<compile_context>
chip_gen: v7x
topology: tpu7x:2x2x1
jax: 0.10.0
libtpu: 0.0.40
codegen_flags: <defaults>
</compile_context>

<pallas_src>
import functools
import math

import jax
import jax.numpy as jnp
from jax import lax
from jax.experimental import pallas as pl
from jax.experimental.pallas import tpu as pltpu

TB = 16          # images per grid step
ROWS0 = 40       # padded rows per image at the input   (32 valid + 8 zero)
ROWS1 = 16       # padded rows per image after pool1    (14 valid + 2 zero)
LANEPAD = 128    # per-slab lane padding (keeps every concat / K-slab 128-aligned)


# ----------------------------------------------------------------------------
# The fused kernel
# ----------------------------------------------------------------------------
def _lenet5a_kernel(x_ref, m1_ref, b1_ref, l1_ref, pw1_ref,
                    m2_ref, b2_ref, s2_ref, q_ref, fb1_ref,
                    w2_ref, fb2_ref, w3_ref, fb3_ref, o_ref):
    f32, bf16 = jnp.float32, jnp.bfloat16

    def mm(a, b):  # MXU matmul, f32 accumulation
        return jnp.dot(a, b, preferred_element_type=f32)

    def kcat(x):
        # (R, 128) f32 -> (R, 5*128) bf16: lane-concat of the 5 kh-shifted slabs.
        # Shifts are sublane rotates on f32 (clean for any shift amount); each
        # slab is cast to bf16 exactly once.  slab_i[r, :] == x[r + i, :].
        n = x.shape[0]
        slabs = [x.astype(bf16)]
        for i in range(1, 5):
            slabs.append(pltpu.roll(x, shift=n - i, axis=0).astype(bf16))
        return jnp.concatenate(slabs, axis=1)

    # ---- conv1 + bias + ReLU : one deep-K (640) matmul ----------------------
    x0 = x_ref[...]                                           # (640, 128) f32
    a1 = jnp.maximum(mm(kcat(x0), m1_ref[...]) + b1_ref[...], 0.0)  # (640, 168)
    a1 = a1.astype(bf16)

    # ---- 2x2 avg pool 1: H-pool + row compaction (left), W-pool (right) -----
    u = mm(l1_ref[...], a1).astype(bf16)                      # (256, 168)
    x1 = mm(u, pw1_ref[...])                                  # (256, 128) f32

    # ---- conv2 + bias + ReLU : one deep-K (640) matmul -----------------------
    a2 = jnp.maximum(mm(kcat(x1), m2_ref[...]) + b2_ref[...], 0.0)  # (256, 160)

    # ---- pool2 row-pair sums, h3-major rows (f32) ----------------------------
    r = mm(s2_ref[...], a2)                                   # (80, 160)

    # ---- fc1 folded with pool2-W + NCHW flatten: 5 tiny aligned matmuls ------
    f = mm(r[0:TB, :], q_ref[0])
    for h3 in range(1, 5):
        f = f + mm(r[h3 * TB:(h3 + 1) * TB, :], q_ref[h3])    # (16, 120)
    z = jnp.maximum(f + fb1_ref[...], 0.0)

    # ---- fc2 + ReLU, fc3 (padded to 128 lanes -> lane-dense HBM store) -------
    z = jnp.maximum(mm(z, w2_ref[...]) + fb2_ref[...], 0.0)   # (16, 84)
    o_ref[...] = (mm(z, w3_ref[...]) + fb3_ref[...]).astype(o_ref.dtype)


# ----------------------------------------------------------------------------
# One-time weight folding (outside jit)
# ----------------------------------------------------------------------------
def prepare_params(params):
    f32, bf16 = jnp.float32, jnp.bfloat16

    def band(w, w_in, w_out):
        # Fold (cout,cin,kh,kw) conv weights into ONE (5*128, w_out*cout) band
        # matrix: rows = (kh, w_in*cin padded to 128), cols = (ow*cout + cout).
        cout, cin, kh, kw = w.shape
        wt = jnp.transpose(w, (2, 3, 1, 0))                   # (kh, kw, cin, cout)
        acc = jnp.zeros((kh, w_in, cin, w_out, cout), f32)
        for j in range(kw):
            sel = jnp.zeros((w_in, w_out), f32).at[
                jnp.arange(w_out) + j, jnp.arange(w_out)].set(1.0)
            acc = acc + sel[None, :, None, :, None] * wt[:, j][:, None, :, None, :]
        acc = acc.reshape(kh, w_in * cin, w_out * cout)
        acc = jnp.pad(acc, ((0, 0), (0, LANEPAD - w_in * cin), (0, 0)))
        return acc.reshape(kh * LANEPAD, w_out * cout)

    m1 = band(params["conv1_w"], 32, 28)                      # (640, 168)
    m2 = band(params["conv2_w"], 14, 10)                      # (640, 160)

    # pool1 H (0.25 * row-pair sum) + row compaction, block-diag over TB images.
    blk = jnp.zeros((ROWS1, ROWS0), f32).at[:14, :28].set(
        0.25 * jnp.repeat(jnp.eye(14, dtype=f32), 2, axis=1))
    l1 = jnp.kron(jnp.eye(TB, dtype=f32), blk)                # (256, 640)

    # pool1 W (pair sum), lanes (ow,6) -> (w2,6), lane-padded to 128.
    pw1 = jnp.kron(jnp.repeat(jnp.eye(14, dtype=f32), 2, axis=0),
                   jnp.eye(6, dtype=f32))                     # (168, 84)
    pw1 = jnp.pad(pw1, ((0, 0), (0, LANEPAD - 84)))

    # pool2 row-pair selector, h3-major rows: row h3*TB + b picks a2 rows
    # b*16 + 2*h3 and b*16 + 2*h3 + 1.
    s2 = jnp.zeros((5 * TB, TB * ROWS1), f32)
    cols = jnp.arange(TB) * ROWS1
    for h3 in range(5):
        for a in range(2):
            s2 = s2.at[h3 * TB + jnp.arange(TB), cols + 2 * h3 + a].set(1.0)

    # fc1 folded with pool2-W + NCHW flatten:
    # q[h3, ow2*16 + c2, n] = 0.25 * fc1_w[n, c2*25 + h3*5 + ow2//2]
    wq = params["fc1_w"].reshape(120, 16, 5, 5)               # (n, c2, h3, w3)
    q = 0.25 * jnp.transpose(wq[:, :, :, jnp.arange(10) // 2],
                             (2, 3, 1, 0)).reshape(5, 160, 120)

    # fc3 padded to 128 output lanes (zero cols / zero bias, sliced in wrapper).
    w3 = jnp.zeros((84, 128), f32).at[:, :10].set(params["fc3_w"].T)
    fb3 = jnp.zeros((1, 128), f32).at[0, :10].set(params["fc3_b"])

    return {
        # bf16 only for the big conv / pool1 matmuls
        "m1": m1.astype(bf16),
        "b1": jnp.tile(params["conv1_b"], 28).reshape(1, 168).astype(f32),
        "l1": l1.astype(bf16),
        "pw1": pw1.astype(bf16),
        "m2": m2.astype(bf16),
        "b2": jnp.tile(params["conv2_b"], 10).reshape(1, 160).astype(f32),
        # tiny FC-side matrices stay f32 (precision; negligible MXU cost)
        "s2": s2,
        "q": q,
        "fb1": params["fc1_b"].reshape(1, 120).astype(f32),
        "w2": params["fc2_w"].T.astype(f32),
        "fb2": params["fc2_b"].reshape(1, 84).astype(f32),
        "w3": w3,
        "fb3": fb3,
    }


# ----------------------------------------------------------------------------
# Forward pass
# ----------------------------------------------------------------------------
_WEIGHT_NAMES = ["m1", "b1", "l1", "pw1", "m2", "b2", "s2", "q",
                 "fb1", "w2", "fb2", "w3", "fb3"]


@jax.jit
def lenet5a_forward(prepared, x_nchw):
    B = x_nchw.shape[0]
    n_steps = max(2, -(-B // TB))          # pad batch; >= 2 steps for megacore
    b_pad = n_steps * TB

    # Layout glue (XLA): NCHW -> rows=(image, h), lanes=(w*3 + c);
    # pad to 40 rows/image, 128 lanes, b_pad images.
    x = jnp.transpose(x_nchw, (0, 2, 3, 1)).reshape(B, 32, 96)
    x = jnp.pad(x, ((0, b_pad - B), (0, ROWS0 - 32), (0, LANEPAD - 96)))
    x = x.reshape(b_pad * ROWS0, LANEPAD)

    def full_spec(arr):
        nd = arr.ndim
        return pl.BlockSpec(arr.shape, lambda i, nd=nd: (0,) * nd)

    per_step_macs = (640 * 640 * 168          # conv1
                     + 256 * 640 * 168        # pool1 H + compaction
                     + 256 * 168 * 128        # pool1 W
                     + 256 * 640 * 160        # conv2
                     + 80 * 256 * 160         # pool2 row pairs
                     + 5 * 16 * 160 * 120     # fc1 (folded)
                     + 16 * 120 * 84 + 16 * 84 * 128)        # fc2, fc3
    flops = 2 * per_step_macs * n_steps
    bytes_accessed = int(x.size) * 4 + b_pad * 128 * 4 + sum(
        int(prepared[n].size) * prepared[n].dtype.itemsize for n in _WEIGHT_NAMES)

    out = pl.pallas_call(
        _lenet5a_kernel,
        out_shape=jax.ShapeDtypeStruct((b_pad, 128), jnp.float32),
        grid_spec=pltpu.PrefetchScalarGridSpec(
            num_scalar_prefetch=0,
            grid=(n_steps,),
            in_specs=[pl.BlockSpec((TB * ROWS0, LANEPAD), lambda i: (i, 0))]
                     + [full_spec(prepared[n]) for n in _WEIGHT_NAMES],
            out_specs=pl.BlockSpec((TB, 128), lambda i: (i, 0)),
        ),
        compiler_params=pltpu.CompilerParams(dimension_semantics=("parallel",)),
        cost_estimate=pl.CostEstimate(flops=int(flops), transcendentals=0,
                                      bytes_accessed=int(bytes_accessed)),
    )(x, *[prepared[n] for n in _WEIGHT_NAMES])

    return out[:B, :10]


# ----------------------------------------------------------------------------
# Parameter init (kaiming_uniform_(nonlinearity='relu'), zero bias)
# ----------------------------------------------------------------------------
def kaiming_uniform(key, shape, fan_in):
    bound = math.sqrt(2.0) * math.sqrt(3.0 / fan_in)
    return jax.random.uniform(key, shape, jnp.float32, -bound, bound)


def init_lenet5a_params(key):
    ks = jax.random.split(key, 5)
    return {
        "conv1_w": kaiming_uniform(ks[0], (6, 3, 5, 5), 3 * 5 * 5),
        "conv1_b": jnp.zeros((6,), jnp.float32),
        "conv2_w": kaiming_uniform(ks[1], (16, 6, 5, 5), 6 * 5 * 5),
        "conv2_b": jnp.zeros((16,), jnp.float32),
        "fc1_w": kaiming_uniform(ks[2], (120, 400), 400),
        "fc1_b": jnp.zeros((120,), jnp.float32),
        "fc2_w": kaiming_uniform(ks[3], (84, 120), 120),
        "fc2_b": jnp.zeros((84,), jnp.float32),
        "fc3_w": kaiming_uniform(ks[4], (10, 84), 84),
        "fc3_b": jnp.zeros((10,), jnp.float32),
    }


# ----------------------------------------------------------------------------
# Pure-JAX reference (PyTorch semantics) for the numerical self-check
# ----------------------------------------------------------------------------
def lenet5a_reference(params, x):
    B = x.shape[0]
    dn1 = lax.conv_dimension_numbers(x.shape, params["conv1_w"].shape,
                                     ("NCHW", "OIHW", "NCHW"))
    y = lax.conv_general_dilated(x, params["conv1_w"], (1, 1), "VALID",
                                 dimension_numbers=dn1)
    y = jnp.maximum(y + params["conv1_b"][None, :, None, None], 0.0)
    y = y.reshape(B, 6, 14, 2, 14, 2).mean(axis=(3, 5))
    dn2 = lax.conv_dimension_numbers(y.shape, params["conv2_w"].shape,
                                     ("NCHW", "OIHW", "NCHW"))
    y = lax.conv_general_dilated(y, params["conv2_w"], (1, 1), "VALID",
                                 dimension_numbers=dn2)
    y = jnp.maximum(y + params["conv2_b"][None, :, None, None], 0.0)
    y = y.reshape(B, 16, 5, 2, 5, 2).mean(axis=(3, 5)).reshape(B, 400)
    y = jnp.maximum(y @ params["fc1_w"].T + params["fc1_b"], 0.0)
    y = jnp.maximum(y @ params["fc2_w"].T + params["fc2_b"], 0.0)
    return y @ params["fc3_w"].T + params["fc3_b"]


if __name__ == "__main__":
    key = jax.random.PRNGKey(0)
    k_param, k_x = jax.random.split(key)
    params = init_lenet5a_params(k_param)
    B = 2
    x = jax.random.normal(k_x, (B, 3, 32, 32), dtype=jnp.float32)

    prepared = prepare_params(params)          # one-time weight folding
    out = lenet5a_forward(prepared, x)
    jax.block_until_ready(out)

    ref = lenet5a_reference(params, x)
    err = float(jnp.max(jnp.abs(out - ref)))
    assert out.shape == (B, 10) and out.dtype == jnp.float32
    # bf16 MXU operands in the conv/pool stages give ~1e-2-scale differences.
    assert err < 2e-1, f"mismatch vs pure-JAX reference: max|diff|={err}"
    print("KERNEL_OK")
</pallas_src>

<mosaic_0001>
module attributes {stable_mosaic.version = 11 : i64} {
  func.func @_lenet5a_kernel(%arg0: i32, %arg1: memref<640x128xf32, #tpu.memory_space<vmem>>, %arg2: memref<640x168xbf16, #tpu.memory_space<vmem>>, %arg3: memref<1x168xf32, #tpu.memory_space<vmem>>, %arg4: memref<256x640xbf16, #tpu.memory_space<vmem>>, %arg5: memref<168x128xbf16, #tpu.memory_space<vmem>>, %arg6: memref<640x160xbf16, #tpu.memory_space<vmem>>, %arg7: memref<1x160xf32, #tpu.memory_space<vmem>>, %arg8: memref<80x256xf32, #tpu.memory_space<vmem>>, %arg9: memref<5x160x120xf32, #tpu.memory_space<vmem>>, %arg10: memref<1x120xf32, #tpu.memory_space<vmem>>, %arg11: memref<120x84xf32, #tpu.memory_space<vmem>>, %arg12: memref<1x84xf32, #tpu.memory_space<vmem>>, %arg13: memref<84x128xf32, #tpu.memory_space<vmem>>, %arg14: memref<1x128xf32, #tpu.memory_space<vmem>>, %arg15: memref<16x128xf32, #tpu.memory_space<vmem>>) attributes {dimension_semantics = [#tpu.dimension_semantics<parallel>], iteration_bounds = array<i64: 2>, scalar_prefetch = 0 : i64, scratch_operands = 0 : i64, tpu.core_type = #tpu.core_type<tc>, window_params = [{transform_indices = @transform_0, window_bounds = array<i64: 640, 128>}, {pipeline_mode = #tpu.pipeline_mode<synchronous>, transform_indices = @transform_1, window_bounds = array<i64: 640, 168>}, {pipeline_mode = #tpu.pipeline_mode<synchronous>, transform_indices = @transform_2, window_bounds = array<i64: 1, 168>}, {pipeline_mode = #tpu.pipeline_mode<synchronous>, transform_indices = @transform_3, window_bounds = array<i64: 256, 640>}, {pipeline_mode = #tpu.pipeline_mode<synchronous>, transform_indices = @transform_4, window_bounds = array<i64: 168, 128>}, {pipeline_mode = #tpu.pipeline_mode<synchronous>, transform_indices = @transform_5, window_bounds = array<i64: 640, 160>}, {pipeline_mode = #tpu.pipeline_mode<synchronous>, transform_indices = @transform_6, window_bounds = array<i64: 1, 160>}, {pipeline_mode = #tpu.pipeline_mode<synchronous>, transform_indices = @transform_7, window_bounds = array<i64: 80, 256>}, {pipeline_mode = #tpu.pipeline_mode<synchronous>, transform_indices = @transform_8, window_bounds = array<i64: 5, 160, 120>}, {pipeline_mode = #tpu.pipeline_mode<synchronous>, transform_indices = @transform_9, window_bounds = array<i64: 1, 120>}, {pipeline_mode = #tpu.pipeline_mode<synchronous>, transform_indices = @transform_10, window_bounds = array<i64: 120, 84>}, {pipeline_mode = #tpu.pipeline_mode<synchronous>, transform_indices = @transform_11, window_bounds = array<i64: 1, 84>}, {pipeline_mode = #tpu.pipeline_mode<synchronous>, transform_indices = @transform_12, window_bounds = array<i64: 84, 128>}, {pipeline_mode = #tpu.pipeline_mode<synchronous>, transform_indices = @transform_13, window_bounds = array<i64: 1, 128>}, {transform_indices = @transform_14, window_bounds = array<i64: 16, 128>}]} {
    %c0 = arith.constant 0 : index
    %c0_0 = arith.constant 0 : index
    %0 = vector.load %arg1[%c0, %c0_0] : memref<640x128xf32, #tpu.memory_space<vmem>>, vector<640x128xf32>
    %1 = arith.truncf %0 : vector<640x128xf32> to vector<640x128xbf16>
    %c639_i32 = arith.constant 639 : i32
    %2 = tpu.dynamic_rotate %0 by %c639_i32 dim 0 : vector<640x128xf32>, i32 -> vector<640x128xf32>
    %3 = arith.truncf %2 : vector<640x128xf32> to vector<640x128xbf16>
    %c638_i32 = arith.constant 638 : i32
    %4 = tpu.dynamic_rotate %0 by %c638_i32 dim 0 : vector<640x128xf32>, i32 -> vector<640x128xf32>
    %5 = arith.truncf %4 : vector<640x128xf32> to vector<640x128xbf16>
    %c637_i32 = arith.constant 637 : i32
    %6 = tpu.dynamic_rotate %0 by %c637_i32 dim 0 : vector<640x128xf32>, i32 -> vector<640x128xf32>
    %7 = arith.truncf %6 : vector<640x128xf32> to vector<640x128xbf16>
    %c636_i32 = arith.constant 636 : i32
    %8 = tpu.dynamic_rotate %0 by %c636_i32 dim 0 : vector<640x128xf32>, i32 -> vector<640x128xf32>
    %9 = arith.truncf %8 : vector<640x128xf32> to vector<640x128xbf16>
    %10 = tpu.concatenate %1, %3, %5, %7, %9 in 1 : vector<640x128xbf16>, vector<640x128xbf16>, vector<640x128xbf16>, vector<640x128xbf16>, vector<640x128xbf16> -> vector<640x640xbf16>
    %c0_1 = arith.constant 0 : index
    %c0_2 = arith.constant 0 : index
    %11 = vector.load %arg2[%c0_1, %c0_2] : memref<640x168xbf16, #tpu.memory_space<vmem>>, vector<640x168xbf16>
    %cst = arith.constant dense<0.000000e+00> : vector<640x168xf32>
    %12 = tpu.matmul %10, %11, %cst {dimension_numbers = #tpu.dot_dimension_numbers<[1], [0], [0], [1], [0, 0, 1, 1], [], []>} : vector<640x640xbf16>, vector<640x168xbf16>, vector<640x168xf32> -> vector<640x168xf32>
    %c0_3 = arith.constant 0 : index
    %c0_4 = arith.constant 0 : index
    %13 = vector.load %arg3[%c0_3, %c0_4] : memref<1x168xf32, #tpu.memory_space<vmem>>, vector<1x168xf32>
    %14 = vector.broadcast %13 : vector<1x168xf32> to vector<640x168xf32>
    %15 = arith.addf %12, %14 : vector<640x168xf32>
    %cst_5 = arith.constant 0.000000e+00 : f32
    %16 = vector.broadcast %cst_5 : f32 to vector<640x168xf32>
    %17 = arith.maximumf %15, %16 : vector<640x168xf32>
    %18 = arith.truncf %17 : vector<640x168xf32> to vector<640x168xbf16>
    %c0_6 = arith.constant 0 : index
    %c0_7 = arith.constant 0 : index
    %19 = vector.load %arg4[%c0_6, %c0_7] : memref<256x640xbf16, #tpu.memory_space<vmem>>, vector<256x640xbf16>
    %cst_8 = arith.constant dense<0.000000e+00> : vector<256x168xf32>
    %20 = tpu.matmul %19, %18, %cst_8 {dimension_numbers = #tpu.dot_dimension_numbers<[1], [0], [0], [1], [0, 0, 1, 1], [], []>} : vector<256x640xbf16>, vector<640x168xbf16>, vector<256x168xf32> -> vector<256x168xf32>
    %21 = arith.truncf %20 : vector<256x168xf32> to vector<256x168xbf16>
    %c0_9 = arith.constant 0 : index
    %c0_10 = arith.constant 0 : index
    %22 = vector.load %arg5[%c0_9, %c0_10] : memref<168x128xbf16, #tpu.memory_space<vmem>>, vector<168x128xbf16>
    %cst_11 = arith.constant dense<0.000000e+00> : vector<256x128xf32>
    %23 = tpu.matmul %21, %22, %cst_11 {dimension_numbers = #tpu.dot_dimension_numbers<[1], [0], [0], [1], [0, 0, 1, 1], [], []>} : vector<256x168xbf16>, vector<168x128xbf16>, vector<256x128xf32> -> vector<256x128xf32>
    %24 = arith.truncf %23 : vector<256x128xf32> to vector<256x128xbf16>
    %c255_i32 = arith.constant 255 : i32
    %25 = tpu.dynamic_rotate %23 by %c255_i32 dim 0 : vector<256x128xf32>, i32 -> vector<256x128xf32>
    %26 = arith.truncf %25 : vector<256x128xf32> to vector<256x128xbf16>
    %c254_i32 = arith.constant 254 : i32
    %27 = tpu.dynamic_rotate %23 by %c254_i32 dim 0 : vector<256x128xf32>, i32 -> vector<256x128xf32>
    %28 = arith.truncf %27 : vector<256x128xf32> to vector<256x128xbf16>
    %c253_i32 = arith.constant 253 : i32
    %29 = tpu.dynamic_rotate %23 by %c253_i32 dim 0 : vector<256x128xf32>, i32 -> vector<256x128xf32>
    %30 = arith.truncf %29 : vector<256x128xf32> to vector<256x128xbf16>
    %c252_i32 = arith.constant 252 : i32
    %31 = tpu.dynamic_rotate %23 by %c252_i32 dim 0 : vector<256x128xf32>, i32 -> vector<256x128xf32>
    %32 = arith.truncf %31 : vector<256x128xf32> to vector<256x128xbf16>
    %33 = tpu.concatenate %24, %26, %28, %30, %32 in 1 : vector<256x128xbf16>, vector<256x128xbf16>, vector<256x128xbf16>, vector<256x128xbf16>, vector<256x128xbf16> -> vector<256x640xbf16>
    %c0_12 = arith.constant 0 : index
    %c0_13 = arith.constant 0 : index
    %34 = vector.load %arg6[%c0_12, %c0_13] : memref<640x160xbf16, #tpu.memory_space<vmem>>, vector<640x160xbf16>
    %cst_14 = arith.constant dense<0.000000e+00> : vector<256x160xf32>
    %35 = tpu.matmul %33, %34, %cst_14 {dimension_numbers = #tpu.dot_dimension_numbers<[1], [0], [0], [1], [0, 0, 1, 1], [], []>} : vector<256x640xbf16>, vector<640x160xbf16>, vector<256x160xf32> -> vector<256x160xf32>
    %c0_15 = arith.constant 0 : index
    %c0_16 = arith.constant 0 : index
    %36 = vector.load %arg7[%c0_15, %c0_16] : memref<1x160xf32, #tpu.memory_space<vmem>>, vector<1x160xf32>
    %37 = vector.broadcast %36 : vector<1x160xf32> to vector<256x160xf32>
    %38 = arith.addf %35, %37 : vector<256x160xf32>
    %cst_17 = arith.constant 0.000000e+00 : f32
    %39 = vector.broadcast %cst_17 : f32 to vector<256x160xf32>
    %40 = arith.maximumf %38, %39 : vector<256x160xf32>
    %c0_18 = arith.constant 0 : index
    %c0_19 = arith.constant 0 : index
    %41 = vector.load %arg8[%c0_18, %c0_19] : memref<80x256xf32, #tpu.memory_space<vmem>>, vector<80x256xf32>
    %cst_20 = arith.constant dense<0.000000e+00> : vector<80x160xf32>
    %42 = tpu.matmul %41, %40, %cst_20 {dimension_numbers = #tpu.dot_dimension_numbers<[1], [0], [0], [1], [0, 0, 1, 1], [], []>} : vector<80x256xf32>, vector<256x160xf32>, vector<80x160xf32> -> vector<80x160xf32>
    %43 = vector.extract_strided_slice %42 {offsets = [0, 0], sizes = [16, 160], strides = [1, 1]} : vector<80x160xf32> to vector<16x160xf32>
    %c0_21 = arith.constant 0 : index
    %c0_22 = arith.constant 0 : index
    %c0_23 = arith.constant 0 : index
    %44 = vector.load %arg9[%c0_21, %c0_22, %c0_23] : memref<5x160x120xf32, #tpu.memory_space<vmem>>, vector<1x160x120xf32>
    %45 = vector.shape_cast %44 : vector<1x160x120xf32> to vector<160x120xf32>
    %cst_24 = arith.constant dense<0.000000e+00> : vector<16x120xf32>
    %46 = tpu.matmul %43, %45, %cst_24 {dimension_numbers = #tpu.dot_dimension_numbers<[1], [0], [0], [1], [0, 0, 1, 1], [], []>} : vector<16x160xf32>, vector<160x120xf32>, vector<16x120xf32> -> vector<16x120xf32>
    %47 = vector.extract_strided_slice %42 {offsets = [16, 0], sizes = [16, 160], strides = [1, 1]} : vector<80x160xf32> to vector<16x160xf32>
    %c1 = arith.constant 1 : index
    %c0_25 = arith.constant 0 : index
    %c0_26 = arith.constant 0 : index
    %48 = vector.load %arg9[%c1, %c0_25, %c0_26] : memref<5x160x120xf32, #tpu.memory_space<vmem>>, vector<1x160x120xf32>
    %49 = vector.shape_cast %48 : vector<1x160x120xf32> to vector<160x120xf32>
    %cst_27 = arith.constant dense<0.000000e+00> : vector<16x120xf32>
    %50 = tpu.matmul %47, %49, %cst_27 {dimension_numbers = #tpu.dot_dimension_numbers<[1], [0], [0], [1], [0, 0, 1, 1], [], []>} : vector<16x160xf32>, vector<160x120xf32>, vector<16x120xf32> -> vector<16x120xf32>
    %51 = arith.addf %46, %50 : vector<16x120xf32>
    %52 = vector.extract_strided_slice %42 {offsets = [32, 0], sizes = [16, 160], strides = [1, 1]} : vector<80x160xf32> to vector<16x160xf32>
    %c2 = arith.constant 2 : index
    %c0_28 = arith.constant 0 : index
    %c0_29 = arith.constant 0 : index
    %53 = vector.load %arg9[%c2, %c0_28, %c0_29] : memref<5x160x120xf32, #tpu.memory_space<vmem>>, vector<1x160x120xf32>
    %54 = vector.shape_cast %53 : vector<1x160x120xf32> to vector<160x120xf32>
    %cst_30 = arith.constant dense<0.000000e+00> : vector<16x120xf32>
    %55 = tpu.matmul %52, %54, %cst_30 {dimension_numbers = #tpu.dot_dimension_numbers<[1], [0], [0], [1], [0, 0, 1, 1], [], []>} : vector<16x160xf32>, vector<160x120xf32>, vector<16x120xf32> -> vector<16x120xf32>
    %56 = arith.addf %51, %55 : vector<16x120xf32>
    %57 = vector.extract_strided_slice %42 {offsets = [48, 0], sizes = [16, 160], strides = [1, 1]} : vector<80x160xf32> to vector<16x160xf32>
    %c3 = arith.constant 3 : index
    %c0_31 = arith.constant 0 : index
    %c0_32 = arith.constant 0 : index
    %58 = vector.load %arg9[%c3, %c0_31, %c0_32] : memref<5x160x120xf32, #tpu.memory_space<vmem>>, vector<1x160x120xf32>
    %59 = vector.shape_cast %58 : vector<1x160x120xf32> to vector<160x120xf32>
    %cst_33 = arith.constant dense<0.000000e+00> : vector<16x120xf32>
    %60 = tpu.matmul %57, %59, %cst_33 {dimension_numbers = #tpu.dot_dimension_numbers<[1], [0], [0], [1], [0, 0, 1, 1], [], []>} : vector<16x160xf32>, vector<160x120xf32>, vector<16x120xf32> -> vector<16x120xf32>
    %61 = arith.addf %56, %60 : vector<16x120xf32>
    %62 = vector.extract_strided_slice %42 {offsets = [64, 0], sizes = [16, 160], strides = [1, 1]} : vector<80x160xf32> to vector<16x160xf32>
    %c4 = arith.constant 4 : index
    %c0_34 = arith.constant 0 : index
    %c0_35 = arith.constant 0 : index
    %63 = vector.load %arg9[%c4, %c0_34, %c0_35] : memref<5x160x120xf32, #tpu.memory_space<vmem>>, vector<1x160x120xf32>
    %64 = vector.shape_cast %63 : vector<1x160x120xf32> to vector<160x120xf32>
    %cst_36 = arith.constant dense<0.000000e+00> : vector<16x120xf32>
    %65 = tpu.matmul %62, %64, %cst_36 {dimension_numbers = #tpu.dot_dimension_numbers<[1], [0], [0], [1], [0, 0, 1, 1], [], []>} : vector<16x160xf32>, vector<160x120xf32>, vector<16x120xf32> -> vector<16x120xf32>
    %66 = arith.addf %61, %65 : vector<16x120xf32>
    %c0_37 = arith.constant 0 : index
    %c0_38 = arith.constant 0 : index
    %67 = vector.load %arg10[%c0_37, %c0_38] : memref<1x120xf32, #tpu.memory_space<vmem>>, vector<1x120xf32>
    %68 = vector.broadcast %67 : vector<1x120xf32> to vector<16x120xf32>
    %69 = arith.addf %66, %68 : vector<16x120xf32>
    %cst_39 = arith.constant 0.000000e+00 : f32
    %70 = vector.broadcast %cst_39 : f32 to vector<16x120xf32>
    %71 = arith.maximumf %69, %70 : vector<16x120xf32>
    %c0_40 = arith.constant 0 : index
    %c0_41 = arith.constant 0 : index
    %72 = vector.load %arg11[%c0_40, %c0_41] : memref<120x84xf32, #tpu.memory_space<vmem>>, vector<120x84xf32>
    %cst_42 = arith.constant dense<0.000000e+00> : vector<16x84xf32>
    %73 = tpu.matmul %71, %72, %cst_42 {dimension_numbers = #tpu.dot_dimension_numbers<[1], [0], [0], [1], [0, 0, 1, 1], [], []>} : vector<16x120xf32>, vector<120x84xf32>, vector<16x84xf32> -> vector<16x84xf32>
    %c0_43 = arith.constant 0 : index
    %c0_44 = arith.constant 0 : index
    %74 = vector.load %arg12[%c0_43, %c0_44] : memref<1x84xf32, #tpu.memory_space<vmem>>, vector<1x84xf32>
    %75 = vector.broadcast %74 : vector<1x84xf32> to vector<16x84xf32>
    %76 = arith.addf %73, %75 : vector<16x84xf32>
    %cst_45 = arith.constant 0.000000e+00 : f32
    %77 = vector.broadcast %cst_45 : f32 to vector<16x84xf32>
    %78 = arith.maximumf %76, %77 : vector<16x84xf32>
    %c0_46 = arith.constant 0 : index
    %c0_47 = arith.constant 0 : index
    %79 = vector.load %arg13[%c0_46, %c0_47] : memref<84x128xf32, #tpu.memory_space<vmem>>, vector<84x128xf32>
    %cst_48 = arith.constant dense<0.000000e+00> : vector<16x128xf32>
    %80 = tpu.matmul %78, %79, %cst_48 {dimension_numbers = #tpu.dot_dimension_numbers<[1], [0], [0], [1], [0, 0, 1, 1], [], []>} : vector<16x84xf32>, vector<84x128xf32>, vector<16x128xf32> -> vector<16x128xf32>
    %c0_49 = arith.constant 0 : index
    %c0_50 = arith.constant 0 : index
    %81 = vector.load %arg14[%c0_49, %c0_50] : memref<1x128xf32, #tpu.memory_space<vmem>>, vector<1x128xf32>
    %82 = vector.broadcast %81 : vector<1x128xf32> to vector<16x128xf32>
    %83 = arith.addf %80, %82 : vector<16x128xf32>
    %c0_51 = arith.constant 0 : index
    %c0_52 = arith.constant 0 : index
    %84 = vector.load %arg15[%c0_51, %c0_52] : memref<16x128xf32, #tpu.memory_space<vmem>>, vector<16x128xf32>
    tpu.vector_store %arg15[%c0_51, %c0_52], %83 {strides = array<i32>} : memref<16x128xf32, #tpu.memory_space<vmem>>, vector<16x128xf32>,
    return
  }
  func.func @transform_0(%arg0: i32) -> (i32, i32) {
    %c0_i32 = arith.constant 0 : i32
    %c0_i32_0 = arith.constant 0 : i32
    return %arg0, %c0_i32 : i32, i32
  }
  func.func @transform_1(%arg0: i32) -> (i32, i32) {
    %c0_i32 = arith.constant 0 : i32
    %c0_i32_0 = arith.constant 0 : i32
    %c0_i32_1 = arith.constant 0 : i32
    return %c0_i32, %c0_i32_0 : i32, i32
  }
  func.func @transform_2(%arg0: i32) -> (i32, i32) {
    %c0_i32 = arith.constant 0 : i32
    %c0_i32_0 = arith.constant 0 : i32
    %c0_i32_1 = arith.constant 0 : i32
    return %c0_i32, %c0_i32_0 : i32, i32
  }
  func.func @transform_3(%arg0: i32) -> (i32, i32) {
    %c0_i32 = arith.constant 0 : i32
    %c0_i32_0 = arith.constant 0 : i32
    %c0_i32_1 = arith.constant 0 : i32
    return %c0_i32, %c0_i32_0 : i32, i32
  }
  func.func @transform_4(%arg0: i32) -> (i32, i32) {
    %c0_i32 = arith.constant 0 : i32
    %c0_i32_0 = arith.constant 0 : i32
    %c0_i32_1 = arith.constant 0 : i32
    return %c0_i32, %c0_i32_0 : i32, i32
  }
  func.func @transform_5(%arg0: i32) -> (i32, i32) {
    %c0_i32 = arith.constant 0 : i32
    %c0_i32_0 = arith.constant 0 : i32
    %c0_i32_1 = arith.constant 0 : i32
    return %c0_i32, %c0_i32_0 : i32, i32
  }
  func.func @transform_6(%arg0: i32) -> (i32, i32) {
    %c0_i32 = arith.constant 0 : i32
    %c0_i32_0 = arith.constant 0 : i32
    %c0_i32_1 = arith.constant 0 : i32
    return %c0_i32, %c0_i32_0 : i32, i32
  }
  func.func @transform_7(%arg0: i32) -> (i32, i32) {
    %c0_i32 = arith.constant 0 : i32
    %c0_i32_0 = arith.constant 0 : i32
    %c0_i32_1 = arith.constant 0 : i32
    return %c0_i32, %c0_i32_0 : i32, i32
  }
  func.func @transform_8(%arg0: i32) -> (i32, i32, i32) {
    %c0_i32 = arith.constant 0 : i32
    %c0_i32_0 = arith.constant 0 : i32
    %c0_i32_1 = arith.constant 0 : i32
    %c0_i32_2 = arith.constant 0 : i32
    return %c0_i32, %c0_i32_0, %c0_i32_1 : i32, i32, i32
  }
  func.func @transform_9(%arg0: i32) -> (i32, i32) {
    %c0_i32 = arith.constant 0 : i32
    %c0_i32_0 = arith.constant 0 : i32
    %c0_i32_1 = arith.constant 0 : i32
    return %c0_i32, %c0_i32_0 : i32, i32
  }
  func.func @transform_10(%arg0: i32) -> (i32, i32) {
    %c0_i32 = arith.constant 0 : i32
    %c0_i32_0 = arith.constant 0 : i32
    %c0_i32_1 = arith.constant 0 : i32
    return %c0_i32, %c0_i32_0 : i32, i32
  }
  func.func @transform_11(%arg0: i32) -> (i32, i32) {
    %c0_i32 = arith.constant 0 : i32
    %c0_i32_0 = arith.constant 0 : i32
    %c0_i32_1 = arith.constant 0 : i32
    return %c0_i32, %c0_i32_0 : i32, i32
  }
  func.func @transform_12(%arg0: i32) -> (i32, i32) {
    %c0_i32 = arith.constant 0 : i32
    %c0_i32_0 = arith.constant 0 : i32
    %c0_i32_1 = arith.constant 0 : i32
    return %c0_i32, %c0_i32_0 : i32, i32
  }
  func.func @transform_13(%arg0: i32) -> (i32, i32) {
    %c0_i32 = arith.constant 0 : i32
    %c0_i32_0 = arith.constant 0 : i32
    %c0_i32_1 = arith.constant 0 : i32
    return %c0_i32, %c0_i32_0 : i32, i32
  }
  func.func @transform_14(%arg0: i32) -> (i32, i32) {
    %c0_i32 = arith.constant 0 : i32
    %c0_i32_0 = arith.constant 0 : i32
    return %arg0, %c0_i32 : i32, i32
  }
}

</mosaic_0001>

<bundles_post_ra>
// kernel: lenet5a_forward.1
= control target key start
LH: loop header
LB: loop body
LE: loop exit
PB: predicated region body
PF: predicated region fallthrough
CT: control target
= control target key end

     0   :  { %s9326_s29 = smov 0   ;;  %s13075_s0 = inlined_call_operand.vmem [shape: f32[1280,128], index: 0, kind: input, shape index: {}]   ;;  %s13076_s1 = inlined_call_operand.vmem [shape: bf16[640,168], index: 1, kind: input, shape index: {}]   ;;  %s13077_s2 = inlined_call_operand.vmem [shape: f32[1,168], index: 2, kind: input, shape index: {}]   ;;  %s13078_s3 = inlined_call_operand.vmem [shape: bf16[256,640], index: 3, kind: input, shape index: {}]   ;;  %s13079_s4 = inlined_call_operand.vmem [shape: bf16[168,128], index: 4, kind: input, shape index: {}]   ;;  %s13080_s5 = inlined_call_operand.vmem [shape: bf16[640,160], index: 5, kind: input, shape index: {}]   ;;  %s13081_s6 = inlined_call_operand.vmem [shape: f32[1,160], index: 6, kind: input, shape index: {}]   ;;  %s13082_s7 = inlined_call_operand.vmem [shape: f32[80,256], index: 7, kind: input, shape index: {}]   ;;  %s13083_s8 = inlined_call_operand.vmem [shape: f32[5,160,120], index: 8, kind: input, shape index: {}]   ;;  %s13084_s9 = inlined_call_operand.vmem [shape: f32[1,120], index: 9, kind: input, shape index: {}]   ;;  %s13085_s10 = inlined_call_operand.vmem [shape: f32[120,84], index: 10, kind: input, shape index: {}]   ;;  %s13086_s11 = inlined_call_operand.vmem [shape: f32[1,84], index: 11, kind: input, shape index: {}]   ;;  %s13087_s12 = inlined_call_operand.vmem [shape: f32[84,128], index: 12, kind: input, shape index: {}]   ;;  %s13088_s13 = inlined_call_operand.vmem [shape: f32[1,128], index: 13, kind: input, shape index: {}]   ;;  %s13089_s14 = inlined_call_operand.vmem [shape: f32[32,128], index: 14, kind: output, shape index: {}]  }
   0x1 LB: > { %s7260_s30 = sadd.s32 4294967295, %s9247_s29   ;;  %p7264_p0 = scmp.ge.s32.totalorder %s9247_s29, 1  ;;  %s9247_s29 = sphi %s9326_s29, %s24_s29  }
   0x2   : > { %p413_p1 = scmp.lt.s32.totalorder %s9247_s29, 3 }
   0x4   : > { %p414_p2 = pnand %p7264_p0, %p413_p1 }
   0x6   : > { %417 = sbr.rel (%p414_p2) target bundleno = 3323 (0xcfb), region = 76 }
   0xd   : > { %v8795_v0 = vld [vmem:[%s13076_s1 + $0x4] ss:$8 sps:$4 sm:$0xff]   ;;  %v8797_v1 = vld [vmem:[%s13076_s1] ss:$8 sps:$4 sm:$0xff]   ;;  %v8798_v2 = vld [vmem:[%s13076_s1 + $0x14] ss:$8 sps:$4 sm:$0xff]   ;;  %v672_v9 = vlaneseq }
   0xe   : > { %1890 = vmatprep.subr.bf16.mxu0 %v8795_v0  ;;  %v8800_v3 = vld [vmem:[%s13076_s1 + $0x10] ss:$8 sps:$4 sm:$0xff]   ;;  %s459_s23 = smul.u32 80, %s7260_s30  ;;  %v8801_v4 = vld [vmem:[%s13076_s1 + $0x24] ss:$8 sps:$4 sm:$0xff]   ;;  %vm4685_vm4 = vcmask 1043456  }
   0xf   : > { %1891 = vmatpush1.bf16.msra.mxu0 %v8797_v1  ;;  %v8803_v5 = vld [vmem:[%s13076_s1 + $0x20] ss:$8 sps:$4 sm:$0xff]   ;;  %v8804_v6 = vld [vmem:[%s13076_s1 + $0x34] ss:$8 sps:$4 sm:$0xff]   ;;  %v8806_v7 = vld [vmem:[%s13076_s1 + $0x30] ss:$8 sps:$4 sm:$0xff]  }
  0x10   : > { %1892 = vmatprep.subr.bf16.mxu0 %v8798_v2  ;;  %p460_p3 = scmp.lt.s32.totalorder %s459_s23, 159  ;;  %v8807_v8 = vld [vmem:[%s13076_s1 + $0x44] ss:$8 sps:$4 sm:$0xff]   ;;  %v8809_v10 = vld [vmem:[%s13076_s1 + $0x40] ss:$8 sps:$4 sm:$0xff]   ;;  %v9369_v12 = vshrl.u32 %v672_v9, 7 }
  0x11   : > { %v8810_v11 = vld [vmem:[%s13076_s1 + $0x54] ss:$8 sps:$4 sm:$0xff]   ;;  %v8812_v13 = vld [vmem:[%s13076_s1 + $0x50] ss:$8 sps:$4 sm:$0xff]   ;;  %v8813_v14 = vld [vmem:[%s13076_s1 + $0x64] ss:$8 sps:$4 sm:$0xff]  }
  0x12   : > { %s13404_s23 = smov (!%p460_p3, %s459_s23), 159  ;;  %vm674_vm0 = vcmp.lt.s32.totalorder %v9369_v12, 7  ;;  %v8815_v20 = vld [vmem:[%s13076_s1 + $0x60] ss:$8 sps:$4 sm:$0xff]   ;;  %v8816_v22 = vld [vmem:[%s13076_s1 + $0x74] ss:$8 sps:$4 sm:$0xff]  }
  0x13   : > { %1893 = vmatpush1.bf16.msra.mxu0 %v8800_v3  ;;  %s7265_s22 = sshll.u32 %s13404_s23, 3  ;;  %v8818_v26 = vld [vmem:[%s13076_s1 + $0x70] ss:$8 sps:$4 sm:$0xff]   ;;  %v8819_v27 = vld [vmem:[%s13076_s1 + $0x84] ss:$8 sps:$4 sm:$0xff]   ;;  %vm1076_vm1 = vcmp.lt.s32.totalorder %v9369_v12, 5 }
  0x14   : > { %1894 = vmatprep.subr.bf16.mxu0 %v8801_v4  ;;  %s9374_s28 = scalar_lea.vmem %s13075_s0, %s7265_s22  ;;  %v8821_v28 = vld [vmem:[%s13076_s1 + $0x80] ss:$8 sps:$4 sm:$0xff]   ;;  %v8822_v29 = vld [vmem:[%s13076_s1 + $0x94] ss:$8 sps:$4 sm:$0xff]   ;;  %v8824_v30 = vld [vmem:[%s13076_s1 + $0x90] ss:$8 sps:$4 sm:$0xff]  }
  0x15   : > { %v9383_v15 = vld [vmem:[%s9374_s28] sm:$0xff]  ;;  %v9386_v16 = vld [vmem:[%s9374_s28 + $0x8] sm:$0xff]  ;;  %v9390_v17 = vld [vmem:[%s9374_s28 + $0x10] sm:$0xff]  ;;  %vm875_vm2 = vcmp.lt.s32.totalorder %v9369_v12, 6  ;;  %vm1277_vm3 = vcmp.lt.s32.totalorder %v9369_v12, 4  ;;  %vm4636_vm5 = vcmask 326656  }
  0x16   : > { %v13090_v18 = vrot.slane %v9383_v15, 1  ;;  %v593_v19 = vrot.slane %v9386_v16, 1  ;;  %v594_v21 = vrot.slane %v9390_v17, 1  ;;  %v8825_v31 = vld [vmem:[%s13076_s1 + $0xa4] ss:$8 sps:$4 sm:$0xff]   ;;  %v475_v40 = vld [vmem:[%s9374_s28 + $0x18] sm:$0xff]  ;;  %v552_v53 = vpack.c.bf16 %v9386_v16, %v9383_v15 }
  0x17   : > { %1895 = vmatpush1.bf16.msra.mxu0 %v8803_v5  ;;  %v8827_v32 = vld [vmem:[%s13076_s1 + $0xa0] ss:$8 sps:$4 sm:$0xff]   ;;  %v8828_v33 = vld [vmem:[%s13076_s1 + $0xb4] ss:$8 sps:$4 sm:$0xff]   ;;  %v8830_v34 = vld [vmem:[%s13076_s1 + $0xb0] ss:$8 sps:$4 sm:$0xff]   ;;  %v553_v1 = vpack.c.bf16 %v475_v40, %v9390_v17 }
  0x18   : > { %1896 = vmatprep.subr.bf16.mxu0 %v8804_v6  ;;  %v753_v23 = vsel %vm674_vm0, %v13090_v18, %v593_v19  ;;  %v752_v24 = vsel %vm674_vm0, %v593_v19, %v594_v21  ;;  %v8831_v35 = vld [vmem:[%s13076_s1 + $0xc4] ss:$8 sps:$4 sm:$0xff]   ;;  %v8833_v36 = vld [vmem:[%s13076_s1 + $0xc0] ss:$8 sps:$4 sm:$0xff]   ;;  %v8834_v37 = vld [vmem:[%s13076_s1 + $0xd4] ss:$8 sps:$4 sm:$0xff]  }
  0x19   : > { %v755_v25 = vpack.c.bf16 %v752_v24, %v753_v23  ;;  %v8836_v38 = vld [vmem:[%s13076_s1 + $0xd0] ss:$8 sps:$4 sm:$0xff]   ;;  %v8837_v39 = vld [vmem:[%s13076_s1 + $0xe4] ss:$8 sps:$4 sm:$0xff]   ;;  %v8839_v42 = vld [vmem:[%s13076_s1 + $0xe0] ss:$8 sps:$4 sm:$0xff]  }
  0x1a   : > { %v476_v41 = vld [vmem:[%s9374_s28 + $0x20] sm:$0xff]  ;;  %v8840_v43 = vld [vmem:[%s13076_s1 + $0xf4] ss:$8 sps:$4 sm:$0xff]   ;;  %v595_v44 = vrot.slane %v475_v40, 1  ;;  %v8842_v46 = vld [vmem:[%s13076_s1 + $0xf0] ss:$8 sps:$4 sm:$0xff]  }
  0x1b   : > { %1897 = vmatpush1.bf16.msra.mxu0 %v8806_v7  ;;  %1922 = vmatprep.mubr.bf16.mxu0 %v755_v25  ;;  %v596_v45 = vrot.slane %v476_v41, 1  ;;  %v8845_v47 = vld [vmem:[%s13076_s1 + $0x104] ss:$8 sps:$4 sm:$0xff]   ;;  %v9465_v49 = vld [vmem:[%s9374_s28 + $0x30] sm:$0xff]  ;;  %v8843_v52 = vld [vmem:[%s13076_s1 + $0x100] ss:$8 sps:$4 sm:$0xff]  }
  0x1c   : > { %1898 = vmatprep.subr.bf16.mxu0 %v8807_v8  ;;  %v477_v48 = vld [vmem:[%s9374_s28 + $0x28] sm:$0xff]  ;;  %v751_v51 = vsel %vm674_vm0, %v594_v21, %v595_v44  ;;  %v8848_v54 = vld [vmem:[%s13076_s1 + $0x114] ss:$8 sps:$4 sm:$0xff]   ;;  %v598_v57 = vrot.slane %v9465_v49, 1  ;;  %v8846_v58 = vld [vmem:[%s13076_s1 + $0x110] ss:$8 sps:$4 sm:$0xff]  }
  0x1d   : > { %v750_v50 = vsel %vm674_vm0, %v595_v44, %v596_v45  ;;  %v597_v56 = vrot.slane %v477_v48, 1  ;;  %v8851_v59 = vld [vmem:[%s13076_s1 + $0x124] ss:$8 sps:$4 sm:$0xff]   ;;  %v479_v60 = vld [vmem:[%s9374_s28 + $0x38] sm:$0xff]  ;;  %v8849_v0 = vld [vmem:[%s13076_s1 + $0x120] ss:$8 sps:$4 sm:$0xff]   ;;  %v554_v19 = vpack.c.bf16 %v477_v48, %v476_v41 }
  0x1e   : > { %v756_v55 = vpack.c.bf16 %v750_v50, %v751_v51  ;;  %v480_v61 = vld [vmem:[%s9374_s28 + $0x40] sm:$0xff]  ;;  %v8854_v2 = vld [vmem:[%s13076_s1 + $0x134] ss:$8 sps:$4 sm:$0xff]   ;;  %v481_v4 = vld [vmem:[%s9374_s28 + $0x48] sm:$0xff]  ;;  %v599_v6 = vrot.slane %v479_v60, 1  ;;  %vm6507_vm6 = vcmask 261120  }
  0x1f   : > { %1899 = vmatpush1.bf16.msra.mxu0 %v8809_v10  ;;  %v748_v62 = vsel %vm674_vm0, %v597_v56, %v598_v57  ;;  %v749_v63 = vsel %vm674_vm0, %v596_v45, %v597_v56  ;;  %v9501_v5 = vld [vmem:[%s9374_s28 + $0x50] sm:$0xff]  ;;  %v600_v7 = vrot.slane %v480_v61, 1  ;;  %v8857_v9 = vld [vmem:[%s13076_s1 + $0x144] ss:$8 sps:$4 sm:$0xff]   ;;  %v483_v16 = vld [vmem:[%s9374_s28 + $0x58] sm:$0xff]  ;;  %v556_v40 = vpack.c.bf16 %v481_v4, %v480_v61  ;;  %s7266_s20 = sshll.u32 %s7260_s30, 1 }
  0x20   : > { %1900 = vmatprep.subr.bf16.mxu0 %v8810_v11  ;;  %v757_v3 = vpack.c.bf16 %v748_v62, %v749_v63  ;;  %v8852_v8 = vld [vmem:[%s13076_s1 + $0x130] ss:$8 sps:$4 sm:$0xff]   ;;  %v747_v11 = vsel %vm674_vm0, %v598_v57, %v599_v6  ;;  %v8855_v17 = vld [vmem:[%s13076_s1 + $0x140] ss:$8 sps:$4 sm:$0xff]   ;;  %v603_v23 = vrot.slane %v483_v16, 1  ;;  %v557_v48 = vpack.c.bf16 %v483_v16, %v9501_v5  ;;  %p466_p4 = scmp.lt.s32.totalorder %s7266_s20, 3 }
  0x21   : > { %v746_v10 = vsel %vm674_vm0, %v599_v6, %v600_v7  ;;  %v8858_v24 = vld [vmem:[%s13076_s1 + $0x150] ss:$8 sps:$4 sm:$0xff]   ;;  %v8863_v25 = vld [vmem:[%s13076_s1 + $0x164] ss:$8 sps:$4 sm:$0xff]   ;;  %vm7015_vm7 = vcmask 982016   ;;  %vm7117_vm8 = vcmask 687104  }
  0x22   : > { %v758_v21 = vpack.c.bf16 %v746_v10, %v747_v11  ;;  %v487_v44 = vld [vmem:[%s9374_s28 + $0x78] sm:$0xff]  ;;  %v488_v45 = vld [vmem:[%s9374_s28 + $0x80] sm:$0xff]  ;;  %v9586_v6 = vld [vmem:[%s9374_s28 + $0xa8] sm:$0xff]  ;;  %s13406_s20 = smov (!%p466_p4, %s7266_s20), 3 }
  0x23   : > { %1901 = vmatpush1.bf16.msra.mxu0 %v8812_v13  ;;  %v601_v13 = vrot.slane %v481_v4, 1  ;;  %v607_v50 = vrot.slane %v487_v44, 1  ;;  %v608_v51 = vrot.slane %v488_v45, 1  ;;  %v9571_v61 = vld [vmem:[%s9374_s28 + $0xa0] sm:$0xff]  ;;  %v8870_v4 = vld [vmem:[%s13076_s1 + $0x190] ss:$8 sps:$4 sm:$0xff]  }
  0x24   : > { %1902 = vmatprep.subr.bf16.mxu0 %v8813_v14  ;;  %v602_v14 = vrot.slane %v9501_v5, 1  ;;  %v8872_v5 = vld [vmem:[%s13076_s1 + $0x194] ss:$8 sps:$4 sm:$0xff]   ;;  %s7267_s21 = sshll.u32 %s13406_s20, 3 }
  0x27   : > { %1903 = vmatpush1.bf16.msra.mxu0 %v8815_v20  ;;  %v8860_v20 = vld [vmem:[%s13076_s1 + $0x154] ss:$8 sps:$4 sm:$0xff]  }
  0x28   : > { %1904 = vmatprep.subr.bf16.mxu0 %v8816_v22  ;;  %v484_v22 = vld [vmem:[%s9374_s28 + $0x60] sm:$0xff] }
  0x2b   : > { %1905 = vmatpush1.bf16.msra.mxu0 %v8818_v26  ;;  %v744_v26 = vsel %vm674_vm0, %v601_v13, %v602_v14 }
  0x2c   : > { %1906 = vmatprep.subr.bf16.mxu0 %v8819_v27  ;;  %v745_v27 = vsel %vm674_vm0, %v600_v7, %v601_v13  ;;  %v9589_v7 = vld [vmem:[%s9374_s28 + $0xb0] sm:$0xff]  ;;  %v613_v13 = vrot.slane %v9586_v6, 1 }
  0x2f   : > { %1907 = vmatpush1.bf16.msra.mxu0 %v8821_v28  ;;  %v604_v28 = vrot.slane %v484_v22, 1 }
  0x30   : > { %1908 = vmatprep.subr.bf16.mxu0 %v8822_v29  ;;  %v485_v29 = vld [vmem:[%s9374_s28 + $0x68] sm:$0xff] }
  0x31   : > { %v558_v56 = vpack.c.bf16 %v485_v29, %v484_v22 }
  0x33   : > { %1909 = vmatpush1.bf16.msra.mxu0 %v8824_v30  ;;  %v486_v30 = vld [vmem:[%s9374_s28 + $0x70] sm:$0xff] }
  0x34   : > { %1910 = vmatprep.subr.bf16.mxu0 %v8825_v31  ;;  %v8861_v31 = vld [vmem:[%s13076_s1 + $0x160] ss:$8 sps:$4 sm:$0xff]  }
  0x37   : > { %1911 = vmatpush1.bf16.msra.mxu0 %v8827_v32  ;;  %v555_v32 = vpack.c.bf16 %v479_v60, %v9465_v49  ;;  %v9568_v60 = vld [vmem:[%s9374_s28 + $0x98] sm:$0xff] }
  0x38   : > { %1912 = vmatprep.subr.bf16.mxu0 %v8828_v33  ;;  %v8866_v33 = vld [vmem:[%s13076_s1 + $0x174] ss:$8 sps:$4 sm:$0xff]  }
  0x3b   : > { %1913 = vmatpush1.bf16.msra.mxu0 %v8830_v34  ;;  %v759_v34 = vpack.c.bf16 %v744_v26, %v745_v27  ;;  %v8875_v26 = vld [vmem:[%s13076_s1 + $0x1a4] ss:$8 sps:$4 sm:$0xff]  }
  0x3c   : > { %1914 = vmatprep.subr.bf16.mxu0 %v8831_v35  ;;  %v605_v35 = vrot.slane %v485_v29, 1  ;;  %v9621_v29 = vld [vmem:[%s9374_s28 + $0xc8] sm:$0xff] }
  0x3f   : > { %1915 = vmatpush1.bf16.msra.mxu0 %v8833_v36  ;;  %v606_v36 = vrot.slane %v486_v30, 1 }
  0x40   : > { %1916 = vmatprep.subr.bf16.mxu0 %v8834_v37  ;;  %v8864_v37 = vld [vmem:[%s13076_s1 + $0x170] ss:$8 sps:$4 sm:$0xff]  }
  0x43   : > { %1917 = vmatpush1.bf16.msra.mxu0 %v8836_v38  ;;  %v742_v38 = vsel %vm674_vm0, %v603_v23, %v604_v28 }
  0x44   : > { %1918 = vmatprep.subr.bf16.mxu0 %v8837_v39  ;;  %v743_v39 = vsel %vm674_vm0, %v602_v14, %v603_v23  ;;  %v614_v14 = vrot.slane %v9589_v7, 1 }
  0x45   : > { %v760_v41 = vpack.c.bf16 %v742_v38, %v743_v39  ;;  %v9638_v38 = vld [vmem:[%s9374_s28 + $0xe0] sm:$0xff] }
  0x46   : > { %v732_v16 = vsel %vm674_vm0, %v613_v13, %v614_v14 }
  0x47   : > { %1919 = vmatpush1.bf16.msra.mxu0 %v8839_v42  ;;  %v8867_v42 = vld [vmem:[%s13076_s1 + $0x180] ss:$8 sps:$4 sm:$0xff]  }
  0x48   : > { %1920 = vmatprep.subr.bf16.mxu0 %v8840_v43  ;;  %v8869_v43 = vld [vmem:[%s13076_s1 + $0x184] ss:$8 sps:$4 sm:$0xff]  }
  0x4b   : > { %1921 = vmatpush1.bf16.msra.mxu0 %v8842_v46  ;;  %v740_v46 = vsel %vm674_vm0, %v605_v35, %v606_v36 }
  0x4c   : > { %2323 = vmatprep.subr.bf16.mxu0 %v8845_v47  ;;  %v741_v47 = vsel %vm674_vm0, %v604_v28, %v605_v35 }
  0x4d   : > { %v761_v49 = vpack.c.bf16 %v740_v46, %v741_v47  ;;  %v9652_v46 = vld [vmem:[%s9374_s28 + $0xf0] sm:$0xff] }
  0x4e   : > { %1923 = vmatmul.mubr.bf16.vlgmr.msra.gmra.mrb[0].mxu0 %v552_v53  ;;  %v490_v53 = vld [vmem:[%s9374_s28 + $0x90] sm:$0xff] }
  0x4f   : > { %2324 = vmatpush1.bf16.msra.mxu0 %v8843_v52  ;;  %1932 = vmatprep.mubr.bf16.mxu0 %v756_v55  ;;  %v489_v52 = vld [vmem:[%s9374_s28 + $0x88] sm:$0xff]  ;;  %v739_v55 = vsel %vm674_vm0, %v606_v36, %v607_v50 }
  0x50   : > { %2325 = vmatprep.subr.bf16.mxu0 %v8848_v54  ;;  %v738_v54 = vsel %vm674_vm0, %v607_v50, %v608_v51  ;;  %v560_v10 = vpack.c.bf16 %v489_v52, %v488_v45  ;;  %v9649_v45 = vld [vmem:[%s9374_s28 + $0xe8] sm:$0xff]  ;;  %v622_v50 = vrot.slane %v9652_v46, 1 }
  0x51   : > { %v762_v57 = vpack.c.bf16 %v738_v54, %v739_v55  ;;  %v9669_v55 = vld [vmem:[%s9374_s28 + $0xf8] sm:$0xff] }
  0x53   : > { %2326 = vmatpush1.bf16.msra.mxu0 %v8846_v58  ;;  %v609_v58 = vrot.slane %v489_v52, 1  ;;  %v8878_v52 = vld [vmem:[%s13076_s1 + $0x1b4] ss:$8 sps:$4 sm:$0xff]  }
  0x54   : > { %2327 = vmatprep.subr.bf16.mxu0 %v8851_v59  ;;  %v610_v59 = vrot.slane %v490_v53, 1 }
  0x55   : > { %v737_v63 = vsel %vm674_vm0, %v608_v51, %v609_v58  ;;  %v8876_v51 = vld [vmem:[%s13076_s1 + $0x1b0] ss:$8 sps:$4 sm:$0xff]  }
  0x56   : > { %1933 = vmatmul.mubr.bf16.gmra.mrb[4].mxu0 %v553_v1  ;;  %v736_v62 = vsel %vm674_vm0, %v609_v58, %v610_v59 }
  0x57   : > { %1942 = vmatprep.mubr.bf16.mxu0 %v757_v3  ;;  %2328 = vmatpush1.bf16.msra.mxu0 %v8849_v0  ;;  %v559_v0 = vpack.c.bf16 %v487_v44, %v486_v30  ;;  %v763_v1 = vpack.c.bf16 %v736_v62, %v737_v63  ;;  %v612_v3 = vrot.slane %v9571_v61, 1  ;;  %v9624_v30 = vld [vmem:[%s9374_s28 + $0xd0] sm:$0xff] }
  0x58   : > { %2329 = vmatprep.subr.bf16.mxu0 %v8854_v2  ;;  %v611_v2 = vrot.slane %v9568_v60, 1 }
  0x5b   : > { %2330 = vmatpush1.bf16.msra.mxu0 %v8852_v8  ;;  %v734_v8 = vsel %vm674_vm0, %v611_v2, %v612_v3 }
  0x5c   : > { %2331 = vmatprep.subr.bf16.mxu0 %v8857_v9  ;;  %v735_v9 = vsel %vm674_vm0, %v610_v59, %v611_v2  ;;  %v623_v59 = vrot.slane %v9669_v55, 1  ;;  %v9686_v2 = vld [vmem:[%s9374_s28 + $0x110] sm:$0xff] }
  0x5d   : > { %v764_v11 = vpack.c.bf16 %v734_v8, %v735_v9  ;;  %v626_v8 = vrot.slane %v9686_v2, 1  ;;  %v8879_v9 = vld [vmem:[%s13076_s1 + $0x1c0] ss:$8 sps:$4 sm:$0xff]  }
  0x5e   : > { %1943 = vmatmul.mubr.bf16.gmra.mrb[8].mxu0 %v554_v19  ;;  %v9602_v19 = vld [vmem:[%s9374_s28 + $0xb8] sm:$0xff] }
  0x5f   : > { %1952 = vmatprep.mubr.bf16.mxu0 %v758_v21  ;;  %2332 = vmatpush1.bf16.msra.mxu0 %v8855_v17  ;;  %v733_v17 = vsel %vm674_vm0, %v612_v3, %v613_v13  ;;  %v561_v21 = vpack.c.bf16 %v9568_v60, %v490_v53  ;;  %v615_v23 = vrot.slane %v9602_v19, 1  ;;  %v563_v39 = vpack.c.bf16 %v9602_v19, %v9589_v7 }
  0x60   : > { %2333 = vmatprep.subr.bf16.mxu0 %v8860_v20  ;;  %v9605_v20 = vld [vmem:[%s9374_s28 + $0xc0] sm:$0xff]  ;;  %v765_v22 = vpack.c.bf16 %v732_v16, %v733_v17  ;;  %v566_v3 = vpack.c.bf16 %v9649_v45, %v9638_v38  ;;  %v567_v17 = vpack.c.bf16 %v9669_v55, %v9652_v46 }
  0x61   : > { %v731_v28 = vsel %vm674_vm0, %v614_v14, %v615_v23  ;;  %v564_v47 = vpack.c.bf16 %v9621_v29, %v9605_v20  ;;  %v9703_v14 = vld [vmem:[%s9374_s28 + $0x118] sm:$0xff]  ;;  %v9706_v16 = vld [vmem:[%s9374_s28 + $0x120] sm:$0xff] }
  0x63   : > { %2334 = vmatpush1.bf16.msra.mxu0 %v8858_v24  ;;  %v616_v24 = vrot.slane %v9605_v20, 1 }
  0x64   : > { %2335 = vmatprep.subr.bf16.mxu0 %v8863_v25  ;;  %v8873_v25 = vld [vmem:[%s13076_s1 + $0x1a0] ss:$8 sps:$4 sm:$0xff]  }
  0x65   : > { %v730_v27 = vsel %vm674_vm0, %v615_v23, %v616_v24  ;;  %v628_v23 = vrot.slane %v9706_v16, 1 }
  0x66   : > { %1953 = vmatmul.mubr.bf16.gmra.mrb[12].mxu0 %v555_v32  ;;  %v766_v32 = vpack.c.bf16 %v730_v27, %v731_v28  ;;  %v9720_v27 = vld [vmem:[%s9374_s28 + $0x130] sm:$0xff] }
  0x67   : > { %1962 = vmatprep.mubr.bf16.mxu0 %v759_v34  ;;  %2336 = vmatpush1.bf16.msra.mxu0 %v8861_v31  ;;  %v562_v31 = vpack.c.bf16 %v9586_v6, %v9571_v61  ;;  %v618_v34 = vrot.slane %v9624_v30, 1 }
  0x68   : > { %2337 = vmatprep.subr.bf16.mxu0 %v8866_v33  ;;  %v617_v33 = vrot.slane %v9621_v29, 1 }
  0x6a   : > { %v728_v35 = vsel %vm674_vm0, %v617_v33, %v618_v34  ;;  %v729_v36 = vsel %vm674_vm0, %v616_v24, %v617_v33  ;;  %v630_v33 = vrot.slane %v9720_v27, 1 }
  0x6b   : > { %2338 = vmatpush1.bf16.msra.mxu0 %v8864_v37  ;;  %v9635_v37 = vld [vmem:[%s9374_s28 + $0xd8] sm:$0xff] }
  0x6c   : > { %2339 = vmatprep.subr.bf16.mxu0 %v8869_v43 }
  0x6e   : > { %1963 = vmatmul.mubr.bf16.gmra.mrb[16].mxu0 %v556_v40  ;;  %v767_v40 = vpack.c.bf16 %v728_v35, %v729_v36  ;;  %v9731_v36 = vld [vmem:[%s9374_s28 + $0x138] sm:$0xff] }
  0x6f   : > { %1972 = vmatprep.mubr.bf16.mxu0 %v760_v41  ;;  %2340 = vmatpush1.bf16.msra.mxu0 %v8867_v42  ;;  %v619_v41 = vrot.slane %v9635_v37, 1  ;;  %v620_v42 = vrot.slane %v9638_v38, 1 }
  0x70   : > { %2341 = vmatprep.subr.bf16.mxu0 %v8872_v5 }
  0x71   : > { %v726_v43 = vsel %vm674_vm0, %v619_v41, %v620_v42  ;;  %v727_v44 = vsel %vm674_vm0, %v618_v34, %v619_v41 }
  0x73   : > { %2342 = vmatpush1.bf16.msra.mxu0 %v8870_v4 }
  0x74   : > { %2343 = vmatprep.subr.bf16.mxu0 %v8875_v26  ;;  %v9717_v26 = vld [vmem:[%s9374_s28 + $0x128] sm:$0xff] }
  0x76   : > { %1973 = vmatmul.mubr.bf16.gmra.mrb[20].mxu0 %v557_v48  ;;  %v768_v48 = vpack.c.bf16 %v726_v43, %v727_v44  ;;  %v8882_v44 = vld [vmem:[%s13076_s1 + $0x1d0] ss:$8 sps:$4 sm:$0xff]  }
  0x77   : > { %1982 = vmatprep.mubr.bf16.mxu0 %v761_v49  ;;  %2344 = vmatpush1.bf16.msra.mxu0 %v8873_v25  ;;  %v621_v49 = vrot.slane %v9649_v45, 1 }
  0x78   : > { %2345 = vmatprep.subr.bf16.mxu0 %v8878_v52  ;;  %v570_v52 = vpack.c.bf16 %v9717_v26, %v9706_v16 }
  0x79   : > { %v724_v53 = vsel %vm674_vm0, %v621_v49, %v622_v50  ;;  %v725_v54 = vsel %vm674_vm0, %v620_v42, %v621_v49  ;;  %v631_v42 = vrot.slane %v9731_v36, 1 }
  0x7a   : > { %v769_v58 = vpack.c.bf16 %v724_v53, %v725_v54 }
  0x7b   : > { %2346 = vmatpush1.bf16.msra.mxu0 %v8876_v51  ;;  %v715_v49 = vsel %vm674_vm0, %v630_v33, %v631_v42  ;;  %v9754_v51 = vld [vmem:[%s9374_s28 + $0x150] sm:$0xff] }
  0x7e   : > { %1983 = vmatmul.mubr.bf16.gmra.mrb[24].mxu0 %v558_v56  ;;  %v9672_v56 = vld [vmem:[%s9374_s28 + $0x100] sm:$0xff] }
  0x7f   : > { %1992 = vmatprep.mubr.bf16.mxu0 %v762_v57  ;;  %v565_v57 = vpack.c.bf16 %v9635_v37, %v9624_v30  ;;  %v624_v62 = vrot.slane %v9672_v56, 1 }
  0x81   : > { %v722_v63 = vsel %vm674_vm0, %v623_v59, %v624_v62 }
  0x86   : > { %1993 = vmatmul.mubr.bf16.gmra.mrb[28].mxu0 %v559_v0  ;;  %v723_v0 = vsel %vm674_vm0, %v622_v50, %v623_v59  ;;  %v9751_v50 = vld [vmem:[%s9374_s28 + $0x148] sm:$0xff] }
  0x87   : > { %2002 = vmatprep.mubr.bf16.mxu0 %v763_v1  ;;  %v9683_v1 = vld [vmem:[%s9374_s28 + $0x108] sm:$0xff]  ;;  %v770_v4 = vpack.c.bf16 %v722_v63, %v723_v0  ;;  %v633_v54 = vrot.slane %v9751_v50, 1  ;;  %v9768_v63 = vld [vmem:[%s9374_s28 + $0x160] sm:$0xff]  ;;  %v571_v0 = vpack.c.bf16 %v9731_v36, %v9720_v27 }
  0x88   : > { %v625_v5 = vrot.slane %v9683_v1, 1  ;;  %v568_v28 = vpack.c.bf16 %v9683_v1, %v9672_v56 }
  0x8a   : > { %v721_v13 = vsel %vm674_vm0, %v624_v62, %v625_v5  ;;  %v9765_v62 = vld [vmem:[%s9374_s28 + $0x158] sm:$0xff] }
  0x8e   : > { %2003 = vmatmul.mubr.bf16.gmra.mrb[32].mxu0 %v560_v10  ;;  %v8881_v10 = vld [vmem:[%s13076_s1 + $0x1c4] ss:$8 sps:$4 sm:$0xff]  }
  0x8f   : > { %2012 = vmatprep.mubr.bf16.mxu0 %v764_v11  ;;  %v720_v11 = vsel %vm674_vm0, %v625_v5, %v626_v8  ;;  %2347 = vmatprep.subr.bf16.mxu0 %v8881_v10  ;;  %v636_v5 = vrot.slane %v9768_v63, 1 }
  0x90   : > { %2348 = vmatpush1.bf16.msra.mxu0 %v8879_v9  ;;  %v8887_v9 = vld [vmem:[%s13076_s1 + $0x1e4] ss:$8 sps:$4 sm:$0xff]  }
  0x96   : > { %2013 = vmatmul.mubr.bf16.gmra.mrb[36].mxu0 %v561_v21  ;;  %v771_v21 = vpack.c.bf16 %v720_v11, %v721_v13  ;;  %v9785_v13 = vld [vmem:[%s9374_s28 + $0x168] sm:$0xff] }
  0x97   : > { %2022 = vmatprep.mubr.bf16.mxu0 %v765_v22  ;;  %v627_v22 = vrot.slane %v9703_v14, 1 }
  0x99   : > { %v718_v24 = vsel %vm674_vm0, %v627_v22, %v628_v23  ;;  %v719_v25 = vsel %vm674_vm0, %v626_v8, %v627_v22  ;;  %v8885_v8 = vld [vmem:[%s13076_s1 + $0x1e0] ss:$8 sps:$4 sm:$0xff]  }
  0x9e   : > { %2023 = vmatmul.mubr.bf16.gmra.mrb[40].mxu0 %v562_v31  ;;  %v772_v31 = vpack.c.bf16 %v718_v24, %v719_v25 }
  0x9f   : > { %2032 = vmatprep.mubr.bf16.mxu0 %v766_v32  ;;  %v629_v32 = vrot.slane %v9717_v26, 1 }
  0xa1   : > { %v716_v34 = vsel %vm674_vm0, %v629_v32, %v630_v33  ;;  %v717_v35 = vsel %vm674_vm0, %v628_v23, %v629_v32  ;;  %v637_v23 = vrot.slane %v9785_v13, 1  ;;  %v9802_v32 = vld [vmem:[%s9374_s28 + $0x180] sm:$0xff]  ;;  %v573_v33 = vpack.c.bf16 %v9765_v62, %v9754_v51 }
  0xa2   : > { %v773_v41 = vpack.c.bf16 %v716_v34, %v717_v35 }
  0xa6   : > { %2033 = vmatmul.mubr.bf16.gmra.mrb[44].mxu0 %v563_v39  ;;  %v9734_v39 = vld [vmem:[%s9374_s28 + $0x140] sm:$0xff] }
  0xa7   : > { %2042 = vmatprep.mubr.bf16.mxu0 %v767_v40  ;;  %v569_v40 = vpack.c.bf16 %v9703_v14, %v9686_v2  ;;  %v632_v43 = vrot.slane %v9734_v39, 1 }
  0xa9   : > { %v713_v59 = vsel %vm674_vm0, %v632_v43, %v633_v54 }
  0xae   : > { %2043 = vmatmul.mubr.bf16.gmra.mrb[48].mxu0 %v564_v47  ;;  %v8884_v47 = vld [vmem:[%s13076_s1 + $0x1d4] ss:$8 sps:$4 sm:$0xff]  }
  0xaf   : > { %2052 = vmatprep.mubr.bf16.mxu0 %v768_v48  ;;  %v714_v48 = vsel %vm674_vm0, %v631_v42, %v632_v43  ;;  %2349 = vmatprep.subr.bf16.mxu0 %v8884_v47  ;;  %v9813_v43 = vld [vmem:[%s9374_s28 + $0x188] sm:$0xff]  ;;  %v574_v47 = vpack.c.bf16 %v9785_v13, %v9768_v63 }
  0xb0   : > { %2350 = vmatpush1.bf16.msra.mxu0 %v8882_v44  ;;  %v774_v53 = vpack.c.bf16 %v714_v48, %v715_v49  ;;  %v9816_v44 = vld [vmem:[%s9374_s28 + $0x190] sm:$0xff]  ;;  %v641_v49 = vrot.slane %v9813_v43, 1 }
  0xb1   : > { %2351 = vmatprep.subr.bf16.mxu0 %v8887_v9 }
  0xb4   : > { %2352 = vmatpush1.bf16.msra.mxu0 %v8885_v8 }
  0xb6   : > { %2053 = vmatmul.mubr.bf16.gmra.mrb[52].mxu0 %v565_v57  ;;  %v634_v57 = vrot.slane %v9754_v51, 1 }
  0xb7   : > { %2062 = vmatprep.mubr.bf16.mxu0 %v769_v58 }
  0xb8   : > { %v712_v58 = vsel %vm674_vm0, %v633_v54, %v634_v57  ;;  %v8890_v54 = vld [vmem:[%s13076_s1 + $0x1f4] ss:$8 sps:$4 sm:$0xff]  }
  0xb9   : > { %2353 = vmatprep.subr.bf16.mxu0 %v8890_v54  ;;  %v9881_v54 = vld [vmem:[%s9374_s28 + $0x1d0] sm:$0xff] }
  0xbe   : > { %2063 = vmatmul.mubr.bf16.gmra.mrb[56].mxu0 %v566_v3  ;;  %v775_v3 = vpack.c.bf16 %v712_v58, %v713_v59  ;;  %v9833_v59 = vld [vmem:[%s9374_s28 + $0x198] sm:$0xff] }
  0xbf   : > { %2072 = vmatprep.mubr.bf16.mxu0 %v770_v4  ;;  %v635_v4 = vrot.slane %v9765_v62, 1 }
  0xc1   : > { %v710_v10 = vsel %vm674_vm0, %v635_v4, %v636_v5  ;;  %v711_v11 = vsel %vm674_vm0, %v634_v57, %v635_v4 }
  0xc2   : > { %v776_v22 = vpack.c.bf16 %v710_v10, %v711_v11  ;;  %v9847_v11 = vld [vmem:[%s9374_s28 + $0x1a8] sm:$0xff] }
  0xc6   : > { %2073 = vmatmul.mubr.bf16.gmra.mrb[60].mxu0 %v567_v17  ;;  %v9788_v17 = vld [vmem:[%s9374_s28 + $0x170] sm:$0xff] }
  0xc7   : > { %2082 = vmatprep.mubr.bf16.mxu0 %v771_v21  ;;  %v572_v21 = vpack.c.bf16 %v9751_v50, %v9734_v39  ;;  %v638_v24 = vrot.slane %v9788_v17, 1 }
  0xc9   : > { %v708_v25 = vsel %vm674_vm0, %v637_v23, %v638_v24 }
  0xce   : > { %2083 = vmatmul.mubr.bf16.gmra.mrb[64].mxu0 %v568_v28  ;;  %v709_v28 = vsel %vm674_vm0, %v636_v5, %v637_v23  ;;  %v643_v5 = vrot.slane %v9833_v59, 1 }
  0xcf   : > { %2092 = vmatprep.mubr.bf16.mxu0 %v772_v31  ;;  %v9799_v31 = vld [vmem:[%s9374_s28 + $0x178] sm:$0xff]  ;;  %v777_v34 = vpack.c.bf16 %v708_v25, %v709_v28  ;;  %v8893_v28 = vld [vmem:[%s13076_s1 + $0x204] ss:$8 sps:$4 sm:$0xff]  }
  0xd0   : > { %v639_v35 = vrot.slane %v9799_v31, 1 }
  0xd2   : > { %v707_v42 = vsel %vm674_vm0, %v638_v24, %v639_v35  ;;  %v645_v24 = vrot.slane %v9847_v11, 1 }
  0xd6   : > { %2093 = vmatmul.mubr.bf16.gmra.mrb[68].mxu0 %v569_v40  ;;  %v640_v40 = vrot.slane %v9802_v32, 1 }
  0xd7   : > { %2102 = vmatprep.mubr.bf16.mxu0 %v773_v41 }
  0xd8   : > { %v706_v41 = vsel %vm674_vm0, %v639_v35, %v640_v40  ;;  %v705_v58 = vsel %vm674_vm0, %v640_v40, %v641_v49  ;;  %v9864_v35 = vld [vmem:[%s9374_s28 + $0x1b8] sm:$0xff]  ;;  %v9867_v40 = vld [vmem:[%s9374_s28 + $0x1c0] sm:$0xff] }
  0xd9   : > { %v778_v48 = vpack.c.bf16 %v706_v41, %v707_v42  ;;  %v577_v41 = vpack.c.bf16 %v9833_v59, %v9816_v44 }
  0xde   : > { %2103 = vmatmul.mubr.bf16.gmra.mrb[72].mxu0 %v570_v52  ;;  %v642_v52 = vrot.slane %v9816_v44, 1 }
  0xdf   : > { %2112 = vmatprep.mubr.bf16.mxu0 %v774_v53  ;;  %v8888_v53 = vld [vmem:[%s13076_s1 + $0x1f0] ss:$8 sps:$4 sm:$0xff]  }
  0xe0   : > { %v704_v57 = vsel %vm674_vm0, %v641_v49, %v642_v52  ;;  %2354 = vmatpush1.bf16.msra.mxu0 %v8888_v53  ;;  %v703_v10 = vsel %vm674_vm0, %v642_v52, %v643_v5  ;;  %v9878_v53 = vld [vmem:[%s9374_s28 + $0x1c8] sm:$0xff] }
  0xe1   : > { %v779_v4 = vpack.c.bf16 %v704_v57, %v705_v58  ;;  %2756 = vmatprep.subr.bf16.mxu0 %v8893_v28 }
  0xe6   : > { %2113 = vmatmul.mubr.bf16.gmra.mrb[76].mxu0 %v571_v0  ;;  %v9836_v0 = vld [vmem:[%s9374_s28 + $0x1a0] sm:$0xff] }
  0xe7   : > { %2122 = vmatprep.mubr.bf16.mxu0 %v775_v3  ;;  %v575_v3 = vpack.c.bf16 %v9799_v31, %v9788_v17  ;;  %v644_v8 = vrot.slane %v9836_v0, 1  ;;  %v578_v57 = vpack.c.bf16 %v9847_v11, %v9836_v0 }
  0xe9   : > { %v702_v9 = vsel %vm674_vm0, %v643_v5, %v644_v8 }
  0xea   : > { %v780_v23 = vpack.c.bf16 %v702_v9, %v703_v10  ;;  %v9892_v9 = vld [vmem:[%s9374_s28 + $0x1d8] sm:$0xff]  ;;  %v9895_v10 = vld [vmem:[%s9374_s28 + $0x1e0] sm:$0xff] }
  0xee   : > { %2123 = vmatmul.mubr.bf16.gmra.mrb[80].mxu0 %v572_v21  ;;  %v9850_v21 = vld [vmem:[%s9374_s28 + $0x1b0] sm:$0xff] }
  0xef   : > { %2132 = vmatprep.mubr.bf16.mxu0 %v776_v22  ;;  %v576_v22 = vpack.c.bf16 %v9813_v43, %v9802_v32  ;;  %v646_v25 = vrot.slane %v9850_v21, 1 }
  0xf6   : > { %2133 = vmatmul.mubr.bf16.gmra.mrb[84].mxu0 %v573_v33  ;;  %v700_v33 = vsel %vm674_vm0, %v645_v24, %v646_v25 }
  0xf7   : > { %2142 = vmatprep.mubr.bf16.mxu0 %v777_v34  ;;  %v701_v34 = vsel %vm674_vm0, %v644_v8, %v645_v24  ;;  %v651_v24 = vrot.slane %v9892_v9, 1 }
  0xf8   : > { %v781_v42 = vpack.c.bf16 %v700_v33, %v701_v34  ;;  %v9906_v34 = vld [vmem:[%s9374_s28 + $0x1e8] sm:$0xff] }
  0xfe   : > { %2143 = vmatmul.mubr.bf16.gmra.mrb[88].mxu0 %v574_v47  ;;  %v647_v47 = vrot.slane %v9864_v35, 1 }
  0xff   : > { %2152 = vmatprep.mubr.bf16.mxu0 %v778_v48  ;;  %v648_v48 = vrot.slane %v9867_v40, 1 }
 0x100   : > { %v699_v52 = vsel %vm674_vm0, %v646_v25, %v647_v47  ;;  %v652_v25 = vrot.slane %v9895_v10, 1 }
 0x101   : > { %v698_v49 = vsel %vm674_vm0, %v647_v47, %v648_v48 }
 0x102   : > { %v782_v58 = vpack.c.bf16 %v698_v49, %v699_v52  ;;  %v694_v28 = vsel %vm674_vm0, %v651_v24, %v652_v25 }
 0x106   : > { %2153 = vmatmul.mubr.bf16.gmra.mrb[92].mxu0 %v575_v3  ;;  %v649_v3 = vrot.slane %v9878_v53, 1 }
 0x107   : > { %2162 = vmatprep.mubr.bf16.mxu0 %v779_v4  ;;  %v650_v4 = vrot.slane %v9881_v54, 1 }
 0x108   : > { %v697_v8 = vsel %vm674_vm0, %v648_v48, %v649_v3  ;;  %v653_v48 = vrot.slane %v9906_v34, 1 }
 0x109   : > { %v696_v5 = vsel %vm674_vm0, %v649_v3, %v650_v4  ;;  %v695_v33 = vsel %vm674_vm0, %v650_v4, %v651_v24  ;;  %v9923_v3 = vld [vmem:[%s9374_s28 + $0x200] sm:$0xff]  ;;  %v581_v4 = vpack.c.bf16 %v9892_v9, %v9881_v54 }
 0x10a   : > { %v784_v47 = vpack.c.bf16 %v694_v28, %v695_v33  ;;  %13193 = vst [vmem:[#allocation4_spill] sm:$0xff] %v9923_v3  ;;  %v9937_v28 = vld [vmem:[%s9374_s28 + $0x210] sm:$0xff]  ;;  %v582_v33 = vpack.c.bf16 %v9906_v34, %v9895_v10 }
 0x10b   : > { %13195 = vst [vmem:[#allocation6_spill] sm:$0xff] %v9937_v28 }
 0x10e   : > { %2163 = vmatmul.mubr.bf16.gmra.mrb[96].mxu0 %v576_v22  ;;  %v579_v22 = vpack.c.bf16 %v9864_v35, %v9850_v21 }
 0x10f   : > { %2172 = vmatprep.mubr.bf16.mxu0 %v780_v23  ;;  %v783_v23 = vpack.c.bf16 %v696_v5, %v697_v8 }
 0x116   : > { %2173 = vmatmul.mubr.bf16.gmra.mrb[100].mxu0 %v577_v41  ;;  %v9909_v41 = vld [vmem:[%s9374_s28 + $0x1f0] sm:$0xff] }
 0x117   : > { %2182 = vmatprep.mubr.bf16.mxu0 %v781_v42  ;;  %13191 = vst [vmem:[#allocation2_spill] sm:$0xff] %v9909_v41  ;;  %v580_v42 = vpack.c.bf16 %v9878_v53, %v9867_v40  ;;  %v654_v49 = vrot.slane %v9909_v41, 1 }
 0x119   : > { %v692_v52 = vsel %vm674_vm0, %v653_v48, %v654_v49 }
 0x11e   : > { %2183 = vmatmul.mubr.bf16.gmra.mrb[104].mxu0 %v578_v57  ;;  %v693_v57 = vsel %vm674_vm0, %v652_v25, %v653_v48  ;;  %v9934_v25 = vld [vmem:[%s9374_s28 + $0x208] sm:$0xff]  ;;  %v658_v48 = vrot.slane %v9937_v28, 1 }
 0x11f   : > { %2192 = vmatprep.mubr.bf16.mxu0 %v782_v58  ;;  %v9920_v58 = vld [vmem:[%s9374_s28 + $0x1f8] sm:$0xff]  ;;  %v785_v5 = vpack.c.bf16 %v692_v52, %v693_v57  ;;  %13194 = vst [vmem:[#allocation5_spill] sm:$0xff] %v9934_v25 }
 0x120   : > { %13192 = vst [vmem:[#allocation3_spill] sm:$0xff] %v9920_v58  ;;  %v655_v8 = vrot.slane %v9920_v58, 1  ;;  %v9948_v57 = vld [vmem:[%s9374_s28 + $0x218] sm:$0xff] }
 0x121   : > { %13196 = vst [vmem:[#allocation7_spill] sm:$0xff] %v9948_v57 }
 0x122   : > { %v691_v24 = vsel %vm674_vm0, %v654_v49, %v655_v8 }
 0x126   : > { %2193 = vmatmul.mubr.bf16.gmra.mrb[108].mxu0 %v579_v22  ;;  %v656_v22 = vrot.slane %v9923_v3, 1 }
 0x127   : > { %2202 = vmatprep.mubr.bf16.mxu0 %v783_v23 }
 0x128   : > { %v690_v23 = vsel %vm674_vm0, %v655_v8, %v656_v22 }
 0x12e   : > { %2203 = vmatmul.mubr.bf16.gmra.mrb[112].mxu0 %v580_v42  ;;  %v786_v42 = vpack.c.bf16 %v690_v23, %v691_v24  ;;  %v659_v23 = vrot.slane %v9948_v57, 1 }
 0x12f   : > { %2212 = vmatprep.mubr.bf16.mxu0 %v784_v47  ;;  %v657_v47 = vrot.slane %v9934_v25, 1 }
 0x131   : > { %v688_v52 = vsel %vm674_vm0, %v657_v47, %v658_v48  ;;  %v689_v49 = vsel %vm674_vm0, %v656_v22, %v657_v47  ;;  %v687_v22 = vsel %vm674_vm0, %v658_v48, %v659_v23  ;;  %v9965_v47 = vld [vmem:[%s9374_s28 + $0x230] sm:$0xff] }
 0x132   : > { %v787_v8 = vpack.c.bf16 %v688_v52, %v689_v49  ;;  %13199 = vst [vmem:[#allocation10_spill] sm:$0xff] %v9965_v47  ;;  %v584_v52 = vpack.c.bf16 %v9934_v25, %v9923_v3  ;;  %v9993_v3 = vld [vmem:[%s9374_s28 + $0x250] sm:$0xff] }
 0x133   : > { %13203 = vst [vmem:[#allocation14_spill] sm:$0xff] %v9993_v3 }
 0x136   : > { %2213 = vmatmul.mubr.bf16.gmra.mrb[116].mxu0 %v581_v4  ;;  %v9951_v4 = vld [vmem:[%s9374_s28 + $0x220] sm:$0xff] }
 0x137   : > { %2222 = vmatprep.mubr.bf16.mxu0 %v785_v5  ;;  %13197 = vst [vmem:[#allocation8_spill] sm:$0xff] %v9951_v4  ;;  %v583_v5 = vpack.c.bf16 %v9920_v58, %v9909_v41  ;;  %v660_v24 = vrot.slane %v9951_v4, 1  ;;  %v9979_v58 = vld [vmem:[%s9374_s28 + $0x240] sm:$0xff] }
 0x138   : > { %13201 = vst [vmem:[#allocation12_spill] sm:$0xff] %v9979_v58 }
 0x13e   : > { %2223 = vmatmul.mubr.bf16.gmra.mrb[120].mxu0 %v582_v33  ;;  %v686_v33 = vsel %vm674_vm0, %v659_v23, %v660_v24  ;;  %v9976_v23 = vld [vmem:[%s9374_s28 + $0x238] sm:$0xff] }
 0x13f   : > { %2232 = vmatprep.mubr.bf16.mxu0 %v786_v42  ;;  %v9962_v42 = vld [vmem:[%s9374_s28 + $0x228] sm:$0xff]  ;;  %v788_v49 = vpack.c.bf16 %v686_v33, %v687_v22  ;;  %13200 = vst [vmem:[#allocation11_spill] sm:$0xff] %v9976_v23  ;;  %v585_v33 = vpack.c.bf16 %v9948_v57, %v9937_v28  ;;  %v663_v25 = vrot.slane %v9976_v23, 1  ;;  %v10007_v28 = vld [vmem:[%s9374_s28 + $0x260] sm:$0xff] }
 0x140   : > { %13198 = vst [vmem:[#allocation9_spill] sm:$0xff] %v9962_v42  ;;  %v661_v18 = vrot.slane %v9962_v42, 1  ;;  %13205 = vst [vmem:[#allocation16_spill] sm:$0xff] %v10007_v28 }
 0x142   : > { %v685_v48 = vsel %vm674_vm0, %v660_v24, %v661_v18  ;;  %v9990_v24 = vld [vmem:[%s9374_s28 + $0x248] sm:$0xff] }
 0x143   : > { %13202 = vst [vmem:[#allocation13_spill] sm:$0xff] %v9990_v24  ;;  %v665_v57 = vrot.slane %v9990_v24, 1 }
 0x146   : > { %2233 = vmatmul.mubr.bf16.gmra.mrb[124].mxu0 %v583_v5  ;;  %v662_v5 = vrot.slane %v9965_v47, 1 }
 0x147   : > { %2242 = vmatprep.mubr.bf16.mxu0 %v787_v8 }
 0x148   : > { %v684_v8 = vsel %vm674_vm0, %v661_v18, %v662_v5  ;;  %v683_v18 = vsel %vm674_vm0, %v662_v5, %v663_v25  ;;  %v10004_v5 = vld [vmem:[%s9374_s28 + $0x258] sm:$0xff] }
 0x149   : > { %v789_v22 = vpack.c.bf16 %v684_v8, %v685_v48  ;;  %v586_v8 = vpack.c.bf16 %v9962_v42, %v9951_v4  ;;  %13204 = vst [vmem:[#allocation15_spill] sm:$0xff] %v10004_v5  ;;  %v667_v42 = vrot.slane %v10004_v5, 1  ;;  %v10021_v4 = vld [vmem:[%s9374_s28 + $0x270] sm:$0xff] }
 0x14a   : > { %13207 = vst [vmem:[#allocation18_spill] sm:$0xff] %v10021_v4 }
 0x14e   : > { %2243 = vmatmul.mubr.bf16.gmra.mrb[128].mxu0 %v584_v52  ;;  %v664_v52 = vrot.slane %v9979_v58, 1 }
 0x14f   : > { %2252 = vmatprep.mubr.bf16.mxu0 %v788_v49 }
 0x150   : > { %v682_v49 = vsel %vm674_vm0, %v663_v25, %v664_v52  ;;  %v681_v25 = vsel %vm674_vm0, %v664_v52, %v665_v57  ;;  %v10018_v52 = vld [vmem:[%s9374_s28 + $0x268] sm:$0xff] }
 0x151   : > { %v790_v48 = vpack.c.bf16 %v682_v49, %v683_v18  ;;  %v587_v49 = vpack.c.bf16 %v9976_v23, %v9965_v47  ;;  %13206 = vst [vmem:[#allocation17_spill] sm:$0xff] %v10018_v52  ;;  %v669_v23 = vrot.slane %v10018_v52, 1  ;;  %v10046_v47 = vld [vmem:[%s9374_s28] sm:$0xff] }
 0x152   : > { %13210 = vst [vmem:[#allocation20_spill] sm:$0xff] %v10046_v47 }
 0x156   : > { %2253 = vmatmul.mubr.bf16.gmra.mrb[132].mxu0 %v585_v33  ;;  %v666_v33 = vrot.slane %v9993_v3, 1 }
 0x157   : > { %2262 = vmatprep.mubr.bf16.mxu0 %v789_v22 }
 0x158   : > { %v680_v22 = vsel %vm674_vm0, %v665_v57, %v666_v33  ;;  %v679_v57 = vsel %vm674_vm0, %v666_v33, %v667_v42  ;;  %v10032_v33 = vld [vmem:[%s9374_s28 + $0x278] sm:$0xff] }
 0x159   : > { %v791_v18 = vpack.c.bf16 %v680_v22, %v681_v25  ;;  %v588_v22 = vpack.c.bf16 %v9990_v24, %v9979_v58  ;;  %13208 = vst [vmem:[#allocation19_spill] sm:$0xff] %v10032_v33  ;;  %v671_v24 = vrot.slane %v10032_v33, 1 }
 0x15e   : > { %2263 = vmatmul.mubr.bf16.gmra.mrb[136].mxu0 %v586_v8  ;;  %v668_v8 = vrot.slane %v10007_v28, 1 }
 0x15f   : > { %2272 = vmatprep.mubr.bf16.mxu0 %v790_v48 }
 0x160   : > { %v678_v48 = vsel %vm674_vm0, %v667_v42, %v668_v8  ;;  %v677_v42 = vsel %vm674_vm0, %v668_v8, %v669_v23 }
 0x161   : > { %v792_v25 = vpack.c.bf16 %v678_v48, %v679_v57  ;;  %v589_v48 = vpack.c.bf16 %v10004_v5, %v9993_v3 }
 0x166   : > { %2273 = vmatmul.mubr.bf16.gmra.mrb[140].mxu0 %v587_v49  ;;  %v670_v49 = vrot.slane %v10021_v4, 1 }
 0x167   : > { %2282 = vmatprep.mubr.bf16.mxu0 %v791_v18 }
 0x168   : > { %v676_v18 = vsel %vm674_vm0, %v669_v23, %v670_v49  ;;  %v590_v23 = vpack.c.bf16 %v10018_v52, %v10007_v28  ;;  %v10067_v28 = vld [vmem:[%s9374_s28 + $0x20] sm:$0xff] }
 0x169   : > { %v793_v57 = vpack.c.bf16 %v676_v18, %v677_v42  ;;  %v13113_v18 = vrot.slane %v10046_v47, 3  ;;  %v9159_v42 = vld [vmem:[%s9374_s28 + $0x8] sm:$0xff]  ;;  %13212 = vst [vmem:[#allocation22_spill] sm:$0xff] %v10067_v28 }
 0x16e   : > { %2283 = vmatmul.mubr.bf16.gmra.mrb[144].mxu0 %v588_v22  ;;  %v675_v22 = vsel %vm674_vm0, %v670_v49, %v671_v24 }
 0x16f   : > { %2292 = vmatprep.mubr.bf16.mxu0 %v792_v25  ;;  %v13209_v25 = vrot.slane %v9383_v15, 1 }
 0x171   : > { %v754_v58 = vsel %vm674_vm0, %v671_v24, %v13209_v25  ;;  %v591_v24 = vpack.c.bf16 %v10032_v33, %v10021_v4  ;;  %v796_v25 = vrot.slane %v9159_v42, 2  ;;  %v799_v4 = vrot.slane %v10067_v28, 2 }
 0x172   : > { %v794_v8 = vpack.c.bf16 %v754_v58, %v675_v22  ;;  %v13118_v22 = vrot.slane %v10046_v47, 2  ;;  %v10086_v47 = vld [vmem:[%s9374_s28 + $0x28] sm:$0xff] }
 0x173   : > { %13213 = vst [vmem:[#allocation23_spill] sm:$0xff] %v10086_v47 }
 0x176   : > { %2293 = vmatmul.mubr.bf16.gmra.mrb[148].mxu0 %v589_v48  ;;  %v997_v48 = vrot.slane %v9159_v42, 3  ;;  %v954_v42 = vsel %vm875_vm2, %v13118_v22, %v796_v25  ;;  %v10090_v22 = vld [vmem:[%s9374_s28 + $0x30] sm:$0xff] }
 0x177   : > { %2302 = vmatprep.mubr.bf16.mxu0 %v793_v57  ;;  %v9160_v57 = vld [vmem:[%s9374_s28 + $0x10] sm:$0xff]  ;;  %13214 = vst [vmem:[#allocation24_spill] sm:$0xff] %v10090_v22  ;;  %v1002_v3 = vrot.slane %v10090_v22, 3 }
 0x178   : > { %v998_v5 = vrot.slane %v9160_v57, 3  ;;  %v1155_v58 = vsel %vm1076_vm1, %v13113_v18, %v997_v48  ;;  %v797_v52 = vrot.slane %v9160_v57, 2 }
 0x17a   : > { %v1154_v15 = vsel %vm1076_vm1, %v997_v48, %v998_v5  ;;  %v1000_v48 = vrot.slane %v10067_v28, 3  ;;  %v800_v28 = vrot.slane %v10086_v47, 2 }
 0x17b   : > { %v1157_v49 = vpack.c.bf16 %v1154_v15, %v1155_v58  ;;  %v953_v15 = vsel %vm875_vm2, %v796_v25, %v797_v52  ;;  %v1001_v25 = vrot.slane %v10086_v47, 3 }
 0x17c   : > { %v956_v18 = vpack.c.bf16 %v953_v15, %v954_v42  ;;  %v8894_v42 = vld [vmem:[%s13076_s1 + $0x210] ss:$8 sps:$4 sm:$0xff]  }
 0x17e   : > { %2303 = vmatmul.mubr.bf16.gmra.mrb[152].mxu0 %v590_v23  ;;  %v10063_v23 = vld [vmem:[%s9374_s28 + $0x18] sm:$0xff] }
 0x17f   : > { %2312 = vmatprep.mubr.bf16.mxu0 %v794_v8  ;;  %13211 = vst [vmem:[#allocation21_spill] sm:$0xff] %v10063_v23  ;;  %v999_v8 = vrot.slane %v10063_v23, 3  ;;  %v798_v33 = vrot.slane %v10063_v23, 2  ;;  %v10116_v23 = vld [vmem:[%s9374_s28 + $0x38] sm:$0xff] }
 0x180   : > { %13215 = vst [vmem:[#allocation25_spill] sm:$0xff] %v10116_v23 }
 0x181   : > { %v1152_v57 = vsel %vm1076_vm1, %v999_v8, %v1000_v48  ;;  %v1153_v58 = vsel %vm1076_vm1, %v998_v5, %v999_v8  ;;  %v8896_v5 = vld [vmem:[%s13076_s1 + $0x214] ss:$8 sps:$4 sm:$0xff]   ;;  %v951_v8 = vsel %vm875_vm2, %v798_v33, %v799_v4  ;;  %v952_v15 = vsel %vm875_vm2, %v797_v52, %v798_v33  ;;  %v8897_v33 = vld [vmem:[%s13076_s1 + $0x220] ss:$8 sps:$4 sm:$0xff]  }
 0x182   : > { %v801_v52 = vrot.slane %v10090_v22, 2  ;;  %v802_v22 = vrot.slane %v10116_v23, 2 }
 0x186   : > { %2313 = vmatmul.mubr.bf16.gmra.mrb[156].mxu0 %v591_v24  ;;  %v8891_v24 = vld [vmem:[%s13076_s1 + $0x200] ss:$8 sps:$4 sm:$0xff]  }
 0x187   : > { %2355 = vmatprep.mubr.bf16.mxu0 %v1157_v49  ;;  %v1158_v49 = vpack.c.bf16 %v1152_v57, %v1153_v58  ;;  %v1150_v57 = vsel %vm1076_vm1, %v1001_v25, %v1002_v3  ;;  %v8899_v58 = vld [vmem:[%s13076_s1 + $0x224] ss:$8 sps:$4 sm:$0xff]  }
 0x18e   : > { %2356 = vmatmul.mubr.bf16.vlgmr.msra.gmra.mrb[0].mxu0 %v956_v18  ;;  %v1151_v18 = vsel %vm1076_vm1, %v1000_v48, %v1001_v25  ;;  %v1003_v48 = vrot.slane %v10116_v23, 3  ;;  %v10120_v25 = vld [vmem:[%s9374_s28 + $0x40] sm:$0xff] }
 0x18f   : > { %2757 = vmatpush1.bf16.msra.mxu0 %v8891_v24  ;;  %2365 = vmatprep.mubr.bf16.mxu0 %v1158_v49  ;;  %v957_v24 = vpack.c.bf16 %v951_v8, %v952_v15  ;;  %v1159_v49 = vpack.c.bf16 %v1150_v57, %v1151_v18  ;;  %13216 = vst [vmem:[#allocation26_spill] sm:$0xff] %v10120_v25  ;;  %v8902_v8 = vld [vmem:[%s13076_s1 + $0x234] ss:$8 sps:$4 sm:$0xff]   ;;  %v8900_v57 = vld [vmem:[%s13076_s1 + $0x230] ss:$8 sps:$4 sm:$0xff]   ;;  %v803_v47 = vrot.slane %v10120_v25, 2 }
 0x190   : > { %2758 = vmatprep.subr.bf16.mxu0 %v8896_v5  ;;  %v1004_v5 = vrot.slane %v10120_v25, 3  ;;  %v949_v15 = vsel %vm875_vm2, %v800_v28, %v801_v52  ;;  %v10162_v25 = vld [vmem:[%s9374_s28 + $0x60] sm:$0xff] }
 0x191   : > { %13220 = vst [vmem:[#allocation30_spill] sm:$0xff] %v10162_v25 }
 0x192   : > { %v1148_v18 = vsel %vm1076_vm1, %v1003_v48, %v1004_v5 }
 0x193   : > { %2759 = vmatpush1.bf16.msra.mxu0 %v8894_v42  ;;  %v950_v42 = vsel %vm875_vm2, %v799_v4, %v800_v28  ;;  %v10140_v28 = vld [vmem:[%s9374_s28 + $0x48] sm:$0xff] }
 0x194   : > { %2760 = vmatprep.subr.bf16.mxu0 %v8899_v58  ;;  %v1149_v58 = vsel %vm1076_vm1, %v1002_v3, %v1003_v48  ;;  %13217 = vst [vmem:[#allocation27_spill] sm:$0xff] %v10140_v28  ;;  %v1005_v4 = vrot.slane %v10140_v28, 3  ;;  %v947_v3 = vsel %vm875_vm2, %v802_v22, %v803_v47  ;;  %v948_v48 = vsel %vm875_vm2, %v801_v52, %v802_v22 }
 0x195   : > { %v1008_v22 = vrot.slane %v10162_v25, 3 }
 0x196   : > { %2366 = vmatmul.mubr.bf16.gmra.mrb[4].mxu0 %v957_v24  ;;  %v958_v24 = vpack.c.bf16 %v949_v15, %v950_v42  ;;  %v1147_v15 = vsel %vm1076_vm1, %v1004_v5, %v1005_v4  ;;  %v959_v42 = vpack.c.bf16 %v947_v3, %v948_v48 }
 0x197   : > { %2375 = vmatprep.mubr.bf16.mxu0 %v1159_v49  ;;  %2761 = vmatpush1.bf16.msra.mxu0 %v8897_v33  ;;  %v1160_v49 = vpack.c.bf16 %v1148_v18, %v1149_v58  ;;  %v10144_v33 = vld [vmem:[%s9374_s28 + $0x50] sm:$0xff]  ;;  %v804_v18 = vrot.slane %v10140_v28, 2 }
 0x198   : > { %2762 = vmatprep.subr.bf16.mxu0 %v8902_v8  ;;  %13218 = vst [vmem:[#allocation28_spill] sm:$0xff] %v10144_v33  ;;  %v1006_v41 = vrot.slane %v10144_v33, 3  ;;  %v805_v58 = vrot.slane %v10144_v33, 2  ;;  %v807_v33 = vrot.slane %v10162_v25, 2  ;;  %v10180_v28 = vld [vmem:[%s9374_s28 + $0x70] sm:$0xff] }
 0x199   : > { %v946_v5 = vsel %vm875_vm2, %v803_v47, %v804_v18  ;;  %13221 = vst [vmem:[#allocation31_spill] sm:$0xff] %v10180_v28  ;;  %v1010_v47 = vrot.slane %v10180_v28, 3 }
 0x19a   : > { %v1146_v8 = vsel %vm1076_vm1, %v1005_v4, %v1006_v41  ;;  %v945_v52 = vsel %vm875_vm2, %v804_v18, %v805_v58  ;;  %v8905_v18 = vld [vmem:[%s13076_s1 + $0x244] ss:$8 sps:$4 sm:$0xff]  }
 0x19b   : > { %2763 = vmatpush1.bf16.msra.mxu0 %v8900_v57  ;;  %v1161_v57 = vpack.c.bf16 %v1146_v8, %v1147_v15  ;;  %v960_v48 = vpack.c.bf16 %v945_v52, %v946_v5 }
 0x19c   : > { %2764 = vmatprep.subr.bf16.mxu0 %v8905_v18 }
 0x19e   : > { %2376 = vmatmul.mubr.bf16.gmra.mrb[8].mxu0 %v958_v24  ;;  %v10158_v24 = vld [vmem:[%s9374_s28 + $0x58] sm:$0xff] }
 0x19f   : > { %2385 = vmatprep.mubr.bf16.mxu0 %v1160_v49  ;;  %13219 = vst [vmem:[#allocation29_spill] sm:$0xff] %v10158_v24  ;;  %v1007_v49 = vrot.slane %v10158_v24, 3  ;;  %v806_v15 = vrot.slane %v10158_v24, 2  ;;  %v10200_v24 = vld [vmem:[%s9374_s28 + $0x78] sm:$0xff] }
 0x1a1   : > { %v1144_v4 = vsel %vm1076_vm1, %v1007_v49, %v1008_v22  ;;  %v1145_v3 = vsel %vm1076_vm1, %v1006_v41, %v1007_v49  ;;  %v8903_v41 = vld [vmem:[%s13076_s1 + $0x240] ss:$8 sps:$4 sm:$0xff]   ;;  %v943_v49 = vsel %vm875_vm2, %v806_v15, %v807_v33  ;;  %v944_v52 = vsel %vm875_vm2, %v805_v58, %v806_v15 }
 0x1a2   : > { %v1162_v8 = vpack.c.bf16 %v1144_v4, %v1145_v3  ;;  %2765 = vmatpush1.bf16.msra.mxu0 %v8903_v41  ;;  %v961_v3 = vpack.c.bf16 %v943_v49, %v944_v52  ;;  %v1011_v58 = vrot.slane %v10200_v24, 3  ;;  %v10204_v15 = vld [vmem:[%s9374_s28 + $0x80] sm:$0xff] }
 0x1a3   : > { %13222 = vst [vmem:[#allocation32_spill] sm:$0xff] %v10204_v15  ;;  %v1012_v23 = vrot.slane %v10204_v15, 3 }
 0x1a4   : > { %v1141_v18 = vsel %vm1076_vm1, %v1010_v47, %v1011_v58 }
 0x1a5   : > { %v1140_v41 = vsel %vm1076_vm1, %v1011_v58, %v1012_v23 }
 0x1a6   : > { %2386 = vmatmul.mubr.bf16.gmra.mrb[12].mxu0 %v959_v42  ;;  %v10176_v42 = vld [vmem:[%s9374_s28 + $0x68] sm:$0xff]  ;;  %v1164_v52 = vpack.c.bf16 %v1140_v41, %v1141_v18 }
 0x1a7   : > { %2395 = vmatprep.mubr.bf16.mxu0 %v1161_v57  ;;  %v1009_v57 = vrot.slane %v10176_v42, 3  ;;  %v808_v25 = vrot.slane %v10176_v42, 2 }
 0x1a9   : > { %v1142_v5 = vsel %vm1076_vm1, %v1009_v57, %v1010_v47  ;;  %v1143_v4 = vsel %vm1076_vm1, %v1008_v22, %v1009_v57  ;;  %v942_v57 = vsel %vm875_vm2, %v807_v33, %v808_v25 }
 0x1ae   : > { %2396 = vmatmul.mubr.bf16.gmra.mrb[16].mxu0 %v960_v48  ;;  %v1163_v48 = vpack.c.bf16 %v1142_v5, %v1143_v4  ;;  %v810_v5 = vrot.slane %v10200_v24, 2  ;;  %v811_v4 = vrot.slane %v10204_v15, 2  ;;  %v1016_v15 = vrot.slane %v9571_v61, 3  ;;  %v10250_v61 = vld [vmem:[%s9374_s28 + $0xa0] sm:$0xff] }
 0x1af   : > { %2405 = vmatprep.mubr.bf16.mxu0 %v1162_v8  ;;  %v809_v8 = vrot.slane %v10180_v28, 2  ;;  %v10222_v28 = vld [vmem:[%s9374_s28 + $0x90] sm:$0xff] }
 0x1b0   : > { %v939_v33 = vsel %vm875_vm2, %v810_v5, %v811_v4 }
 0x1b1   : > { %v941_v22 = vsel %vm875_vm2, %v808_v25, %v809_v8  ;;  %v1014_v25 = vrot.slane %v10222_v28, 3  ;;  %v940_v47 = vsel %vm875_vm2, %v809_v8, %v810_v5 }
 0x1b2   : > { %v962_v49 = vpack.c.bf16 %v941_v22, %v942_v57  ;;  %v963_v57 = vpack.c.bf16 %v939_v33, %v940_v47 }
 0x1b6   : > { %2406 = vmatmul.mubr.bf16.gmra.mrb[20].mxu0 %v961_v3  ;;  %v10218_v3 = vld [vmem:[%s9374_s28 + $0x88] sm:$0xff] }
 0x1b7   : > { %2415 = vmatprep.mubr.bf16.mxu0 %v1163_v48  ;;  %v1013_v48 = vrot.slane %v10218_v3, 3  ;;  %v812_v18 = vrot.slane %v10218_v3, 2 }
 0x1b9   : > { %v1138_v58 = vsel %vm1076_vm1, %v1013_v48, %v1014_v25  ;;  %v1139_v22 = vsel %vm1076_vm1, %v1012_v23, %v1013_v48  ;;  %v938_v5 = vsel %vm875_vm2, %v811_v4, %v812_v18  ;;  %v1018_v4 = vrot.slane %v9589_v7, 3 }
 0x1ba   : > { %v1165_v41 = vpack.c.bf16 %v1138_v58, %v1139_v22  ;;  %v10246_v58 = vld [vmem:[%s9374_s28 + $0x98] sm:$0xff]  ;;  %v815_v22 = vrot.slane %v10250_v61, 2 }
 0x1be   : > { %2416 = vmatmul.mubr.bf16.gmra.mrb[24].mxu0 %v962_v49  ;;  %v813_v49 = vrot.slane %v10222_v28, 2 }
 0x1bf   : > { %2425 = vmatprep.mubr.bf16.mxu0 %v1164_v52  ;;  %v1015_v52 = vrot.slane %v9568_v60, 3  ;;  %v814_v60 = vrot.slane %v10246_v58, 2 }
 0x1c0   : > { %v937_v8 = vsel %vm875_vm2, %v812_v18, %v813_v49 }
 0x1c1   : > { %v1136_v23 = vsel %vm1076_vm1, %v1015_v52, %v1016_v15  ;;  %v1137_v48 = vsel %vm1076_vm1, %v1014_v25, %v1015_v52  ;;  %v964_v33 = vpack.c.bf16 %v937_v8, %v938_v5  ;;  %v936_v25 = vsel %vm875_vm2, %v813_v49, %v814_v60  ;;  %v8906_v49 = vld [vmem:[%s13076_s1 + $0x250] ss:$8 sps:$4 sm:$0xff]  }
 0x1c2   : > { %v1166_v47 = vpack.c.bf16 %v1136_v23, %v1137_v48  ;;  %v816_v23 = vrot.slane %v9586_v6, 2  ;;  %v817_v48 = vrot.slane %v9589_v7, 2 }
 0x1c6   : > { %2426 = vmatmul.mubr.bf16.gmra.mrb[28].mxu0 %v963_v57  ;;  %v1017_v57 = vrot.slane %v9586_v6, 3  ;;  %v934_v6 = vsel %vm875_vm2, %v815_v22, %v816_v23 }
 0x1c7   : > { %2435 = vmatprep.mubr.bf16.mxu0 %v1165_v41  ;;  %v935_v41 = vsel %vm875_vm2, %v814_v60, %v815_v22  ;;  %v8908_v60 = vld [vmem:[%s13076_s1 + $0x254] ss:$8 sps:$4 sm:$0xff]  }
 0x1c8   : > { %v1134_v18 = vsel %vm1076_vm1, %v1017_v57, %v1018_v4  ;;  %v1135_v52 = vsel %vm1076_vm1, %v1016_v15, %v1017_v57  ;;  %v965_v8 = vpack.c.bf16 %v935_v41, %v936_v25  ;;  %v933_v15 = vsel %vm875_vm2, %v816_v23, %v817_v48  ;;  %2766 = vmatprep.subr.bf16.mxu0 %v8908_v60 }
 0x1c9   : > { %v1167_v5 = vpack.c.bf16 %v1134_v18, %v1135_v52  ;;  %2767 = vmatpush1.bf16.msra.mxu0 %v8906_v49  ;;  %v966_v41 = vpack.c.bf16 %v933_v15, %v934_v6  ;;  %v818_v18 = vrot.slane %v9602_v19, 2  ;;  %v819_v52 = vrot.slane %v9605_v20, 2 }
 0x1ca   : > { %v820_v49 = vrot.slane %v9621_v29, 2  ;;  %v821_v60 = vrot.slane %v9624_v30, 2  ;;  %v1023_v15 = vrot.slane %v9635_v37, 3  ;;  %v1024_v6 = vrot.slane %v9638_v38, 3 }
 0x1cb   : > { %v931_v22 = vsel %vm875_vm2, %v818_v18, %v819_v52 }
 0x1ce   : > { %2436 = vmatmul.mubr.bf16.gmra.mrb[32].mxu0 %v964_v33  ;;  %v1019_v33 = vrot.slane %v9602_v19, 3 }
 0x1cf   : > { %2445 = vmatprep.mubr.bf16.mxu0 %v1166_v47  ;;  %v1020_v47 = vrot.slane %v9605_v20, 3 }
 0x1d0   : > { %v1133_v57 = vsel %vm1076_vm1, %v1018_v4, %v1019_v33  ;;  %v932_v4 = vsel %vm875_vm2, %v817_v48, %v818_v18  ;;  %v929_v48 = vsel %vm875_vm2, %v820_v49, %v821_v60  ;;  %v1025_v18 = vrot.slane %v9649_v45, 3 }
 0x1d1   : > { %v1132_v7 = vsel %vm1076_vm1, %v1019_v33, %v1020_v47  ;;  %v967_v33 = vpack.c.bf16 %v931_v22, %v932_v4 }
 0x1d2   : > { %v1168_v25 = vpack.c.bf16 %v1132_v7, %v1133_v57  ;;  %v930_v7 = vsel %vm875_vm2, %v819_v52, %v820_v49 }
 0x1d3   : > { %v968_v57 = vpack.c.bf16 %v929_v48, %v930_v7  ;;  %v826_v48 = vrot.slane %v9669_v55, 2  ;;  %v827_v7 = vrot.slane %v9672_v56, 2 }
 0x1d6   : > { %2446 = vmatmul.mubr.bf16.gmra.mrb[36].mxu0 %v965_v8  ;;  %v1021_v8 = vrot.slane %v9621_v29, 3 }
 0x1d7   : > { %2455 = vmatprep.mubr.bf16.mxu0 %v1167_v5  ;;  %v1022_v5 = vrot.slane %v9624_v30, 3 }
 0x1d8   : > { %v1131_v19 = vsel %vm1076_vm1, %v1020_v47, %v1021_v8  ;;  %v1128_v47 = vsel %vm1076_vm1, %v1023_v15, %v1024_v6 }
 0x1d9   : > { %v1130_v23 = vsel %vm1076_vm1, %v1021_v8, %v1022_v5  ;;  %v1129_v29 = vsel %vm1076_vm1, %v1022_v5, %v1023_v15  ;;  %v1026_v8 = vrot.slane %v9652_v46, 3 }
 0x1da   : > { %v1169_v20 = vpack.c.bf16 %v1130_v23, %v1131_v19  ;;  %v1170_v30 = vpack.c.bf16 %v1128_v47, %v1129_v29  ;;  %v824_v23 = vrot.slane %v9649_v45, 2  ;;  %v825_v19 = vrot.slane %v9652_v46, 2 }
 0x1db   : > { %v1126_v5 = vsel %vm1076_vm1, %v1025_v18, %v1026_v8  ;;  %v1029_v47 = vrot.slane %v9683_v1, 3  ;;  %v1030_v29 = vrot.slane %v9686_v2, 3 }
 0x1dc   : > { %v925_v49 = vsel %vm875_vm2, %v824_v23, %v825_v19 }
 0x1de   : > { %2456 = vmatmul.mubr.bf16.gmra.mrb[40].mxu0 %v966_v41  ;;  %v822_v41 = vrot.slane %v9635_v37, 2  ;;  %v1127_v37 = vsel %vm1076_vm1, %v1024_v6, %v1025_v18 }
 0x1df   : > { %2465 = vmatprep.mubr.bf16.mxu0 %v1168_v25  ;;  %v823_v25 = vrot.slane %v9638_v38, 2  ;;  %v1171_v38 = vpack.c.bf16 %v1126_v5, %v1127_v37  ;;  %v1031_v5 = vrot.slane %v9703_v14, 3  ;;  %v1032_v37 = vrot.slane %v9706_v16, 3 }
 0x1e0   : > { %v928_v22 = vsel %vm875_vm2, %v821_v60, %v822_v41 }
 0x1e1   : > { %v927_v52 = vsel %vm875_vm2, %v822_v41, %v823_v25  ;;  %v926_v60 = vsel %vm875_vm2, %v823_v25, %v824_v23  ;;  %v923_v41 = vsel %vm875_vm2, %v826_v48, %v827_v7  ;;  %v1120_v23 = vsel %vm1076_vm1, %v1031_v5, %v1032_v37 }
 0x1e2   : > { %v969_v4 = vpack.c.bf16 %v927_v52, %v928_v22  ;;  %v970_v6 = vpack.c.bf16 %v925_v49, %v926_v60  ;;  %v828_v52 = vrot.slane %v9683_v1, 2  ;;  %v829_v22 = vrot.slane %v9686_v2, 2 }
 0x1e3   : > { %v1121_v1 = vsel %vm1076_vm1, %v1030_v29, %v1031_v5  ;;  %v1033_v49 = vrot.slane %v9717_v26, 3  ;;  %v1034_v60 = vrot.slane %v9720_v27, 3 }
 0x1e4   : > { %v1174_v2 = vpack.c.bf16 %v1120_v23, %v1121_v1  ;;  %v1039_v23 = vrot.slane %v9765_v62, 3  ;;  %v1040_v1 = vrot.slane %v9768_v63, 3 }
 0x1e6   : > { %2466 = vmatmul.mubr.bf16.gmra.mrb[44].mxu0 %v967_v33  ;;  %v1027_v33 = vrot.slane %v9669_v55, 3  ;;  %v924_v55 = vsel %vm875_vm2, %v825_v19, %v826_v48  ;;  %v832_v48 = vrot.slane %v9717_v26, 2 }
 0x1e7   : > { %2475 = vmatprep.mubr.bf16.mxu0 %v1169_v20  ;;  %v1028_v20 = vrot.slane %v9672_v56, 3  ;;  %v1122_v56 = vsel %vm1076_vm1, %v1029_v47, %v1030_v29  ;;  %v971_v18 = vpack.c.bf16 %v923_v41, %v924_v55  ;;  %v1036_v29 = vrot.slane %v9734_v39, 3 }
 0x1e8   : > { %v1125_v45 = vsel %vm1076_vm1, %v1026_v8, %v1027_v33 }
 0x1e9   : > { %v1124_v15 = vsel %vm1076_vm1, %v1027_v33, %v1028_v20  ;;  %v1123_v25 = vsel %vm1076_vm1, %v1028_v20, %v1029_v47  ;;  %v830_v33 = vrot.slane %v9703_v14, 2  ;;  %v831_v20 = vrot.slane %v9706_v16, 2 }
 0x1ea   : > { %v1172_v46 = vpack.c.bf16 %v1124_v15, %v1125_v45  ;;  %v1173_v8 = vpack.c.bf16 %v1122_v56, %v1123_v25  ;;  %v1119_v14 = vsel %vm1076_vm1, %v1032_v37, %v1033_v49  ;;  %v1035_v47 = vrot.slane %v9731_v36, 3 }
 0x1eb   : > { %v919_v15 = vsel %vm875_vm2, %v830_v33, %v831_v20  ;;  %v920_v45 = vsel %vm875_vm2, %v829_v22, %v830_v33  ;;  %v834_v56 = vrot.slane %v9731_v36, 2  ;;  %v835_v25 = vrot.slane %v9734_v39, 2 }
 0x1ec   : > { %v1116_v41 = vsel %vm1076_vm1, %v1035_v47, %v1036_v29  ;;  %v1117_v26 = vsel %vm1076_vm1, %v1034_v60, %v1035_v47  ;;  %v840_v47 = vrot.slane %v9785_v13, 2 }
 0x1ee   : > { %2476 = vmatmul.mubr.bf16.gmra.mrb[48].mxu0 %v968_v57  ;;  %v8909_v57 = vld [vmem:[%s13076_s1 + $0x260] ss:$8 sps:$4 sm:$0xff]  }
 0x1ef   : > { %2485 = vmatprep.mubr.bf16.mxu0 %v1170_v30  ;;  %v8911_v30 = vld [vmem:[%s13076_s1 + $0x264] ss:$8 sps:$4 sm:$0xff]  }
 0x1f0   : > { %2768 = vmatprep.subr.bf16.mxu0 %v8911_v30  ;;  %v918_v30 = vsel %vm875_vm2, %v831_v20, %v832_v48 }
 0x1f1   : > { %2769 = vmatpush1.bf16.msra.mxu0 %v8909_v57 }
 0x1f6   : > { %2486 = vmatmul.mubr.bf16.gmra.mrb[52].mxu0 %v969_v4  ;;  %v921_v4 = vsel %vm875_vm2, %v828_v52, %v829_v22 }
 0x1f7   : > { %2495 = vmatprep.mubr.bf16.mxu0 %v1171_v38  ;;  %v922_v38 = vsel %vm875_vm2, %v827_v7, %v828_v52  ;;  %v833_v7 = vrot.slane %v9720_v27, 2  ;;  %v1176_v27 = vpack.c.bf16 %v1116_v41, %v1117_v26  ;;  %v915_v52 = vsel %vm875_vm2, %v834_v56, %v835_v25 }
 0x1f8   : > { %v972_v19 = vpack.c.bf16 %v921_v4, %v922_v38  ;;  %v836_v4 = vrot.slane %v9751_v50, 2  ;;  %v837_v38 = vrot.slane %v9754_v51, 2 }
 0x1f9   : > { %v917_v57 = vsel %vm875_vm2, %v832_v48, %v833_v7  ;;  %v916_v22 = vsel %vm875_vm2, %v833_v7, %v834_v56  ;;  %v842_v56 = vrot.slane %v9799_v31, 2 }
 0x1fa   : > { %v974_v55 = vpack.c.bf16 %v917_v57, %v918_v30  ;;  %v975_v37 = vpack.c.bf16 %v915_v52, %v916_v22  ;;  %v913_v33 = vsel %vm875_vm2, %v836_v4, %v837_v38  ;;  %v1043_v57 = vrot.slane %v9799_v31, 3 }
 0x1fb   : > { %v1044_v30 = vrot.slane %v9802_v32, 3 }
 0x1fe   : > { %2496 = vmatmul.mubr.bf16.gmra.mrb[56].mxu0 %v970_v6  ;;  %v1118_v6 = vsel %vm1076_vm1, %v1033_v49, %v1034_v60 }
 0x1ff   : > { %2505 = vmatprep.mubr.bf16.mxu0 %v1172_v46  ;;  %v973_v46 = vpack.c.bf16 %v919_v15, %v920_v45  ;;  %v1175_v16 = vpack.c.bf16 %v1118_v6, %v1119_v14  ;;  %v838_v15 = vrot.slane %v9765_v62, 2  ;;  %v839_v45 = vrot.slane %v9768_v63, 2 }
 0x200   : > { %v1041_v6 = vrot.slane %v9785_v13, 3  ;;  %v1042_v14 = vrot.slane %v9788_v17, 3 }
 0x201   : > { %v910_v26 = vsel %vm875_vm2, %v839_v45, %v840_v47 }
 0x202   : > { %v1110_v48 = vsel %vm1076_vm1, %v1041_v6, %v1042_v14  ;;  %v1111_v62 = vsel %vm1076_vm1, %v1040_v1, %v1041_v6  ;;  %v1109_v13 = vsel %vm1076_vm1, %v1042_v14, %v1043_v57  ;;  %v848_v6 = vrot.slane %v9847_v11, 2 }
 0x203   : > { %v1179_v63 = vpack.c.bf16 %v1110_v48, %v1111_v62  ;;  %v849_v14 = vrot.slane %v9850_v21, 2 }
 0x205   : > { %v901_v48 = vsel %vm875_vm2, %v848_v6, %v849_v14 }
 0x206   : > { %2506 = vmatmul.mubr.bf16.gmra.mrb[60].mxu0 %v971_v18  ;;  %v1037_v18 = vrot.slane %v9751_v50, 3  ;;  %v914_v50 = vsel %vm875_vm2, %v835_v25, %v836_v4  ;;  %v843_v25 = vrot.slane %v9802_v32, 2  ;;  %v1047_v4 = vrot.slane %v9833_v59, 3 }
 0x207   : > { %2515 = vmatprep.mubr.bf16.mxu0 %v1173_v8  ;;  %v1038_v8 = vrot.slane %v9754_v51, 3  ;;  %v1112_v51 = vsel %vm1076_vm1, %v1039_v23, %v1040_v1  ;;  %v976_v49 = vpack.c.bf16 %v913_v33, %v914_v50  ;;  %v846_v33 = vrot.slane %v9833_v59, 2 }
 0x208   : > { %v1115_v36 = vsel %vm1076_vm1, %v1036_v29, %v1037_v18  ;;  %v841_v29 = vrot.slane %v9788_v17, 2  ;;  %v907_v52 = vsel %vm875_vm2, %v842_v56, %v843_v25  ;;  %v847_v50 = vrot.slane %v9836_v0, 2 }
 0x209   : > { %v1114_v5 = vsel %vm1076_vm1, %v1037_v18, %v1038_v8  ;;  %v1113_v20 = vsel %vm1076_vm1, %v1038_v8, %v1039_v23  ;;  %v1045_v18 = vrot.slane %v9813_v43, 3  ;;  %v1046_v8 = vrot.slane %v9816_v44, 3 }
 0x20a   : > { %v1177_v39 = vpack.c.bf16 %v1114_v5, %v1115_v36  ;;  %v1178_v60 = vpack.c.bf16 %v1112_v51, %v1113_v20  ;;  %v909_v41 = vsel %vm875_vm2, %v840_v47, %v841_v29  ;;  %v908_v22 = vsel %vm875_vm2, %v841_v29, %v842_v56 }
 0x20b   : > { %v1106_v5 = vsel %vm1076_vm1, %v1045_v18, %v1046_v8  ;;  %v1107_v31 = vsel %vm1076_vm1, %v1044_v30, %v1045_v18  ;;  %v979_v36 = vpack.c.bf16 %v907_v52, %v908_v22  ;;  %v1049_v51 = vrot.slane %v9847_v11, 3 }
 0x20c   : > { %v1181_v32 = vpack.c.bf16 %v1106_v5, %v1107_v31  ;;  %v1050_v20 = vrot.slane %v9850_v21, 3  ;;  %v902_v62 = vsel %vm875_vm2, %v847_v50, %v848_v6  ;;  %v850_v47 = vrot.slane %v9864_v35, 2  ;;  %v13227_v6 = vld [vmem:[#allocation6_spill] sm:$0xff] }
 0x20d   : > { %v851_v29 = vrot.slane %v9867_v40, 2  ;;  %v1055_v56 = vrot.slane %v9892_v9, 3  ;;  %v854_v5 = vrot.slane %v9892_v9, 2  ;;  %v855_v31 = vrot.slane %v9895_v10, 2 }
 0x20e   : > { %2516 = vmatmul.mubr.bf16.gmra.mrb[64].mxu0 %v972_v19  ;;  %v8912_v19 = vld [vmem:[%s13076_s1 + $0x270] ss:$8 sps:$4 sm:$0xff]  }
 0x20f   : > { %2525 = vmatprep.mubr.bf16.mxu0 %v1174_v2  ;;  %v8914_v2 = vld [vmem:[%s13076_s1 + $0x274] ss:$8 sps:$4 sm:$0xff]  }
 0x210   : > { %2770 = vmatprep.subr.bf16.mxu0 %v8914_v2 }
 0x211   : > { %2771 = vmatpush1.bf16.msra.mxu0 %v8912_v19 }
 0x216   : > { %2526 = vmatmul.mubr.bf16.gmra.mrb[68].mxu0 %v973_v46  ;;  %v911_v46 = vsel %vm875_vm2, %v838_v15, %v839_v45 }
 0x217   : > { %2535 = vmatprep.mubr.bf16.mxu0 %v1175_v16  ;;  %v912_v16 = vsel %vm875_vm2, %v837_v38, %v838_v15  ;;  %v1048_v38 = vrot.slane %v9836_v0, 3  ;;  %v1102_v15 = vsel %vm1076_vm1, %v1049_v51, %v1050_v20 }
 0x218   : > { %v977_v7 = vpack.c.bf16 %v911_v46, %v912_v16  ;;  %v1051_v46 = vrot.slane %v9864_v35, 3  ;;  %v1052_v16 = vrot.slane %v9867_v40, 3 }
 0x219   : > { %v1104_v19 = vsel %vm1076_vm1, %v1047_v4, %v1048_v38  ;;  %v1103_v59 = vsel %vm1076_vm1, %v1048_v38, %v1049_v51 }
 0x21a   : > { %v1183_v0 = vpack.c.bf16 %v1102_v15, %v1103_v59  ;;  %v1101_v11 = vsel %vm1076_vm1, %v1050_v20, %v1051_v46 }
 0x21e   : > { %2536 = vmatmul.mubr.bf16.gmra.mrb[72].mxu0 %v974_v55  ;;  %v1108_v55 = vsel %vm1076_vm1, %v1043_v57, %v1044_v30  ;;  %v1053_v57 = vrot.slane %v9878_v53, 3  ;;  %v1054_v30 = vrot.slane %v9881_v54, 3 }
 0x21f   : > { %2545 = vmatprep.mubr.bf16.mxu0 %v1176_v27  ;;  %v978_v27 = vpack.c.bf16 %v909_v41, %v910_v26  ;;  %v1180_v17 = vpack.c.bf16 %v1108_v55, %v1109_v13  ;;  %v899_v41 = vsel %vm875_vm2, %v850_v47, %v851_v29  ;;  %v900_v26 = vsel %vm875_vm2, %v849_v14, %v850_v47  ;;  %v13228_v47 = vld [vmem:[#allocation7_spill] sm:$0xff] }
 0x220   : > { %v1098_v55 = vsel %vm1076_vm1, %v1053_v57, %v1054_v30  ;;  %v1099_v35 = vsel %vm1076_vm1, %v1052_v16, %v1053_v57  ;;  %v983_v13 = vpack.c.bf16 %v899_v41, %v900_v26  ;;  %v1062_v14 = vrot.slane %v13227_v6, 3  ;;  %v13229_v57 = vld [vmem:[#allocation8_spill] sm:$0xff] }
 0x221   : > { %v1185_v40 = vpack.c.bf16 %v1098_v55, %v1099_v35 }
 0x226   : > { %2546 = vmatmul.mubr.bf16.gmra.mrb[76].mxu0 %v975_v37  ;;  %v844_v37 = vrot.slane %v9813_v43, 2  ;;  %v1105_v43 = vsel %vm1076_vm1, %v1046_v8, %v1047_v4 }
 0x227   : > { %2555 = vmatprep.mubr.bf16.mxu0 %v1177_v39  ;;  %v845_v39 = vrot.slane %v9816_v44, 2  ;;  %v1182_v44 = vpack.c.bf16 %v1104_v19, %v1105_v43  ;;  %v13224_v43 = vld [vmem:[#allocation3_spill] sm:$0xff] }
 0x228   : > { %v906_v1 = vsel %vm875_vm2, %v843_v25, %v844_v37  ;;  %v1056_v25 = vrot.slane %v9895_v10, 3  ;;  %v858_v15 = vrot.slane %v13224_v43, 2 }
 0x229   : > { %v905_v23 = vsel %vm875_vm2, %v844_v37, %v845_v39 }
 0x22a   : > { %v980_v2 = vpack.c.bf16 %v905_v23, %v906_v1  ;;  %v1096_v52 = vsel %vm1076_vm1, %v1055_v56, %v1056_v25  ;;  %v856_v1 = vrot.slane %v9906_v34, 2 }
 0x22c   : > { %v894_v51 = vsel %vm875_vm2, %v855_v31, %v856_v1 }
 0x22e   : > { %2556 = vmatmul.mubr.bf16.gmra.mrb[80].mxu0 %v976_v49  ;;  %v903_v49 = vsel %vm875_vm2, %v846_v33, %v847_v50 }
 0x22f   : > { %2565 = vmatprep.mubr.bf16.mxu0 %v1178_v60  ;;  %v904_v60 = vsel %vm875_vm2, %v845_v39, %v846_v33  ;;  %v895_v39 = vsel %vm875_vm2, %v854_v5, %v855_v31 }
 0x230   : > { %v981_v45 = vpack.c.bf16 %v903_v49, %v904_v60 }
 0x236   : > { %2566 = vmatmul.mubr.bf16.gmra.mrb[84].mxu0 %v977_v7  ;;  %v1100_v7 = vsel %vm1076_vm1, %v1051_v46, %v1052_v16 }
 0x237   : > { %2575 = vmatprep.mubr.bf16.mxu0 %v1179_v63  ;;  %v982_v63 = vpack.c.bf16 %v901_v48, %v902_v62  ;;  %v1184_v21 = vpack.c.bf16 %v1100_v7, %v1101_v11 }
 0x23e   : > { %2576 = vmatmul.mubr.bf16.gmra.mrb[88].mxu0 %v978_v27  ;;  %v852_v27 = vrot.slane %v9878_v53, 2  ;;  %v1097_v53 = vsel %vm1076_vm1, %v1054_v30, %v1055_v56  ;;  %v1064_v30 = vrot.slane %v13229_v57, 3  ;;  %v13230_v56 = vld [vmem:[#allocation9_spill] sm:$0xff] }
 0x23f   : > { %2585 = vmatprep.mubr.bf16.mxu0 %v1180_v17  ;;  %v853_v17 = vrot.slane %v9881_v54, 2  ;;  %v1186_v54 = vpack.c.bf16 %v1096_v52, %v1097_v53 }
 0x240   : > { %v898_v8 = vsel %vm875_vm2, %v851_v29, %v852_v27  ;;  %v1063_v29 = vrot.slane %v13228_v47, 3 }
 0x241   : > { %v897_v18 = vsel %vm875_vm2, %v852_v27, %v853_v17  ;;  %v896_v4 = vsel %vm875_vm2, %v853_v17, %v854_v5  ;;  %v862_v27 = vrot.slane %v13228_v47, 2  ;;  %v863_v17 = vrot.slane %v13229_v57, 2 }
 0x242   : > { %v984_v22 = vpack.c.bf16 %v897_v18, %v898_v8  ;;  %v985_v23 = vpack.c.bf16 %v895_v39, %v896_v4  ;;  %v1088_v55 = vsel %vm1076_vm1, %v1063_v29, %v1064_v30  ;;  %v1089_v35 = vsel %vm1076_vm1, %v1062_v14, %v1063_v29  ;;  %v13231_v18 = vld [vmem:[#allocation10_spill] sm:$0xff]  ;;  %v13233_v4 = vld [vmem:[#allocation12_spill] sm:$0xff] }
 0x243   : > { %v1066_v8 = vrot.slane %v13231_v18, 3  ;;  %v887_v52 = vsel %vm875_vm2, %v862_v27, %v863_v17 }
 0x246   : > { %2586 = vmatmul.mubr.bf16.gmra.mrb[92].mxu0 %v979_v36  ;;  %v1057_v36 = vrot.slane %v9906_v34, 3 }
 0x247   : > { %2595 = vmatprep.mubr.bf16.mxu0 %v1181_v32  ;;  %v13223_v32 = vld [vmem:[#allocation2_spill] sm:$0xff] }
 0x248   : > { %v1058_v37 = vrot.slane %v13223_v32, 3  ;;  %v1095_v9 = vsel %vm1076_vm1, %v1056_v25, %v1057_v36  ;;  %v857_v19 = vrot.slane %v13223_v32, 2  ;;  %v1065_v25 = vrot.slane %v13230_v56, 3 }
 0x249   : > { %v865_v32 = vrot.slane %v13231_v18, 2 }
 0x24a   : > { %v1094_v38 = vsel %vm1076_vm1, %v1057_v36, %v1058_v37  ;;  %v893_v50 = vsel %vm875_vm2, %v856_v1, %v857_v19  ;;  %v892_v16 = vsel %vm875_vm2, %v857_v19, %v858_v15  ;;  %v864_v36 = vrot.slane %v13230_v56, 2 }
 0x24b   : > { %v1187_v10 = vpack.c.bf16 %v1094_v38, %v1095_v9  ;;  %v986_v49 = vpack.c.bf16 %v893_v50, %v894_v51  ;;  %v1068_v38 = vrot.slane %v13233_v4, 3  ;;  %v13234_v51 = vld [vmem:[#allocation13_spill] sm:$0xff] }
 0x24c   : > { %v885_v9 = vsel %vm875_vm2, %v864_v36, %v865_v32 }
 0x24e   : > { %2596 = vmatmul.mubr.bf16.gmra.mrb[96].mxu0 %v980_v2  ;;  %v1059_v2 = vrot.slane %v13224_v43, 3 }
 0x24f   : > { %2605 = vmatprep.mubr.bf16.mxu0 %v1182_v44  ;;  %v13225_v44 = vld [vmem:[#allocation4_spill] sm:$0xff] }
 0x250   : > { %v1060_v33 = vrot.slane %v13225_v44, 3  ;;  %v1093_v34 = vsel %vm1076_vm1, %v1058_v37, %v1059_v2  ;;  %v859_v59 = vrot.slane %v13225_v44, 2  ;;  %v13232_v37 = vld [vmem:[#allocation11_spill] sm:$0xff] }
 0x251   : > { %v1067_v39 = vrot.slane %v13232_v37, 3 }
 0x252   : > { %v1092_v20 = vsel %vm1076_vm1, %v1059_v2, %v1060_v33  ;;  %v891_v46 = vsel %vm875_vm2, %v858_v15, %v859_v59  ;;  %v10582_v2 = vld [vmem:[%s9374_s28 + $0x238] sm:$0xff] }
 0x253   : > { %v1188_v60 = vpack.c.bf16 %v1092_v20, %v1093_v34  ;;  %v987_v7 = vpack.c.bf16 %v891_v46, %v892_v16  ;;  %v1085_v1 = vsel %vm1076_vm1, %v1066_v8, %v1067_v39  ;;  %v866_v44 = vrot.slane %v10582_v2, 2  ;;  %v13235_v34 = vld [vmem:[#allocation14_spill] sm:$0xff]  ;;  %v10604_v16 = vld [vmem:[%s9374_s28 + $0x250] sm:$0xff] }
 0x254   : > { %v1069_v20 = vrot.slane %v13234_v51, 3 }
 0x255   : > { %v884_v15 = vsel %vm875_vm2, %v865_v32, %v866_v44  ;;  %v13240_v32 = vld [vmem:[#allocation19_spill] sm:$0xff] }
 0x256   : > { %2606 = vmatmul.mubr.bf16.gmra.mrb[100].mxu0 %v981_v45  ;;  %v13226_v45 = vld [vmem:[#allocation5_spill] sm:$0xff]  ;;  %v1075_v37 = vrot.slane %v13240_v32, 3  ;;  %v13251_v32 = vld [vmem:[#allocation28_spill] sm:$0xff] }
 0x257   : > { %2615 = vmatprep.mubr.bf16.mxu0 %v1183_v0  ;;  %v1061_v0 = vrot.slane %v13226_v45, 3 }
 0x259   : > { %v1090_v48 = vsel %vm1076_vm1, %v1061_v0, %v1062_v14  ;;  %v1091_v62 = vsel %vm1076_vm1, %v1060_v33, %v1061_v0  ;;  %v10586_v33 = vld [vmem:[%s9374_s28 + $0x240] sm:$0xff]  ;;  %v10600_v14 = vld [vmem:[%s9374_s28 + $0x248] sm:$0xff] }
 0x25a   : > { %v1189_v11 = vpack.c.bf16 %v1090_v48, %v1091_v62  ;;  %v867_v50 = vrot.slane %v10586_v33, 2  ;;  %v868_v46 = vrot.slane %v10600_v14, 2  ;;  %v869_v48 = vrot.slane %v10604_v16, 2  ;;  %v13236_v62 = vld [vmem:[#allocation15_spill] sm:$0xff] }
 0x25c   : > { %v882_v47 = vsel %vm875_vm2, %v867_v50, %v868_v46 }
 0x25e   : > { %2616 = vmatmul.mubr.bf16.gmra.mrb[104].mxu0 %v982_v63  ;;  %v860_v63 = vrot.slane %v13226_v45, 2  ;;  %v1083_v45 = vsel %vm1076_vm1, %v1068_v38, %v1069_v20 }
 0x25f   : > { %2625 = vmatprep.mubr.bf16.mxu0 %v1184_v21  ;;  %v861_v21 = vrot.slane %v13227_v6, 2 }
 0x260   : > { %v890_v26 = vsel %vm875_vm2, %v859_v59, %v860_v63 }
 0x261   : > { %v889_v41 = vsel %vm875_vm2, %v860_v63, %v861_v21  ;;  %v888_v53 = vsel %vm875_vm2, %v861_v21, %v862_v27  ;;  %v881_v21 = vsel %vm875_vm2, %v868_v46, %v869_v48 }
 0x262   : > { %v989_v5 = vpack.c.bf16 %v887_v52, %v888_v53 }
 0x266   : > { %2626 = vmatmul.mubr.bf16.gmra.mrb[108].mxu0 %v983_v13  ;;  %v988_v13 = vpack.c.bf16 %v889_v41, %v890_v26  ;;  %v10618_v26 = vld [vmem:[%s9374_s28 + $0x258] sm:$0xff] }
 0x267   : > { %2635 = vmatprep.mubr.bf16.mxu0 %v1185_v40  ;;  %v1190_v40 = vpack.c.bf16 %v1088_v55, %v1089_v35  ;;  %v870_v55 = vrot.slane %v10618_v26, 2  ;;  %v10622_v35 = vld [vmem:[%s9374_s28 + $0x260] sm:$0xff] }
 0x269   : > { %v880_v18 = vsel %vm875_vm2, %v869_v48, %v870_v55 }
 0x26e   : > { %2636 = vmatmul.mubr.bf16.gmra.mrb[112].mxu0 %v984_v22  ;;  %v1086_v22 = vsel %vm1076_vm1, %v1065_v25, %v1066_v8 }
 0x26f   : > { %2645 = vmatprep.mubr.bf16.mxu0 %v1186_v54  ;;  %v1087_v54 = vsel %vm1076_vm1, %v1064_v30, %v1065_v25  ;;  %v992_v30 = vpack.c.bf16 %v881_v21, %v882_v47 }
 0x270   : > { %v1191_v31 = vpack.c.bf16 %v1086_v22, %v1087_v54  ;;  %v10636_v54 = vld [vmem:[%s9374_s28 + $0x268] sm:$0xff] }
 0x276   : > { %2646 = vmatmul.mubr.bf16.gmra.mrb[116].mxu0 %v985_v23  ;;  %v886_v23 = vsel %vm875_vm2, %v863_v17, %v864_v36  ;;  %v13239_v17 = vld [vmem:[#allocation18_spill] sm:$0xff] }
 0x277   : > { %2655 = vmatprep.mubr.bf16.mxu0 %v1187_v10  ;;  %v1084_v10 = vsel %vm1076_vm1, %v1067_v39, %v1068_v38  ;;  %v990_v19 = vpack.c.bf16 %v885_v9, %v886_v23  ;;  %v1074_v56 = vrot.slane %v13239_v17, 3  ;;  %v13241_v9 = vld [vmem:[#allocation20_spill] sm:$0xff] }
 0x278   : > { %v1192_v43 = vpack.c.bf16 %v1084_v10, %v1085_v1  ;;  %v13242_v23 = vrot.slane %v13241_v9, 3  ;;  %v13243_v51 = vrot.slane %v13241_v9, 2  ;;  %v13252_v9 = vld [vmem:[#allocation29_spill] sm:$0xff] }
 0x279   : > { %v1077_v38 = vsel %vm1076_vm1, %v1074_v56, %v1075_v37 }
 0x27a   : > { %v1156_v10 = vsel %vm1076_vm1, %v1075_v37, %v13242_v23  ;;  %v1207_v37 = vrot.slane %v13251_v32, 4  ;;  %v1208_v23 = vrot.slane %v13252_v9, 4 }
 0x27e   : > { %2656 = vmatmul.mubr.bf16.gmra.mrb[120].mxu0 %v986_v49  ;;  %v1070_v49 = vrot.slane %v13235_v34, 3 }
 0x27f   : > { %2665 = vmatprep.mubr.bf16.mxu0 %v1188_v60  ;;  %v883_v60 = vsel %vm875_vm2, %v866_v44, %v867_v50 }
 0x280   : > { %v1082_v59 = vsel %vm1076_vm1, %v1069_v20, %v1070_v49  ;;  %v991_v0 = vpack.c.bf16 %v883_v60, %v884_v15  ;;  %v9189_v15 = vld [vmem:[%s9374_s28 + $0x8] sm:$0xff] }
 0x281   : > { %v1193_v6 = vpack.c.bf16 %v1082_v59, %v1083_v45  ;;  %v1198_v59 = vrot.slane %v9189_v15, 4  ;;  %v9190_v45 = vld [vmem:[%s9374_s28 + $0x10] sm:$0xff] }
 0x286   : > { %2666 = vmatmul.mubr.bf16.gmra.mrb[124].mxu0 %v987_v7  ;;  %v1071_v7 = vrot.slane %v13236_v62, 3 }
 0x287   : > { %2675 = vmatprep.mubr.bf16.mxu0 %v1189_v11  ;;  %v13237_v11 = vld [vmem:[#allocation16_spill] sm:$0xff] }
 0x288   : > { %v1072_v63 = vrot.slane %v13237_v11, 3  ;;  %v1081_v57 = vsel %vm1076_vm1, %v1070_v49, %v1071_v7  ;;  %v10665_v49 = vld [vmem:[%s9374_s28] sm:$0xff] }
 0x289   : > { %v1197_v60 = vrot.slane %v10665_v49, 4 }
 0x28a   : > { %v1080_v29 = vsel %vm1076_vm1, %v1071_v7, %v1072_v63  ;;  %v13244_v7 = vld [vmem:[#allocation21_spill] sm:$0xff] }
 0x28b   : > { %v1194_v41 = vpack.c.bf16 %v1080_v29, %v1081_v57  ;;  %v1356_v48 = vsel %vm1277_vm3, %v1197_v60, %v1198_v59  ;;  %v1200_v11 = vrot.slane %v13244_v7, 4 }
 0x28e   : > { %2676 = vmatmul.mubr.bf16.gmra.mrb[128].mxu0 %v988_v13  ;;  %v871_v13 = vrot.slane %v10622_v35, 2 }
 0x28f   : > { %2685 = vmatprep.mubr.bf16.mxu0 %v1190_v40  ;;  %v13238_v40 = vld [vmem:[#allocation17_spill] sm:$0xff] }
 0x290   : > { %v1073_v27 = vrot.slane %v13238_v40, 3  ;;  %v879_v25 = vsel %vm875_vm2, %v870_v55, %v871_v13  ;;  %v13247_v55 = vld [vmem:[#allocation24_spill] sm:$0xff] }
 0x291   : > { %v993_v53 = vpack.c.bf16 %v879_v25, %v880_v18  ;;  %v13249_v18 = vld [vmem:[#allocation26_spill] sm:$0xff] }
 0x292   : > { %v1078_v8 = vsel %vm1076_vm1, %v1073_v27, %v1074_v56  ;;  %v1079_v52 = vsel %vm1076_vm1, %v1072_v63, %v1073_v27  ;;  %v13245_v63 = vld [vmem:[#allocation22_spill] sm:$0xff]  ;;  %v13248_v56 = vld [vmem:[#allocation25_spill] sm:$0xff] }
 0x293   : > { %v1195_v22 = vpack.c.bf16 %v1078_v8, %v1079_v52  ;;  %v1201_v21 = vrot.slane %v13245_v63, 4  ;;  %v1204_v25 = vrot.slane %v13248_v56, 4  ;;  %v1205_v8 = vrot.slane %v13249_v18, 4 }
 0x294   : > { %v1215_v63 = vrot.slane %v10222_v28, 4 }
 0x295   : > { %v1353_v47 = vsel %vm1277_vm3, %v1200_v11, %v1201_v21  ;;  %v1349_v52 = vsel %vm1277_vm3, %v1204_v25, %v1205_v8 }
 0x296   : > { %2686 = vmatmul.mubr.bf16.gmra.mrb[132].mxu0 %v989_v5  ;;  %v872_v5 = vrot.slane %v10636_v54, 2 }
 0x297   : > { %2695 = vmatprep.mubr.bf16.mxu0 %v1191_v31  ;;  %v10640_v31 = vld [vmem:[%s9374_s28 + $0x270] sm:$0xff] }
 0x298   : > { %v873_v36 = vrot.slane %v10640_v31, 2  ;;  %v878_v4 = vsel %vm875_vm2, %v871_v13, %v872_v5  ;;  %v1203_v13 = vrot.slane %v13247_v55, 4 }
 0x29a   : > { %v877_v39 = vsel %vm875_vm2, %v872_v5, %v873_v36  ;;  %v13250_v5 = vld [vmem:[#allocation27_spill] sm:$0xff] }
 0x29b   : > { %v994_v1 = vpack.c.bf16 %v877_v39, %v878_v4 }
 0x29e   : > { %2696 = vmatmul.mubr.bf16.gmra.mrb[136].mxu0 %v990_v19  ;;  %v1196_v19 = vpack.c.bf16 %v1156_v10, %v1077_v38  ;;  %v13253_v10 = vld [vmem:[#allocation30_spill] sm:$0xff] }
 0x29f   : > { %2705 = vmatprep.mubr.bf16.mxu0 %v1192_v43  ;;  %v10655_v43 = vld [vmem:[%s9374_s28 + $0x278] sm:$0xff] }
 0x2a0   : > { %v874_v44 = vrot.slane %v10655_v43, 2 }
 0x2a2   : > { %v876_v50 = vsel %vm875_vm2, %v873_v36, %v874_v44  ;;  %v955_v20 = vsel %vm875_vm2, %v874_v44, %v13243_v51  ;;  %v1206_v36 = vrot.slane %v13250_v5, 4  ;;  %v1346_v44 = vsel %vm1277_vm3, %v1207_v37, %v1208_v23 }
 0x2a3   : > { %v995_v34 = vpack.c.bf16 %v955_v20, %v876_v50  ;;  %v1210_v51 = vrot.slane %v10176_v42, 4  ;;  %v13254_v20 = vld [vmem:[#allocation31_spill] sm:$0xff] }
 0x2a4   : > { %v1347_v39 = vsel %vm1277_vm3, %v1206_v36, %v1207_v37  ;;  %v1348_v4 = vsel %vm1277_vm3, %v1205_v8, %v1206_v36  ;;  %v9196_v36 = vld [vmem:[%s9374_s28 + $0xd0] sm:$0xff] }
 0x2a5   : > { %v1362_v38 = vpack.c.bf16 %v1347_v39, %v1348_v4  ;;  %v1223_v32 = vrot.slane %v9196_v36, 4 }
 0x2a6   : > { %2706 = vmatmul.mubr.bf16.gmra.mrb[140].mxu0 %v991_v0  ;;  %v1199_v0 = vrot.slane %v9190_v45, 4 }
 0x2a7   : > { %2715 = vmatprep.mubr.bf16.mxu0 %v1193_v6  ;;  %v13136_v6 = vmov 0  }
 0x2a8   : > { %v1355_v46 = vsel %vm1277_vm3, %v1198_v59, %v1199_v0  ;;  %v1354_v29 = vsel %vm1277_vm3, %v1199_v0, %v1200_v11  ;;  %v1212_v0 = vrot.slane %v10200_v24, 4  ;;  %v1214_v11 = vrot.slane %v10218_v3, 4 }
 0x2a9   : > { %v1358_v62 = vpack.c.bf16 %v1355_v46, %v1356_v48  ;;  %v1359_v57 = vpack.c.bf16 %v1353_v47, %v1354_v29  ;;  %v13255_v46 = vld [vmem:[#allocation32_spill] sm:$0xff]  ;;  %v1216_v29 = vrot.slane %v10246_v58, 4 }
 0x2aa   : > { %v1213_v48 = vrot.slane %v13255_v46, 4  ;;  %v1339_v24 = vsel %vm1277_vm3, %v1214_v11, %v1215_v63 }
 0x2ab   : > { %v1338_v3 = vsel %vm1277_vm3, %v1215_v63, %v1216_v29  ;;  %v9203_v63 = vld [vmem:[%s9374_s28 + $0x108] sm:$0xff] }
 0x2ac   : > { %v1341_v42 = vsel %vm1277_vm3, %v1212_v0, %v1213_v48 }
 0x2ae   : > { %2716 = vmatmul.mubr.bf16.gmra.mrb[144].mxu0 %v992_v30  ;;  %v13246_v30 = vld [vmem:[#allocation23_spill] sm:$0xff] }
 0x2af   : > { %2725 = vmatprep.mubr.bf16.mxu0 %v1194_v41  ;;  %v1202_v41 = vrot.slane %v13246_v30, 4 }
 0x2b1   : > { %v1351_v40 = vsel %vm1277_vm3, %v1202_v41, %v1203_v13  ;;  %v1352_v27 = vsel %vm1277_vm3, %v1201_v21, %v1202_v41  ;;  %v1340_v21 = vsel %vm1277_vm3, %v1213_v48, %v1214_v11  ;;  %v9191_v41 = vld [vmem:[%s9374_s28 + $0xa8] sm:$0xff]  ;;  %v9202_v48 = vld [vmem:[%s9374_s28 + $0x100] sm:$0xff] }
 0x2b2   : > { %v1360_v17 = vpack.c.bf16 %v1351_v40, %v1352_v27  ;;  %v1366_v47 = vpack.c.bf16 %v1339_v24, %v1340_v21  ;;  %v1218_v55 = vrot.slane %v9191_v41, 4  ;;  %v1230_v24 = vrot.slane %v9203_v63, 4  ;;  %v9204_v21 = vld [vmem:[%s9374_s28 + $0x110] sm:$0xff]  ;;  %v9206_v41 = vld [vmem:[%s9374_s28 + $0x120] sm:$0xff] }
 0x2b3   : > { %v9218_v63 = vld [vmem:[%s9374_s28 + $0x180] sm:$0xff] }
 0x2b6   : > { %2726 = vmatmul.mubr.bf16.gmra.mrb[148].mxu0 %v993_v53  ;;  %v1350_v53 = vsel %vm1277_vm3, %v1203_v13, %v1204_v25  ;;  %v9192_v13 = vld [vmem:[%s9374_s28 + $0xb0] sm:$0xff]  ;;  %v9194_v25 = vld [vmem:[%s9374_s28 + $0xc0] sm:$0xff] }
 0x2b7   : > { %2735 = vmatprep.mubr.bf16.mxu0 %v1195_v22  ;;  %v1361_v22 = vpack.c.bf16 %v1349_v52, %v1350_v53  ;;  %v1219_v40 = vrot.slane %v9192_v13, 4  ;;  %v1221_v18 = vrot.slane %v9194_v25, 4 }
 0x2b9   : > { %v1335_v58 = vsel %vm1277_vm3, %v1218_v55, %v1219_v40 }
 0x2be   : > { %2736 = vmatmul.mubr.bf16.gmra.mrb[152].mxu0 %v994_v1  ;;  %v1209_v1 = vrot.slane %v13253_v10, 4 }
 0x2bf   : > { %2745 = vmatprep.mubr.bf16.mxu0 %v1196_v19 }
 0x2c0   : > { %v1345_v19 = vsel %vm1277_vm3, %v1208_v23, %v1209_v1  ;;  %v1344_v59 = vsel %vm1277_vm3, %v1209_v1, %v1210_v51  ;;  %v9198_v23 = vld [vmem:[%s9374_s28 + $0xe0] sm:$0xff] }
 0x2c1   : > { %v1363_v50 = vpack.c.bf16 %v1345_v19, %v1346_v44  ;;  %v1225_v10 = vrot.slane %v9198_v23, 4 }
 0x2c6   : > { %2746 = vmatmul.mubr.bf16.gmra.mrb[156].mxu0 %v995_v34  ;;  %v1211_v34 = vrot.slane %v13254_v20, 4  ;;  %v9200_v20 = vld [vmem:[%s9374_s28 + $0xf0] sm:$0xff] }
 0x2c7   : > { %2788 = vmatprep.mubr.bf16.mxu0 %v13136_v6 }
 0x2c8   : > { %v1343_v15 = vsel %vm1277_vm3, %v1210_v51, %v1211_v34 }
 0x2c9   : > { %v1364_v45 = vpack.c.bf16 %v1343_v15, %v1344_v59 }
 0x2ce   : > { %2789 = vmatmul.mubr.bf16.vlgmr.msra.gmra.mrb[0].mxu0 %v1358_v62  ;;  %v1342_v62 = vsel %vm1277_vm3, %v1211_v34, %v1212_v0  ;;  %v1227_v34 = vrot.slane %v9200_v20, 4  ;;  %v9201_v0 = vld [vmem:[%s9374_s28 + $0xf8] sm:$0xff] }
 0x2cf   : > { %2798 = vmatprep.mubr.bf16.mxu0 %v13136_v6  ;;  %v1365_v7 = vpack.c.bf16 %v1341_v42, %v1342_v62  ;;  %v1228_v46 = vrot.slane %v9201_v0, 4  ;;  %v1229_v42 = vrot.slane %v9202_v48, 4  ;;  %v9216_v0 = vld [vmem:[%s9374_s28 + $0x170] sm:$0xff] }
 0x2d1   : > { %v1325_v62 = vsel %vm1277_vm3, %v1228_v46, %v1229_v42 }
 0x2d6   : > { %2799 = vmatmul.mubr.bf16.gmra.mrb[4].mxu0 %v1359_v57  ;;  %v1217_v57 = vrot.slane %v10250_v61, 4 }
 0x2d7   : > { %2808 = vmatprep.mubr.bf16.mxu0 %v13136_v6 }
 0x2d8   : > { %v1337_v28 = vsel %vm1277_vm3, %v1216_v29, %v1217_v57  ;;  %v1336_v61 = vsel %vm1277_vm3, %v1217_v57, %v1218_v55  ;;  %v1324_v57 = vsel %vm1277_vm3, %v1229_v42, %v1230_v24  ;;  %v1233_v55 = vrot.slane %v9206_v41, 4 }
 0x2d9   : > { %v1367_v30 = vpack.c.bf16 %v1337_v28, %v1338_v3  ;;  %v1368_v27 = vpack.c.bf16 %v1335_v58, %v1336_v61  ;;  %v9205_v3 = vld [vmem:[%s9374_s28 + $0x118] sm:$0xff]  ;;  %v9207_v61 = vld [vmem:[%s9374_s28 + $0x128] sm:$0xff] }
 0x2de   : > { %2809 = vmatmul.mubr.bf16.gmra.mrb[8].mxu0 %v1360_v17  ;;  %v9193_v17 = vld [vmem:[%s9374_s28 + $0xb8] sm:$0xff] }
 0x2df   : > { %2818 = vmatprep.mubr.bf16.mxu0 %v13136_v6  ;;  %v1220_v56 = vrot.slane %v9193_v17, 4  ;;  %v9208_v17 = vld [vmem:[%s9374_s28 + $0x130] sm:$0xff] }
 0x2e1   : > { %v1333_v8 = vsel %vm1277_vm3, %v1220_v56, %v1221_v18  ;;  %v1334_v52 = vsel %vm1277_vm3, %v1219_v40, %v1220_v56  ;;  %v1235_v56 = vrot.slane %v9208_v17, 4 }
 0x2e2   : > { %v1369_v53 = vpack.c.bf16 %v1333_v8, %v1334_v52  ;;  %v9209_v52 = vld [vmem:[%s9374_s28 + $0x138] sm:$0xff] }
 0x2e6   : > { %2819 = vmatmul.mubr.bf16.gmra.mrb[12].mxu0 %v1361_v22  ;;  %v9195_v22 = vld [vmem:[%s9374_s28 + $0xc8] sm:$0xff] }
 0x2e7   : > { %2828 = vmatprep.mubr.bf16.mxu0 %v13136_v6  ;;  %v1222_v5 = vrot.slane %v9195_v22, 4  ;;  %v9210_v22 = vld [vmem:[%s9374_s28 + $0x140] sm:$0xff] }
 0x2e9   : > { %v1331_v37 = vsel %vm1277_vm3, %v1222_v5, %v1223_v32  ;;  %v1332_v39 = vsel %vm1277_vm3, %v1221_v18, %v1222_v5  ;;  %v1237_v5 = vrot.slane %v9210_v22, 4 }
 0x2ea   : > { %v1370_v4 = vpack.c.bf16 %v1331_v37, %v1332_v39  ;;  %v9211_v39 = vld [vmem:[%s9374_s28 + $0x148] sm:$0xff] }
 0x2ee   : > { %2829 = vmatmul.mubr.bf16.gmra.mrb[16].mxu0 %v1362_v38  ;;  %v9197_v38 = vld [vmem:[%s9374_s28 + $0xd8] sm:$0xff] }
 0x2ef   : > { %2838 = vmatprep.mubr.bf16.mxu0 %v13136_v6  ;;  %v1224_v9 = vrot.slane %v9197_v38, 4  ;;  %v9212_v38 = vld [vmem:[%s9374_s28 + $0x150] sm:$0xff] }
 0x2f1   : > { %v1329_v1 = vsel %vm1277_vm3, %v1224_v9, %v1225_v10  ;;  %v1330_v19 = vsel %vm1277_vm3, %v1223_v32, %v1224_v9  ;;  %v1239_v9 = vrot.slane %v9212_v38, 4 }
 0x2f2   : > { %v1371_v44 = vpack.c.bf16 %v1329_v1, %v1330_v19  ;;  %v9213_v19 = vld [vmem:[%s9374_s28 + $0x158] sm:$0xff] }
 0x2f6   : > { %2839 = vmatmul.mubr.bf16.gmra.mrb[20].mxu0 %v1363_v50  ;;  %v9199_v50 = vld [vmem:[%s9374_s28 + $0xe8] sm:$0xff] }
 0x2f7   : > { %2848 = vmatprep.mubr.bf16.mxu0 %v13136_v6  ;;  %v1226_v51 = vrot.slane %v9199_v50, 4  ;;  %v9214_v50 = vld [vmem:[%s9374_s28 + $0x160] sm:$0xff] }
 0x2f9   : > { %v1327_v15 = vsel %vm1277_vm3, %v1226_v51, %v1227_v34  ;;  %v1328_v59 = vsel %vm1277_vm3, %v1225_v10, %v1226_v51  ;;  %v1241_v51 = vrot.slane %v9214_v50, 4 }
 0x2fe   : > { %2849 = vmatmul.mubr.bf16.gmra.mrb[24].mxu0 %v1364_v45  ;;  %v1372_v45 = vpack.c.bf16 %v1327_v15, %v1328_v59  ;;  %v9215_v59 = vld [vmem:[%s9374_s28 + $0x168] sm:$0xff] }
 0x2ff   : > { %2858 = vmatprep.mubr.bf16.mxu0 %v13136_v6 }
 0x306   : > { %2859 = vmatmul.mubr.bf16.gmra.mrb[28].mxu0 %v1365_v7  ;;  %v1326_v7 = vsel %vm1277_vm3, %v1227_v34, %v1228_v46  ;;  %v1243_v46 = vrot.slane %v9216_v0, 4 }
 0x307   : > { %2868 = vmatprep.mubr.bf16.mxu0 %v13136_v6  ;;  %v1373_v11 = vpack.c.bf16 %v1325_v62, %v1326_v7  ;;  %v9217_v7 = vld [vmem:[%s9374_s28 + $0x178] sm:$0xff] }
 0x30e   : > { %2869 = vmatmul.mubr.bf16.gmra.mrb[32].mxu0 %v1366_v47  ;;  %v1231_v47 = vrot.slane %v9204_v21, 4 }
 0x30f   : > { %2878 = vmatprep.mubr.bf16.mxu0 %v13136_v6 }
 0x310   : > { %v1323_v29 = vsel %vm1277_vm3, %v1230_v24, %v1231_v47  ;;  %v1245_v24 = vrot.slane %v9218_v63, 4 }
 0x311   : > { %v1374_v28 = vpack.c.bf16 %v1323_v29, %v1324_v57  ;;  %v9219_v57 = vld [vmem:[%s9374_s28 + $0x188] sm:$0xff] }
 0x316   : > { %2879 = vmatmul.mubr.bf16.gmra.mrb[36].mxu0 %v1367_v30  ;;  %v1232_v30 = vrot.slane %v9205_v3, 4  ;;  %v9220_v3 = vld [vmem:[%s9374_s28 + $0x190] sm:$0xff] }
 0x317   : > { %2888 = vmatprep.mubr.bf16.mxu0 %v13136_v6 }
 0x318   : > { %v1321_v13 = vsel %vm1277_vm3, %v1232_v30, %v1233_v55  ;;  %v1322_v40 = vsel %vm1277_vm3, %v1231_v47, %v1232_v30  ;;  %v1247_v30 = vrot.slane %v9220_v3, 4 }
 0x319   : > { %v1375_v58 = vpack.c.bf16 %v1321_v13, %v1322_v40  ;;  %v9221_v40 = vld [vmem:[%s9374_s28 + $0x198] sm:$0xff] }
 0x31e   : > { %2889 = vmatmul.mubr.bf16.gmra.mrb[40].mxu0 %v1368_v27  ;;  %v1234_v27 = vrot.slane %v9207_v61, 4  ;;  %v9222_v61 = vld [vmem:[%s9374_s28 + $0x1a0] sm:$0xff] }
 0x31f   : > { %2898 = vmatprep.mubr.bf16.mxu0 %v13136_v6 }
 0x320   : > { %v1319_v25 = vsel %vm1277_vm3, %v1234_v27, %v1235_v56  ;;  %v1320_v18 = vsel %vm1277_vm3, %v1233_v55, %v1234_v27  ;;  %v1249_v27 = vrot.slane %v9222_v61, 4  ;;  %v9229_v61 = vld [vmem:[%s9374_s28 + $0x1d8] sm:$0xff] }
 0x321   : > { %v1376_v8 = vpack.c.bf16 %v1319_v25, %v1320_v18  ;;  %v9223_v18 = vld [vmem:[%s9374_s28 + $0x1a8] sm:$0xff] }
 0x326   : > { %2899 = vmatmul.mubr.bf16.gmra.mrb[44].mxu0 %v1369_v53  ;;  %v1236_v53 = vrot.slane %v9209_v52, 4  ;;  %v9224_v52 = vld [vmem:[%s9374_s28 + $0x1b0] sm:$0xff] }
 0x327   : > { %2908 = vmatprep.mubr.bf16.mxu0 %v13136_v6 }
 0x328   : > { %v1317_v36 = vsel %vm1277_vm3, %v1236_v53, %v1237_v5  ;;  %v1318_v32 = vsel %vm1277_vm3, %v1235_v56, %v1236_v53  ;;  %v1251_v53 = vrot.slane %v9224_v52, 4 }
 0x329   : > { %v1377_v37 = vpack.c.bf16 %v1317_v36, %v1318_v32  ;;  %v13135_v36 = vsub.s32 0, %v9369_v12 }
 0x32e   : > { %2909 = vmatmul.mubr.bf16.gmra.mrb[48].mxu0 %v1370_v4  ;;  %v1238_v4 = vrot.slane %v9211_v39, 4  ;;  %v13134_v39 = vsub.s32 1, %v9369_v12 }
 0x32f   : > { %2918 = vmatprep.mubr.bf16.mxu0 %v13136_v6 }
 0x330   : > { %v1315_v23 = vsel %vm1277_vm3, %v1238_v4, %v1239_v9  ;;  %v1316_v10 = vsel %vm1277_vm3, %v1237_v5, %v1238_v4  ;;  %v9225_v4 = vld [vmem:[%s9374_s28 + $0x1b8] sm:$0xff] }
 0x331   : > { %v1378_v1 = vpack.c.bf16 %v1315_v23, %v1316_v10  ;;  %v1252_v38 = vrot.slane %v9225_v4, 4 }
 0x336   : > { %2919 = vmatmul.mubr.bf16.gmra.mrb[52].mxu0 %v1371_v44  ;;  %v1240_v44 = vrot.slane %v9213_v19, 4 }
 0x337   : > { %2928 = vmatprep.mubr.bf16.mxu0 %v13136_v6 }
 0x338   : > { %v1313_v20 = vsel %vm1277_vm3, %v1240_v44, %v1241_v51  ;;  %v1314_v34 = vsel %vm1277_vm3, %v1239_v9, %v1240_v44  ;;  %v9226_v9 = vld [vmem:[%s9374_s28 + $0x1c0] sm:$0xff]  ;;  %v1302_v44 = vsel %vm1277_vm3, %v1251_v53, %v1252_v38 }
 0x339   : > { %v1379_v15 = vpack.c.bf16 %v1313_v20, %v1314_v34  ;;  %v1253_v23 = vrot.slane %v9226_v9, 4 }
 0x33b   : > { %v1301_v19 = vsel %vm1277_vm3, %v1252_v38, %v1253_v23 }
 0x33c   : > { %v1385_v34 = vpack.c.bf16 %v1301_v19, %v1302_v44 }
 0x33e   : > { %2929 = vmatmul.mubr.bf16.gmra.mrb[56].mxu0 %v1372_v45  ;;  %v1242_v45 = vrot.slane %v9215_v59, 4 }
 0x33f   : > { %2938 = vmatprep.mubr.bf16.mxu0 %v13136_v6 }
 0x340   : > { %v1311_v48 = vsel %vm1277_vm3, %v1242_v45, %v1243_v46  ;;  %v1312_v42 = vsel %vm1277_vm3, %v1241_v51, %v1242_v45  ;;  %v9227_v45 = vld [vmem:[%s9374_s28 + $0x1c8] sm:$0xff] }
 0x341   : > { %v1380_v62 = vpack.c.bf16 %v1311_v48, %v1312_v42  ;;  %v1254_v0 = vrot.slane %v9227_v45, 4 }
 0x346   : > { %2939 = vmatmul.mubr.bf16.gmra.mrb[60].mxu0 %v1373_v11  ;;  %v1244_v11 = vrot.slane %v9217_v7, 4  ;;  %v8917_v7 = vld [vmem:[%s13078_s3 + $0x4] ss:$20 sps:$4 sm:$0xff]  }
 0x347   : > { %2948 = vmatprep.mubr.bf16.mxu0 %v13136_v6  ;;  %3973 = vmatprep.mubr.bf16.mxu1 %v8917_v7 }
 0x348   : > { %v1309_v21 = vsel %vm1277_vm3, %v1244_v11, %v1245_v24  ;;  %v1310_v47 = vsel %vm1277_vm3, %v1243_v46, %v1244_v11  ;;  %v9228_v46 = vld [vmem:[%s9374_s28 + $0x1d0] sm:$0xff] }
 0x349   : > { %v1381_v29 = vpack.c.bf16 %v1309_v21, %v1310_v47  ;;  %v1255_v48 = vrot.slane %v9228_v46, 4 }
 0x34e   : > { %2949 = vmatmul.mubr.bf16.gmra.mrb[64].mxu0 %v1374_v28  ;;  %v1246_v28 = vrot.slane %v9219_v57, 4  ;;  %v1300_v57 = vsel %vm1277_vm3, %v1253_v23, %v1254_v0 }
 0x34f   : > { %2958 = vmatprep.mubr.bf16.mxu0 %v13136_v6 }
 0x350   : > { %v1307_v41 = vsel %vm1277_vm3, %v1246_v28, %v1247_v30  ;;  %v1308_v55 = vsel %vm1277_vm3, %v1245_v24, %v1246_v28 }
 0x351   : > { %v1382_v13 = vpack.c.bf16 %v1307_v41, %v1308_v55 }
 0x356   : > { %2959 = vmatmul.mubr.bf16.gmra.mrb[68].mxu0 %v1375_v58  ;;  %v1248_v58 = vrot.slane %v9221_v40, 4 }
 0x357   : > { %2968 = vmatprep.mubr.bf16.mxu0 %v13136_v6 }
 0x358   : > { %v1305_v17 = vsel %vm1277_vm3, %v1248_v58, %v1249_v27  ;;  %v1306_v56 = vsel %vm1277_vm3, %v1247_v30, %v1248_v58 }
 0x359   : > { %v1383_v25 = vpack.c.bf16 %v1305_v17, %v1306_v56  ;;  %v9230_v17 = vld [vmem:[%s9374_s28 + $0x1e0] sm:$0xff] }
 0x35a   : > { %v1257_v56 = vrot.slane %v9230_v17, 4 }
 0x35e   : > { %2969 = vmatmul.mubr.bf16.gmra.mrb[72].mxu0 %v1376_v8  ;;  %v1250_v8 = vrot.slane %v9223_v18, 4 }
 0x35f   : > { %2978 = vmatprep.mubr.bf16.mxu0 %v13136_v6 }
 0x360   : > { %v1303_v22 = vsel %vm1277_vm3, %v1250_v8, %v1251_v53  ;;  %v1304_v5 = vsel %vm1277_vm3, %v1249_v27, %v1250_v8  ;;  %v1256_v27 = vrot.slane %v9229_v61, 4 }
 0x361   : > { %v1384_v32 = vpack.c.bf16 %v1303_v22, %v1304_v5 }
 0x366   : > { %2979 = vmatmul.mubr.bf16.gmra.mrb[76].mxu0 %v1377_v37  ;;  %v1478_v37 = vld [vmem:[%s13077_s2] sm:$0x3] }
 0x367   : > { %2988 = vmatprep.mubr.bf16.mxu0 %v13136_v6  ;;  %v10869_v10 = vrot.slane %v1478_v37, %v13135_v36 }
 0x36e   : > { %2989 = vmatmul.mubr.bf16.gmra.mrb[80].mxu0 %v1378_v1  ;;  %v10873_v1 = vrot.slane %v1478_v37, %v13134_v39  ;;  %v1298_v37 = vsel %vm1277_vm3, %v1255_v48, %v1256_v27 }
 0x36f   : > { %2998 = vmatprep.mubr.bf16.mxu0 %v13136_v6 }
 0x376   : > { %2999 = vmatmul.mubr.bf16.gmra.mrb[84].mxu0 %v1379_v15 }
 0x377   : > { %3008 = vmatprep.mubr.bf16.mxu0 %v13136_v6 }
 0x37e   : > { %3009 = vmatmul.mubr.bf16.gmra.mrb[88].mxu0 %v1380_v62 }
 0x37f   : > { %3018 = vmatprep.mubr.bf16.mxu0 %v13136_v6 }
 0x386   : > { %3019 = vmatmul.mubr.bf16.gmra.mrb[92].mxu0 %v1381_v29  ;;  %v1299_v29 = vsel %vm1277_vm3, %v1254_v0, %v1255_v48 }
 0x387   : > { %3028 = vmatprep.mubr.bf16.mxu0 %v13136_v6 }
 0x38e   : > { %3029 = vmatmul.mubr.bf16.gmra.mrb[96].mxu0 %v1382_v13  ;;  %v1386_v13 = vpack.c.bf16 %v1299_v29, %v1300_v57 }
 0x38f   : > { %3038 = vmatprep.mubr.bf16.mxu0 %v13136_v6 }
 0x396   : > { %3039 = vmatmul.mubr.bf16.gmra.mrb[100].mxu0 %v1383_v25 }
 0x397   : > { %3048 = vmatprep.mubr.bf16.mxu0 %v13136_v6 }
 0x39e   : > { %3049 = vmatmul.mubr.bf16.gmra.mrb[104].mxu0 %v1384_v32  ;;  %v1297_v32 = vsel %vm1277_vm3, %v1256_v27, %v1257_v56 }
 0x39f   : > { %3058 = vmatprep.mubr.bf16.mxu0 %v13136_v6  ;;  %v1387_v44 = vpack.c.bf16 %v1297_v32, %v1298_v37 }
 0x3a1   : > { %v2790_v50 = vpop.f32.mrb[0].mxu0 }
 0x3a2   : > { %v7985_v51 = vadd.f32 %v2790_v50, %v10869_v10  ;;  %v2792_v20 = vpop.f32.mrb[1].mxu0 }
 0x3a3   : > { %v7986_v15 = vadd.f32 %v2792_v20, %v10873_v1  ;;  %v2794_v59 = vpop.f32.mrb[2].mxu0  ;;  %v9231_v20 = vld [vmem:[%s9374_s28 + $0x1e8] sm:$0xff] }
 0x3a4   : > { %v7987_v42 = vadd.f32 %v2794_v59, %v10869_v10  ;;  %v2796_v62 = vpop.f32.mrb[3].mxu0  ;;  %v3189_v63 = vmax.f32 %v7985_v51, 0.0 }
 0x3a5   : > { %v7988_v11 = vadd.f32 %v2796_v62, %v10873_v1  ;;  %v3190_v21 = vmax.f32 %v7986_v15, 0.0  ;;  %v9232_v15 = vld [vmem:[%s9374_s28 + $0x1f0] sm:$0xff] }
 0x3a6   : > { %v3191_v24 = vmax.f32 %v7987_v42, 0.0  ;;  %3059 = vmatmul.mubr.bf16.gmra.mrb[108].mxu0 %v1385_v34  ;;  %v1258_v34 = vrot.slane %v9231_v20, 4  ;;  %v1259_v59 = vrot.slane %v9232_v15, 4 }
 0x3a7   : > { %v3192_v47 = vmax.f32 %v7988_v11, 0.0  ;;  %3068 = vmatprep.mubr.bf16.mxu0 %v13136_v6 }
 0x3a8   : > { %v3349_v28 = vpack.c.bf16 %v3191_v24, %v3189_v63  ;;  %v1295_v11 = vsel %vm1277_vm3, %v1258_v34, %v1259_v59  ;;  %v1296_v63 = vsel %vm1277_vm3, %v1257_v56, %v1258_v34 }
 0x3a9   : > { %v2800_v3 = vpop.f32.mrb[4].mxu0  ;;  %v3350_v30 = vpack.c.bf16 %v3192_v47, %v3190_v21 }
 0x3aa   : > { %v7989_v41 = vadd.f32 %v2800_v3, %v10869_v10  ;;  %v2802_v55 = vpop.f32.mrb[5].mxu0 }
 0x3ab   : > { %v7990_v40 = vadd.f32 %v2802_v55, %v10873_v1  ;;  %v2804_v58 = vpop.f32.mrb[6].mxu0  ;;  %3941 = vmatprep.subr.bf16.mxu1 %v3350_v30 }
 0x3ac   : > { %v7991_v25 = vadd.f32 %v2804_v58, %v10869_v10  ;;  %v2806_v18 = vpop.f32.mrb[7].mxu0  ;;  %3942 = vmatpush1.bf16.msra.mxu1 %v3349_v28  ;;  %v3193_v52 = vmax.f32 %v7989_v41, 0.0  ;;  %v1388_v28 = vpack.c.bf16 %v1295_v11, %v1296_v63  ;;  %v9233_v41 = vld [vmem:[%s9374_s28 + $0x1f8] sm:$0xff] }
 0x3ad   : > { %v7992_v8 = vadd.f32 %v2806_v18, %v10873_v1  ;;  %v3194_v22 = vmax.f32 %v7990_v40, 0.0  ;;  %v1260_v55 = vrot.slane %v9233_v41, 4 }
 0x3ae   : > { %v3195_v53 = vmax.f32 %v7991_v25, 0.0  ;;  %3069 = vmatmul.mubr.bf16.gmra.mrb[112].mxu0 %v1386_v13  ;;  %v9234_v13 = vld [vmem:[%s9374_s28 + $0x200] sm:$0xff] }
 0x3af   : > { %v3196_v5 = vmax.f32 %v7992_v8, 0.0  ;;  %3078 = vmatprep.mubr.bf16.mxu0 %v13136_v6  ;;  %v1261_v40 = vrot.slane %v9234_v13, 4 }
 0x3b0   : > { %v3351_v4 = vpack.c.bf16 %v3195_v53, %v3193_v52  ;;  %v1294_v52 = vsel %vm1277_vm3, %v1259_v59, %v1260_v55 }
 0x3b1   : > { %v3352_v38 = vpack.c.bf16 %v3196_v5, %v3194_v22  ;;  %v2810_v9 = vpop.f32.mrb[8].mxu0  ;;  %v1293_v8 = vsel %vm1277_vm3, %v1260_v55, %v1261_v40 }
 0x3b2   : > { %v7993_v23 = vadd.f32 %v2810_v9, %v10869_v10  ;;  %v2812_v19 = vpop.f32.mrb[9].mxu0 }
 0x3b3   : > { %v7994_v50 = vadd.f32 %v2812_v19, %v10873_v1  ;;  %v2814_v51 = vpop.f32.mrb[10].mxu0  ;;  %3943 = vmatprep.subr.bf16.mxu1 %v3352_v38 }
 0x3b4   : > { %v7995_v45 = vadd.f32 %v2814_v51, %v10869_v10  ;;  %v2816_v0 = vpop.f32.mrb[11].mxu0  ;;  %3944 = vmatpush1.bf16.msra.mxu1 %v3351_v4  ;;  %v3197_v48 = vmax.f32 %v7993_v23, 0.0  ;;  %v1389_v4 = vpack.c.bf16 %v1293_v8, %v1294_v52  ;;  %v9235_v23 = vld [vmem:[%s9374_s28 + $0x208] sm:$0xff] }
 0x3b5   : > { %v7996_v46 = vadd.f32 %v2816_v0, %v10873_v1  ;;  %v3198_v62 = vmax.f32 %v7994_v50, 0.0  ;;  %v1262_v19 = vrot.slane %v9235_v23, 4 }
 0x3b6   : > { %v3199_v42 = vmax.f32 %v7995_v45, 0.0  ;;  %3079 = vmatmul.mubr.bf16.gmra.mrb[116].mxu0 %v1387_v44  ;;  %v9236_v44 = vld [vmem:[%s9374_s28 + $0x210] sm:$0xff] }
 0x3b7   : > { %v3200_v7 = vmax.f32 %v7996_v46, 0.0  ;;  %3088 = vmatprep.mubr.bf16.mxu0 %v13136_v6  ;;  %v1263_v50 = vrot.slane %v9236_v44, 4 }
 0x3b8   : > { %v3353_v24 = vpack.c.bf16 %v3199_v42, %v3197_v48  ;;  %v1292_v48 = vsel %vm1277_vm3, %v1261_v40, %v1262_v19 }
 0x3b9   : > { %v3354_v21 = vpack.c.bf16 %v3200_v7, %v3198_v62  ;;  %v2820_v47 = vpop.f32.mrb[12].mxu0  ;;  %v1291_v46 = vsel %vm1277_vm3, %v1262_v19, %v1263_v50 }
 0x3ba   : > { %v7997_v29 = vadd.f32 %v2820_v47, %v10869_v10  ;;  %v2822_v57 = vpop.f32.mrb[13].mxu0 }
 0x3bb   : > { %v7998_v3 = vadd.f32 %v2822_v57, %v10873_v1  ;;  %v2824_v30 = vpop.f32.mrb[14].mxu0  ;;  %3945 = vmatprep.subr.bf16.mxu1 %v3354_v21 }
 0x3bc   : > { %v7999_v58 = vadd.f32 %v2824_v30, %v10869_v10  ;;  %v2826_v61 = vpop.f32.mrb[15].mxu0  ;;  %3946 = vmatpush1.bf16.msra.mxu1 %v3353_v24  ;;  %v3201_v17 = vmax.f32 %v7997_v29, 0.0  ;;  %v1390_v24 = vpack.c.bf16 %v1291_v46, %v1292_v48  ;;  %v9237_v29 = vld [vmem:[%s9374_s28 + $0x218] sm:$0xff] }
 0x3bd   : > { %v8000_v27 = vadd.f32 %v2826_v61, %v10873_v1  ;;  %v3202_v25 = vmax.f32 %v7998_v3, 0.0  ;;  %v1264_v57 = vrot.slane %v9237_v29, 4 }
 0x3be   : > { %v3203_v56 = vmax.f32 %v7999_v58, 0.0  ;;  %3089 = vmatmul.mubr.bf16.gmra.mrb[120].mxu0 %v1388_v28  ;;  %v9238_v28 = vld [vmem:[%s9374_s28 + $0x220] sm:$0xff] }
 0x3bf   : > { %v3204_v18 = vmax.f32 %v8000_v27, 0.0  ;;  %3098 = vmatprep.mubr.bf16.mxu0 %v13136_v6  ;;  %v1265_v3 = vrot.slane %v9238_v28, 4 }
 0x3c0   : > { %v3355_v53 = vpack.c.bf16 %v3203_v56, %v3201_v17  ;;  %v1290_v17 = vsel %vm1277_vm3, %v1263_v50, %v1264_v57 }
 0x3c1   : > { %v3356_v22 = vpack.c.bf16 %v3204_v18, %v3202_v25  ;;  %v2830_v5 = vpop.f32.mrb[16].mxu0  ;;  %v1289_v27 = vsel %vm1277_vm3, %v1264_v57, %v1265_v3 }
 0x3c2   : > { %v8001_v32 = vadd.f32 %v2830_v5, %v10869_v10  ;;  %v2832_v37 = vpop.f32.mrb[17].mxu0 }
 0x3c3   : > { %v8002_v38 = vadd.f32 %v2832_v37, %v10873_v1  ;;  %v2834_v9 = vpop.f32.mrb[18].mxu0  ;;  %3947 = vmatprep.subr.bf16.mxu1 %v3356_v22 }
 0x3c4   : > { %v8003_v51 = vadd.f32 %v2834_v9, %v10869_v10  ;;  %v2836_v20 = vpop.f32.mrb[19].mxu0  ;;  %3948 = vmatpush1.bf16.msra.mxu1 %v3355_v53  ;;  %v3205_v15 = vmax.f32 %v8001_v32, 0.0  ;;  %v1391_v53 = vpack.c.bf16 %v1289_v27, %v1290_v17  ;;  %v9239_v32 = vld [vmem:[%s9374_s28 + $0x228] sm:$0xff]  ;;  %v1270_v17 = vrot.slane %v10600_v14, 4 }
 0x3c5   : > { %v8004_v34 = vadd.f32 %v2836_v20, %v10873_v1  ;;  %v3206_v45 = vmax.f32 %v8002_v38, 0.0  ;;  %v1266_v37 = vrot.slane %v9239_v32, 4 }
 0x3c6   : > { %v3207_v59 = vmax.f32 %v8003_v51, 0.0  ;;  %3099 = vmatmul.mubr.bf16.gmra.mrb[124].mxu0 %v1389_v4  ;;  %v9240_v4 = vld [vmem:[%s9374_s28 + $0x230] sm:$0xff]  ;;  %s469_s28 = scalar_lea.vmem %s13089_s14, %s7267_s21 }
 0x3c7   : > { %v3208_v0 = vmax.f32 %v8004_v34, 0.0  ;;  %3108 = vmatprep.mubr.bf16.mxu0 %v13136_v6  ;;  %v1267_v38 = vrot.slane %v9240_v4, 4 }
 0x3c8   : > { %v3357_v42 = vpack.c.bf16 %v3207_v59, %v3205_v15  ;;  %v1288_v15 = vsel %vm1277_vm3, %v1265_v3, %v1266_v37 }
 0x3c9   : > { %v3358_v62 = vpack.c.bf16 %v3208_v0, %v3206_v45  ;;  %v2840_v7 = vpop.f32.mrb[20].mxu0  ;;  %v1287_v34 = vsel %vm1277_vm3, %v1266_v37, %v1267_v38 }
 0x3ca   : > { %v8005_v11 = vadd.f32 %v2840_v7, %v10869_v10  ;;  %v2842_v63 = vpop.f32.mrb[21].mxu0 }
 0x3cb   : > { %v8006_v21 = vadd.f32 %v2842_v63, %v10873_v1  ;;  %v2844_v47 = vpop.f32.mrb[22].mxu0  ;;  %3949 = vmatprep.subr.bf16.mxu1 %v3358_v62  ;;  %v1269_v63 = vrot.slane %v10586_v33, 4 }
 0x3cc   : > { %v8007_v30 = vadd.f32 %v2844_v47, %v10869_v10  ;;  %v2846_v41 = vpop.f32.mrb[23].mxu0  ;;  %3950 = vmatpush1.bf16.msra.mxu1 %v3357_v42  ;;  %v3209_v13 = vmax.f32 %v8005_v11, 0.0  ;;  %v1392_v42 = vpack.c.bf16 %v1287_v34, %v1288_v15  ;;  %v1268_v11 = vrot.slane %v10582_v2, 4 }
 0x3cd   : > { %v8008_v55 = vadd.f32 %v2846_v41, %v10873_v1  ;;  %v3210_v58 = vmax.f32 %v8006_v21, 0.0  ;;  %v1284_v14 = vsel %vm1277_vm3, %v1269_v63, %v1270_v17 }
 0x3ce   : > { %v3211_v40 = vmax.f32 %v8007_v30, 0.0  ;;  %3109 = vmatmul.mubr.bf16.gmra.mrb[128].mxu0 %v1390_v24  ;;  %v1285_v30 = vsel %vm1277_vm3, %v1268_v11, %v1269_v63  ;;  %v1286_v2 = vsel %vm1277_vm3, %v1267_v38, %v1268_v11 }
 0x3cf   : > { %v3212_v61 = vmax.f32 %v8008_v55, 0.0  ;;  %3118 = vmatprep.mubr.bf16.mxu0 %v13136_v6 }
 0x3d0   : > { %v3359_v56 = vpack.c.bf16 %v3211_v40, %v3209_v13 }
 0x3d1   : > { %v3360_v25 = vpack.c.bf16 %v3212_v61, %v3210_v58  ;;  %v2850_v18 = vpop.f32.mrb[24].mxu0  ;;  %v1393_v58 = vpack.c.bf16 %v1285_v30, %v1286_v2 }
 0x3d2   : > { %v8009_v8 = vadd.f32 %v2850_v18, %v10869_v10  ;;  %v2852_v52 = vpop.f32.mrb[25].mxu0 }
 0x3d3   : > { %v8010_v22 = vadd.f32 %v2852_v52, %v10873_v1  ;;  %v2854_v5 = vpop.f32.mrb[26].mxu0  ;;  %3951 = vmatprep.subr.bf16.mxu1 %v3360_v25 }
 0x3d4   : > { %v8011_v9 = vadd.f32 %v2854_v5, %v10869_v10  ;;  %v2856_v23 = vpop.f32.mrb[27].mxu0  ;;  %3952 = vmatpush1.bf16.msra.mxu1 %v3359_v56  ;;  %v3213_v44 = vmax.f32 %v8009_v8, 0.0  ;;  %v1271_v56 = vrot.slane %v10604_v16, 4 }
 0x3d5   : > { %v8012_v19 = vadd.f32 %v2856_v23, %v10873_v1  ;;  %v3214_v51 = vmax.f32 %v8010_v22, 0.0 }
 0x3d6   : > { %v3215_v50 = vmax.f32 %v8011_v9, 0.0  ;;  %3119 = vmatmul.mubr.bf16.gmra.mrb[132].mxu0 %v1391_v53  ;;  %v1283_v32 = vsel %vm1277_vm3, %v1270_v17, %v1271_v56 }
 0x3d7   : > { %v3216_v20 = vmax.f32 %v8012_v19, 0.0  ;;  %3128 = vmatprep.mubr.bf16.mxu0 %v13136_v6  ;;  %v1394_v23 = vpack.c.bf16 %v1283_v32, %v1284_v14 }
 0x3d8   : > { %v3361_v59 = vpack.c.bf16 %v3215_v50, %v3213_v44  ;;  %v1272_v50 = vrot.slane %v10618_v26, 4 }
 0x3d9   : > { %v3362_v45 = vpack.c.bf16 %v3216_v20, %v3214_v51  ;;  %v2860_v0 = vpop.f32.mrb[28].mxu0  ;;  %v1273_v51 = vrot.slane %v10622_v35, 4 }
 0x3da   : > { %v8013_v46 = vadd.f32 %v2860_v0, %v10869_v10  ;;  %v2862_v48 = vpop.f32.mrb[29].mxu0  ;;  %v1282_v26 = vsel %vm1277_vm3, %v1271_v56, %v1272_v50 }
 0x3db   : > { %v8014_v62 = vadd.f32 %v2862_v48, %v10873_v1  ;;  %v2864_v7 = vpop.f32.mrb[30].mxu0  ;;  %3953 = vmatprep.subr.bf16.mxu1 %v3362_v45  ;;  %v1281_v48 = vsel %vm1277_vm3, %v1272_v50, %v1273_v51 }
 0x3dc   : > { %v8015_v24 = vadd.f32 %v2864_v7, %v10869_v10  ;;  %v2866_v21 = vpop.f32.mrb[31].mxu0  ;;  %3954 = vmatpush1.bf16.msra.mxu1 %v3361_v59  ;;  %v3217_v29 = vmax.f32 %v8013_v46, 0.0  ;;  %v1395_v63 = vpack.c.bf16 %v1281_v48, %v1282_v26 }
 0x3dd   : > { %v8016_v47 = vadd.f32 %v2866_v21, %v10873_v1  ;;  %v3218_v28 = vmax.f32 %v8014_v62, 0.0 }
 0x3de   : > { %v3219_v57 = vmax.f32 %v8015_v24, 0.0  ;;  %3129 = vmatmul.mubr.bf16.gmra.mrb[136].mxu0 %v1392_v42 }
 0x3df   : > { %v3220_v3 = vmax.f32 %v8016_v47, 0.0  ;;  %3138 = vmatprep.mubr.bf16.mxu0 %v13136_v6  ;;  %v1274_v47 = vrot.slane %v10636_v54, 4 }
 0x3e0   : > { %v3363_v33 = vpack.c.bf16 %v3219_v57, %v3217_v29  ;;  %v1275_v29 = vrot.slane %v10640_v31, 4 }
 0x3e1   : > { %v3364_v41 = vpack.c.bf16 %v3220_v3, %v3218_v28  ;;  %v2870_v55 = vpop.f32.mrb[32].mxu0  ;;  %v1280_v54 = vsel %vm1277_vm3, %v1273_v51, %v1274_v47 }
 0x3e2   : > { %v8017_v13 = vadd.f32 %v2870_v55, %v10869_v10  ;;  %v2872_v40 = vpop.f32.mrb[33].mxu0  ;;  %v1279_v55 = vsel %vm1277_vm3, %v1274_v47, %v1275_v29 }
 0x3e3   : > { %v8018_v61 = vadd.f32 %v2872_v40, %v10873_v1  ;;  %v2874_v27 = vpop.f32.mrb[34].mxu0  ;;  %3955 = vmatprep.subr.bf16.mxu1 %v3364_v41 }
 0x3e4   : > { %v8019_v25 = vadd.f32 %v2874_v27, %v10869_v10  ;;  %v2876_v18 = vpop.f32.mrb[35].mxu0  ;;  %3956 = vmatpush1.bf16.msra.mxu1 %v3363_v33  ;;  %v3221_v52 = vmax.f32 %v8017_v13, 0.0  ;;  %v1396_v27 = vpack.c.bf16 %v1279_v55, %v1280_v54 }
 0x3e5   : > { %v8020_v8 = vadd.f32 %v2876_v18, %v10873_v1  ;;  %v3222_v22 = vmax.f32 %v8018_v61, 0.0 }
 0x3e6   : > { %v3223_v53 = vmax.f32 %v8019_v25, 0.0  ;;  %3139 = vmatmul.mubr.bf16.gmra.mrb[140].mxu0 %v1393_v58  ;;  %v1276_v25 = vrot.slane %v10655_v43, 4 }
 0x3e7   : > { %v3224_v5 = vmax.f32 %v8020_v8, 0.0  ;;  %3148 = vmatprep.mubr.bf16.mxu0 %v13136_v6 }
 0x3e8   : > { %v3365_v16 = vpack.c.bf16 %v3223_v53, %v3221_v52  ;;  %v1278_v14 = vsel %vm1277_vm3, %v1275_v29, %v1276_v25  ;;  %v1357_v43 = vsel %vm1277_vm3, %v1276_v25, %v1197_v60 }
 0x3e9   : > { %v3366_v37 = vpack.c.bf16 %v3224_v5, %v3222_v22  ;;  %v2880_v4 = vpop.f32.mrb[36].mxu0 }
 0x3ea   : > { %v8021_v38 = vadd.f32 %v2880_v4, %v10869_v10  ;;  %v2882_v9 = vpop.f32.mrb[37].mxu0 }
 0x3eb   : > { %v8022_v19 = vadd.f32 %v2882_v9, %v10873_v1  ;;  %v2884_v44 = vpop.f32.mrb[38].mxu0  ;;  %3957 = vmatprep.subr.bf16.mxu1 %v3366_v37 }
 0x3ec   : > { %v8023_v20 = vadd.f32 %v2884_v44, %v10869_v10  ;;  %v2886_v34 = vpop.f32.mrb[39].mxu0  ;;  %3958 = vmatpush1.bf16.msra.mxu1 %v3365_v16  ;;  %v3225_v59 = vmax.f32 %v8021_v38, 0.0 }
 0x3ed   : > { %v8024_v15 = vadd.f32 %v2886_v34, %v10873_v1  ;;  %v3226_v0 = vmax.f32 %v8022_v19, 0.0 }
 0x3ee   : > { %v3227_v45 = vmax.f32 %v8023_v20, 0.0  ;;  %3149 = vmatmul.mubr.bf16.gmra.mrb[144].mxu0 %v1394_v23  ;;  %v1397_v23 = vpack.c.bf16 %v1357_v43, %v1278_v14 }
 0x3ef   : > { %v3228_v46 = vmax.f32 %v8024_v15, 0.0  ;;  %3158 = vmatprep.mubr.bf16.mxu0 %v13136_v6 }
 0x3f0   : > { %v3367_v35 = vpack.c.bf16 %v3227_v45, %v3225_v59 }
 0x3f1   : > { %v3368_v42 = vpack.c.bf16 %v3228_v46, %v3226_v0  ;;  %v2890_v62 = vpop.f32.mrb[40].mxu0 }
 0x3f2   : > { %v8025_v7 = vadd.f32 %v2890_v62, %v10869_v10  ;;  %v2892_v11 = vpop.f32.mrb[41].mxu0 }
 0x3f3   : > { %v8026_v24 = vadd.f32 %v2892_v11, %v10873_v1  ;;  %v2894_v21 = vpop.f32.mrb[42].mxu0  ;;  %3959 = vmatprep.subr.bf16.mxu1 %v3368_v42 }
 0x3f4   : > { %v8027_v57 = vadd.f32 %v2894_v21, %v10869_v10  ;;  %v2896_v28 = vpop.f32.mrb[43].mxu0  ;;  %3960 = vmatpush1.bf16.msra.mxu1 %v3367_v35  ;;  %v3229_v30 = vmax.f32 %v8025_v7, 0.0 }
 0x3f5   : > { %v8028_v3 = vadd.f32 %v2896_v28, %v10873_v1  ;;  %v3230_v33 = vmax.f32 %v8026_v24, 0.0 }
 0x3f6   : > { %v3231_v2 = vmax.f32 %v8027_v57, 0.0  ;;  %3159 = vmatmul.mubr.bf16.gmra.mrb[148].mxu0 %v1395_v63 }
 0x3f7   : > { %v3232_v41 = vmax.f32 %v8028_v3, 0.0  ;;  %3168 = vmatprep.mubr.bf16.mxu0 %v13136_v6 }
 0x3f8   : > { %v3369_v31 = vpack.c.bf16 %v3231_v2, %v3229_v30 }
 0x3f9   : > { %v3370_v13 = vpack.c.bf16 %v3232_v41, %v3230_v33  ;;  %v2900_v40 = vpop.f32.mrb[44].mxu0 }
 0x3fa   : > { %v8029_v58 = vadd.f32 %v2900_v40, %v10869_v10  ;;  %v2902_v61 = vpop.f32.mrb[45].mxu0 }
 0x3fb   : > { %v8030_v17 = vadd.f32 %v2902_v61, %v10873_v1  ;;  %v2904_v56 = vpop.f32.mrb[46].mxu0  ;;  %3961 = vmatprep.subr.bf16.mxu1 %v3370_v13 }
 0x3fc   : > { %v8031_v18 = vadd.f32 %v2904_v56, %v10869_v10  ;;  %v2906_v8 = vpop.f32.mrb[47].mxu0  ;;  %3962 = vmatpush1.bf16.msra.mxu1 %v3369_v31  ;;  %v3233_v53 = vmax.f32 %v8029_v58, 0.0 }
 0x3fd   : > { %v8032_v52 = vadd.f32 %v2906_v8, %v10873_v1  ;;  %v3234_v5 = vmax.f32 %v8030_v17, 0.0 }
 0x3fe   : > { %v3235_v22 = vmax.f32 %v8031_v18, 0.0  ;;  %3169 = vmatmul.mubr.bf16.gmra.mrb[152].mxu0 %v1396_v27 }
 0x3ff   : > { %v3236_v32 = vmax.f32 %v8032_v52, 0.0  ;;  %3178 = vmatprep.mubr.bf16.mxu0 %v13136_v6 }
 0x400   : > { %v3371_v16 = vpack.c.bf16 %v3235_v22, %v3233_v53 }
 0x401   : > { %v3372_v37 = vpack.c.bf16 %v3236_v32, %v3234_v5  ;;  %v2910_v4 = vpop.f32.mrb[48].mxu0 }
 0x402   : > { %v8033_v38 = vadd.f32 %v2910_v4, %v10869_v10  ;;  %v2912_v9 = vpop.f32.mrb[49].mxu0 }
 0x403   : > { %v8034_v19 = vadd.f32 %v2912_v9, %v10873_v1  ;;  %v2914_v44 = vpop.f32.mrb[50].mxu0  ;;  %3963 = vmatprep.subr.bf16.mxu1 %v3372_v37 }
 0x404   : > { %v8035_v50 = vadd.f32 %v2914_v44, %v10869_v10  ;;  %v2916_v51 = vpop.f32.mrb[51].mxu0  ;;  %3964 = vmatpush1.bf16.msra.mxu1 %v3371_v16  ;;  %v3237_v20 = vmax.f32 %v8033_v38, 0.0 }
 0x405   : > { %v8036_v49 = vadd.f32 %v2916_v51, %v10873_v1  ;;  %v3238_v60 = vmax.f32 %v8034_v19, 0.0  ;;  %v8915_v19 = vld [vmem:[%s13078_s3] ss:$20 sps:$4 sm:$0xff]  }
 0x406   : > { %v3239_v34 = vmax.f32 %v8035_v50, 0.0  ;;  %3179 = vmatmul.mubr.bf16.gmra.mrb[156].mxu0 %v1397_v23  ;;  %v8918_v51 = vld [vmem:[%s13078_s3 + $0x2c] ss:$20 sps:$4 sm:$0xff]  }
 0x407   : > { %v3240_v15 = vmax.f32 %v8036_v49, 0.0 }
 0x408   : > { %v3373_v59 = vpack.c.bf16 %v3239_v34, %v3237_v20 }
 0x409   : > { %v3374_v45 = vpack.c.bf16 %v3240_v15, %v3238_v60  ;;  %v2920_v0 = vpop.f32.mrb[52].mxu0 }
 0x40a   : > { %v8037_v46 = vadd.f32 %v2920_v0, %v10869_v10  ;;  %v2922_v48 = vpop.f32.mrb[53].mxu0 }
 0x40b   : > { %v8038_v26 = vadd.f32 %v2922_v48, %v10873_v1  ;;  %v2924_v35 = vpop.f32.mrb[54].mxu0  ;;  %3965 = vmatprep.subr.bf16.mxu1 %v3374_v45 }
 0x40c   : > { %v8039_v42 = vadd.f32 %v2924_v35, %v10869_v10  ;;  %v2926_v62 = vpop.f32.mrb[55].mxu0  ;;  %3966 = vmatpush1.bf16.msra.mxu1 %v3373_v59  ;;  %v3241_v11 = vmax.f32 %v8037_v46, 0.0 }
 0x40d   : > { %v8040_v7 = vadd.f32 %v2926_v62, %v10873_v1  ;;  %v3242_v24 = vmax.f32 %v8038_v26, 0.0 }
 0x40e   : > { %v3243_v63 = vmax.f32 %v8039_v42, 0.0  ;;  %v8920_v42 = vld [vmem:[%s13078_s3 + $0x28] ss:$20 sps:$4 sm:$0xff]  }
 0x40f   : > { %v3244_v21 = vmax.f32 %v8040_v7, 0.0 }
 0x410   : > { %v3375_v47 = vpack.c.bf16 %v3243_v63, %v3241_v11  ;;  %v8921_v11 = vld [vmem:[%s13078_s3 + $0x54] ss:$20 sps:$4 sm:$0xff]  }
 0x411   : > { %v3376_v29 = vpack.c.bf16 %v3244_v21, %v3242_v24  ;;  %v2930_v57 = vpop.f32.mrb[56].mxu0 }
 0x412   : > { %v8041_v28 = vadd.f32 %v2930_v57, %v10869_v10  ;;  %v2932_v3 = vpop.f32.mrb[57].mxu0 }
 0x413   : > { %v8042_v30 = vadd.f32 %v2932_v3, %v10873_v1  ;;  %v2934_v2 = vpop.f32.mrb[58].mxu0  ;;  %3967 = vmatprep.subr.bf16.mxu1 %v3376_v29 }
 0x414   : > { %v8043_v33 = vadd.f32 %v2934_v2, %v10869_v10  ;;  %v2936_v41 = vpop.f32.mrb[59].mxu0  ;;  %3968 = vmatpush1.bf16.msra.mxu1 %v3375_v47  ;;  %v3245_v54 = vmax.f32 %v8041_v28, 0.0 }
 0x415   : > { %v8044_v55 = vadd.f32 %v2936_v41, %v10873_v1  ;;  %v3246_v13 = vmax.f32 %v8042_v30, 0.0 }
 0x416   : > { %v3247_v31 = vmax.f32 %v8043_v33, 0.0 }
 0x417   : > { %v3248_v40 = vmax.f32 %v8044_v55, 0.0  ;;  %v8923_v55 = vld [vmem:[%s13078_s3 + $0x50] ss:$20 sps:$4 sm:$0xff]  }
 0x418   : > { %v3377_v58 = vpack.c.bf16 %v3247_v31, %v3245_v54 }
 0x419   : > { %v3378_v61 = vpack.c.bf16 %v3248_v40, %v3246_v13  ;;  %v2940_v27 = vpop.f32.mrb[60].mxu0  ;;  %v8924_v13 = vld [vmem:[%s13078_s3 + $0x7c] ss:$20 sps:$4 sm:$0xff]  }
 0x41a   : > { %v8045_v17 = vadd.f32 %v2940_v27, %v10869_v10  ;;  %v2942_v56 = vpop.f32.mrb[61].mxu0 }
 0x41b   : > { %v8046_v25 = vadd.f32 %v2942_v56, %v10873_v1  ;;  %v2944_v18 = vpop.f32.mrb[62].mxu0  ;;  %3969 = vmatprep.subr.bf16.mxu1 %v3378_v61 }
 0x41c   : > { %v8047_v8 = vadd.f32 %v2944_v18, %v10869_v10  ;;  %v2946_v52 = vpop.f32.mrb[63].mxu0  ;;  %3970 = vmatpush1.bf16.msra.mxu1 %v3377_v58  ;;  %v3249_v22 = vmax.f32 %v8045_v17, 0.0 }
 0x41d   : > { %v8048_v53 = vadd.f32 %v2946_v52, %v10873_v1  ;;  %v3250_v32 = vmax.f32 %v8046_v25, 0.0 }
 0x41e   : > { %v3251_v5 = vmax.f32 %v8047_v8, 0.0 }
 0x41f   : > { %v3252_v14 = vmax.f32 %v8048_v53, 0.0 }
 0x420   : > { %v3379_v43 = vpack.c.bf16 %v3251_v5, %v3249_v22  ;;  %v8926_v5 = vld [vmem:[%s13078_s3 + $0x78] ss:$20 sps:$4 sm:$0xff]  }
 0x421   : > { %v3380_v16 = vpack.c.bf16 %v3252_v14, %v3250_v32  ;;  %v2950_v37 = vpop.f32.mrb[64].mxu0 }
 0x422   : > { %v8049_v4 = vadd.f32 %v2950_v37, %v10869_v10  ;;  %v2952_v38 = vpop.f32.mrb[65].mxu0 }
 0x423   : > { %v8050_v9 = vadd.f32 %v2952_v38, %v10873_v1  ;;  %v2954_v23 = vpop.f32.mrb[66].mxu0  ;;  %3971 = vmatprep.subr.bf16.mxu1 %v3380_v16 }
 0x424   : > { %v8051_v44 = vadd.f32 %v2954_v23, %v10869_v10  ;;  %v2956_v50 = vpop.f32.mrb[67].mxu0  ;;  %3972 = vmatpush1.bf16.msra.mxu1 %v3379_v43  ;;  %v3253_v20 = vmax.f32 %v8049_v4, 0.0  ;;  %v8927_v43 = vld [vmem:[%s13078_s3 + $0xa4] ss:$20 sps:$4 sm:$0xff]  }
 0x425   : > { %v8052_v49 = vadd.f32 %v2956_v50, %v10873_v1  ;;  %v3254_v60 = vmax.f32 %v8050_v9, 0.0 }
 0x426   : > { %v3255_v34 = vmax.f32 %v8051_v44, 0.0 }
 0x427   : > { %v3256_v15 = vmax.f32 %v8052_v49, 0.0  ;;  %3974 = vmatmul.mubr.bf16.vlgmr.msra.gmra.mrb[0].mxu1 %v8915_v19 }
 0x428   : > { %v3381_v59 = vpack.c.bf16 %v3255_v34, %v3253_v20  ;;  %3983 = vmatprep.mubr.bf16.mxu1 %v8918_v51  ;;  %v8929_v34 = vld [vmem:[%s13078_s3 + $0xa0] ss:$20 sps:$4 sm:$0xff]  }
 0x429   : > { %v3382_v45 = vpack.c.bf16 %v3256_v15, %v3254_v60  ;;  %v2960_v0 = vpop.f32.mrb[68].mxu0 }
 0x42a   : > { %v8053_v46 = vadd.f32 %v2960_v0, %v10869_v10  ;;  %v2962_v48 = vpop.f32.mrb[69].mxu0 }
 0x42b   : > { %v8054_v26 = vadd.f32 %v2962_v48, %v10873_v1  ;;  %v2964_v35 = vpop.f32.mrb[70].mxu0  ;;  %4134 = vmatprep.subr.bf16.mxu1 %v3382_v45 }
 0x42c   : > { %v8055_v62 = vadd.f32 %v2964_v35, %v10869_v10  ;;  %v2966_v7 = vpop.f32.mrb[71].mxu0  ;;  %4135 = vmatpush1.bf16.msra.mxu1 %v3381_v59  ;;  %v3257_v24 = vmax.f32 %v8053_v46, 0.0  ;;  %v8930_v59 = vld [vmem:[%s13078_s3 + $0xcc] ss:$20 sps:$4 sm:$0xff]  }
 0x42d   : > { %v8056_v63 = vadd.f32 %v2966_v7, %v10873_v1  ;;  %v3258_v47 = vmax.f32 %v8054_v26, 0.0 }
 0x42e   : > { %v3259_v21 = vmax.f32 %v8055_v62, 0.0 }
 0x42f   : > { %v3260_v29 = vmax.f32 %v8056_v63, 0.0  ;;  %3984 = vmatmul.mubr.bf16.gmra.mrb[4].mxu1 %v8920_v42 }
 0x430   : > { %v3383_v57 = vpack.c.bf16 %v3259_v21, %v3257_v24  ;;  %3993 = vmatprep.mubr.bf16.mxu1 %v8921_v11  ;;  %v8932_v21 = vld [vmem:[%s13078_s3 + $0xc8] ss:$20 sps:$4 sm:$0xff]  }
 0x431   : > { %v3384_v28 = vpack.c.bf16 %v3260_v29, %v3258_v47  ;;  %v2970_v3 = vpop.f32.mrb[72].mxu0 }
 0x432   : > { %v8057_v30 = vadd.f32 %v2970_v3, %v10869_v10  ;;  %v2972_v2 = vpop.f32.mrb[73].mxu0 }
 0x433   : > { %v8058_v33 = vadd.f32 %v2972_v2, %v10873_v1  ;;  %v2974_v41 = vpop.f32.mrb[74].mxu0  ;;  %4136 = vmatprep.subr.bf16.mxu1 %v3384_v28 }
 0x434   : > { %v8059_v54 = vadd.f32 %v2974_v41, %v10869_v10  ;;  %v2976_v31 = vpop.f32.mrb[75].mxu0  ;;  %4137 = vmatpush1.bf16.msra.mxu1 %v3383_v57  ;;  %v3261_v58 = vmax.f32 %v8057_v30, 0.0  ;;  %v8933_v57 = vld [vmem:[%s13078_s3 + $0xf4] ss:$20 sps:$4 sm:$0xff]  }
 0x435   : > { %v8060_v40 = vadd.f32 %v2976_v31, %v10873_v1  ;;  %v3262_v27 = vmax.f32 %v8058_v33, 0.0 }
 0x436   : > { %v3263_v61 = vmax.f32 %v8059_v54, 0.0 }
 0x437   : > { %v3264_v17 = vmax.f32 %v8060_v40, 0.0  ;;  %3994 = vmatmul.mubr.bf16.gmra.mrb[8].mxu1 %v8923_v55 }
 0x438   : > { %v3385_v56 = vpack.c.bf16 %v3263_v61, %v3261_v58  ;;  %4003 = vmatprep.mubr.bf16.mxu1 %v8924_v13  ;;  %v8935_v61 = vld [vmem:[%s13078_s3 + $0xf0] ss:$20 sps:$4 sm:$0xff]  }
 0x439   : > { %v3386_v25 = vpack.c.bf16 %v3264_v17, %v3262_v27  ;;  %v2980_v18 = vpop.f32.mrb[76].mxu0 }
 0x43a   : > { %v8061_v8 = vadd.f32 %v2980_v18, %v10869_v10  ;;  %v2982_v52 = vpop.f32.mrb[77].mxu0 }
 0x43b   : > { %v8062_v53 = vadd.f32 %v2982_v52, %v10873_v1  ;;  %v2984_v22 = vpop.f32.mrb[78].mxu0  ;;  %4138 = vmatprep.subr.bf16.mxu1 %v3386_v25 }
 0x43c   : > { %v8063_v32 = vadd.f32 %v2984_v22, %v10869_v10  ;;  %v2986_v14 = vpop.f32.mrb[79].mxu0  ;;  %4139 = vmatpush1.bf16.msra.mxu1 %v3385_v56  ;;  %v3265_v37 = vmax.f32 %v8061_v8, 0.0  ;;  %v8936_v56 = vld [vmem:[%s13078_s3 + $0x11c] ss:$20 sps:$4 sm:$0xff]  }
 0x43d   : > { %v8064_v16 = vadd.f32 %v2986_v14, %v10873_v1  ;;  %v3266_v38 = vmax.f32 %v8062_v53, 0.0 }
 0x43e   : > { %v3267_v4 = vmax.f32 %v8063_v32, 0.0 }
 0x43f   : > { %v3268_v9 = vmax.f32 %v8064_v16, 0.0  ;;  %4004 = vmatmul.mubr.bf16.gmra.mrb[12].mxu1 %v8926_v5 }
 0x440   : > { %v3387_v23 = vpack.c.bf16 %v3267_v4, %v3265_v37  ;;  %4013 = vmatprep.mubr.bf16.mxu1 %v8927_v43  ;;  %v8938_v4 = vld [vmem:[%s13078_s3 + $0x118] ss:$20 sps:$4 sm:$0xff]  }
 0x441   : > { %v3388_v19 = vpack.c.bf16 %v3268_v9, %v3266_v38  ;;  %v2990_v44 = vpop.f32.mrb[80].mxu0 }
 0x442   : > { %v8065_v50 = vadd.f32 %v2990_v44, %v10869_v10  ;;  %v2992_v51 = vpop.f32.mrb[81].mxu0 }
 0x443   : > { %v8066_v49 = vadd.f32 %v2992_v51, %v10873_v1  ;;  %v2994_v20 = vpop.f32.mrb[82].mxu0  ;;  %4140 = vmatprep.subr.bf16.mxu1 %v3388_v19 }
 0x444   : > { %v8067_v60 = vadd.f32 %v2994_v20, %v10869_v10  ;;  %v2996_v15 = vpop.f32.mrb[83].mxu0  ;;  %4141 = vmatpush1.bf16.msra.mxu1 %v3387_v23  ;;  %v3269_v0 = vmax.f32 %v8065_v50, 0.0  ;;  %v8939_v23 = vld [vmem:[%s13078_s3 + $0x144] ss:$20 sps:$4 sm:$0xff]  }
 0x445   : > { %v8068_v45 = vadd.f32 %v2996_v15, %v10873_v1  ;;  %v3270_v48 = vmax.f32 %v8066_v49, 0.0 }
 0x446   : > { %v3271_v46 = vmax.f32 %v8067_v60, 0.0 }
 0x447   : > { %v3272_v26 = vmax.f32 %v8068_v45, 0.0  ;;  %4014 = vmatmul.mubr.bf16.gmra.mrb[16].mxu1 %v8929_v34 }
 0x448   : > { %v3389_v35 = vpack.c.bf16 %v3271_v46, %v3269_v0  ;;  %4023 = vmatprep.mubr.bf16.mxu1 %v8930_v59  ;;  %v8941_v46 = vld [vmem:[%s13078_s3 + $0x140] ss:$20 sps:$4 sm:$0xff]  }
 0x449   : > { %v3390_v42 = vpack.c.bf16 %v3272_v26, %v3270_v48  ;;  %v3000_v62 = vpop.f32.mrb[84].mxu0 }
 0x44a   : > { %v8069_v7 = vadd.f32 %v3000_v62, %v10869_v10  ;;  %v3002_v11 = vpop.f32.mrb[85].mxu0 }
 0x44b   : > { %v8070_v63 = vadd.f32 %v3002_v11, %v10873_v1  ;;  %v3004_v24 = vpop.f32.mrb[86].mxu0  ;;  %4142 = vmatprep.subr.bf16.mxu1 %v3390_v42 }
 0x44c   : > { %v8071_v47 = vadd.f32 %v3004_v24, %v10869_v10  ;;  %v3006_v29 = vpop.f32.mrb[87].mxu0  ;;  %4143 = vmatpush1.bf16.msra.mxu1 %v3389_v35  ;;  %v3273_v3 = vmax.f32 %v8069_v7, 0.0  ;;  %v8942_v35 = vld [vmem:[%s13078_s3 + $0x16c] ss:$20 sps:$4 sm:$0xff]  }
 0x44d   : > { %v8072_v28 = vadd.f32 %v3006_v29, %v10873_v1  ;;  %v3274_v2 = vmax.f32 %v8070_v63, 0.0 }
 0x44e   : > { %v3275_v30 = vmax.f32 %v8071_v47, 0.0 }
 0x44f   : > { %v3276_v33 = vmax.f32 %v8072_v28, 0.0  ;;  %4024 = vmatmul.mubr.bf16.gmra.mrb[20].mxu1 %v8932_v21 }
 0x450   : > { %v3391_v41 = vpack.c.bf16 %v3275_v30, %v3273_v3  ;;  %4033 = vmatprep.mubr.bf16.mxu1 %v8933_v57  ;;  %v8944_v30 = vld [vmem:[%s13078_s3 + $0x168] ss:$20 sps:$4 sm:$0xff]  }
 0x451   : > { %v3392_v55 = vpack.c.bf16 %v3276_v33, %v3274_v2  ;;  %v3010_v54 = vpop.f32.mrb[88].mxu0 }
 0x452   : > { %v8073_v31 = vadd.f32 %v3010_v54, %v10869_v10  ;;  %v3012_v13 = vpop.f32.mrb[89].mxu0 }
 0x453   : > { %v8074_v40 = vadd.f32 %v3012_v13, %v10873_v1  ;;  %v3014_v58 = vpop.f32.mrb[90].mxu0  ;;  %4144 = vmatprep.subr.bf16.mxu1 %v3392_v55 }
 0x454   : > { %v8075_v27 = vadd.f32 %v3014_v58, %v10869_v10  ;;  %v3016_v17 = vpop.f32.mrb[91].mxu0  ;;  %4145 = vmatpush1.bf16.msra.mxu1 %v3391_v41  ;;  %v3277_v18 = vmax.f32 %v8073_v31, 0.0  ;;  %v8945_v41 = vld [vmem:[%s13078_s3 + $0x194] ss:$20 sps:$4 sm:$0xff]  }
 0x455   : > { %v8076_v25 = vadd.f32 %v3016_v17, %v10873_v1  ;;  %v3278_v52 = vmax.f32 %v8074_v40, 0.0 }
 0x456   : > { %v3279_v8 = vmax.f32 %v8075_v27, 0.0 }
 0x457   : > { %v3280_v53 = vmax.f32 %v8076_v25, 0.0  ;;  %4034 = vmatmul.mubr.bf16.gmra.mrb[24].mxu1 %v8935_v61 }
 0x458   : > { %v3393_v22 = vpack.c.bf16 %v3279_v8, %v3277_v18  ;;  %4043 = vmatprep.mubr.bf16.mxu1 %v8936_v56  ;;  %v8947_v8 = vld [vmem:[%s13078_s3 + $0x190] ss:$20 sps:$4 sm:$0xff]  }
 0x459   : > { %v3394_v5 = vpack.c.bf16 %v3280_v53, %v3278_v52  ;;  %v3020_v32 = vpop.f32.mrb[92].mxu0 }
 0x45a   : > { %v8077_v14 = vadd.f32 %v3020_v32, %v10869_v10  ;;  %v3022_v43 = vpop.f32.mrb[93].mxu0 }
 0x45b   : > { %v8078_v16 = vadd.f32 %v3022_v43, %v10873_v1  ;;  %v3024_v37 = vpop.f32.mrb[94].mxu0  ;;  %4146 = vmatprep.subr.bf16.mxu1 %v3394_v5 }
 0x45c   : > { %v8079_v38 = vadd.f32 %v3024_v37, %v10869_v10  ;;  %v3026_v9 = vpop.f32.mrb[95].mxu0  ;;  %4147 = vmatpush1.bf16.msra.mxu1 %v3393_v22  ;;  %v3281_v44 = vmax.f32 %v8077_v14, 0.0  ;;  %v8948_v22 = vld [vmem:[%s13078_s3 + $0x1bc] ss:$20 sps:$4 sm:$0xff]  }
 0x45d   : > { %v8080_v19 = vadd.f32 %v3026_v9, %v10873_v1  ;;  %v3282_v51 = vmax.f32 %v8078_v16, 0.0 }
 0x45e   : > { %v3283_v50 = vmax.f32 %v8079_v38, 0.0 }
 0x45f   : > { %v3284_v49 = vmax.f32 %v8080_v19, 0.0  ;;  %4044 = vmatmul.mubr.bf16.gmra.mrb[28].mxu1 %v8938_v4 }
 0x460   : > { %v3395_v20 = vpack.c.bf16 %v3283_v50, %v3281_v44  ;;  %4053 = vmatprep.mubr.bf16.mxu1 %v8939_v23  ;;  %v8950_v50 = vld [vmem:[%s13078_s3 + $0x1b8] ss:$20 sps:$4 sm:$0xff]  }
 0x461   : > { %v3396_v34 = vpack.c.bf16 %v3284_v49, %v3282_v51  ;;  %v3030_v60 = vpop.f32.mrb[96].mxu0 }
 0x462   : > { %v8081_v15 = vadd.f32 %v3030_v60, %v10869_v10  ;;  %v3032_v59 = vpop.f32.mrb[97].mxu0 }
 0x463   : > { %v8082_v45 = vadd.f32 %v3032_v59, %v10873_v1  ;;  %v3034_v0 = vpop.f32.mrb[98].mxu0  ;;  %4148 = vmatprep.subr.bf16.mxu1 %v3396_v34 }
 0x464   : > { %v8083_v48 = vadd.f32 %v3034_v0, %v10869_v10  ;;  %v3036_v26 = vpop.f32.mrb[99].mxu0  ;;  %4149 = vmatpush1.bf16.msra.mxu1 %v3395_v20  ;;  %v3285_v62 = vmax.f32 %v8081_v15, 0.0  ;;  %v8951_v20 = vld [vmem:[%s13078_s3 + $0x1e4] ss:$20 sps:$4 sm:$0xff]  }
 0x465   : > { %v8084_v42 = vadd.f32 %v3036_v26, %v10873_v1  ;;  %v3286_v11 = vmax.f32 %v8082_v45, 0.0 }
 0x466   : > { %v3287_v7 = vmax.f32 %v8083_v48, 0.0 }
 0x467   : > { %v3288_v63 = vmax.f32 %v8084_v42, 0.0  ;;  %4054 = vmatmul.mubr.bf16.gmra.mrb[32].mxu1 %v8941_v46 }
 0x468   : > { %v3397_v24 = vpack.c.bf16 %v3287_v7, %v3285_v62  ;;  %4063 = vmatprep.mubr.bf16.mxu1 %v8942_v35  ;;  %v8953_v7 = vld [vmem:[%s13078_s3 + $0x1e0] ss:$20 sps:$4 sm:$0xff]  }
 0x469   : > { %v3398_v21 = vpack.c.bf16 %v3288_v63, %v3286_v11  ;;  %v3040_v47 = vpop.f32.mrb[100].mxu0 }
 0x46a   : > { %v8085_v29 = vadd.f32 %v3040_v47, %v10869_v10  ;;  %v3042_v57 = vpop.f32.mrb[101].mxu0 }
 0x46b   : > { %v8086_v28 = vadd.f32 %v3042_v57, %v10873_v1  ;;  %v3044_v3 = vpop.f32.mrb[102].mxu0  ;;  %4150 = vmatprep.subr.bf16.mxu1 %v3398_v21 }
 0x46c   : > { %v8087_v2 = vadd.f32 %v3044_v3, %v10869_v10  ;;  %v3046_v33 = vpop.f32.mrb[103].mxu0  ;;  %4151 = vmatpush1.bf16.msra.mxu1 %v3397_v24  ;;  %v3289_v54 = vmax.f32 %v8085_v29, 0.0  ;;  %v8954_v24 = vld [vmem:[%s13078_s3 + $0x20c] ss:$20 sps:$4 sm:$0xff]  }
 0x46d   : > { %v8088_v55 = vadd.f32 %v3046_v33, %v10873_v1  ;;  %v3290_v13 = vmax.f32 %v8086_v28, 0.0 }
 0x46e   : > { %v3291_v31 = vmax.f32 %v8087_v2, 0.0 }
 0x46f   : > { %v3292_v40 = vmax.f32 %v8088_v55, 0.0  ;;  %4064 = vmatmul.mubr.bf16.gmra.mrb[36].mxu1 %v8944_v30 }
 0x470   : > { %v3399_v58 = vpack.c.bf16 %v3291_v31, %v3289_v54  ;;  %4073 = vmatprep.mubr.bf16.mxu1 %v8945_v41  ;;  %v8956_v31 = vld [vmem:[%s13078_s3 + $0x208] ss:$20 sps:$4 sm:$0xff]  }
 0x471   : > { %v3400_v61 = vpack.c.bf16 %v3292_v40, %v3290_v13  ;;  %v3050_v27 = vpop.f32.mrb[104].mxu0 }
 0x472   : > { %v8089_v17 = vadd.f32 %v3050_v27, %v10869_v10  ;;  %v3052_v56 = vpop.f32.mrb[105].mxu0 }
 0x473   : > { %v8090_v25 = vadd.f32 %v3052_v56, %v10873_v1  ;;  %v3054_v18 = vpop.f32.mrb[106].mxu0  ;;  %4152 = vmatprep.subr.bf16.mxu1 %v3400_v61 }
 0x474   : > { %v8091_v52 = vadd.f32 %v3054_v18, %v10869_v10  ;;  %v3056_v53 = vpop.f32.mrb[107].mxu0  ;;  %4153 = vmatpush1.bf16.msra.mxu1 %v3399_v58  ;;  %v3293_v32 = vmax.f32 %v8089_v17, 0.0  ;;  %v8957_v58 = vld [vmem:[%s13078_s3 + $0x234] ss:$20 sps:$4 sm:$0xff]  }
 0x475   : > { %v8092_v5 = vadd.f32 %v3056_v53, %v10873_v1  ;;  %v3294_v43 = vmax.f32 %v8090_v25, 0.0 }
 0x476   : > { %v3295_v14 = vmax.f32 %v8091_v52, 0.0 }
 0x477   : > { %v3296_v16 = vmax.f32 %v8092_v5, 0.0  ;;  %4074 = vmatmul.mubr.bf16.gmra.mrb[40].mxu1 %v8947_v8 }
 0x478   : > { %v3401_v37 = vpack.c.bf16 %v3295_v14, %v3293_v32  ;;  %4083 = vmatprep.mubr.bf16.mxu1 %v8948_v22  ;;  %v8959_v14 = vld [vmem:[%s13078_s3 + $0x230] ss:$20 sps:$4 sm:$0xff]  }
 0x479   : > { %v3402_v4 = vpack.c.bf16 %v3296_v16, %v3294_v43  ;;  %v3060_v38 = vpop.f32.mrb[108].mxu0 }
 0x47a   : > { %v8093_v9 = vadd.f32 %v3060_v38, %v10869_v10  ;;  %v3062_v23 = vpop.f32.mrb[109].mxu0 }
 0x47b   : > { %v8094_v19 = vadd.f32 %v3062_v23, %v10873_v1  ;;  %v3064_v44 = vpop.f32.mrb[110].mxu0  ;;  %4154 = vmatprep.subr.bf16.mxu1 %v3402_v4 }
 0x47c   : > { %v8095_v51 = vadd.f32 %v3064_v44, %v10869_v10  ;;  %v3066_v49 = vpop.f32.mrb[111].mxu0  ;;  %4155 = vmatpush1.bf16.msra.mxu1 %v3401_v37  ;;  %v3297_v60 = vmax.f32 %v8093_v9, 0.0  ;;  %v8960_v37 = vld [vmem:[%s13078_s3 + $0x25c] ss:$20 sps:$4 sm:$0xff]  }
 0x47d   : > { %v8096_v34 = vadd.f32 %v3066_v49, %v10873_v1  ;;  %v3298_v59 = vmax.f32 %v8094_v19, 0.0 }
 0x47e   : > { %v3299_v15 = vmax.f32 %v8095_v51, 0.0 }
 0x47f   : > { %v3300_v45 = vmax.f32 %v8096_v34, 0.0  ;;  %4084 = vmatmul.mubr.bf16.gmra.mrb[44].mxu1 %v8950_v50 }
 0x480   : > { %v3403_v0 = vpack.c.bf16 %v3299_v15, %v3297_v60  ;;  %4093 = vmatprep.mubr.bf16.mxu1 %v8951_v20  ;;  %v8962_v15 = vld [vmem:[%s13078_s3 + $0x258] ss:$20 sps:$4 sm:$0xff]  }
 0x481   : > { %v3404_v46 = vpack.c.bf16 %v3300_v45, %v3298_v59  ;;  %v3070_v48 = vpop.f32.mrb[112].mxu0 }
 0x482   : > { %v8097_v26 = vadd.f32 %v3070_v48, %v10869_v10  ;;  %v3072_v35 = vpop.f32.mrb[113].mxu0 }
 0x483   : > { %v8098_v42 = vadd.f32 %v3072_v35, %v10873_v1  ;;  %v3074_v62 = vpop.f32.mrb[114].mxu0  ;;  %4156 = vmatprep.subr.bf16.mxu1 %v3404_v46 }
 0x484   : > { %v8099_v11 = vadd.f32 %v3074_v62, %v10869_v10  ;;  %v3076_v63 = vpop.f32.mrb[115].mxu0  ;;  %4157 = vmatpush1.bf16.msra.mxu1 %v3403_v0  ;;  %v3301_v47 = vmax.f32 %v8097_v26, 0.0  ;;  %v8965_v0 = vld [vmem:[%s13078_s3 + $0xc] ss:$20 sps:$4 sm:$0xff]  }
 0x485   : > { %v8100_v21 = vadd.f32 %v3076_v63, %v10873_v1  ;;  %v3302_v57 = vmax.f32 %v8098_v42, 0.0 }
 0x486   : > { %v3303_v29 = vmax.f32 %v8099_v11, 0.0 }
 0x487   : > { %v3304_v28 = vmax.f32 %v8100_v21, 0.0  ;;  %4094 = vmatmul.mubr.bf16.gmra.mrb[48].mxu1 %v8953_v7 }
 0x488   : > { %v3405_v3 = vpack.c.bf16 %v3303_v29, %v3301_v47  ;;  %4103 = vmatprep.mubr.bf16.mxu1 %v8954_v24  ;;  %v8963_v29 = vld [vmem:[%s13078_s3 + $0x8] ss:$20 sps:$4 sm:$0xff]  }
 0x489   : > { %v3406_v30 = vpack.c.bf16 %v3304_v28, %v3302_v57  ;;  %v3080_v2 = vpop.f32.mrb[116].mxu0 }
 0x48a   : > { %v8101_v33 = vadd.f32 %v3080_v2, %v10869_v10  ;;  %v3082_v41 = vpop.f32.mrb[117].mxu0 }
 0x48b   : > { %v8102_v55 = vadd.f32 %v3082_v41, %v10873_v1  ;;  %v3084_v54 = vpop.f32.mrb[118].mxu0  ;;  %4158 = vmatprep.subr.bf16.mxu1 %v3406_v30 }
 0x48c   : > { %v8103_v13 = vadd.f32 %v3084_v54, %v10869_v10  ;;  %v3086_v40 = vpop.f32.mrb[119].mxu0  ;;  %4159 = vmatpush1.bf16.msra.mxu1 %v3405_v3  ;;  %v3305_v27 = vmax.f32 %v8101_v33, 0.0  ;;  %v8966_v3 = vld [vmem:[%s13078_s3 + $0x34] ss:$20 sps:$4 sm:$0xff]  }
 0x48d   : > { %v8104_v61 = vadd.f32 %v3086_v40, %v10873_v1  ;;  %v3306_v56 = vmax.f32 %v8102_v55, 0.0 }
 0x48e   : > { %v3307_v17 = vmax.f32 %v8103_v13, 0.0 }
 0x48f   : > { %v3308_v25 = vmax.f32 %v8104_v61, 0.0  ;;  %4104 = vmatmul.mubr.bf16.gmra.mrb[52].mxu1 %v8956_v31 }
 0x490   : > { %v3407_v18 = vpack.c.bf16 %v3307_v17, %v3305_v27  ;;  %4113 = vmatprep.mubr.bf16.mxu1 %v8957_v58  ;;  %v8968_v17 = vld [vmem:[%s13078_s3 + $0x30] ss:$20 sps:$4 sm:$0xff]  }
 0x491   : > { %v3408_v8 = vpack.c.bf16 %v3308_v25, %v3306_v56  ;;  %v3090_v52 = vpop.f32.mrb[120].mxu0 }
 0x492   : > { %v8105_v53 = vadd.f32 %v3090_v52, %v10869_v10  ;;  %v3092_v22 = vpop.f32.mrb[121].mxu0 }
 0x493   : > { %v8106_v5 = vadd.f32 %v3092_v22, %v10873_v1  ;;  %v3094_v32 = vpop.f32.mrb[122].mxu0  ;;  %4160 = vmatprep.subr.bf16.mxu1 %v3408_v8 }
 0x494   : > { %v8107_v43 = vadd.f32 %v3094_v32, %v10869_v10  ;;  %v3096_v16 = vpop.f32.mrb[123].mxu0  ;;  %4161 = vmatpush1.bf16.msra.mxu1 %v3407_v18  ;;  %v3309_v38 = vmax.f32 %v8105_v53, 0.0  ;;  %v8969_v18 = vld [vmem:[%s13078_s3 + $0x5c] ss:$20 sps:$4 sm:$0xff]  }
 0x495   : > { %v8108_v4 = vadd.f32 %v3096_v16, %v10873_v1  ;;  %v3310_v23 = vmax.f32 %v8106_v5, 0.0 }
 0x496   : > { %v3311_v9 = vmax.f32 %v8107_v43, 0.0 }
 0x497   : > { %v3312_v19 = vmax.f32 %v8108_v4, 0.0  ;;  %4114 = vmatmul.mubr.bf16.gmra.mrb[56].mxu1 %v8959_v14 }
 0x498   : > { %v3409_v44 = vpack.c.bf16 %v3311_v9, %v3309_v38  ;;  %4123 = vmatprep.mubr.bf16.mxu1 %v8960_v37  ;;  %v8971_v9 = vld [vmem:[%s13078_s3 + $0x58] ss:$20 sps:$4 sm:$0xff]  }
 0x499   : > { %v3410_v50 = vpack.c.bf16 %v3312_v19, %v3310_v23  ;;  %v3100_v51 = vpop.f32.mrb[124].mxu0 }
 0x49a   : > { %v8109_v49 = vadd.f32 %v3100_v51, %v10869_v10  ;;  %v3102_v20 = vpop.f32.mrb[125].mxu0 }
 0x49b   : > { %v8110_v34 = vadd.f32 %v3102_v20, %v10873_v1  ;;  %v3104_v60 = vpop.f32.mrb[126].mxu0  ;;  %4162 = vmatprep.subr.bf16.mxu1 %v3410_v50 }
 0x49c   : > { %v8111_v59 = vadd.f32 %v3104_v60, %v10869_v10  ;;  %v3106_v45 = vpop.f32.mrb[127].mxu0  ;;  %4163 = vmatpush1.bf16.msra.mxu1 %v3409_v44  ;;  %v3313_v48 = vmax.f32 %v8109_v49, 0.0  ;;  %v8972_v44 = vld [vmem:[%s13078_s3 + $0x84] ss:$20 sps:$4 sm:$0xff]  }
 0x49d   : > { %v8112_v46 = vadd.f32 %v3106_v45, %v10873_v1  ;;  %v3314_v35 = vmax.f32 %v8110_v34, 0.0 }
 0x49e   : > { %v3315_v26 = vmax.f32 %v8111_v59, 0.0 }
 0x49f   : > { %v3316_v42 = vmax.f32 %v8112_v46, 0.0  ;;  %4124 = vmatmul.mubr.bf16.gmra.mrb[60].mxu1 %v8962_v15 }
 0x4a0   : > { %v3411_v62 = vpack.c.bf16 %v3315_v26, %v3313_v48  ;;  %4166 = vmatprep.mubr.bf16.mxu1 %v8965_v0  ;;  %v8974_v26 = vld [vmem:[%s13078_s3 + $0x80] ss:$20 sps:$4 sm:$0xff]  }
 0x4a1   : > { %v3412_v7 = vpack.c.bf16 %v3316_v42, %v3314_v35  ;;  %v3110_v11 = vpop.f32.mrb[128].mxu0 }
 0x4a2   : > { %v8113_v63 = vadd.f32 %v3110_v11, %v10869_v10  ;;  %v3112_v24 = vpop.f32.mrb[129].mxu0 }
 0x4a3   : > { %v8114_v21 = vadd.f32 %v3112_v24, %v10873_v1  ;;  %v3114_v47 = vpop.f32.mrb[130].mxu0  ;;  %4164 = vmatprep.subr.bf16.mxu1 %v3412_v7 }
 0x4a4   : > { %v8115_v57 = vadd.f32 %v3114_v47, %v10869_v10  ;;  %v3116_v28 = vpop.f32.mrb[131].mxu0  ;;  %4165 = vmatpush1.bf16.msra.mxu1 %v3411_v62  ;;  %v3317_v2 = vmax.f32 %v8113_v63, 0.0  ;;  %v8975_v62 = vld [vmem:[%s13078_s3 + $0xac] ss:$20 sps:$4 sm:$0xff]  }
 0x4a5   : > { %v8116_v30 = vadd.f32 %v3116_v28, %v10873_v1  ;;  %v3318_v41 = vmax.f32 %v8114_v21, 0.0 }
 0x4a6   : > { %v3319_v33 = vmax.f32 %v8115_v57, 0.0 }
 0x4a7   : > { %v3320_v55 = vmax.f32 %v8116_v30, 0.0  ;;  %4167 = vmatmul.mubr.bf16.vlgmr.msra.gmra.mrb[0].mxu1 %v8963_v29 }
 0x4a8   : > { %v3413_v54 = vpack.c.bf16 %v3319_v33, %v3317_v2  ;;  %4176 = vmatprep.mubr.bf16.mxu1 %v8966_v3  ;;  %v8977_v33 = vld [vmem:[%s13078_s3 + $0xa8] ss:$20 sps:$4 sm:$0xff]  }
 0x4a9   : > { %v3414_v31 = vpack.c.bf16 %v3320_v55, %v3318_v41  ;;  %v3120_v13 = vpop.f32.mrb[132].mxu0 }
 0x4aa   : > { %v8117_v40 = vadd.f32 %v3120_v13, %v10869_v10  ;;  %v3122_v58 = vpop.f32.mrb[133].mxu0 }
 0x4ab   : > { %v8118_v61 = vadd.f32 %v3122_v58, %v10873_v1  ;;  %v3124_v27 = vpop.f32.mrb[134].mxu0  ;;  %4327 = vmatprep.subr.bf16.mxu1 %v3414_v31 }
 0x4ac   : > { %v8119_v56 = vadd.f32 %v3124_v27, %v10869_v10  ;;  %v3126_v25 = vpop.f32.mrb[135].mxu0  ;;  %4328 = vmatpush1.bf16.msra.mxu1 %v3413_v54  ;;  %v3321_v52 = vmax.f32 %v8117_v40, 0.0  ;;  %v8978_v54 = vld [vmem:[%s13078_s3 + $0xd4] ss:$20 sps:$4 sm:$0xff]  }
 0x4ad   : > { %v8120_v8 = vadd.f32 %v3126_v25, %v10873_v1  ;;  %v3322_v22 = vmax.f32 %v8118_v61, 0.0 }
 0x4ae   : > { %v3323_v53 = vmax.f32 %v8119_v56, 0.0 }
 0x4af   : > { %v3324_v5 = vmax.f32 %v8120_v8, 0.0  ;;  %4177 = vmatmul.mubr.bf16.gmra.mrb[4].mxu1 %v8968_v17 }
 0x4b0   : > { %v3415_v32 = vpack.c.bf16 %v3323_v53, %v3321_v52  ;;  %4186 = vmatprep.mubr.bf16.mxu1 %v8969_v18  ;;  %v8980_v53 = vld [vmem:[%s13078_s3 + $0xd0] ss:$20 sps:$4 sm:$0xff]  }
 0x4b1   : > { %v3416_v14 = vpack.c.bf16 %v3324_v5, %v3322_v22  ;;  %v3130_v43 = vpop.f32.mrb[136].mxu0 }
 0x4b2   : > { %v8121_v16 = vadd.f32 %v3130_v43, %v10869_v10  ;;  %v3132_v37 = vpop.f32.mrb[137].mxu0 }
 0x4b3   : > { %v8122_v4 = vadd.f32 %v3132_v37, %v10873_v1  ;;  %v3134_v38 = vpop.f32.mrb[138].mxu0  ;;  %4329 = vmatprep.subr.bf16.mxu1 %v3416_v14 }
 0x4b4   : > { %v8123_v23 = vadd.f32 %v3134_v38, %v10869_v10  ;;  %v3136_v19 = vpop.f32.mrb[139].mxu0  ;;  %4330 = vmatpush1.bf16.msra.mxu1 %v3415_v32  ;;  %v3325_v51 = vmax.f32 %v8121_v16, 0.0  ;;  %v8981_v32 = vld [vmem:[%s13078_s3 + $0xfc] ss:$20 sps:$4 sm:$0xff]  }
 0x4b5   : > { %v8124_v50 = vadd.f32 %v3136_v19, %v10873_v1  ;;  %v3326_v20 = vmax.f32 %v8122_v4, 0.0 }
 0x4b6   : > { %v3327_v49 = vmax.f32 %v8123_v23, 0.0 }
 0x4b7   : > { %v3328_v34 = vmax.f32 %v8124_v50, 0.0  ;;  %4187 = vmatmul.mubr.bf16.gmra.mrb[8].mxu1 %v8971_v9 }
 0x4b8   : > { %v3417_v60 = vpack.c.bf16 %v3327_v49, %v3325_v51  ;;  %4196 = vmatprep.mubr.bf16.mxu1 %v8972_v44  ;;  %v8983_v49 = vld [vmem:[%s13078_s3 + $0xf8] ss:$20 sps:$4 sm:$0xff]  }
 0x4b9   : > { %v3418_v15 = vpack.c.bf16 %v3328_v34, %v3326_v20  ;;  %v3140_v59 = vpop.f32.mrb[140].mxu0 }
 0x4ba   : > { %v8125_v45 = vadd.f32 %v3140_v59, %v10869_v10  ;;  %v3142_v0 = vpop.f32.mrb[141].mxu0 }
 0x4bb   : > { %v8126_v46 = vadd.f32 %v3142_v0, %v10873_v1  ;;  %v3144_v48 = vpop.f32.mrb[142].mxu0  ;;  %4331 = vmatprep.subr.bf16.mxu1 %v3418_v15 }
 0x4bc   : > { %v8127_v35 = vadd.f32 %v3144_v48, %v10869_v10  ;;  %v3146_v42 = vpop.f32.mrb[143].mxu0  ;;  %4332 = vmatpush1.bf16.msra.mxu1 %v3417_v60  ;;  %v3329_v11 = vmax.f32 %v8125_v45, 0.0  ;;  %v8984_v60 = vld [vmem:[%s13078_s3 + $0x124] ss:$20 sps:$4 sm:$0xff]  }
 0x4bd   : > { %v8128_v7 = vadd.f32 %v3146_v42, %v10873_v1  ;;  %v3330_v24 = vmax.f32 %v8126_v46, 0.0 }
 0x4be   : > { %v3331_v63 = vmax.f32 %v8127_v35, 0.0 }
 0x4bf   : > { %v3332_v21 = vmax.f32 %v8128_v7, 0.0  ;;  %4197 = vmatmul.mubr.bf16.gmra.mrb[12].mxu1 %v8974_v26 }
 0x4c0   : > { %v3419_v47 = vpack.c.bf16 %v3331_v63, %v3329_v11  ;;  %4206 = vmatprep.mubr.bf16.mxu1 %v8975_v62  ;;  %v8986_v63 = vld [vmem:[%s13078_s3 + $0x120] ss:$20 sps:$4 sm:$0xff]  }
 0x4c1   : > { %v3420_v29 = vpack.c.bf16 %v3332_v21, %v3330_v24  ;;  %v3150_v57 = vpop.f32.mrb[144].mxu0 }
 0x4c2   : > { %v8129_v28 = vadd.f32 %v3150_v57, %v10869_v10  ;;  %v3152_v3 = vpop.f32.mrb[145].mxu0 }
 0x4c3   : > { %v8130_v30 = vadd.f32 %v3152_v3, %v10873_v1  ;;  %v3154_v2 = vpop.f32.mrb[146].mxu0  ;;  %4333 = vmatprep.subr.bf16.mxu1 %v3420_v29 }
 0x4c4   : > { %v8131_v41 = vadd.f32 %v3154_v2, %v10869_v10  ;;  %v3156_v55 = vpop.f32.mrb[147].mxu0  ;;  %4334 = vmatpush1.bf16.msra.mxu1 %v3419_v47  ;;  %v3333_v13 = vmax.f32 %v8129_v28, 0.0  ;;  %v8987_v47 = vld [vmem:[%s13078_s3 + $0x14c] ss:$20 sps:$4 sm:$0xff]  }
 0x4c5   : > { %v8132_v31 = vadd.f32 %v3156_v55, %v10873_v1  ;;  %v3334_v58 = vmax.f32 %v8130_v30, 0.0  ;;  %v8993_v55 = vld [vmem:[%s13078_s3 + $0x19c] ss:$20 sps:$4 sm:$0xff]  }
 0x4c6   : > { %v3335_v40 = vmax.f32 %v8131_v41, 0.0  ;;  %v8990_v41 = vld [vmem:[%s13078_s3 + $0x174] ss:$20 sps:$4 sm:$0xff]  }
 0x4c7   : > { %v3336_v61 = vmax.f32 %v8132_v31, 0.0  ;;  %4207 = vmatmul.mubr.bf16.gmra.mrb[16].mxu1 %v8977_v33  ;;  %v8996_v31 = vld [vmem:[%s13078_s3 + $0x1c4] ss:$20 sps:$4 sm:$0xff]  }
 0x4c8   : > { %v3421_v27 = vpack.c.bf16 %v3335_v40, %v3333_v13  ;;  %4216 = vmatprep.mubr.bf16.mxu1 %v8978_v54  ;;  %v8995_v54 = vld [vmem:[%s13078_s3 + $0x198] ss:$20 sps:$4 sm:$0xff]   ;;  %v8998_v13 = vld [vmem:[%s13078_s3 + $0x1c0] ss:$20 sps:$4 sm:$0xff]  }
 0x4c9   : > { %v3422_v17 = vpack.c.bf16 %v3336_v61, %v3334_v58  ;;  %v3160_v56 = vpop.f32.mrb[148].mxu0  ;;  %v8999_v40 = vld [vmem:[%s13078_s3 + $0x1ec] ss:$20 sps:$4 sm:$0xff]   ;;  %v9001_v58 = vld [vmem:[%s13078_s3 + $0x1e8] ss:$20 sps:$4 sm:$0xff]  }
 0x4ca   : > { %v8133_v25 = vadd.f32 %v3160_v56, %v10869_v10  ;;  %v3162_v18 = vpop.f32.mrb[149].mxu0  ;;  %v9002_v61 = vld [vmem:[%s13078_s3 + $0x214] ss:$20 sps:$4 sm:$0xff]   ;;  %v9007_v56 = vld [vmem:[%s13078_s3 + $0x238] ss:$20 sps:$4 sm:$0xff]  }
 0x4cb   : > { %v8134_v8 = vadd.f32 %v3162_v18, %v10873_v1  ;;  %v3164_v52 = vpop.f32.mrb[150].mxu0  ;;  %4335 = vmatprep.subr.bf16.mxu1 %v3422_v17  ;;  %v9005_v17 = vld [vmem:[%s13078_s3 + $0x23c] ss:$20 sps:$4 sm:$0xff]   ;;  %v9010_v18 = vld [vmem:[%s13078_s3 + $0x260] ss:$20 sps:$4 sm:$0xff]  }
 0x4cc   : > { %v8135_v22 = vadd.f32 %v3164_v52, %v10869_v10  ;;  %v3166_v5 = vpop.f32.mrb[151].mxu0  ;;  %4336 = vmatpush1.bf16.msra.mxu1 %v3421_v27  ;;  %v3337_v43 = vmax.f32 %v8133_v25, 0.0  ;;  %v9004_v27 = vld [vmem:[%s13078_s3 + $0x210] ss:$20 sps:$4 sm:$0xff]  }
 0x4cd   : > { %v8136_v14 = vadd.f32 %v3166_v5, %v10873_v1  ;;  %v3338_v37 = vmax.f32 %v8134_v8, 0.0  ;;  %v9008_v25 = vld [vmem:[%s13078_s3 + $0x264] ss:$20 sps:$4 sm:$0xff]   ;;  %v9028_v5 = vld [vmem:[%s13079_s4 + $0x10] sm:$0xff]  }
 0x4ce   : > { %v3339_v16 = vmax.f32 %v8135_v22, 0.0  ;;  %v9011_v8 = vld [vmem:[%s13078_s3 + $0x10] ss:$20 sps:$4 sm:$0xff]   ;;  %v9012_v22 = vld [vmem:[%s13078_s3 + $0x38] ss:$20 sps:$4 sm:$0xff]  }
 0x4cf   : > { %v3340_v4 = vmax.f32 %v8136_v14, 0.0  ;;  %4217 = vmatmul.mubr.bf16.gmra.mrb[20].mxu1 %v8980_v53  ;;  %v9023_v52 = vld [vmem:[%s13079_s4] sm:$0xff]   ;;  %v9026_v53 = vld [vmem:[%s13079_s4 + $0x8] sm:$0xff]  }
 0x4d0   : > { %v3423_v38 = vpack.c.bf16 %v3339_v16, %v3337_v43  ;;  %4226 = vmatprep.mubr.bf16.mxu1 %v8981_v32  ;;  %v9030_v32 = vld [vmem:[%s13079_s4 + $0x18] sm:$0xff]   ;;  %v9013_v14 = vld [vmem:[%s13078_s3 + $0x60] ss:$20 sps:$4 sm:$0xff]   ;;  %v9032_v16 = vld [vmem:[%s13079_s4 + $0x28] sm:$0xff]  }
 0x4d1   : > { %v3424_v9 = vpack.c.bf16 %v3340_v4, %v3338_v37  ;;  %v3170_v23 = vpop.f32.mrb[152].mxu0  ;;  %v9031_v43 = vld [vmem:[%s13079_s4 + $0x20] sm:$0xff]   ;;  %v9014_v37 = vld [vmem:[%s13078_s3 + $0x88] ss:$20 sps:$4 sm:$0xff]   ;;  %v9033_v4 = vld [vmem:[%s13079_s4 + $0x30] sm:$0xff]  }
 0x4d2   : > { %v8137_v19 = vadd.f32 %v3170_v23, %v10869_v10  ;;  %v3172_v44 = vpop.f32.mrb[153].mxu0  ;;  %v9035_v23 = vld [vmem:[%s13079_s4 + $0x40] sm:$0xff]  }
 0x4d3   : > { %v8138_v50 = vadd.f32 %v3172_v44, %v10873_v1  ;;  %v3174_v51 = vpop.f32.mrb[154].mxu0  ;;  %4337 = vmatprep.subr.bf16.mxu1 %v3424_v9  ;;  %v9015_v9 = vld [vmem:[%s13078_s3 + $0xb0] ss:$20 sps:$4 sm:$0xff]   ;;  %v9016_v44 = vld [vmem:[%s13078_s3 + $0xd8] ss:$20 sps:$4 sm:$0xff]  }
 0x4d4   : > { %v8139_v20 = vadd.f32 %v3174_v51, %v10869_v10  ;;  %v3176_v34 = vpop.f32.mrb[155].mxu0  ;;  %4338 = vmatpush1.bf16.msra.mxu1 %v3423_v38  ;;  %v3341_v59 = vmax.f32 %v8137_v19, 0.0  ;;  %v9034_v38 = vld [vmem:[%s13079_s4 + $0x38] sm:$0xff]   ;;  %v9036_v19 = vld [vmem:[%s13079_s4 + $0x48] sm:$0xff]  }
 0x4d5   : > { %v8140_v15 = vadd.f32 %v3176_v34, %v10873_v1  ;;  %v3342_v0 = vmax.f32 %v8138_v50, 0.0  ;;  %v9017_v50 = vld [vmem:[%s13078_s3 + $0x100] ss:$20 sps:$4 sm:$0xff]   ;;  %v9018_v51 = vld [vmem:[%s13078_s3 + $0x128] ss:$20 sps:$4 sm:$0xff]  }
 0x4d6   : > { %v3343_v45 = vmax.f32 %v8139_v20, 0.0  ;;  %v9020_v20 = vld [vmem:[%s13078_s3 + $0x178] ss:$20 sps:$4 sm:$0xff]   ;;  %v9021_v34 = vld [vmem:[%s13078_s3 + $0x1a0] ss:$20 sps:$4 sm:$0xff]  }
 0x4d7   : > { %v3344_v46 = vmax.f32 %v8140_v15, 0.0  ;;  %4227 = vmatmul.mubr.bf16.gmra.mrb[24].mxu1 %v8983_v49  ;;  %v9019_v49 = vld [vmem:[%s13078_s3 + $0x150] ss:$20 sps:$4 sm:$0xff]  }
 0x4d8   : > { %v3425_v48 = vpack.c.bf16 %v3343_v45, %v3341_v59  ;;  %4236 = vmatprep.mubr.bf16.mxu1 %v8984_v60  ;;  %v9022_v60 = vld [vmem:[%s13078_s3 + $0x1c8] ss:$20 sps:$4 sm:$0xff]   ;;  %v9037_v15 = vld [vmem:[%s13079_s4 + $0x50] ss:$0 sps:$4 sm:$0xff]  }
 0x4d9   : > { %v3426_v26 = vpack.c.bf16 %v3344_v46, %v3342_v0  ;;  %v3180_v35 = vpop.f32.mrb[156].mxu0  ;;  %v4687_v59 = vsel %vm4685_vm4, %v9037_v15, 0  ;;  %v9024_v45 = vld [vmem:[%s13078_s3 + $0x1f0] ss:$20 sps:$4 sm:$0xff]   ;;  %v9025_v0 = vld [vmem:[%s13078_s3 + $0x218] ss:$20 sps:$4 sm:$0xff]  }
 0x4da   : > { %v8141_v42 = vadd.f32 %v3180_v35, %v10869_v10  ;;  %v3182_v62 = vpop.f32.mrb[157].mxu0  ;;  %v9027_v46 = vld [vmem:[%s13078_s3 + $0x240] ss:$20 sps:$4 sm:$0xff]  }
 0x4db   : > { %v8142_v7 = vadd.f32 %v3182_v62, %v10873_v1  ;;  %v3184_v11 = vpop.f32.mrb[158].mxu0  ;;  %4339 = vmatprep.subr.bf16.mxu1 %v3426_v26  ;;  %v9040_v26 = vld [vmem:[%s13080_s5 + $0x4] ss:$8 sps:$4 sm:$0xff]  }
 0x4dc   : > { %v8143_v24 = vadd.f32 %v3184_v11, %v10869_v10  ;;  %v3186_v21 = vpop.f32.mrb[159].mxu0  ;;  %4340 = vmatpush1.bf16.msra.mxu1 %v3425_v48  ;;  %v3345_v57 = vmax.f32 %v8141_v42, 0.0  ;;  %v8989_v10 = vld [vmem:[%s13078_s3 + $0x148] ss:$20 sps:$4 sm:$0xff]  }
 0x4dd   : > { %v8144_v29 = vadd.f32 %v3186_v21, %v10873_v1  ;;  %v3346_v3 = vmax.f32 %v8142_v7, 0.0  ;;  %v8992_v1 = vld [vmem:[%s13078_s3 + $0x170] ss:$20 sps:$4 sm:$0xff]   ;;  %v9029_v48 = vld [vmem:[%s13078_s3 + $0x268] ss:$20 sps:$4 sm:$0xff]  }
 0x4de   : > { %v3347_v28 = vmax.f32 %v8143_v24, 0.0  ;;  %v9038_v24 = vld [vmem:[%s13080_s5] ss:$8 sps:$4 sm:$0xff]   ;;  %v9043_v21 = vld [vmem:[%s13080_s5 + $0x14] ss:$8 sps:$4 sm:$0xff]  }
 0x4df   : > { %v3348_v30 = vmax.f32 %v8144_v29, 0.0  ;;  %4237 = vmatmul.mubr.bf16.gmra.mrb[28].mxu1 %v8986_v63  ;;  %v9041_v29 = vld [vmem:[%s13080_s5 + $0x10] ss:$8 sps:$4 sm:$0xff]  }
 0x4e0   : > { %v3427_v2 = vpack.c.bf16 %v3347_v28, %v3345_v57  ;;  %4246 = vmatprep.mubr.bf16.mxu1 %v8987_v47  ;;  %v9046_v28 = vld [vmem:[%s13080_s5 + $0x24] ss:$8 sps:$4 sm:$0xff]  }
 0x4e1   : > { %v3428_v33 = vpack.c.bf16 %v3348_v30, %v3346_v3 }
 0x4e3   : > { %4341 = vmatprep.subr.bf16.mxu1 %v3428_v33 }
 0x4e4   : > { %4342 = vmatpush1.bf16.msra.mxu1 %v3427_v2 }
 0x4e5   : > { %4689 = vmatprep.subr.bf16.mxu1 %v13136_v6 }
 0x4e7   : > { %4247 = vmatmul.mubr.bf16.gmra.mrb[32].mxu1 %v8989_v10  ;;  %v9044_v10 = vld [vmem:[%s13080_s5 + $0x20] ss:$8 sps:$4 sm:$0xff]  }
 0x4e8   : > { %4256 = vmatprep.mubr.bf16.mxu1 %v8990_v41  ;;  %v9049_v41 = vld [vmem:[%s13080_s5 + $0x34] ss:$8 sps:$4 sm:$0xff]  }
 0x4ef   : > { %4257 = vmatmul.mubr.bf16.gmra.mrb[36].mxu1 %v8992_v1 }
 0x4f0   : > { %4266 = vmatprep.mubr.bf16.mxu1 %v8993_v55  ;;  %v9047_v55 = vld [vmem:[%s13080_s5 + $0x30] ss:$8 sps:$4 sm:$0xff]  }
 0x4f7   : > { %4267 = vmatmul.mubr.bf16.gmra.mrb[40].mxu1 %v8995_v54 }
 0x4f8   : > { %4276 = vmatprep.mubr.bf16.mxu1 %v8996_v31  ;;  %v9052_v31 = vld [vmem:[%s13080_s5 + $0x44] ss:$8 sps:$4 sm:$0xff]  }
 0x4ff   : > { %4277 = vmatmul.mubr.bf16.gmra.mrb[44].mxu1 %v8998_v13 }
 0x500   : > { %4286 = vmatprep.mubr.bf16.mxu1 %v8999_v40 }
 0x507   : > { %4287 = vmatmul.mubr.bf16.gmra.mrb[48].mxu1 %v9001_v58 }
 0x508   : > { %4296 = vmatprep.mubr.bf16.mxu1 %v9002_v61 }
 0x50f   : > { %4297 = vmatmul.mubr.bf16.gmra.mrb[52].mxu1 %v9004_v27  ;;  %v9050_v27 = vld [vmem:[%s13080_s5 + $0x40] ss:$8 sps:$4 sm:$0xff]  }
 0x510   : > { %4306 = vmatprep.mubr.bf16.mxu1 %v9005_v17  ;;  %v9055_v17 = vld [vmem:[%s13080_s5 + $0x54] ss:$8 sps:$4 sm:$0xff]  }
 0x517   : > { %4307 = vmatmul.mubr.bf16.gmra.mrb[56].mxu1 %v9007_v56 }
 0x518   : > { %4316 = vmatprep.mubr.bf16.mxu1 %v9008_v25  ;;  %v9053_v25 = vld [vmem:[%s13080_s5 + $0x50] ss:$8 sps:$4 sm:$0xff]  }
 0x51f   : > { %4317 = vmatmul.mubr.bf16.gmra.mrb[60].mxu1 %v9010_v18 }
 0x520   : > { %4359 = vmatprep.mubr.bf16.mxu1 %v13136_v6 }
 0x527   : > { %4360 = vmatmul.mubr.bf16.vlgmr.msra.gmra.mrb[0].mxu1 %v9011_v8  ;;  %v9058_v8 = vld [vmem:[%s13080_s5 + $0x64] ss:$8 sps:$4 sm:$0xff]  }
 0x528   : > { %4369 = vmatprep.mubr.bf16.mxu1 %v13136_v6  ;;  %4690 = vmatpush1.bf16.msra.mxu1 %v9023_v52 }
 0x529   : > { %4691 = vmatprep.subr.bf16.mxu1 %v13136_v6 }
 0x52c   : > { %4692 = vmatpush1.bf16.msra.mxu1 %v9026_v53 }
 0x52d   : > { %4693 = vmatprep.subr.bf16.mxu1 %v13136_v6 }
 0x52f   : > { %4370 = vmatmul.mubr.bf16.gmra.mrb[4].mxu1 %v9012_v22 }
 0x530   : > { %4379 = vmatprep.mubr.bf16.mxu1 %v13136_v6  ;;  %4694 = vmatpush1.bf16.msra.mxu1 %v9028_v5 }
 0x531   : > { %4695 = vmatprep.subr.bf16.mxu1 %v13136_v6 }
 0x534   : > { %4696 = vmatpush1.bf16.msra.mxu1 %v9030_v32  ;;  %v9056_v32 = vld [vmem:[%s13080_s5 + $0x60] ss:$8 sps:$4 sm:$0xff]  }
 0x535   : > { %4697 = vmatprep.subr.bf16.mxu1 %v13136_v6 }
 0x537   : > { %4380 = vmatmul.mubr.bf16.gmra.mrb[8].mxu1 %v9013_v14  ;;  %v9061_v14 = vld [vmem:[%s13080_s5 + $0x74] ss:$8 sps:$4 sm:$0xff]  }
 0x538   : > { %4389 = vmatprep.mubr.bf16.mxu1 %v13136_v6  ;;  %4698 = vmatpush1.bf16.msra.mxu1 %v9031_v43 }
 0x539   : > { %4699 = vmatprep.subr.bf16.mxu1 %v13136_v6 }
 0x53c   : > { %4700 = vmatpush1.bf16.msra.mxu1 %v9032_v16  ;;  %v9059_v16 = vld [vmem:[%s13080_s5 + $0x70] ss:$8 sps:$4 sm:$0xff]  }
 0x53d   : > { %4701 = vmatprep.subr.bf16.mxu1 %v13136_v6 }
 0x53f   : > { %4390 = vmatmul.mubr.bf16.gmra.mrb[12].mxu1 %v9014_v37 }
 0x540   : > { %4399 = vmatprep.mubr.bf16.mxu1 %v13136_v6  ;;  %4702 = vmatpush1.bf16.msra.mxu1 %v9033_v4  ;;  %v9064_v4 = vld [vmem:[%s13080_s5 + $0x84] ss:$8 sps:$4 sm:$0xff]  }
 0x541   : > { %4703 = vmatprep.subr.bf16.mxu1 %v13136_v6 }
 0x544   : > { %4704 = vmatpush1.bf16.msra.mxu1 %v9034_v38 }
 0x545   : > { %4705 = vmatprep.subr.bf16.mxu1 %v13136_v6 }
 0x547   : > { %4400 = vmatmul.mubr.bf16.gmra.mrb[16].mxu1 %v9015_v9 }
 0x548   : > { %4409 = vmatprep.mubr.bf16.mxu1 %v13136_v6  ;;  %4706 = vmatpush1.bf16.msra.mxu1 %v9035_v23 }
 0x549   : > { %4707 = vmatprep.subr.bf16.mxu1 %v13136_v6 }
 0x54c   : > { %4708 = vmatpush1.bf16.msra.mxu1 %v9036_v19 }
 0x54d   : > { %4709 = vmatprep.subr.bf16.mxu1 %v13136_v6 }
 0x54f   : > { %4410 = vmatmul.mubr.bf16.gmra.mrb[20].mxu1 %v9016_v44  ;;  %v9062_v44 = vld [vmem:[%s13080_s5 + $0x80] ss:$8 sps:$4 sm:$0xff]  }
 0x550   : > { %4419 = vmatprep.mubr.bf16.mxu1 %v13136_v6  ;;  %4710 = vmatpush1.bf16.msra.mxu1 %v4687_v59 }
 0x551   : > { %5678 = vmatprep.subr.bf16.mxu1 %v9040_v26  ;;  %v9071_v26 = vld [vmem:[%s13080_s5 + $0xb0] ss:$8 sps:$4 sm:$0xff]  }
 0x557   : > { %4420 = vmatmul.mubr.bf16.gmra.mrb[24].mxu1 %v9017_v50  ;;  %v9067_v50 = vld [vmem:[%s13080_s5 + $0x94] ss:$8 sps:$4 sm:$0xff]  }
 0x558   : > { %4429 = vmatprep.mubr.bf16.mxu1 %v13136_v6 }
 0x55f   : > { %4430 = vmatmul.mubr.bf16.gmra.mrb[28].mxu1 %v9018_v51 }
 0x560   : > { %4439 = vmatprep.mubr.bf16.mxu1 %v13136_v6 }
 0x567   : > { %4440 = vmatmul.mubr.bf16.gmra.mrb[32].mxu1 %v9019_v49  ;;  %v9065_v49 = vld [vmem:[%s13080_s5 + $0x90] ss:$8 sps:$4 sm:$0xff]  }
 0x568   : > { %4449 = vmatprep.mubr.bf16.mxu1 %v13136_v6 }
 0x56f   : > { %4450 = vmatmul.mubr.bf16.gmra.mrb[36].mxu1 %v9020_v20 }
 0x570   : > { %4459 = vmatprep.mubr.bf16.mxu1 %v13136_v6 }
 0x577   : > { %4460 = vmatmul.mubr.bf16.gmra.mrb[40].mxu1 %v9021_v34  ;;  %v9070_v34 = vld [vmem:[%s13080_s5 + $0xa4] ss:$8 sps:$4 sm:$0xff]  }
 0x578   : > { %4469 = vmatprep.mubr.bf16.mxu1 %v13136_v6 }
 0x57f   : > { %4470 = vmatmul.mubr.bf16.gmra.mrb[44].mxu1 %v9022_v60 }
 0x580   : > { %4479 = vmatprep.mubr.bf16.mxu1 %v13136_v6 }
 0x587   : > { %4480 = vmatmul.mubr.bf16.gmra.mrb[48].mxu1 %v9024_v45 }
 0x588   : > { %4489 = vmatprep.mubr.bf16.mxu1 %v13136_v6 }
 0x58f   : > { %4490 = vmatmul.mubr.bf16.gmra.mrb[52].mxu1 %v9025_v0  ;;  %v9068_v0 = vld [vmem:[%s13080_s5 + $0xa0] ss:$8 sps:$4 sm:$0xff]  }
 0x590   : > { %4499 = vmatprep.mubr.bf16.mxu1 %v13136_v6 }
 0x597   : > { %4500 = vmatmul.mubr.bf16.gmra.mrb[56].mxu1 %v9027_v46  ;;  %v9073_v46 = vld [vmem:[%s13080_s5 + $0xb4] ss:$8 sps:$4 sm:$0xff]  }
 0x598   : > { %4509 = vmatprep.mubr.bf16.mxu1 %v13136_v6 }
 0x59f   : > { %4510 = vmatmul.mubr.bf16.gmra.mrb[60].mxu1 %v9029_v48 }
 0x5fa   : > { %v4361_v35 = vpop.f32.mrb[0].mxu1 }
 0x5fb   : > { %v4363_v42 = vpop.f32.mrb[1].mxu1 }
 0x5fc   : > { %v4365_v62 = vpop.f32.mrb[2].mxu1 }
 0x5fd   : > { %v4520_v7 = vpack.c.bf16 %v4365_v62, %v4361_v35  ;;  %v4367_v11 = vpop.f32.mrb[3].mxu1 }
 0x5fe   : > { %v4521_v63 = vpack.c.bf16 %v4367_v11, %v4363_v42  ;;  %v9076_v42 = vld [vmem:[%s13080_s5 + $0xc4] ss:$8 sps:$4 sm:$0xff]  }
 0x600   : > { %7439 = vmatprep.mubr.msk.bf16.mxu1 %vm4636_vm5, %v4521_v63 }
 0x601   : > { %4722 = vmatmul.mubr.bf16.vlgmr.msra.gmra.mrb[64].mxu1 %v4520_v7 }
 0x602   : > { %v4371_v47 = vpop.f32.mrb[4].mxu1  ;;  %5679 = vmatpush1.bf16.msra.mxu1 %v9038_v24  ;;  %v9074_v24 = vld [vmem:[%s13080_s5 + $0xc0] ss:$8 sps:$4 sm:$0xff]  }
 0x603   : > { %v4373_v57 = vpop.f32.mrb[5].mxu1  ;;  %5680 = vmatprep.subr.bf16.mxu1 %v9043_v21  ;;  %v9079_v21 = vld [vmem:[%s13080_s5 + $0xd4] ss:$8 sps:$4 sm:$0xff]  }
 0x604   : > { %v4375_v3 = vpop.f32.mrb[6].mxu1 }
 0x605   : > { %v4522_v30 = vpack.c.bf16 %v4375_v3, %v4371_v47  ;;  %v4377_v2 = vpop.f32.mrb[7].mxu1 }
 0x606   : > { %v4523_v33 = vpack.c.bf16 %v4377_v2, %v4373_v57  ;;  %5681 = vmatpush1.bf16.msra.mxu1 %v9041_v29  ;;  %v9077_v29 = vld [vmem:[%s13080_s5 + $0xd0] ss:$8 sps:$4 sm:$0xff]  }
 0x607   : > { %5682 = vmatprep.subr.bf16.mxu1 %v9046_v28 }
 0x608   : > { %7440 = vmatprep.mubr.msk.bf16.mxu1 %vm4636_vm5, %v4523_v33 }
 0x609   : > { %4730 = vmatmul.mubr.bf16.gmra.mrb[68].mxu1 %v4522_v30 }
 0x60a   : > { %v4381_v1 = vpop.f32.mrb[8].mxu1  ;;  %5683 = vmatpush1.bf16.msra.mxu1 %v9044_v10 }
 0x60b   : > { %v4383_v54 = vpop.f32.mrb[9].mxu1  ;;  %5684 = vmatprep.subr.bf16.mxu1 %v9049_v41 }
 0x60c   : > { %v4385_v13 = vpop.f32.mrb[10].mxu1 }
 0x60d   : > { %v4524_v40 = vpack.c.bf16 %v4385_v13, %v4381_v1  ;;  %v4387_v58 = vpop.f32.mrb[11].mxu1 }
 0x60e   : > { %v4525_v61 = vpack.c.bf16 %v4387_v58, %v4383_v54  ;;  %5685 = vmatpush1.bf16.msra.mxu1 %v9047_v55 }
 0x60f   : > { %5686 = vmatprep.subr.bf16.mxu1 %v9052_v31 }
 0x610   : > { %7441 = vmatprep.mubr.msk.bf16.mxu1 %vm4636_vm5, %v4525_v61 }
 0x611   : > { %4738 = vmatmul.mubr.bf16.gmra.mrb[72].mxu1 %v4524_v40 }
 0x612   : > { %v4391_v56 = vpop.f32.mrb[12].mxu1  ;;  %5687 = vmatpush1.bf16.msra.mxu1 %v9050_v27 }
 0x613   : > { %v4393_v18 = vpop.f32.mrb[13].mxu1  ;;  %5688 = vmatprep.subr.bf16.mxu1 %v9055_v17 }
 0x614   : > { %v4395_v52 = vpop.f32.mrb[14].mxu1 }
 0x615   : > { %v4526_v53 = vpack.c.bf16 %v4395_v52, %v4391_v56  ;;  %v4397_v22 = vpop.f32.mrb[15].mxu1 }
 0x616   : > { %v4527_v5 = vpack.c.bf16 %v4397_v22, %v4393_v18  ;;  %5689 = vmatpush1.bf16.msra.mxu1 %v9053_v25 }
 0x617   : > { %5690 = vmatprep.subr.bf16.mxu1 %v9058_v8 }
 0x618   : > { %7442 = vmatprep.mubr.msk.bf16.mxu1 %vm4636_vm5, %v4527_v5 }
 0x619   : > { %4746 = vmatmul.mubr.bf16.gmra.mrb[76].mxu1 %v4526_v53 }
 0x61a   : > { %v4401_v43 = vpop.f32.mrb[16].mxu1  ;;  %5691 = vmatpush1.bf16.msra.mxu1 %v9056_v32 }
 0x61b   : > { %v4403_v37 = vpop.f32.mrb[17].mxu1  ;;  %5692 = vmatprep.subr.bf16.mxu1 %v9061_v14 }
 0x61c   : > { %v4405_v38 = vpop.f32.mrb[18].mxu1 }
 0x61d   : > { %v4528_v9 = vpack.c.bf16 %v4405_v38, %v4401_v43  ;;  %v4407_v23 = vpop.f32.mrb[19].mxu1 }
 0x61e   : > { %v4529_v19 = vpack.c.bf16 %v4407_v23, %v4403_v37  ;;  %5693 = vmatpush1.bf16.msra.mxu1 %v9059_v16  ;;  %v9080_v16 = vld [vmem:[%s13080_s5 + $0xe0] ss:$8 sps:$4 sm:$0xff]   ;;  %v9082_v37 = vld [vmem:[%s13080_s5 + $0xe4] ss:$8 sps:$4 sm:$0xff]  }
 0x61f   : > { %5694 = vmatprep.subr.bf16.mxu1 %v9064_v4 }
 0x620   : > { %7443 = vmatprep.mubr.msk.bf16.mxu1 %vm4636_vm5, %v4529_v19 }
 0x621   : > { %4754 = vmatmul.mubr.bf16.gmra.mrb[80].mxu1 %v4528_v9 }
 0x622   : > { %v4411_v51 = vpop.f32.mrb[20].mxu1  ;;  %5695 = vmatpush1.bf16.msra.mxu1 %v9062_v44 }
 0x623   : > { %v4413_v20 = vpop.f32.mrb[21].mxu1  ;;  %5696 = vmatprep.subr.bf16.mxu1 %v9067_v50  ;;  %v9085_v50 = vld [vmem:[%s13080_s5 + $0xf4] ss:$8 sps:$4 sm:$0xff]  }
 0x624   : > { %v4415_v60 = vpop.f32.mrb[22].mxu1 }
 0x625   : > { %v4530_v15 = vpack.c.bf16 %v4415_v60, %v4411_v51  ;;  %v4417_v59 = vpop.f32.mrb[23].mxu1  ;;  %v9083_v51 = vld [vmem:[%s13080_s5 + $0xf0] ss:$8 sps:$4 sm:$0xff]  }
 0x626   : > { %v4531_v45 = vpack.c.bf16 %v4417_v59, %v4413_v20  ;;  %5697 = vmatpush1.bf16.msra.mxu1 %v9065_v49 }
 0x627   : > { %5698 = vmatprep.subr.bf16.mxu1 %v9070_v34 }
 0x628   : > { %7444 = vmatprep.mubr.msk.bf16.mxu1 %vm4636_vm5, %v4531_v45  ;;  %v9088_v45 = vld [vmem:[%s13080_s5 + $0x104] ss:$8 sps:$4 sm:$0xff]  }
 0x629   : > { %4762 = vmatmul.mubr.bf16.gmra.mrb[84].mxu1 %v4530_v15 }
 0x62a   : > { %v4421_v48 = vpop.f32.mrb[24].mxu1  ;;  %5699 = vmatpush1.bf16.msra.mxu1 %v9068_v0 }
 0x62b   : > { %v4423_v35 = vpop.f32.mrb[25].mxu1  ;;  %5700 = vmatprep.subr.bf16.mxu1 %v9073_v46 }
 0x62c   : > { %v4425_v62 = vpop.f32.mrb[26].mxu1 }
 0x62d   : > { %v4532_v7 = vpack.c.bf16 %v4425_v62, %v4421_v48  ;;  %v4427_v11 = vpop.f32.mrb[27].mxu1 }
 0x62e   : > { %v4533_v63 = vpack.c.bf16 %v4427_v11, %v4423_v35  ;;  %5701 = vmatpush1.bf16.msra.mxu1 %v9071_v26 }
 0x62f   : > { %5702 = vmatprep.subr.bf16.mxu1 %v9076_v42 }
 0x630   : > { %7445 = vmatprep.mubr.msk.bf16.mxu1 %vm4636_vm5, %v4533_v63 }
 0x631   : > { %4770 = vmatmul.mubr.bf16.gmra.mrb[88].mxu1 %v4532_v7 }
 0x632   : > { %v4431_v47 = vpop.f32.mrb[28].mxu1  ;;  %5703 = vmatpush1.bf16.msra.mxu1 %v9074_v24 }
 0x633   : > { %v4433_v57 = vpop.f32.mrb[29].mxu1  ;;  %5704 = vmatprep.subr.bf16.mxu1 %v9079_v21 }
 0x634   : > { %v4435_v28 = vpop.f32.mrb[30].mxu1 }
 0x635   : > { %v4534_v3 = vpack.c.bf16 %v4435_v28, %v4431_v47  ;;  %v4437_v30 = vpop.f32.mrb[31].mxu1 }
 0x636   : > { %v4535_v2 = vpack.c.bf16 %v4437_v30, %v4433_v57  ;;  %5705 = vmatpush1.bf16.msra.mxu1 %v9077_v29 }
 0x637   : > { %5706 = vmatprep.subr.bf16.mxu1 %v9082_v37 }
 0x638   : > { %7446 = vmatprep.mubr.msk.bf16.mxu1 %vm4636_vm5, %v4535_v2 }
 0x639   : > { %4778 = vmatmul.mubr.bf16.gmra.mrb[92].mxu1 %v4534_v3 }
 0x63a   : > { %v4441_v33 = vpop.f32.mrb[32].mxu1  ;;  %5707 = vmatpush1.bf16.msra.mxu1 %v9080_v16 }
 0x63b   : > { %v4443_v10 = vpop.f32.mrb[33].mxu1  ;;  %5708 = vmatprep.subr.bf16.mxu1 %v9085_v50 }
 0x63c   : > { %v4445_v41 = vpop.f32.mrb[34].mxu1 }
 0x63d   : > { %v4536_v1 = vpack.c.bf16 %v4445_v41, %v4441_v33  ;;  %v4447_v55 = vpop.f32.mrb[35].mxu1 }
 0x63e   : > { %v4537_v54 = vpack.c.bf16 %v4447_v55, %v4443_v10  ;;  %5709 = vmatpush1.bf16.msra.mxu1 %v9083_v51 }
 0x63f   : > { %5871 = vmatprep.subr.bf16.mxu1 %v9088_v45 }
 0x640   : > { %7447 = vmatprep.mubr.msk.bf16.mxu1 %vm4636_vm5, %v4537_v54 }
 0x641   : > { %4786 = vmatmul.mubr.bf16.gmra.mrb[96].mxu1 %v4536_v1 }
 0x642   : > { %v4451_v31 = vpop.f32.mrb[36].mxu1 }
 0x643   : > { %v4453_v13 = vpop.f32.mrb[37].mxu1 }
 0x644   : > { %v4455_v40 = vpop.f32.mrb[38].mxu1 }
 0x645   : > { %v4538_v58 = vpack.c.bf16 %v4455_v40, %v4451_v31  ;;  %v4457_v61 = vpop.f32.mrb[39].mxu1 }
 0x646   : > { %v4539_v27 = vpack.c.bf16 %v4457_v61, %v4453_v13 }
 0x648   : > { %7448 = vmatprep.mubr.msk.bf16.mxu1 %vm4636_vm5, %v4539_v27 }
 0x649   : > { %4794 = vmatmul.mubr.bf16.gmra.mrb[100].mxu1 %v4538_v58 }
 0x64a   : > { %v4461_v17 = vpop.f32.mrb[40].mxu1 }
 0x64b   : > { %v4463_v56 = vpop.f32.mrb[41].mxu1 }
 0x64c   : > { %v4465_v25 = vpop.f32.mrb[42].mxu1 }
 0x64d   : > { %v4540_v18 = vpack.c.bf16 %v4465_v25, %v4461_v17  ;;  %v4467_v8 = vpop.f32.mrb[43].mxu1 }
 0x64e   : > { %v4541_v52 = vpack.c.bf16 %v4467_v8, %v4463_v56 }
 0x650   : > { %7449 = vmatprep.mubr.msk.bf16.mxu1 %vm4636_vm5, %v4541_v52 }
 0x651   : > { %4802 = vmatmul.mubr.bf16.gmra.mrb[104].mxu1 %v4540_v18 }
 0x652   : > { %v4471_v53 = vpop.f32.mrb[44].mxu1 }
 0x653   : > { %v4473_v22 = vpop.f32.mrb[45].mxu1 }
 0x654   : > { %v4475_v5 = vpop.f32.mrb[46].mxu1 }
 0x655   : > { %v4542_v32 = vpack.c.bf16 %v4475_v5, %v4471_v53  ;;  %v4477_v14 = vpop.f32.mrb[47].mxu1 }
 0x656   : > { %v4543_v43 = vpack.c.bf16 %v4477_v14, %v4473_v22 }
 0x658   : > { %7450 = vmatprep.mubr.msk.bf16.mxu1 %vm4636_vm5, %v4543_v43 }
 0x659   : > { %4810 = vmatmul.mubr.bf16.gmra.mrb[108].mxu1 %v4542_v32 }
 0x65a   : > { %v4481_v4 = vpop.f32.mrb[48].mxu1 }
 0x65b   : > { %v4483_v38 = vpop.f32.mrb[49].mxu1 }
 0x65c   : > { %v4485_v9 = vpop.f32.mrb[50].mxu1 }
 0x65d   : > { %v4544_v23 = vpack.c.bf16 %v4485_v9, %v4481_v4  ;;  %v4487_v19 = vpop.f32.mrb[51].mxu1 }
 0x65e   : > { %v4545_v44 = vpack.c.bf16 %v4487_v19, %v4483_v38  ;;  %v9086_v38 = vld [vmem:[%s13080_s5 + $0x100] ss:$8 sps:$4 sm:$0xff]  }
 0x660   : > { %7451 = vmatprep.mubr.msk.bf16.mxu1 %vm4636_vm5, %v4545_v44  ;;  %v9091_v44 = vld [vmem:[%s13080_s5 + $0x114] ss:$8 sps:$4 sm:$0xff]  }
 0x661   : > { %4818 = vmatmul.mubr.bf16.gmra.mrb[112].mxu1 %v4544_v23 }
 0x662   : > { %v4491_v49 = vpop.f32.mrb[52].mxu1 }
 0x663   : > { %v4493_v20 = vpop.f32.mrb[53].mxu1 }
 0x664   : > { %v4495_v34 = vpop.f32.mrb[54].mxu1 }
 0x665   : > { %v4546_v60 = vpack.c.bf16 %v4495_v34, %v4491_v49  ;;  %v4497_v15 = vpop.f32.mrb[55].mxu1 }
 0x666   : > { %v4547_v59 = vpack.c.bf16 %v4497_v15, %v4493_v20 }
 0x668   : > { %7452 = vmatprep.mubr.msk.bf16.mxu1 %vm4636_vm5, %v4547_v59 }
 0x669   : > { %4826 = vmatmul.mubr.bf16.gmra.mrb[116].mxu1 %v4546_v60 }
 0x66a   : > { %v4501_v0 = vpop.f32.mrb[56].mxu1 }
 0x66b   : > { %v4503_v46 = vpop.f32.mrb[57].mxu1 }
 0x66c   : > { %v4505_v48 = vpop.f32.mrb[58].mxu1 }
 0x66d   : > { %v4548_v26 = vpack.c.bf16 %v4505_v48, %v4501_v0  ;;  %v4507_v35 = vpop.f32.mrb[59].mxu1 }
 0x66e   : > { %v4549_v42 = vpack.c.bf16 %v4507_v35, %v4503_v46  ;;  %v9089_v46 = vld [vmem:[%s13080_s5 + $0x110] ss:$8 sps:$4 sm:$0xff]   ;;  %v9094_v35 = vld [vmem:[%s13080_s5 + $0x124] ss:$8 sps:$4 sm:$0xff]  }
 0x670   : > { %7453 = vmatprep.mubr.msk.bf16.mxu1 %vm4636_vm5, %v4549_v42 }
 0x671   : > { %4834 = vmatmul.mubr.bf16.gmra.mrb[120].mxu1 %v4548_v26 }
 0x672   : > { %v4511_v62 = vpop.f32.mrb[60].mxu1 }
 0x673   : > { %v4513_v7 = vpop.f32.mrb[61].mxu1 }
 0x674   : > { %v4515_v11 = vpop.f32.mrb[62].mxu1 }
 0x675   : > { %v4550_v63 = vpack.c.bf16 %v4515_v11, %v4511_v62  ;;  %v4517_v24 = vpop.f32.mrb[63].mxu1 }
 0x676   : > { %v4551_v21 = vpack.c.bf16 %v4517_v24, %v4513_v7 }
 0x678   : > { %7454 = vmatprep.mubr.msk.bf16.mxu1 %vm4636_vm5, %v4551_v21 }
 0x679   : > { %4842 = vmatmul.mubr.bf16.gmra.mrb[124].mxu1 %v4550_v63 }
 0x6d4   : > { %v11541_v47 = vpop.f32.mrb[64].mxu1 }
 0x6d5   : > { %v4725_v29 = vpop.f32.mrb[65].mxu1  ;;  %v13141_v41 = vrot.slane %v11541_v47, 1  ;;  %v13139_v1 = vrot.slane %v11541_v47, 2  ;;  %v13140_v55 = vrot.slane %v11541_v47, 3  ;;  %v13138_v54 = vrot.slane %v11541_v47, 4 }
 0x6d6   : > { %v4726_v57 = vpop.f32.mrb[66].mxu1 }
 0x6d7   : > { %v4850_v28 = vpack.c.bf16 %v4726_v57, %v11541_v47  ;;  %v4728_v3 = vpop.f32.mrb[67].mxu1  ;;  %v4867_v30 = vrot.slane %v4726_v57, 1  ;;  %v4947_v2 = vrot.slane %v4726_v57, 2  ;;  %v5027_v33 = vrot.slane %v4726_v57, 3 }
 0x6d8   : > { %v5107_v10 = vrot.slane %v4726_v57, 4 }
 0x6d9   : > { %v4928_v27 = vsel %vm674_vm0, %v13141_v41, %v4867_v30  ;;  %v11562_v25 = vsel %vm1076_vm1, %v13140_v55, %v5027_v33  ;;  %v11568_v18 = vsel %vm875_vm2, %v13139_v1, %v4947_v2 }
 0x6da   : > { %v11574_v8 = vsel %vm1277_vm3, %v13138_v54, %v5107_v10 }
 0x6db   : > { %13256 = vst [vmem:[#allocation2_spill] sm:$0xff] %v11574_v8 }
 0x6dc   : > { %v11548_v31 = vpop.f32.mrb[68].mxu1 }
 0x6dd   : > { %v4868_v13 = vrot.slane %v11548_v31, 1  ;;  %v4948_v40 = vrot.slane %v11548_v31, 2  ;;  %v5028_v58 = vrot.slane %v11548_v31, 3  ;;  %v4733_v61 = vpop.f32.mrb[69].mxu1  ;;  %v5108_v17 = vrot.slane %v11548_v31, 4 }
 0x6de   : > { %v4734_v56 = vpop.f32.mrb[70].mxu1 }
 0x6df   : > { %v4869_v52 = vrot.slane %v4734_v56, 1  ;;  %v4949_v53 = vrot.slane %v4734_v56, 2  ;;  %v5029_v22 = vrot.slane %v4734_v56, 3  ;;  %v5109_v5 = vrot.slane %v4734_v56, 4  ;;  %v4736_v32 = vpop.f32.mrb[71].mxu1 }
 0x6e0   : > { %v4927_v14 = vsel %vm674_vm0, %v4867_v30, %v4868_v13  ;;  %v4851_v43 = vpack.c.bf16 %v4734_v56, %v11548_v31  ;;  %v11581_v16 = vsel %vm1076_vm1, %v5027_v33, %v5028_v58  ;;  %v11585_v37 = vsel %vm875_vm2, %v4947_v2, %v4948_v40  ;;  %v9092_v30 = vld [vmem:[%s13080_s5 + $0x120] ss:$8 sps:$4 sm:$0xff]  }
 0x6e1   : > { %v4930_v4 = vpack.c.bf16 %v4927_v14, %v4928_v27  ;;  %v4926_v9 = vsel %vm674_vm0, %v4868_v13, %v4869_v52  ;;  %v11601_v50 = vsel %vm1076_vm1, %v5028_v58, %v5029_v22  ;;  %v11605_v51 = vsel %vm875_vm2, %v4948_v40, %v4949_v53  ;;  %v9100_v14 = vld [vmem:[%s13080_s5 + $0x144] ss:$8 sps:$4 sm:$0xff]  }
 0x6e2   : > { %v11609_v49 = vsel %vm1277_vm3, %v5107_v10, %v5108_v17  ;;  %v11613_v20 = vsel %vm1277_vm3, %v5108_v17, %v5109_v5  ;;  %v9097_v10 = vld [vmem:[%s13080_s5 + $0x134] ss:$8 sps:$4 sm:$0xff]  }
 0x6e3   : > { %13257 = vst [vmem:[#allocation3_spill] sm:$0xff] %v11609_v49  ;;  %13258 = vst [vmem:[#allocation4_spill] sm:$0xff] %v11613_v20  ;;  %5710 = vmatprep.mubr.bf16.mxu1 %v4930_v4 }
 0x6e4   : > { %5711 = vmatmul.mubr.bf16.vlgmr.msra.gmra.mrb[128].mxu1 %v4850_v28  ;;  %v11617_v60 = vpop.f32.mrb[72].mxu1 }
 0x6e5   : > { %v4870_v15 = vrot.slane %v11617_v60, 1  ;;  %v4950_v59 = vrot.slane %v11617_v60, 2  ;;  %v5030_v45 = vrot.slane %v11617_v60, 3  ;;  %v4741_v0 = vpop.f32.mrb[73].mxu1  ;;  %5872 = vmatpush1.bf16.msra.mxu1 %v9086_v38  ;;  %v5110_v48 = vrot.slane %v11617_v60, 4 }
 0x6e6   : > { %v4742_v26 = vpop.f32.mrb[74].mxu1  ;;  %5873 = vmatprep.subr.bf16.mxu1 %v9091_v44 }
 0x6e7   : > { %v4871_v42 = vrot.slane %v4742_v26, 1  ;;  %v4951_v62 = vrot.slane %v4742_v26, 2  ;;  %v5031_v7 = vrot.slane %v4742_v26, 3  ;;  %v5111_v11 = vrot.slane %v4742_v26, 4  ;;  %v4744_v63 = vpop.f32.mrb[75].mxu1 }
 0x6e8   : > { %v4925_v24 = vsel %vm674_vm0, %v4869_v52, %v4870_v15  ;;  %v4852_v21 = vpack.c.bf16 %v4742_v26, %v11617_v60  ;;  %v11634_v29 = vsel %vm1076_vm1, %v5029_v22, %v5030_v45  ;;  %v11638_v57 = vsel %vm875_vm2, %v4949_v53, %v4950_v59  ;;  %v9095_v22 = vld [vmem:[%s13080_s5 + $0x130] ss:$8 sps:$4 sm:$0xff]  }
 0x6e9   : > { %v4931_v28 = vpack.c.bf16 %v4925_v24, %v4926_v9  ;;  %5874 = vmatpush1.bf16.msra.mxu1 %v9089_v46  ;;  %v4924_v3 = vsel %vm674_vm0, %v4870_v15, %v4871_v42  ;;  %v11654_v31 = vsel %vm1076_vm1, %v5030_v45, %v5031_v7  ;;  %v11658_v13 = vsel %vm875_vm2, %v4950_v59, %v4951_v62 }
 0x6ea   : > { %5875 = vmatprep.subr.bf16.mxu1 %v9094_v35  ;;  %v11662_v40 = vsel %vm1277_vm3, %v5109_v5, %v5110_v48  ;;  %v11666_v58 = vsel %vm1277_vm3, %v5110_v48, %v5111_v11  ;;  %v9098_v48 = vld [vmem:[%s13080_s5 + $0x140] ss:$8 sps:$4 sm:$0xff]  }
 0x6eb   : > { %13259 = vst [vmem:[#allocation5_spill] sm:$0xff] %v11662_v40  ;;  %13260 = vst [vmem:[#allocation6_spill] sm:$0xff] %v11666_v58  ;;  %5720 = vmatprep.mubr.bf16.mxu1 %v4931_v28 }
 0x6ec   : > { %5721 = vmatmul.mubr.bf16.gmra.mrb[132].mxu1 %v4851_v43  ;;  %v11670_v27 = vpop.f32.mrb[76].mxu1 }
 0x6ed   : > { %v4872_v17 = vrot.slane %v11670_v27, 1  ;;  %v4952_v56 = vrot.slane %v11670_v27, 2  ;;  %v5032_v52 = vrot.slane %v11670_v27, 3  ;;  %v4749_v53 = vpop.f32.mrb[77].mxu1  ;;  %5876 = vmatpush1.bf16.msra.mxu1 %v9092_v30  ;;  %v5112_v5 = vrot.slane %v11670_v27, 4 }
 0x6ee   : > { %v4750_v32 = vpop.f32.mrb[78].mxu1  ;;  %5877 = vmatprep.subr.bf16.mxu1 %v9097_v10 }
 0x6ef   : > { %v4873_v43 = vrot.slane %v4750_v32, 1  ;;  %v4953_v4 = vrot.slane %v4750_v32, 2  ;;  %v5033_v38 = vrot.slane %v4750_v32, 3  ;;  %v5113_v9 = vrot.slane %v4750_v32, 4  ;;  %v4752_v44 = vpop.f32.mrb[79].mxu1 }
 0x6f0   : > { %v4923_v60 = vsel %vm674_vm0, %v4871_v42, %v4872_v17  ;;  %v4853_v15 = vpack.c.bf16 %v4750_v32, %v11670_v27  ;;  %v11687_v59 = vsel %vm1076_vm1, %v5031_v7, %v5032_v52  ;;  %v11691_v45 = vsel %vm875_vm2, %v4951_v62, %v4952_v56  ;;  %v9103_v42 = vld [vmem:[%s13080_s5 + $0x154] ss:$8 sps:$4 sm:$0xff]  }
 0x6f1   : > { %v4932_v0 = vpack.c.bf16 %v4923_v60, %v4924_v3  ;;  %v4922_v46 = vsel %vm674_vm0, %v4872_v17, %v4873_v43  ;;  %5878 = vmatpush1.bf16.msra.mxu1 %v9095_v22  ;;  %v11707_v62 = vsel %vm1076_vm1, %v5032_v52, %v5033_v38  ;;  %v11711_v7 = vsel %vm875_vm2, %v4952_v56, %v4953_v4 }
 0x6f2   : > { %5879 = vmatprep.subr.bf16.mxu1 %v9100_v14  ;;  %v11715_v63 = vsel %vm1277_vm3, %v5111_v11, %v5112_v5  ;;  %v11719_v24 = vsel %vm1277_vm3, %v5112_v5, %v5113_v9  ;;  %v9101_v11 = vld [vmem:[%s13080_s5 + $0x150] ss:$8 sps:$4 sm:$0xff]  }
 0x6f3   : > { %13261 = vst [vmem:[#allocation7_spill] sm:$0xff] %v11715_v63  ;;  %13262 = vst [vmem:[#allocation8_spill] sm:$0xff] %v11719_v24  ;;  %5730 = vmatprep.mubr.bf16.mxu1 %v4932_v0 }
 0x6f4   : > { %5731 = vmatmul.mubr.bf16.gmra.mrb[136].mxu1 %v4852_v21  ;;  %v11723_v3 = vpop.f32.mrb[80].mxu1  ;;  %v9106_v21 = vld [vmem:[%s13080_s5 + $0x164] ss:$8 sps:$4 sm:$0xff]  }
 0x6f5   : > { %v4874_v30 = vrot.slane %v11723_v3, 1  ;;  %v4954_v10 = vrot.slane %v11723_v3, 2  ;;  %v5034_v27 = vrot.slane %v11723_v3, 3  ;;  %v4757_v17 = vpop.f32.mrb[81].mxu1  ;;  %5880 = vmatpush1.bf16.msra.mxu1 %v9098_v48  ;;  %v5114_v56 = vrot.slane %v11723_v3, 4 }
 0x6f6   : > { %v4758_v52 = vpop.f32.mrb[82].mxu1  ;;  %5881 = vmatprep.subr.bf16.mxu1 %v9103_v42 }
 0x6f7   : > { %v4875_v53 = vrot.slane %v4758_v52, 1  ;;  %v4955_v22 = vrot.slane %v4758_v52, 2  ;;  %v5035_v5 = vrot.slane %v4758_v52, 3  ;;  %v5115_v32 = vrot.slane %v4758_v52, 4  ;;  %v4760_v14 = vpop.f32.mrb[83].mxu1 }
 0x6f8   : > { %v4921_v44 = vsel %vm674_vm0, %v4873_v43, %v4874_v30  ;;  %v4854_v60 = vpack.c.bf16 %v4758_v52, %v11723_v3  ;;  %v11740_v0 = vsel %vm1076_vm1, %v5033_v38, %v5034_v27  ;;  %v11744_v48 = vsel %vm875_vm2, %v4953_v4, %v4954_v10  ;;  %v9104_v14 = vld [vmem:[%s13080_s5 + $0x160] ss:$8 sps:$4 sm:$0xff]   ;;  %v9109_v4 = vld [vmem:[%s13080_s5 + $0x174] ss:$8 sps:$4 sm:$0xff]  }
 0x6f9   : > { %v4933_v42 = vpack.c.bf16 %v4921_v44, %v4922_v46  ;;  %v4920_v17 = vsel %vm674_vm0, %v4874_v30, %v4875_v53  ;;  %5882 = vmatpush1.bf16.msra.mxu1 %v9101_v11  ;;  %v11760_v46 = vsel %vm1076_vm1, %v5034_v27, %v5035_v5  ;;  %v11764_v3 = vsel %vm875_vm2, %v4954_v10, %v4955_v22 }
 0x6fa   : > { %5883 = vmatprep.subr.bf16.mxu1 %v9106_v21  ;;  %v11768_v30 = vsel %vm1277_vm3, %v5113_v9, %v5114_v56  ;;  %v11772_v11 = vsel %vm1277_vm3, %v5114_v56, %v5115_v32  ;;  %v9107_v9 = vld [vmem:[%s13080_s5 + $0x170] ss:$8 sps:$4 sm:$0xff]  }
 0x6fb   : > { %13263 = vst [vmem:[#allocation9_spill] sm:$0xff] %v11768_v30  ;;  %13264 = vst [vmem:[#allocation10_spill] sm:$0xff] %v11772_v11  ;;  %5740 = vmatprep.mubr.bf16.mxu1 %v4933_v42 }
 0x6fc   : > { %5741 = vmatmul.mubr.bf16.gmra.mrb[140].mxu1 %v4853_v15  ;;  %v11776_v21 = vpop.f32.mrb[84].mxu1  ;;  %v9112_v15 = vld [vmem:[%s13080_s5 + $0x184] ss:$8 sps:$4 sm:$0xff]  }
 0x6fd   : > { %v4876_v27 = vrot.slane %v11776_v21, 1  ;;  %v4956_v10 = vrot.slane %v11776_v21, 2  ;;  %v5036_v44 = vrot.slane %v11776_v21, 3  ;;  %v4765_v39 = vpop.f32.mrb[85].mxu1  ;;  %5884 = vmatpush1.bf16.msra.mxu1 %v9104_v14  ;;  %v5116_v56 = vrot.slane %v11776_v21, 4 }
 0x6fe   : > { %v4766_v42 = vpop.f32.mrb[86].mxu1  ;;  %5885 = vmatprep.subr.bf16.mxu1 %v9109_v4 }
 0x6ff   : > { %v4877_v36 = vrot.slane %v4766_v42, 1  ;;  %v4957_v52 = vrot.slane %v4766_v42, 2  ;;  %v5037_v28 = vrot.slane %v4766_v42, 3  ;;  %v5117_v61 = vrot.slane %v4766_v42, 4  ;;  %v4768_v34 = vpop.f32.mrb[87].mxu1 }
 0x700   : > { %v4919_v39 = vsel %vm674_vm0, %v4875_v53, %v4876_v27  ;;  %v4855_v14 = vpack.c.bf16 %v4766_v42, %v11776_v21  ;;  %v11793_v6 = vsel %vm1076_vm1, %v5035_v5, %v5036_v44  ;;  %v11797_v4 = vsel %vm875_vm2, %v4955_v22, %v4956_v10  ;;  %v9110_v34 = vld [vmem:[%s13080_s5 + $0x180] ss:$8 sps:$4 sm:$0xff]   ;;  %v9115_v22 = vld [vmem:[%s13080_s5 + $0x194] ss:$8 sps:$4 sm:$0xff]  }
 0x701   : > { %v4934_v38 = vpack.c.bf16 %v4919_v39, %v4920_v17  ;;  %v4918_v43 = vsel %vm674_vm0, %v4876_v27, %v4877_v36  ;;  %5886 = vmatpush1.bf16.msra.mxu1 %v9107_v9  ;;  %v11813_v17 = vsel %vm1076_vm1, %v5036_v44, %v5037_v28  ;;  %v11817_v21 = vsel %vm875_vm2, %v4956_v10, %v4957_v52 }
 0x702   : > { %5887 = vmatprep.subr.bf16.mxu1 %v9112_v15  ;;  %v11821_v27 = vsel %vm1277_vm3, %v5115_v32, %v5116_v56  ;;  %v11825_v9 = vsel %vm1277_vm3, %v5116_v56, %v5117_v61  ;;  %v9113_v32 = vld [vmem:[%s13080_s5 + $0x190] ss:$8 sps:$4 sm:$0xff]  }
 0x703   : > { %13265 = vst [vmem:[#allocation11_spill] sm:$0xff] %v11821_v27  ;;  %13266 = vst [vmem:[#allocation12_spill] sm:$0xff] %v11825_v9  ;;  %5750 = vmatprep.mubr.bf16.mxu1 %v4934_v38 }
 0x704   : > { %5751 = vmatmul.mubr.bf16.gmra.mrb[144].mxu1 %v4854_v60  ;;  %v11829_v15 = vpop.f32.mrb[88].mxu1  ;;  %v9118_v60 = vld [vmem:[%s13080_s5 + $0x1a4] ss:$8 sps:$4 sm:$0xff]  }
 0x705   : > { %v4878_v44 = vrot.slane %v11829_v15, 1  ;;  %v4958_v10 = vrot.slane %v11829_v15, 2  ;;  %v5038_v39 = vrot.slane %v11829_v15, 3  ;;  %v4773_v5 = vpop.f32.mrb[89].mxu1  ;;  %5888 = vmatpush1.bf16.msra.mxu1 %v9110_v34  ;;  %v5118_v38 = vrot.slane %v11829_v15, 4 }
 0x706   : > { %v4774_v56 = vpop.f32.mrb[90].mxu1  ;;  %5889 = vmatprep.subr.bf16.mxu1 %v9115_v22 }
 0x707   : > { %v4879_v42 = vrot.slane %v4774_v56, 1  ;;  %v4959_v53 = vrot.slane %v4774_v56, 2  ;;  %v5039_v35 = vrot.slane %v4774_v56, 3  ;;  %v5119_v26 = vrot.slane %v4774_v56, 4  ;;  %v4776_v33 = vpop.f32.mrb[91].mxu1 }
 0x708   : > { %v4917_v34 = vsel %vm674_vm0, %v4877_v36, %v4878_v44  ;;  %v4856_v5 = vpack.c.bf16 %v4774_v56, %v11829_v15  ;;  %v11846_v2 = vsel %vm1076_vm1, %v5037_v28, %v5038_v39  ;;  %v11850_v22 = vsel %vm875_vm2, %v4957_v52, %v4958_v10  ;;  %v9116_v33 = vld [vmem:[%s13080_s5 + $0x1a0] ss:$8 sps:$4 sm:$0xff]   ;;  %v9121_v52 = vld [vmem:[%s13080_s5 + $0x1b4] ss:$8 sps:$4 sm:$0xff]  }
 0x709   : > { %v4935_v19 = vpack.c.bf16 %v4917_v34, %v4918_v43  ;;  %v4916_v23 = vsel %vm674_vm0, %v4878_v44, %v4879_v42  ;;  %5890 = vmatpush1.bf16.msra.mxu1 %v9113_v32  ;;  %v11866_v43 = vsel %vm1076_vm1, %v5038_v39, %v5039_v35  ;;  %v11870_v15 = vsel %vm875_vm2, %v4958_v10, %v4959_v53 }
 0x70a   : > { %5891 = vmatprep.subr.bf16.mxu1 %v9118_v60  ;;  %v11874_v44 = vsel %vm1277_vm3, %v5117_v61, %v5118_v38  ;;  %v11878_v32 = vsel %vm1277_vm3, %v5118_v38, %v5119_v26  ;;  %v9119_v61 = vld [vmem:[%s13080_s5 + $0x1b0] ss:$8 sps:$4 sm:$0xff]  }
 0x70b   : > { %13267 = vst [vmem:[#allocation13_spill] sm:$0xff] %v11874_v44  ;;  %13268 = vst [vmem:[#allocation14_spill] sm:$0xff] %v11878_v32  ;;  %5760 = vmatprep.mubr.bf16.mxu1 %v4935_v19 }
 0x70c   : > { %5761 = vmatmul.mubr.bf16.gmra.mrb[148].mxu1 %v4855_v14  ;;  %v11882_v60 = vpop.f32.mrb[92].mxu1  ;;  %v9124_v14 = vld [vmem:[%s13080_s5 + $0x1c4] ss:$8 sps:$4 sm:$0xff]  }
 0x70d   : > { %v4880_v39 = vrot.slane %v11882_v60, 1  ;;  %v4960_v10 = vrot.slane %v11882_v60, 2  ;;  %v5040_v34 = vrot.slane %v11882_v60, 3  ;;  %v4781_v28 = vpop.f32.mrb[93].mxu1  ;;  %5892 = vmatpush1.bf16.msra.mxu1 %v9116_v33  ;;  %v5120_v19 = vrot.slane %v11882_v60, 4 }
 0x70e   : > { %v4782_v38 = vpop.f32.mrb[94].mxu1  ;;  %5893 = vmatprep.subr.bf16.mxu1 %v9121_v52 }
 0x70f   : > { %v4881_v56 = vrot.slane %v4782_v38, 1  ;;  %v4961_v36 = vrot.slane %v4782_v38, 2  ;;  %v5041_v54 = vrot.slane %v4782_v38, 3  ;;  %v5121_v1 = vrot.slane %v4782_v38, 4  ;;  %v4784_v55 = vpop.f32.mrb[95].mxu1 }
 0x710   : > { %v4915_v33 = vsel %vm674_vm0, %v4879_v42, %v4880_v39  ;;  %v4857_v28 = vpack.c.bf16 %v4782_v38, %v11882_v60  ;;  %v11899_v41 = vsel %vm1076_vm1, %v5039_v35, %v5040_v34  ;;  %v11903_v52 = vsel %vm875_vm2, %v4959_v53, %v4960_v10  ;;  %v9122_v55 = vld [vmem:[%s13080_s5 + $0x1c0] ss:$8 sps:$4 sm:$0xff]   ;;  %v9127_v53 = vld [vmem:[%s13080_s5 + $0x1d4] ss:$8 sps:$4 sm:$0xff]  }
 0x711   : > { %v4936_v9 = vpack.c.bf16 %v4915_v33, %v4916_v23  ;;  %v4914_v44 = vsel %vm674_vm0, %v4880_v39, %v4881_v56  ;;  %5894 = vmatpush1.bf16.msra.mxu1 %v9119_v61  ;;  %v11919_v23 = vsel %vm1076_vm1, %v5040_v34, %v5041_v54  ;;  %v11923_v60 = vsel %vm875_vm2, %v4960_v10, %v4961_v36 }
 0x712   : > { %5895 = vmatprep.subr.bf16.mxu1 %v9124_v14  ;;  %v11927_v39 = vsel %vm1277_vm3, %v5119_v26, %v5120_v19  ;;  %v11931_v61 = vsel %vm1277_vm3, %v5120_v19, %v5121_v1  ;;  %v9125_v26 = vld [vmem:[%s13080_s5 + $0x1d0] ss:$8 sps:$4 sm:$0xff]  }
 0x713   : > { %13269 = vst [vmem:[#allocation15_spill] sm:$0xff] %v11927_v39  ;;  %13270 = vst [vmem:[#allocation16_spill] sm:$0xff] %v11931_v61  ;;  %5770 = vmatprep.mubr.bf16.mxu1 %v4936_v9 }
 0x714   : > { %5771 = vmatmul.mubr.bf16.gmra.mrb[152].mxu1 %v4856_v5  ;;  %v11935_v14 = vpop.f32.mrb[96].mxu1  ;;  %v9130_v5 = vld [vmem:[%s13080_s5 + $0x1e4] ss:$8 sps:$4 sm:$0xff]  }
 0x715   : > { %v4882_v34 = vrot.slane %v11935_v14, 1  ;;  %v4962_v10 = vrot.slane %v11935_v14, 2  ;;  %v5042_v33 = vrot.slane %v11935_v14, 3  ;;  %v4789_v35 = vpop.f32.mrb[97].mxu1  ;;  %5896 = vmatpush1.bf16.msra.mxu1 %v9122_v55  ;;  %v5122_v9 = vrot.slane %v11935_v14, 4 }
 0x716   : > { %v4790_v19 = vpop.f32.mrb[98].mxu1  ;;  %5897 = vmatprep.subr.bf16.mxu1 %v9127_v53 }
 0x717   : > { %v4883_v38 = vrot.slane %v4790_v19, 1  ;;  %v4963_v42 = vrot.slane %v4790_v19, 2  ;;  %v5043_v32 = vrot.slane %v4790_v19, 3  ;;  %v5123_v39 = vrot.slane %v4790_v19, 4  ;;  %v4792_v11 = vpop.f32.mrb[99].mxu1 }
 0x718   : > { %v4913_v55 = vsel %vm674_vm0, %v4881_v56, %v4882_v34  ;;  %v4858_v35 = vpack.c.bf16 %v4790_v19, %v11935_v14  ;;  %v11952_v27 = vsel %vm1076_vm1, %v5041_v54, %v5042_v33  ;;  %v11956_v53 = vsel %vm875_vm2, %v4961_v36, %v4962_v10  ;;  %v9128_v11 = vld [vmem:[%s13080_s5 + $0x1e0] ss:$8 sps:$4 sm:$0xff]   ;;  %v9133_v36 = vld [vmem:[%s13080_s5 + $0x1f4] ss:$8 sps:$4 sm:$0xff]  }
 0x719   : > { %v4937_v24 = vpack.c.bf16 %v4913_v55, %v4914_v44  ;;  %v4912_v30 = vsel %vm674_vm0, %v4882_v34, %v4883_v38  ;;  %5898 = vmatpush1.bf16.msra.mxu1 %v9125_v26  ;;  %v11972_v44 = vsel %vm1076_vm1, %v5042_v33, %v5043_v32  ;;  %v11976_v14 = vsel %vm875_vm2, %v4962_v10, %v4963_v42 }
 0x71a   : > { %5899 = vmatprep.subr.bf16.mxu1 %v9130_v5  ;;  %13271 = vst [vmem:[#allocation17_spill] sm:$0xff] %v11976_v14  ;;  %v11980_v34 = vsel %vm1277_vm3, %v5121_v1, %v5122_v9  ;;  %v11984_v26 = vsel %vm1277_vm3, %v5122_v9, %v5123_v39  ;;  %v9131_v1 = vld [vmem:[%s13080_s5 + $0x1f0] ss:$8 sps:$4 sm:$0xff]  }
 0x71b   : > { %13272 = vst [vmem:[#allocation18_spill] sm:$0xff] %v11980_v34  ;;  %13273 = vst [vmem:[#allocation19_spill] sm:$0xff] %v11984_v26  ;;  %5780 = vmatprep.mubr.bf16.mxu1 %v4937_v24  ;;  %v9136_v24 = vld [vmem:[%s13080_s5 + $0x204] ss:$8 sps:$4 sm:$0xff]  }
 0x71c   : > { %5781 = vmatmul.mubr.bf16.gmra.mrb[156].mxu1 %v4857_v28  ;;  %v4795_v5 = vpop.f32.mrb[100].mxu1 }
 0x71d   : > { %v4884_v33 = vrot.slane %v4795_v5, 1  ;;  %v4964_v55 = vrot.slane %v4795_v5, 2  ;;  %v5044_v54 = vrot.slane %v4795_v5, 3  ;;  %v4797_v56 = vpop.f32.mrb[101].mxu1  ;;  %5900 = vmatpush1.bf16.msra.mxu1 %v9128_v11  ;;  %v5124_v10 = vrot.slane %v4795_v5, 4 }
 0x71e   : > { %v4798_v58 = vpop.f32.mrb[102].mxu1  ;;  %5901 = vmatprep.subr.bf16.mxu1 %v9133_v36 }
 0x71f   : > { %v4885_v9 = vrot.slane %v4798_v58, 1  ;;  %v4965_v19 = vrot.slane %v4798_v58, 2  ;;  %v5045_v28 = vrot.slane %v4798_v58, 3  ;;  %v5125_v61 = vrot.slane %v4798_v58, 4  ;;  %v4800_v34 = vpop.f32.mrb[103].mxu1 }
 0x720   : > { %v4911_v56 = vsel %vm674_vm0, %v4883_v38, %v4884_v33  ;;  %v4859_v11 = vpack.c.bf16 %v4798_v58, %v4795_v5  ;;  %v11998_v63 = vsel %vm1076_vm1, %v5043_v32, %v5044_v54  ;;  %v12002_v36 = vsel %vm875_vm2, %v4963_v42, %v4964_v55 }
 0x721   : > { %v4938_v20 = vpack.c.bf16 %v4911_v56, %v4912_v30  ;;  %v4910_v40 = vsel %vm674_vm0, %v4884_v33, %v4885_v9  ;;  %5902 = vmatpush1.bf16.msra.mxu1 %v9131_v1  ;;  %v12012_v58 = vsel %vm1076_vm1, %v5044_v54, %v5045_v28  ;;  %v12016_v32 = vsel %vm875_vm2, %v4964_v55, %v4965_v19 }
 0x722   : > { %6064 = vmatprep.subr.bf16.mxu1 %v9136_v24  ;;  %13274 = vst [vmem:[#allocation20_spill] sm:$0xff] %v12012_v58  ;;  %13275 = vst [vmem:[#allocation21_spill] sm:$0xff] %v12016_v32  ;;  %v12020_v30 = vsel %vm1277_vm3, %v5123_v39, %v5124_v10  ;;  %v12024_v42 = vsel %vm1277_vm3, %v5124_v10, %v5125_v61 }
 0x723   : > { %13276 = vst [vmem:[#allocation22_spill] sm:$0xff] %v12020_v30  ;;  %13277 = vst [vmem:[#allocation23_spill] sm:$0xff] %v12024_v42  ;;  %5790 = vmatprep.mubr.bf16.mxu1 %v4938_v20 }
 0x724   : > { %5791 = vmatmul.mubr.bf16.gmra.mrb[160].mxu1 %v4858_v35  ;;  %v4803_v33 = vpop.f32.mrb[104].mxu1 }
 0x725   : > { %v4886_v54 = vrot.slane %v4803_v33, 1  ;;  %v4966_v1 = vrot.slane %v4803_v33, 2  ;;  %v5046_v24 = vrot.slane %v4803_v33, 3  ;;  %v4805_v56 = vpop.f32.mrb[105].mxu1  ;;  %v5126_v55 = vrot.slane %v4803_v33, 4 }
 0x726   : > { %v4806_v38 = vpop.f32.mrb[106].mxu1 }
 0x727   : > { %v4887_v34 = vrot.slane %v4806_v38, 1  ;;  %v4967_v8 = vrot.slane %v4806_v38, 2  ;;  %v5047_v39 = vrot.slane %v4806_v38, 3  ;;  %v5127_v49 = vrot.slane %v4806_v38, 4  ;;  %v4808_v14 = vpop.f32.mrb[107].mxu1 }
 0x728   : > { %v4909_v10 = vsel %vm674_vm0, %v4885_v9, %v4886_v54  ;;  %v4860_v20 = vpack.c.bf16 %v4806_v38, %v4803_v33  ;;  %v12032_v5 = vsel %vm1076_vm1, %v5045_v28, %v5046_v24  ;;  %v12036_v35 = vsel %vm875_vm2, %v4965_v19, %v4966_v1 }
 0x729   : > { %13278 = vst [vmem:[#allocation24_spill] sm:$0xff] %v12032_v5  ;;  %13279 = vst [vmem:[#allocation25_spill] sm:$0xff] %v12036_v35  ;;  %v4939_v56 = vpack.c.bf16 %v4909_v10, %v4910_v40  ;;  %v4908_v26 = vsel %vm674_vm0, %v4886_v54, %v4887_v34  ;;  %v12046_v9 = vsel %vm1076_vm1, %v5046_v24, %v5047_v39 }
 0x72a   : > { %13280 = vst [vmem:[#allocation26_spill] sm:$0xff] %v12046_v9  ;;  %v12050_v28 = vsel %vm875_vm2, %v4966_v1, %v4967_v8  ;;  %v12054_v40 = vsel %vm1277_vm3, %v5125_v61, %v5126_v55  ;;  %v12058_v19 = vsel %vm1277_vm3, %v5126_v55, %v5127_v49 }
 0x72b   : > { %13281 = vst [vmem:[#allocation27_spill] sm:$0xff] %v12050_v28  ;;  %13282 = vst [vmem:[#allocation28_spill] sm:$0xff] %v12054_v40  ;;  %5800 = vmatprep.mubr.bf16.mxu1 %v4939_v56 }
 0x72c   : > { %13283 = vst [vmem:[#allocation29_spill] sm:$0xff] %v12058_v19  ;;  %5801 = vmatmul.mubr.bf16.gmra.mrb[164].mxu1 %v4859_v11  ;;  %v4811_v33 = vpop.f32.mrb[108].mxu1 }
 0x72d   : > { %v4888_v54 = vrot.slane %v4811_v33, 1  ;;  %v4968_v24 = vrot.slane %v4811_v33, 2  ;;  %v5048_v10 = vrot.slane %v4811_v33, 3  ;;  %v4813_v14 = vpop.f32.mrb[109].mxu1  ;;  %v5128_v1 = vrot.slane %v4811_v33, 4 }
 0x72e   : > { %v4814_v30 = vpop.f32.mrb[110].mxu1 }
 0x72f   : > { %v4889_v32 = vrot.slane %v4814_v30, 1  ;;  %v4969_v35 = vrot.slane %v4814_v30, 2  ;;  %v5049_v61 = vrot.slane %v4814_v30, 3  ;;  %v5129_v58 = vrot.slane %v4814_v30, 4  ;;  %v4816_v5 = vpop.f32.mrb[111].mxu1 }
 0x730   : > { %v4907_v55 = vsel %vm674_vm0, %v4887_v34, %v4888_v54  ;;  %v4861_v56 = vpack.c.bf16 %v4814_v30, %v4811_v33  ;;  %v12066_v38 = vsel %vm1076_vm1, %v5047_v39, %v5048_v10  ;;  %v12070_v11 = vsel %vm875_vm2, %v4967_v8, %v4968_v24 }
 0x731   : > { %13284 = vst [vmem:[#allocation30_spill] sm:$0xff] %v12066_v38  ;;  %13285 = vst [vmem:[#allocation31_spill] sm:$0xff] %v12070_v11  ;;  %v4940_v14 = vpack.c.bf16 %v4907_v55, %v4908_v26  ;;  %v4906_v42 = vsel %vm674_vm0, %v4888_v54, %v4889_v32  ;;  %v12080_v34 = vsel %vm1076_vm1, %v5048_v10, %v5049_v61 }
 0x732   : > { %13286 = vst [vmem:[#allocation32_spill] sm:$0xff] %v12080_v34  ;;  %v12084_v30 = vsel %vm875_vm2, %v4968_v24, %v4969_v35  ;;  %v12088_v8 = vsel %vm1277_vm3, %v5127_v49, %v5128_v1  ;;  %v12092_v26 = vsel %vm1277_vm3, %v5128_v1, %v5129_v58 }
 0x733   : > { %13287 = vst [vmem:[#allocation33_spill] sm:$0xff] %v12084_v30  ;;  %13288 = vst [vmem:[#allocation34_spill] sm:$0xff] %v12088_v8  ;;  %5810 = vmatprep.mubr.bf16.mxu1 %v4940_v14 }
 0x734   : > { %13289 = vst [vmem:[#allocation35_spill] sm:$0xff] %v12092_v26  ;;  %5811 = vmatmul.mubr.bf16.gmra.mrb[168].mxu1 %v4860_v20  ;;  %v4819_v33 = vpop.f32.mrb[112].mxu1 }
 0x735   : > { %v4890_v54 = vrot.slane %v4819_v33, 1  ;;  %v4970_v10 = vrot.slane %v4819_v33, 2  ;;  %v5050_v55 = vrot.slane %v4819_v33, 3  ;;  %v4821_v5 = vpop.f32.mrb[113].mxu1  ;;  %v5130_v24 = vrot.slane %v4819_v33, 4 }
 0x736   : > { %v4822_v40 = vpop.f32.mrb[114].mxu1 }
 0x737   : > { %v4891_v28 = vrot.slane %v4822_v40, 1  ;;  %v4971_v11 = vrot.slane %v4822_v40, 2  ;;  %v5051_v49 = vrot.slane %v4822_v40, 3  ;;  %v5131_v9 = vrot.slane %v4822_v40, 4  ;;  %v4824_v38 = vpop.f32.mrb[115].mxu1 }
 0x738   : > { %v4905_v1 = vsel %vm674_vm0, %v4889_v32, %v4890_v54  ;;  %v4862_v14 = vpack.c.bf16 %v4822_v40, %v4819_v33  ;;  %v12100_v39 = vsel %vm1076_vm1, %v5049_v61, %v5050_v55  ;;  %v12104_v20 = vsel %vm875_vm2, %v4969_v35, %v4970_v10 }
 0x739   : > { %13290 = vst [vmem:[#allocation36_spill] sm:$0xff] %v12100_v39  ;;  %13291 = vst [vmem:[#allocation37_spill] sm:$0xff] %v12104_v20  ;;  %v4941_v5 = vpack.c.bf16 %v4905_v1, %v4906_v42  ;;  %v4904_v19 = vsel %vm674_vm0, %v4890_v54, %v4891_v28  ;;  %v12114_v32 = vsel %vm1076_vm1, %v5050_v55, %v5051_v49 }
 0x73a   : > { %13292 = vst [vmem:[#allocation38_spill] sm:$0xff] %v12114_v32  ;;  %v12118_v40 = vsel %vm875_vm2, %v4970_v10, %v4971_v11  ;;  %v12122_v42 = vsel %vm1277_vm3, %v5129_v58, %v5130_v24  ;;  %v12126_v35 = vsel %vm1277_vm3, %v5130_v24, %v5131_v9 }
 0x73b   : > { %13293 = vst [vmem:[#allocation39_spill] sm:$0xff] %v12118_v40  ;;  %13294 = vst [vmem:[#allocation40_spill] sm:$0xff] %v12122_v42  ;;  %5820 = vmatprep.mubr.bf16.mxu1 %v4941_v5 }
 0x73c   : > { %13295 = vst [vmem:[#allocation41_spill] sm:$0xff] %v12126_v35  ;;  %5821 = vmatmul.mubr.bf16.gmra.mrb[172].mxu1 %v4861_v56  ;;  %v4827_v33 = vpop.f32.mrb[116].mxu1 }
 0x73d   : > { %v4892_v54 = vrot.slane %v4827_v33, 1  ;;  %v4972_v55 = vrot.slane %v4827_v33, 2  ;;  %v5052_v1 = vrot.slane %v4827_v33, 3  ;;  %v4829_v38 = vpop.f32.mrb[117].mxu1  ;;  %v5132_v10 = vrot.slane %v4827_v33, 4 }
 0x73e   : > { %v4830_v8 = vpop.f32.mrb[118].mxu1 }
 0x73f   : > { %v4893_v30 = vrot.slane %v4830_v8, 1  ;;  %v4973_v20 = vrot.slane %v4830_v8, 2  ;;  %v5053_v58 = vrot.slane %v4830_v8, 3  ;;  %v5133_v34 = vrot.slane %v4830_v8, 4  ;;  %v4832_v39 = vpop.f32.mrb[119].mxu1 }
 0x740   : > { %v4903_v24 = vsel %vm674_vm0, %v4891_v28, %v4892_v54  ;;  %v4863_v5 = vpack.c.bf16 %v4830_v8, %v4827_v33  ;;  %v12134_v61 = vsel %vm1076_vm1, %v5051_v49, %v5052_v1  ;;  %v12138_v56 = vsel %vm875_vm2, %v4971_v11, %v4972_v55 }
 0x741   : > { %13296 = vst [vmem:[#allocation42_spill] sm:$0xff] %v12134_v61  ;;  %13297 = vst [vmem:[#allocation43_spill] sm:$0xff] %v12138_v56  ;;  %v4942_v38 = vpack.c.bf16 %v4903_v24, %v4904_v19  ;;  %v4902_v26 = vsel %vm674_vm0, %v4892_v54, %v4893_v30  ;;  %v12148_v28 = vsel %vm1076_vm1, %v5052_v1, %v5053_v58 }
 0x742   : > { %13298 = vst [vmem:[#allocation44_spill] sm:$0xff] %v12148_v28  ;;  %v12152_v8 = vsel %vm875_vm2, %v4972_v55, %v4973_v20  ;;  %v12156_v19 = vsel %vm1277_vm3, %v5131_v9, %v5132_v10  ;;  %v12160_v11 = vsel %vm1277_vm3, %v5132_v10, %v5133_v34 }
 0x743   : > { %13299 = vst [vmem:[#allocation45_spill] sm:$0xff] %v12152_v8  ;;  %13300 = vst [vmem:[#allocation46_spill] sm:$0xff] %v12156_v19  ;;  %5830 = vmatprep.mubr.bf16.mxu1 %v4942_v38 }
 0x744   : > { %13301 = vst [vmem:[#allocation47_spill] sm:$0xff] %v12160_v11  ;;  %5831 = vmatmul.mubr.bf16.gmra.mrb[176].mxu1 %v4862_v14  ;;  %v4835_v33 = vpop.f32.mrb[120].mxu1 }
 0x745   : > { %v4894_v54 = vrot.slane %v4835_v33, 1  ;;  %v4974_v1 = vrot.slane %v4835_v33, 2  ;;  %v5054_v24 = vrot.slane %v4835_v33, 3  ;;  %v4837_v39 = vpop.f32.mrb[121].mxu1  ;;  %v5134_v55 = vrot.slane %v4835_v33, 4 }
 0x746   : > { %v4838_v42 = vpop.f32.mrb[122].mxu1 }
 0x747   : > { %v4895_v40 = vrot.slane %v4838_v42, 1  ;;  %v4975_v56 = vrot.slane %v4838_v42, 2  ;;  %v5055_v9 = vrot.slane %v4838_v42, 3  ;;  %v5135_v32 = vrot.slane %v4838_v42, 4  ;;  %v4840_v61 = vpop.f32.mrb[123].mxu1 }
 0x748   : > { %v4901_v10 = vsel %vm674_vm0, %v4893_v30, %v4894_v54  ;;  %v4864_v38 = vpack.c.bf16 %v4838_v42, %v4835_v33  ;;  %v12168_v49 = vsel %vm1076_vm1, %v5053_v58, %v5054_v24  ;;  %v12172_v14 = vsel %vm875_vm2, %v4973_v20, %v4974_v1 }
 0x749   : > { %13302 = vst [vmem:[#allocation48_spill] sm:$0xff] %v12168_v49  ;;  %13303 = vst [vmem:[#allocation49_spill] sm:$0xff] %v12172_v14  ;;  %v4943_v39 = vpack.c.bf16 %v4901_v10, %v4902_v26  ;;  %v4900_v35 = vsel %vm674_vm0, %v4894_v54, %v4895_v40  ;;  %v12182_v30 = vsel %vm1076_vm1, %v5054_v24, %v5055_v9 }
 0x74a   : > { %v12186_v42 = vsel %vm875_vm2, %v4974_v1, %v4975_v56  ;;  %v12190_v26 = vsel %vm1277_vm3, %v5133_v34, %v5134_v55  ;;  %v12194_v20 = vsel %vm1277_vm3, %v5134_v55, %v5135_v32 }
 0x74b   : > { %13304 = vst [vmem:[#allocation50_spill] sm:$0xff] %v12190_v26  ;;  %5840 = vmatprep.mubr.bf16.mxu1 %v4943_v39  ;;  %v13305_v26 = vrot.slane %v11541_v47, 1 }
 0x74c   : > { %5841 = vmatmul.mubr.bf16.gmra.mrb[180].mxu1 %v4863_v5  ;;  %v4843_v33 = vpop.f32.mrb[124].mxu1 }
 0x74d   : > { %v4896_v54 = vrot.slane %v4843_v33, 1  ;;  %v4976_v24 = vrot.slane %v4843_v33, 2  ;;  %v5056_v10 = vrot.slane %v4843_v33, 3  ;;  %v4845_v61 = vpop.f32.mrb[125].mxu1  ;;  %v5136_v1 = vrot.slane %v4843_v33, 4 }
 0x74e   : > { %v4846_v19 = vpop.f32.mrb[126].mxu1 }
 0x74f   : > { %v4897_v8 = vrot.slane %v4846_v19, 1  ;;  %v4977_v14 = vrot.slane %v4846_v19, 2  ;;  %v5057_v34 = vrot.slane %v4846_v19, 3  ;;  %v5137_v28 = vrot.slane %v4846_v19, 4  ;;  %v4848_v49 = vpop.f32.mrb[127].mxu1 }
 0x750   : > { %v4899_v55 = vsel %vm674_vm0, %v4895_v40, %v4896_v54  ;;  %v4865_v39 = vpack.c.bf16 %v4846_v19, %v4843_v33  ;;  %v12202_v58 = vsel %vm1076_vm1, %v5055_v9, %v5056_v10  ;;  %v12206_v5 = vsel %vm875_vm2, %v4975_v56, %v4976_v24 }
 0x751   : > { %v4944_v61 = vpack.c.bf16 %v4899_v55, %v4900_v35  ;;  %v4898_v11 = vsel %vm674_vm0, %v4896_v54, %v4897_v8  ;;  %v4929_v49 = vsel %vm674_vm0, %v4897_v8, %v13305_v26  ;;  %v5104_v40 = vpack.c.bf16 %v12202_v58, %v12182_v30  ;;  %v13362_v30 = vld [vmem:[#allocation5_spill] sm:$0xff]  ;;  %v13363_v58 = vld [vmem:[#allocation4_spill] sm:$0xff] }
 0x752   : > { %v4945_v19 = vpack.c.bf16 %v4929_v49, %v4898_v11  ;;  %v5024_v9 = vpack.c.bf16 %v12206_v5, %v12186_v42  ;;  %v12220_v56 = vsel %vm1076_vm1, %v5056_v10, %v5057_v34  ;;  %v13306_v35 = vrot.slane %v11541_v47, 3  ;;  %v13365_v5 = vld [vmem:[#allocation7_spill] sm:$0xff] }
 0x753   : > { %5850 = vmatprep.mubr.bf16.mxu1 %v4944_v61  ;;  %v12232_v11 = vsel %vm875_vm2, %v4976_v24, %v4977_v14  ;;  %v13307_v26 = vrot.slane %v11541_v47, 2  ;;  %v12242_v10 = vsel %vm1277_vm3, %v5135_v32, %v5136_v1  ;;  %v12250_v24 = vsel %vm1277_vm3, %v5136_v1, %v5137_v28  ;;  %v9134_v1 = vld [vmem:[%s13080_s5 + $0x200] ss:$8 sps:$4 sm:$0xff]  }
 0x754   : > { %v12226_v33 = vsel %vm1076_vm1, %v5057_v34, %v13306_v35  ;;  %5851 = vmatmul.mubr.bf16.gmra.mrb[184].mxu1 %v4864_v38  ;;  %v5184_v55 = vpack.c.bf16 %v12242_v10, %v12194_v20  ;;  %v13308_v61 = vrot.slane %v11541_v47, 4  ;;  %v13309_v38 = vpack.c.bf16 %v11581_v16, %v11562_v25  ;;  %v9139_v47 = vld [vmem:[%s13080_s5 + $0x214] ss:$8 sps:$4 sm:$0xff]   ;;  %v9137_v25 = vld [vmem:[%s13080_s5 + $0x210] ss:$8 sps:$4 sm:$0xff]  }
 0x755   : > { %v5105_v8 = vpack.c.bf16 %v12226_v33, %v12220_v56  ;;  %v12238_v54 = vsel %vm875_vm2, %v4977_v14, %v13307_v26  ;;  %5860 = vmatprep.mubr.bf16.mxu1 %v4945_v19  ;;  %v13311_v49 = vpack.c.bf16 %v11634_v29, %v11601_v50  ;;  %v9142_v16 = vld [vmem:[%s13080_s5 + $0x224] ss:$8 sps:$4 sm:$0xff]   ;;  %v13312_v50 = vpack.c.bf16 %v11638_v57, %v11605_v51  ;;  %v9146_v51 = vld [vmem:[%s13080_s5 + $0x240] ss:$8 sps:$4 sm:$0xff]   ;;  %v9151_v57 = vld [vmem:[%s13080_s5 + $0x254] ss:$8 sps:$4 sm:$0xff]  }
 0x756   : > { %v5025_v34 = vpack.c.bf16 %v12238_v54, %v12232_v11  ;;  %v12256_v14 = vsel %vm1277_vm3, %v5137_v28, %v13308_v61  ;;  %v13310_v28 = vpack.c.bf16 %v11585_v37, %v11568_v18  ;;  %v9140_v18 = vld [vmem:[%s13080_s5 + $0x220] ss:$8 sps:$4 sm:$0xff]   ;;  %v9145_v37 = vld [vmem:[%s13080_s5 + $0x234] ss:$8 sps:$4 sm:$0xff]   ;;  %v13313_v29 = vpack.c.bf16 %v11687_v59, %v11654_v31  ;;  %v9148_v19 = vld [vmem:[%s13080_s5 + $0x244] ss:$8 sps:$4 sm:$0xff]  }
 0x757   : > { %v5185_v32 = vpack.c.bf16 %v12256_v14, %v12250_v24  ;;  %v13314_v31 = vpack.c.bf16 %v11691_v45, %v11658_v13  ;;  %v13315_v59 = vpack.c.bf16 %v11740_v0, %v11707_v62  ;;  %v9149_v35 = vld [vmem:[%s13080_s5 + $0x250] ss:$8 sps:$4 sm:$0xff]   ;;  %v9154_v26 = vld [vmem:[%s13080_s5 + $0x264] ss:$8 sps:$4 sm:$0xff]   ;;  %v9152_v13 = vld [vmem:[%s13080_s5 + $0x260] ss:$8 sps:$4 sm:$0xff]   ;;  %v13316_v62 = vpack.c.bf16 %v11744_v48, %v11711_v7 }
 0x758   : > { %v9157_v45 = vld [vmem:[%s13080_s5 + $0x274] ss:$8 sps:$4 sm:$0xff]   ;;  %v13317_v0 = vpack.c.bf16 %v11793_v6, %v11760_v46  ;;  %v9155_v61 = vld [vmem:[%s13080_s5 + $0x270] ss:$8 sps:$4 sm:$0xff]   ;;  %v13320_v7 = vpack.c.bf16 %v11850_v22, %v11817_v21  ;;  %v13321_v6 = vpack.c.bf16 %v11899_v41, %v11866_v43  ;;  %v13322_v48 = vpack.c.bf16 %v11903_v52, %v11870_v15  ;;  %v13334_v52 = vld [vmem:[#allocation30_spill] sm:$0xff] }
 0x759   : > { %v13323_v46 = vpack.c.bf16 %v11952_v27, %v11919_v23  ;;  %v13329_v21 = vld [vmem:[#allocation20_spill] sm:$0xff]  ;;  %v13331_v43 = vld [vmem:[#allocation25_spill] sm:$0xff]  ;;  %v13335_v23 = vld [vmem:[#allocation26_spill] sm:$0xff]  ;;  %v13364_v42 = vpack.c.bf16 %v13362_v30, %v13363_v58  ;;  %v13401_v14 = vsub.s32 0, %v9369_v12 }
 0x75a   : > { %v13332_v15 = vld [vmem:[#allocation21_spill] sm:$0xff]  ;;  %v13369_v33 = vld [vmem:[#allocation8_spill] sm:$0xff]  ;;  %v13371_v11 = vld [vmem:[#allocation11_spill] sm:$0xff] }
 0x75b   : > { %v13333_v27 = vpack.c.bf16 %v13331_v43, %v13332_v15  ;;  %v13368_v56 = vld [vmem:[#allocation9_spill] sm:$0xff]  ;;  %v13372_v54 = vld [vmem:[#allocation10_spill] sm:$0xff]  ;;  %v6468_v20 = vld [vmem:[%s13083_s8 + $0x10] sm:$0xff] }
 0x75c   : > { %5861 = vmatmul.mubr.bf16.gmra.mrb[188].mxu1 %v4865_v39  ;;  %v9143_v39 = vld [vmem:[%s13080_s5 + $0x230] ss:$8 sps:$4 sm:$0xff]   ;;  %v13389_v15 = vld [vmem:[#allocation34_spill] sm:$0xff] }
 0x75d   : > { %5903 = vmatprep.mubr.bf16.mxu1 %v13309_v38  ;;  %v13318_v38 = vpack.c.bf16 %v11797_v4, %v11764_v3  ;;  %v13325_v3 = vpack.c.bf16 %v11998_v63, %v11972_v44  ;;  %v13326_v4 = vld [vmem:[#allocation17_spill] sm:$0xff]  ;;  %v13340_v44 = vld [vmem:[#allocation36_spill] sm:$0xff]  ;;  %v5266_v24 = vld [vmem:[%s13081_s6] sm:$0x3] }
 0x75e   : > { %v13327_v41 = vpack.c.bf16 %v12002_v36, %v13326_v4  ;;  %v13383_v4 = vld [vmem:[#allocation22_spill] sm:$0xff]  ;;  %v6469_v10 = vld [vmem:[%s13083_s8 + $0x18] sm:$0xff] }
 0x764   : > { %5904 = vmatmul.mubr.bf16.vlgmr.msra.gmra.mrb[128].mxu1 %v13310_v28  ;;  %v13341_v28 = vld [vmem:[#allocation32_spill] sm:$0xff] }
 0x765   : > { %5913 = vmatprep.mubr.bf16.mxu1 %v13311_v49  ;;  %6065 = vmatpush1.bf16.msra.mxu1 %v9134_v1  ;;  %v13319_v1 = vpack.c.bf16 %v11846_v2, %v11813_v17  ;;  %v13324_v2 = vpack.c.bf16 %v11956_v53, %v11923_v60  ;;  %v13328_v17 = vld [vmem:[#allocation24_spill] sm:$0xff]  ;;  %v13336_v60 = vpack.c.bf16 %v13334_v52, %v13335_v23  ;;  %v13337_v53 = vld [vmem:[#allocation31_spill] sm:$0xff]  ;;  %v13343_v49 = vld [vmem:[#allocation37_spill] sm:$0xff] }
 0x766   : > { %6066 = vmatprep.subr.bf16.mxu1 %v9139_v47  ;;  %v13330_v22 = vpack.c.bf16 %v13328_v17, %v13329_v21  ;;  %v13338_v47 = vld [vmem:[#allocation27_spill] sm:$0xff]  ;;  %v13342_v36 = vpack.c.bf16 %v13340_v44, %v13341_v28  ;;  %v13386_v21 = vld [vmem:[#allocation28_spill] sm:$0xff]  ;;  %v13398_v28 = vld [vmem:[#allocation50_spill] sm:$0xff] }
 0x767   : > { %v13339_v63 = vpack.c.bf16 %v13337_v53, %v13338_v47  ;;  %v13392_v23 = vld [vmem:[#allocation40_spill] sm:$0xff]  ;;  %v13395_v47 = vld [vmem:[#allocation46_spill] sm:$0xff] }
 0x769   : > { %6067 = vmatpush1.bf16.msra.mxu1 %v9137_v25  ;;  %v13344_v25 = vld [vmem:[#allocation33_spill] sm:$0xff] }
 0x76a   : > { %6068 = vmatprep.subr.bf16.mxu1 %v9142_v16  ;;  %v13345_v16 = vpack.c.bf16 %v13343_v49, %v13344_v25  ;;  %v6466_v25 = vld [vmem:[%s13083_s8] sm:$0xff] }
 0x76c   : > { %5914 = vmatmul.mubr.bf16.gmra.mrb[132].mxu1 %v13312_v50 }
 0x76d   : > { %5923 = vmatprep.mubr.bf16.mxu1 %v13313_v29  ;;  %6069 = vmatpush1.bf16.msra.mxu1 %v9140_v18  ;;  %v13346_v18 = vld [vmem:[#allocation42_spill] sm:$0xff]  ;;  %v13349_v29 = vld [vmem:[#allocation43_spill] sm:$0xff] }
 0x76e   : > { %6070 = vmatprep.subr.bf16.mxu1 %v9145_v37  ;;  %v13347_v37 = vld [vmem:[#allocation38_spill] sm:$0xff] }
 0x76f   : > { %v13348_v50 = vpack.c.bf16 %v13346_v18, %v13347_v37  ;;  %v9250_v18 = vmov 0.0|0.0  }
 0x770   : > { %7817 = vmatprep.subr.bf16.mxu0 %v9250_v18 }
 0x771   : > { %6071 = vmatpush1.bf16.msra.mxu1 %v9143_v39  ;;  %v13350_v39 = vld [vmem:[#allocation39_spill] sm:$0xff] }
 0x772   : > { %6072 = vmatprep.subr.bf16.mxu1 %v9148_v19  ;;  %v13351_v19 = vpack.c.bf16 %v13349_v29, %v13350_v39 }
 0x774   : > { %5924 = vmatmul.mubr.bf16.gmra.mrb[136].mxu1 %v13314_v31 }
 0x775   : > { %5933 = vmatprep.mubr.bf16.mxu1 %v13315_v59  ;;  %6073 = vmatpush1.bf16.msra.mxu1 %v9146_v51  ;;  %v13352_v51 = vld [vmem:[#allocation48_spill] sm:$0xff]  ;;  %v13355_v59 = vld [vmem:[#allocation49_spill] sm:$0xff] }
 0x776   : > { %6074 = vmatprep.subr.bf16.mxu1 %v9151_v57  ;;  %v13353_v57 = vld [vmem:[#allocation44_spill] sm:$0xff] }
 0x777   : > { %v13354_v31 = vpack.c.bf16 %v13352_v51, %v13353_v57 }
 0x779   : > { %6075 = vmatpush1.bf16.msra.mxu1 %v9149_v35  ;;  %v13356_v35 = vld [vmem:[#allocation45_spill] sm:$0xff] }
 0x77a   : > { %6076 = vmatprep.subr.bf16.mxu1 %v9154_v26  ;;  %v13357_v26 = vpack.c.bf16 %v13355_v59, %v13356_v35 }
 0x77c   : > { %5934 = vmatmul.mubr.bf16.gmra.mrb[140].mxu1 %v13316_v62  ;;  %v13360_v62 = vld [vmem:[#allocation2_spill] sm:$0xff] }
 0x77d   : > { %5943 = vmatprep.mubr.bf16.mxu1 %v13317_v0  ;;  %6077 = vmatpush1.bf16.msra.mxu1 %v9152_v13  ;;  %v13358_v13 = vmov 0  }
 0x77e   : > { %6078 = vmatprep.subr.bf16.mxu1 %v9157_v45  ;;  %v13359_v45 = vld [vmem:[#allocation3_spill] sm:$0xff] }
 0x77f   : > { %v13361_v0 = vpack.c.bf16 %v13359_v45, %v13360_v62 }
 0x781   : > { %6079 = vmatpush1.bf16.msra.mxu1 %v9155_v61  ;;  %v13374_v61 = vld [vmem:[#allocation13_spill] sm:$0xff] }
 0x784   : > { %5944 = vmatmul.mubr.bf16.gmra.mrb[144].mxu1 %v13318_v38  ;;  %v13375_v38 = vld [vmem:[#allocation12_spill] sm:$0xff] }
 0x785   : > { %5953 = vmatprep.mubr.bf16.mxu1 %v13319_v1  ;;  %v13376_v1 = vpack.c.bf16 %v13374_v61, %v13375_v38 }
 0x78c   : > { %5954 = vmatmul.mubr.bf16.gmra.mrb[148].mxu1 %v13320_v7  ;;  %v13377_v7 = vld [vmem:[#allocation15_spill] sm:$0xff] }
 0x78d   : > { %5963 = vmatprep.mubr.bf16.mxu1 %v13321_v6  ;;  %v13378_v6 = vld [vmem:[#allocation14_spill] sm:$0xff] }
 0x794   : > { %5964 = vmatmul.mubr.bf16.gmra.mrb[152].mxu1 %v13322_v48  ;;  %v13379_v48 = vpack.c.bf16 %v13377_v7, %v13378_v6  ;;  %v6471_v7 = vld [vmem:[%s13083_s8 + $0x28] sm:$0xff] }
 0x795   : > { %5973 = vmatprep.mubr.bf16.mxu1 %v13323_v46  ;;  %v13380_v46 = vld [vmem:[#allocation18_spill] sm:$0xff] }
 0x79c   : > { %5974 = vmatmul.mubr.bf16.gmra.mrb[156].mxu1 %v13324_v2  ;;  %v13381_v2 = vld [vmem:[#allocation16_spill] sm:$0xff] }
 0x79d   : > { %5983 = vmatprep.mubr.bf16.mxu1 %v13325_v3  ;;  %v13382_v3 = vpack.c.bf16 %v13380_v46, %v13381_v2 }
 0x7a4   : > { %5984 = vmatmul.mubr.bf16.gmra.mrb[160].mxu1 %v13327_v41  ;;  %v13384_v41 = vld [vmem:[#allocation19_spill] sm:$0xff] }
 0x7a5   : > { %5993 = vmatprep.mubr.bf16.mxu1 %v13330_v22  ;;  %v13385_v17 = vpack.c.bf16 %v13383_v4, %v13384_v41  ;;  %v13387_v22 = vld [vmem:[#allocation23_spill] sm:$0xff] }
 0x7a6   : > { %v13388_v43 = vpack.c.bf16 %v13386_v21, %v13387_v22 }
 0x7ac   : > { %5994 = vmatmul.mubr.bf16.gmra.mrb[164].mxu1 %v13333_v27  ;;  %v13390_v27 = vld [vmem:[#allocation29_spill] sm:$0xff] }
 0x7ad   : > { %6003 = vmatprep.mubr.bf16.mxu1 %v13336_v60  ;;  %v13391_v52 = vpack.c.bf16 %v13389_v15, %v13390_v27  ;;  %v13393_v60 = vld [vmem:[#allocation35_spill] sm:$0xff] }
 0x7ae   : > { %v13394_v53 = vpack.c.bf16 %v13392_v23, %v13393_v60  ;;  %v6472_v60 = vld [vmem:[%s13083_s8 + $0x30] sm:$0xff] }
 0x7b4   : > { %6004 = vmatmul.mubr.bf16.gmra.mrb[168].mxu1 %v13339_v63  ;;  %v13396_v63 = vld [vmem:[#allocation41_spill] sm:$0xff] }
 0x7b5   : > { %6013 = vmatprep.mubr.bf16.mxu1 %v13342_v36  ;;  %v13397_v44 = vpack.c.bf16 %v13395_v47, %v13396_v63  ;;  %v13399_v36 = vld [vmem:[#allocation47_spill] sm:$0xff] }
 0x7b6   : > { %v13400_v49 = vpack.c.bf16 %v13398_v28, %v13399_v36 }
 0x7bc   : > { %6014 = vmatmul.mubr.bf16.gmra.mrb[172].mxu1 %v13345_v16  ;;  %v6467_v16 = vld [vmem:[%s13083_s8 + $0x8] sm:$0xff] }
 0x7bd   : > { %6023 = vmatprep.mubr.bf16.mxu1 %v13348_v50  ;;  %v7818_v37 = vpack.c.bf16 %v6467_v16, %v6466_v25  ;;  %v13402_v50 = vsub.s32 1, %v9369_v12 }
 0x7bf   : > { %7819 = vmatpush1.bf16.msra.mxu0 %v7818_v37  ;;  %v12489_v29 = vrot.slane %v5266_v24, %v13402_v50 }
 0x7c0   : > { %7820 = vmatprep.subr.bf16.mxu0 %v9250_v18 }
 0x7c4   : > { %6024 = vmatmul.mubr.bf16.gmra.mrb[176].mxu1 %v13351_v19 }
 0x7c5   : > { %6033 = vmatprep.mubr.bf16.mxu1 %v13354_v31 }
 0x7cc   : > { %6034 = vmatmul.mubr.bf16.gmra.mrb[180].mxu1 %v13357_v26  ;;  %v6322_v26 = vld [vmem:[%s13082_s7 + $0x8] sm:$0xff] }
 0x7cd   : > { %6043 = vmatprep.mubr.bf16.mxu1 %v5104_v40  ;;  %v13366_v40 = vld [vmem:[#allocation6_spill] sm:$0xff] }
 0x7d4   : > { %6044 = vmatmul.mubr.bf16.gmra.mrb[184].mxu1 %v5024_v9  ;;  %v13367_v9 = vpack.c.bf16 %v13365_v5, %v13366_v40 }
 0x7d5   : > { %6053 = vmatprep.mubr.bf16.mxu1 %v5105_v8  ;;  %v13370_v8 = vpack.c.bf16 %v13368_v56, %v13369_v33 }
 0x7dc   : > { %6054 = vmatmul.mubr.bf16.gmra.mrb[188].mxu1 %v5025_v34  ;;  %v13373_v34 = vpack.c.bf16 %v13371_v11, %v13372_v54 }
 0x7dd   : > { %6096 = vmatprep.mubr.bf16.mxu1 %v13358_v13 }
 0x7e4   : > { %6097 = vmatmul.mubr.bf16.vlgmr.msra.gmra.mrb[128].mxu1 %v13361_v0 }
 0x7e5   : > { %6106 = vmatprep.mubr.bf16.mxu1 %v13358_v13 }
 0x7ec   : > { %6107 = vmatmul.mubr.bf16.gmra.mrb[132].mxu1 %v13364_v42 }
 0x7ed   : > { %6116 = vmatprep.mubr.bf16.mxu1 %v13358_v13 }
 0x7f4   : > { %6117 = vmatmul.mubr.bf16.gmra.mrb[136].mxu1 %v13367_v9 }
 0x7f5   : > { %6126 = vmatprep.mubr.bf16.mxu1 %v13358_v13 }
 0x7fc   : > { %6127 = vmatmul.mubr.bf16.gmra.mrb[140].mxu1 %v13370_v8 }
 0x7fd   : > { %6136 = vmatprep.mubr.bf16.mxu1 %v13358_v13 }
 0x804   : > { %6137 = vmatmul.mubr.bf16.gmra.mrb[144].mxu1 %v13373_v34 }
 0x805   : > { %6146 = vmatprep.mubr.bf16.mxu1 %v13358_v13 }
 0x80c   : > { %6147 = vmatmul.mubr.bf16.gmra.mrb[148].mxu1 %v13376_v1  ;;  %v6470_v1 = vld [vmem:[%s13083_s8 + $0x20] sm:$0xff] }
 0x80d   : > { %6156 = vmatprep.mubr.bf16.mxu1 %v13358_v13 }
 0x814   : > { %6157 = vmatmul.mubr.bf16.gmra.mrb[152].mxu1 %v13379_v48  ;;  %v7824_v48 = vpack.c.bf16 %v6471_v7, %v6470_v1 }
 0x815   : > { %6166 = vmatprep.mubr.bf16.mxu1 %v13358_v13 }
 0x81c   : > { %6167 = vmatmul.mubr.bf16.gmra.mrb[156].mxu1 %v13382_v3 }
 0x81d   : > { %6176 = vmatprep.mubr.bf16.mxu1 %v13358_v13 }
 0x824   : > { %6177 = vmatmul.mubr.bf16.gmra.mrb[160].mxu1 %v13385_v17 }
 0x825   : > { %6186 = vmatprep.mubr.bf16.mxu1 %v13358_v13 }
 0x82c   : > { %6187 = vmatmul.mubr.bf16.gmra.mrb[164].mxu1 %v13388_v43 }
 0x82d   : > { %6196 = vmatprep.mubr.bf16.mxu1 %v13358_v13 }
 0x834   : > { %6197 = vmatmul.mubr.bf16.gmra.mrb[168].mxu1 %v13391_v52 }
 0x835   : > { %6206 = vmatprep.mubr.bf16.mxu1 %v13358_v13 }
 0x83c   : > { %6207 = vmatmul.mubr.bf16.gmra.mrb[172].mxu1 %v13394_v53  ;;  %v6473_v53 = vld [vmem:[%s13083_s8 + $0x38] sm:$0xff] }
 0x83d   : > { %6216 = vmatprep.mubr.bf16.mxu1 %v13358_v13  ;;  %v7827_v63 = vpack.c.bf16 %v6473_v53, %v6472_v60 }
 0x844   : > { %6217 = vmatmul.mubr.bf16.gmra.mrb[176].mxu1 %v13397_v44 }
 0x845   : > { %6226 = vmatprep.mubr.bf16.mxu1 %v13358_v13 }
 0x84c   : > { %6227 = vmatmul.mubr.bf16.gmra.mrb[180].mxu1 %v13400_v49 }
 0x84d   : > { %6236 = vmatprep.mubr.bf16.mxu1 %v13358_v13 }
 0x854   : > { %6237 = vmatmul.mubr.bf16.gmra.mrb[184].mxu1 %v5184_v55  ;;  %v7821_v55 = vpack.c.bf16 %v6469_v10, %v6468_v20 }
 0x855   : > { %6246 = vmatprep.mubr.bf16.mxu1 %v13358_v13 }
 0x856   : > { %7822 = vmatpush1.bf16.msra.mxu0 %v7821_v55 }
 0x857   : > { %7823 = vmatprep.subr.bf16.mxu0 %v9250_v18 }
 0x85a   : > { %7825 = vmatpush1.bf16.msra.mxu0 %v7824_v48  ;;  %v6479_v48 = vld [vmem:[%s13083_s8 + $0x68] sm:$0xff] }
 0x85b   : > { %7826 = vmatprep.subr.bf16.mxu0 %v9250_v18 }
 0x85c   : > { %6247 = vmatmul.mubr.bf16.gmra.mrb[188].mxu1 %v5185_v32  ;;  %v12485_v32 = vrot.slane %v5266_v24, %v13401_v14 }
 0x85d   : > { %6405 = vmatprep.mubr.f32.mxu1 %v6322_v26  ;;  %v6474_v26 = vld [vmem:[%s13083_s8 + $0x40] sm:$0xff] }
 0x85e   : > { %7828 = vmatpush1.bf16.msra.mxu0 %v7827_v63  ;;  %v6482_v63 = vld [vmem:[%s13083_s8 + $0x80] sm:$0xff] }
 0x85f   : > { %7829 = vmatprep.subr.bf16.mxu0 %v9250_v18 }
 0x8b7   : > { %v6098_v39 = vpop.f32.mrb[128].mxu1 }
 0x8b8   : > { %v8145_v19 = vadd.f32 %v6098_v39, %v12485_v32  ;;  %v6100_v51 = vpop.f32.mrb[129].mxu1 }
 0x8b9   : > { %v8146_v57 = vadd.f32 %v6100_v51, %v12489_v29  ;;  %v6102_v31 = vpop.f32.mrb[130].mxu1 }
 0x8ba   : > { %v8147_v59 = vadd.f32 %v6102_v31, %v12485_v32  ;;  %v6104_v35 = vpop.f32.mrb[131].mxu1  ;;  %v6257_v12 = vmax.f32 %v8145_v19, 0.0 }
 0x8bb   : > { %v8148_v13 = vadd.f32 %v6104_v35, %v12489_v29  ;;  %v6258_v62 = vmax.f32 %v8146_v57, 0.0 }
 0x8bc   : > { %v6259_v45 = vmax.f32 %v8147_v59, 0.0 }
 0x8bd   : > { %v6260_v0 = vmax.f32 %v8148_v13, 0.0  ;;  %v6475_v13 = vld [vmem:[%s13083_s8 + $0x48] sm:$0xff] }
 0x8be   : > { %v7725_v30 = vpack.c.bf16 %v6259_v45, %v6257_v12 }
 0x8bf   : > { %v7723_v58 = vpack.c.bf16 %v6260_v0, %v6258_v62  ;;  %v6108_v42 = vpop.f32.mrb[132].mxu1  ;;  %v7830_v62 = vpack.c.bf16 %v6475_v13, %v6474_v26 }
 0x8c0   : > { %v8149_v5 = vadd.f32 %v6108_v42, %v12485_v32  ;;  %v6110_v40 = vpop.f32.mrb[133].mxu1 }
 0x8c1   : > { %v8150_v9 = vadd.f32 %v6110_v40, %v12489_v29  ;;  %v6112_v56 = vpop.f32.mrb[134].mxu1  ;;  %7724 = vmatprep.subr.bf16.mxu1 %v7723_v58  ;;  %7831 = vmatpush1.bf16.msra.mxu0 %v7830_v62 }
 0x8c2   : > { %v8151_v33 = vadd.f32 %v6112_v56, %v12485_v32  ;;  %v6114_v8 = vpop.f32.mrb[135].mxu1  ;;  %7726 = vmatpush1.bf16.msra.mxu1 %v7725_v30  ;;  %v6261_v54 = vmax.f32 %v8149_v5, 0.0  ;;  %7832 = vmatprep.subr.bf16.mxu0 %v9250_v18 }
 0x8c3   : > { %v8152_v11 = vadd.f32 %v6114_v8, %v12489_v29  ;;  %v6262_v61 = vmax.f32 %v8150_v9, 0.0 }
 0x8c4   : > { %v6263_v34 = vmax.f32 %v8151_v33, 0.0 }
 0x8c5   : > { %v6264_v38 = vmax.f32 %v8152_v11, 0.0 }
 0x8c6   : > { %v7729_v6 = vpack.c.bf16 %v6263_v34, %v6261_v54  ;;  %v6476_v34 = vld [vmem:[%s13083_s8 + $0x50] sm:$0xff] }
 0x8c7   : > { %v7727_v46 = vpack.c.bf16 %v6264_v38, %v6262_v61  ;;  %v6118_v2 = vpop.f32.mrb[136].mxu1  ;;  %v6477_v61 = vld [vmem:[%s13083_s8 + $0x58] sm:$0xff]  ;;  %v6478_v38 = vld [vmem:[%s13083_s8 + $0x60] sm:$0xff] }
 0x8c8   : > { %v8153_v3 = vadd.f32 %v6118_v2, %v12485_v32  ;;  %v6120_v4 = vpop.f32.mrb[137].mxu1 }
 0x8c9   : > { %v8154_v41 = vadd.f32 %v6120_v4, %v12489_v29  ;;  %v6122_v17 = vpop.f32.mrb[138].mxu1  ;;  %7728 = vmatprep.subr.bf16.mxu1 %v7727_v46  ;;  %v7836_v4 = vpack.c.bf16 %v6479_v48, %v6478_v38 }
 0x8ca   : > { %v8155_v21 = vadd.f32 %v6122_v17, %v12485_v32  ;;  %v6124_v22 = vpop.f32.mrb[139].mxu1  ;;  %7730 = vmatpush1.bf16.msra.mxu1 %v7729_v6  ;;  %v6265_v15 = vmax.f32 %v8153_v3, 0.0  ;;  %v7833_v6 = vpack.c.bf16 %v6477_v61, %v6476_v34 }
 0x8cb   : > { %v8156_v43 = vadd.f32 %v6124_v22, %v12489_v29  ;;  %v6266_v52 = vmax.f32 %v8154_v41, 0.0  ;;  %v6481_v22 = vld [vmem:[%s13083_s8 + $0x78] sm:$0xff] }
 0x8cc   : > { %v6267_v27 = vmax.f32 %v8155_v21, 0.0  ;;  %7834 = vmatpush1.bf16.msra.mxu0 %v7833_v6  ;;  %v6480_v21 = vld [vmem:[%s13083_s8 + $0x70] sm:$0xff] }
 0x8cd   : > { %v6268_v23 = vmax.f32 %v8156_v43, 0.0  ;;  %7835 = vmatprep.subr.bf16.mxu0 %v9250_v18  ;;  %v7839_v60 = vpack.c.bf16 %v6481_v22, %v6480_v21 }
 0x8ce   : > { %v7733_v47 = vpack.c.bf16 %v6267_v27, %v6265_v15 }
 0x8cf   : > { %v7731_v44 = vpack.c.bf16 %v6268_v23, %v6266_v52  ;;  %v6128_v28 = vpop.f32.mrb[140].mxu1 }
 0x8d0   : > { %v8157_v36 = vadd.f32 %v6128_v28, %v12485_v32  ;;  %v6130_v49 = vpop.f32.mrb[141].mxu1  ;;  %7837 = vmatpush1.bf16.msra.mxu0 %v7836_v4 }
 0x8d1   : > { %v8158_v25 = vadd.f32 %v6130_v49, %v12489_v29  ;;  %v6132_v16 = vpop.f32.mrb[142].mxu1  ;;  %7732 = vmatprep.subr.bf16.mxu1 %v7731_v44  ;;  %7838 = vmatprep.subr.bf16.mxu0 %v9250_v18  ;;  %v6483_v44 = vld [vmem:[%s13083_s8 + $0x88] sm:$0xff] }
 0x8d2   : > { %v8159_v37 = vadd.f32 %v6132_v16, %v12485_v32  ;;  %v6134_v20 = vpop.f32.mrb[143].mxu1  ;;  %7734 = vmatpush1.bf16.msra.mxu1 %v7733_v47  ;;  %v6269_v55 = vmax.f32 %v8157_v36, 0.0 }
 0x8d3   : > { %v8160_v10 = vadd.f32 %v6134_v20, %v12489_v29  ;;  %v6270_v14 = vmax.f32 %v8158_v25, 0.0 }
 0x8d4   : > { %v6271_v24 = vmax.f32 %v8159_v37, 0.0  ;;  %7840 = vmatpush1.bf16.msra.mxu0 %v7839_v60  ;;  %v7842_v37 = vpack.c.bf16 %v6483_v44, %v6482_v63 }
 0x8d5   : > { %v6272_v50 = vmax.f32 %v8160_v10, 0.0  ;;  %7841 = vmatprep.subr.bf16.mxu0 %v9250_v18 }
 0x8d6   : > { %v7737_v39 = vpack.c.bf16 %v6271_v24, %v6269_v55 }
 0x8d7   : > { %v7735_v19 = vpack.c.bf16 %v6272_v50, %v6270_v14  ;;  %v6138_v51 = vpop.f32.mrb[144].mxu1 }
 0x8d8   : > { %v8161_v57 = vadd.f32 %v6138_v51, %v12485_v32  ;;  %v6140_v31 = vpop.f32.mrb[145].mxu1  ;;  %7843 = vmatpush1.bf16.msra.mxu0 %v7842_v37 }
 0x8d9   : > { %v8162_v59 = vadd.f32 %v6140_v31, %v12489_v29  ;;  %v6142_v35 = vpop.f32.mrb[146].mxu1  ;;  %7736 = vmatprep.subr.bf16.mxu1 %v7735_v19  ;;  %7844 = vmatprep.subr.bf16.mxu0 %v9250_v18 }
 0x8da   : > { %v8163_v12 = vadd.f32 %v6142_v35, %v12485_v32  ;;  %v6144_v45 = vpop.f32.mrb[147].mxu1  ;;  %7738 = vmatpush1.bf16.msra.mxu1 %v7737_v39  ;;  %v6273_v30 = vmax.f32 %v8161_v57, 0.0 }
 0x8db   : > { %v8164_v0 = vadd.f32 %v6144_v45, %v12489_v29  ;;  %v6274_v42 = vmax.f32 %v8162_v59, 0.0 }
 0x8dc   : > { %v6275_v58 = vmax.f32 %v8163_v12, 0.0 }
 0x8dd   : > { %v6276_v5 = vmax.f32 %v8164_v0, 0.0 }
 0x8de   : > { %v7741_v40 = vpack.c.bf16 %v6275_v58, %v6273_v30 }
 0x8df   : > { %v7739_v9 = vpack.c.bf16 %v6276_v5, %v6274_v42  ;;  %v6148_v56 = vpop.f32.mrb[148].mxu1 }
 0x8e0   : > { %v8165_v33 = vadd.f32 %v6148_v56, %v12485_v32  ;;  %v6150_v8 = vpop.f32.mrb[149].mxu1 }
 0x8e1   : > { %v8166_v11 = vadd.f32 %v6150_v8, %v12489_v29  ;;  %v6152_v54 = vpop.f32.mrb[150].mxu1  ;;  %7740 = vmatprep.subr.bf16.mxu1 %v7739_v9 }
 0x8e2   : > { %v8167_v1 = vadd.f32 %v6152_v54, %v12485_v32  ;;  %v6154_v7 = vpop.f32.mrb[151].mxu1  ;;  %7742 = vmatpush1.bf16.msra.mxu1 %v7741_v40  ;;  %v6277_v2 = vmax.f32 %v8165_v33, 0.0 }
 0x8e3   : > { %v8168_v46 = vadd.f32 %v6154_v7, %v12489_v29  ;;  %v6278_v41 = vmax.f32 %v8166_v11, 0.0 }
 0x8e4   : > { %v6279_v3 = vmax.f32 %v8167_v1, 0.0 }
 0x8e5   : > { %v6280_v17 = vmax.f32 %v8168_v46, 0.0 }
 0x8e6   : > { %v7745_v43 = vpack.c.bf16 %v6279_v3, %v6277_v2 }
 0x8e7   : > { %v7743_v15 = vpack.c.bf16 %v6280_v17, %v6278_v41  ;;  %v6158_v27 = vpop.f32.mrb[152].mxu1 }
 0x8e8   : > { %v8169_v52 = vadd.f32 %v6158_v27, %v12485_v32  ;;  %v6160_v23 = vpop.f32.mrb[153].mxu1 }
 0x8e9   : > { %v8170_v53 = vadd.f32 %v6160_v23, %v12489_v29  ;;  %v6162_v47 = vpop.f32.mrb[154].mxu1  ;;  %7744 = vmatprep.subr.bf16.mxu1 %v7743_v15 }
 0x8ea   : > { %v8171_v28 = vadd.f32 %v6162_v47, %v12485_v32  ;;  %v6164_v36 = vpop.f32.mrb[155].mxu1  ;;  %7746 = vmatpush1.bf16.msra.mxu1 %v7745_v43  ;;  %v6281_v25 = vmax.f32 %v8169_v52, 0.0 }
 0x8eb   : > { %v8172_v49 = vadd.f32 %v6164_v36, %v12489_v29  ;;  %v6282_v20 = vmax.f32 %v8170_v53, 0.0 }
 0x8ec   : > { %v6283_v16 = vmax.f32 %v8171_v28, 0.0 }
 0x8ed   : > { %v6284_v10 = vmax.f32 %v8172_v49, 0.0 }
 0x8ee   : > { %v7749_v55 = vpack.c.bf16 %v6283_v16, %v6281_v25 }
 0x8ef   : > { %v7747_v24 = vpack.c.bf16 %v6284_v10, %v6282_v20  ;;  %v6168_v14 = vpop.f32.mrb[156].mxu1 }
 0x8f0   : > { %v8173_v50 = vadd.f32 %v6168_v14, %v12485_v32  ;;  %v6170_v39 = vpop.f32.mrb[157].mxu1 }
 0x8f1   : > { %v8174_v19 = vadd.f32 %v6170_v39, %v12489_v29  ;;  %v6172_v51 = vpop.f32.mrb[158].mxu1  ;;  %7748 = vmatprep.subr.bf16.mxu1 %v7747_v24 }
 0x8f2   : > { %v8175_v57 = vadd.f32 %v6172_v51, %v12485_v32  ;;  %v6174_v31 = vpop.f32.mrb[159].mxu1  ;;  %7750 = vmatpush1.bf16.msra.mxu1 %v7749_v55  ;;  %v6285_v35 = vmax.f32 %v8173_v50, 0.0 }
 0x8f3   : > { %v8176_v59 = vadd.f32 %v6174_v31, %v12489_v29  ;;  %v6286_v13 = vmax.f32 %v8174_v19, 0.0 }
 0x8f4   : > { %v6287_v26 = vmax.f32 %v8175_v57, 0.0 }
 0x8f5   : > { %v6288_v12 = vmax.f32 %v8176_v59, 0.0 }
 0x8f6   : > { %v7753_v45 = vpack.c.bf16 %v6287_v26, %v6285_v35 }
 0x8f7   : > { %v7751_v62 = vpack.c.bf16 %v6288_v12, %v6286_v13  ;;  %v6178_v0 = vpop.f32.mrb[160].mxu1 }
 0x8f8   : > { %v8177_v30 = vadd.f32 %v6178_v0, %v12485_v32  ;;  %v6180_v58 = vpop.f32.mrb[161].mxu1 }
 0x8f9   : > { %v8178_v42 = vadd.f32 %v6180_v58, %v12489_v29  ;;  %v6182_v5 = vpop.f32.mrb[162].mxu1  ;;  %7752 = vmatprep.subr.bf16.mxu1 %v7751_v62 }
 0x8fa   : > { %v8179_v40 = vadd.f32 %v6182_v5, %v12485_v32  ;;  %v6184_v9 = vpop.f32.mrb[163].mxu1  ;;  %7754 = vmatpush1.bf16.msra.mxu1 %v7753_v45  ;;  %v6289_v33 = vmax.f32 %v8177_v30, 0.0 }
 0x8fb   : > { %v8180_v56 = vadd.f32 %v6184_v9, %v12489_v29  ;;  %v6290_v11 = vmax.f32 %v8178_v42, 0.0 }
 0x8fc   : > { %v6291_v8 = vmax.f32 %v8179_v40, 0.0 }
 0x8fd   : > { %v6292_v54 = vmax.f32 %v8180_v56, 0.0 }
 0x8fe   : > { %v7757_v34 = vpack.c.bf16 %v6291_v8, %v6289_v33 }
 0x8ff   : > { %v7755_v61 = vpack.c.bf16 %v6292_v54, %v6290_v11  ;;  %v6188_v38 = vpop.f32.mrb[164].mxu1 }
 0x900   : > { %v8181_v1 = vadd.f32 %v6188_v38, %v12485_v32  ;;  %v6190_v7 = vpop.f32.mrb[165].mxu1 }
 0x901   : > { %v8182_v6 = vadd.f32 %v6190_v7, %v12489_v29  ;;  %v6192_v48 = vpop.f32.mrb[166].mxu1  ;;  %7756 = vmatprep.subr.bf16.mxu1 %v7755_v61 }
 0x902   : > { %v8183_v46 = vadd.f32 %v6192_v48, %v12485_v32  ;;  %v6194_v2 = vpop.f32.mrb[167].mxu1  ;;  %7758 = vmatpush1.bf16.msra.mxu1 %v7757_v34  ;;  %v6293_v4 = vmax.f32 %v8181_v1, 0.0 }
 0x903   : > { %v8184_v3 = vadd.f32 %v6194_v2, %v12489_v29  ;;  %v6294_v17 = vmax.f32 %v8182_v6, 0.0 }
 0x904   : > { %v6295_v41 = vmax.f32 %v8183_v46, 0.0 }
 0x905   : > { %v6296_v21 = vmax.f32 %v8184_v3, 0.0 }
 0x906   : > { %v7761_v22 = vpack.c.bf16 %v6295_v41, %v6293_v4 }
 0x907   : > { %v7759_v43 = vpack.c.bf16 %v6296_v21, %v6294_v17  ;;  %v6198_v15 = vpop.f32.mrb[168].mxu1 }
 0x908   : > { %v8185_v27 = vadd.f32 %v6198_v15, %v12485_v32  ;;  %v6200_v52 = vpop.f32.mrb[169].mxu1 }
 0x909   : > { %v8186_v23 = vadd.f32 %v6200_v52, %v12489_v29  ;;  %v6202_v60 = vpop.f32.mrb[170].mxu1  ;;  %7760 = vmatprep.subr.bf16.mxu1 %v7759_v43 }
 0x90a   : > { %v8187_v53 = vadd.f32 %v6202_v60, %v12485_v32  ;;  %v6204_v47 = vpop.f32.mrb[171].mxu1  ;;  %7762 = vmatpush1.bf16.msra.mxu1 %v7761_v22  ;;  %v6297_v44 = vmax.f32 %v8185_v27, 0.0 }
 0x90b   : > { %v8188_v63 = vadd.f32 %v6204_v47, %v12489_v29  ;;  %v6298_v36 = vmax.f32 %v8186_v23, 0.0 }
 0x90c   : > { %v6299_v28 = vmax.f32 %v8187_v53, 0.0 }
 0x90d   : > { %v6300_v49 = vmax.f32 %v8188_v63, 0.0 }
 0x90e   : > { %v7765_v25 = vpack.c.bf16 %v6299_v28, %v6297_v44 }
 0x90f   : > { %v7763_v16 = vpack.c.bf16 %v6300_v49, %v6298_v36  ;;  %v6208_v37 = vpop.f32.mrb[172].mxu1 }
 0x910   : > { %v8189_v20 = vadd.f32 %v6208_v37, %v12485_v32  ;;  %v6210_v10 = vpop.f32.mrb[173].mxu1 }
 0x911   : > { %v8190_v55 = vadd.f32 %v6210_v10, %v12489_v29  ;;  %v6212_v24 = vpop.f32.mrb[174].mxu1  ;;  %7764 = vmatprep.subr.bf16.mxu1 %v7763_v16 }
 0x912   : > { %v8191_v14 = vadd.f32 %v6212_v24, %v12485_v32  ;;  %v6214_v50 = vpop.f32.mrb[175].mxu1  ;;  %7766 = vmatpush1.bf16.msra.mxu1 %v7765_v25  ;;  %v6301_v19 = vmax.f32 %v8189_v20, 0.0 }
 0x913   : > { %v8192_v39 = vadd.f32 %v6214_v50, %v12489_v29  ;;  %v6302_v57 = vmax.f32 %v8190_v55, 0.0 }
 0x914   : > { %v6303_v51 = vmax.f32 %v8191_v14, 0.0 }
 0x915   : > { %v6304_v31 = vmax.f32 %v8192_v39, 0.0 }
 0x916   : > { %v7769_v59 = vpack.c.bf16 %v6303_v51, %v6301_v19  ;;  %v7535_v51 = vld [vmem:[%s13083_s8 + $0xa0] sm:$0xff] }
 0x917   : > { %v7767_v35 = vpack.c.bf16 %v6304_v31, %v6302_v57  ;;  %v6218_v26 = vpop.f32.mrb[176].mxu1  ;;  %v7536_v57 = vld [vmem:[%s13083_s8 + $0xa8] sm:$0xff]  ;;  %v6324_v31 = vld [vmem:[%s13082_s7 + $0x18] sm:$0xff] }
 0x918   : > { %v8193_v13 = vadd.f32 %v6218_v26, %v12485_v32  ;;  %v6220_v12 = vpop.f32.mrb[177].mxu1  ;;  %v6323_v26 = vld [vmem:[%s13082_s7 + $0x10] sm:$0xff] }
 0x919   : > { %v8194_v45 = vadd.f32 %v6220_v12, %v12489_v29  ;;  %v6222_v62 = vpop.f32.mrb[178].mxu1  ;;  %7768 = vmatprep.subr.bf16.mxu1 %v7767_v35  ;;  %v7538_v35 = vld [vmem:[%s13083_s8 + $0xb8] sm:$0xff]  ;;  %v6326_v12 = vld [vmem:[%s13082_s7 + $0x28] sm:$0xff] }
 0x91a   : > { %v8195_v0 = vadd.f32 %v6222_v62, %v12485_v32  ;;  %v6224_v30 = vpop.f32.mrb[179].mxu1  ;;  %7770 = vmatpush1.bf16.msra.mxu1 %v7769_v59  ;;  %v6305_v42 = vmax.f32 %v8193_v13, 0.0  ;;  %v7537_v59 = vld [vmem:[%s13083_s8 + $0xb0] sm:$0xff]  ;;  %v7540_v62 = vld [vmem:[%s13083_s8 + $0xc8] sm:$0xff] }
 0x91b   : > { %v8196_v58 = vadd.f32 %v6224_v30, %v12489_v29  ;;  %v6306_v40 = vmax.f32 %v8194_v45, 0.0  ;;  %v7791_v13 = vpack.c.bf16 %v7538_v35, %v7537_v59  ;;  %v7539_v45 = vld [vmem:[%s13083_s8 + $0xc0] sm:$0xff]  ;;  %v7561_v59 = vld [vmem:[%s13083_s8 + $0x150] sm:$0xff] }
 0x91c   : > { %v6307_v5 = vmax.f32 %v8195_v0, 0.0  ;;  %v6325_v0 = vld [vmem:[%s13082_s7 + $0x20] sm:$0xff]  ;;  %v7794_v30 = vpack.c.bf16 %v7540_v62, %v7539_v45  ;;  %v7588_v45 = vld [vmem:[%s13083_s8 + $0x218] sm:$0xff] }
 0x91d   : > { %v6308_v9 = vmax.f32 %v8196_v58, 0.0  ;;  %v6328_v58 = vld [vmem:[%s13082_s7 + $0x38] sm:$0xff] }
 0x91e   : > { %v7773_v56 = vpack.c.bf16 %v6307_v5, %v6305_v42  ;;  %v7541_v42 = vld [vmem:[%s13083_s8 + $0xd0] sm:$0xff]  ;;  %v7542_v5 = vld [vmem:[%s13083_s8 + $0xd8] sm:$0xff] }
 0x91f   : > { %v7771_v33 = vpack.c.bf16 %v6308_v9, %v6306_v40  ;;  %v6228_v8 = vpop.f32.mrb[180].mxu1  ;;  %v6327_v40 = vld [vmem:[%s13082_s7 + $0x30] sm:$0xff]  ;;  %v7797_v9 = vpack.c.bf16 %v7542_v5, %v7541_v42  ;;  %v7564_v5 = vld [vmem:[%s13083_s8 + $0x168] sm:$0xff] }
 0x920   : > { %v8197_v11 = vadd.f32 %v6228_v8, %v12485_v32  ;;  %v6230_v54 = vpop.f32.mrb[181].mxu1  ;;  %v7544_v8 = vld [vmem:[%s13083_s8 + $0xe8] sm:$0xff] }
 0x921   : > { %v8198_v34 = vadd.f32 %v6230_v54, %v12489_v29  ;;  %v6232_v61 = vpop.f32.mrb[182].mxu1  ;;  %7772 = vmatprep.subr.bf16.mxu1 %v7771_v33  ;;  %v7543_v33 = vld [vmem:[%s13083_s8 + $0xe0] sm:$0xff] }
 0x922   : > { %v8199_v38 = vadd.f32 %v6232_v61, %v12485_v32  ;;  %v6234_v1 = vpop.f32.mrb[183].mxu1  ;;  %7774 = vmatpush1.bf16.msra.mxu1 %v7773_v56  ;;  %v6309_v6 = vmax.f32 %v8197_v11, 0.0  ;;  %v6330_v56 = vld [vmem:[%s13082_s7 + $0x48] sm:$0xff]  ;;  %v6329_v11 = vld [vmem:[%s13082_s7 + $0x40] sm:$0xff]  ;;  %v7800_v54 = vpack.c.bf16 %v7544_v8, %v7543_v33  ;;  %v7545_v61 = vld [vmem:[%s13083_s8 + $0xf0] sm:$0xff] }
 0x923   : > { %v8200_v7 = vadd.f32 %v6234_v1, %v12489_v29  ;;  %v6310_v46 = vmax.f32 %v8198_v34, 0.0  ;;  %v6332_v34 = vld [vmem:[%s13082_s7 + $0x58] sm:$0xff]  ;;  %v6331_v1 = vld [vmem:[%s13082_s7 + $0x50] sm:$0xff] }
 0x924   : > { %v6311_v48 = vmax.f32 %v8199_v38, 0.0  ;;  %v7546_v38 = vld [vmem:[%s13083_s8 + $0xf8] sm:$0xff]  ;;  %v7565_v33 = vld [vmem:[%s13083_s8 + $0x170] sm:$0xff] }
 0x925   : > { %v6312_v2 = vmax.f32 %v8200_v7, 0.0  ;;  %v7803_v7 = vpack.c.bf16 %v7546_v38, %v7545_v61  ;;  %v7592_v61 = vld [vmem:[%s13083_s8 + $0x238] sm:$0xff] }
 0x926   : > { %v7777_v3 = vpack.c.bf16 %v6311_v48, %v6309_v6  ;;  %v6334_v6 = vld [vmem:[%s13082_s7 + $0x68] sm:$0xff]  ;;  %v7547_v48 = vld [vmem:[%s13083_s8 + $0x100] sm:$0xff] }
 0x927   : > { %v7775_v4 = vpack.c.bf16 %v6312_v2, %v6310_v46  ;;  %v6238_v41 = vpop.f32.mrb[184].mxu1  ;;  %v7548_v46 = vld [vmem:[%s13083_s8 + $0x108] sm:$0xff]  ;;  %v6333_v2 = vld [vmem:[%s13082_s7 + $0x60] sm:$0xff] }
 0x928   : > { %v8201_v17 = vadd.f32 %v6238_v41, %v12485_v32  ;;  %v6240_v21 = vpop.f32.mrb[185].mxu1  ;;  %v7549_v41 = vld [vmem:[%s13083_s8 + $0x110] sm:$0xff] }
 0x929   : > { %v8202_v22 = vadd.f32 %v6240_v21, %v12489_v29  ;;  %v6242_v43 = vpop.f32.mrb[186].mxu1  ;;  %7776 = vmatprep.subr.bf16.mxu1 %v7775_v4  ;;  %v6336_v4 = vld [vmem:[%s13082_s7 + $0x78] sm:$0xff]  ;;  %v6335_v21 = vld [vmem:[%s13082_s7 + $0x70] sm:$0xff] }
 0x92a   : > { %v8203_v15 = vadd.f32 %v6242_v43, %v12485_v32  ;;  %v6244_v27 = vpop.f32.mrb[187].mxu1  ;;  %7778 = vmatpush1.bf16.msra.mxu1 %v7777_v3  ;;  %v6313_v23 = vmax.f32 %v8201_v17, 0.0  ;;  %v7806_v3 = vpack.c.bf16 %v7548_v46, %v7547_v48  ;;  %v7550_v17 = vld [vmem:[%s13083_s8 + $0x118] sm:$0xff]  ;;  %v6338_v43 = vld [vmem:[%s13082_s7 + $0x88] sm:$0xff] }
 0x92b   : > { %v8204_v52 = vadd.f32 %v6244_v27, %v12489_v29  ;;  %v6314_v53 = vmax.f32 %v8202_v22, 0.0  ;;  %v7809_v22 = vpack.c.bf16 %v7550_v17, %v7549_v41  ;;  %v6340_v27 = vld [vmem:[%s13082_s7 + $0x98] sm:$0xff]  ;;  %v7568_v46 = vld [vmem:[%s13083_s8 + $0x188] sm:$0xff]  ;;  %v7569_v17 = vld [vmem:[%s13083_s8 + $0x190] sm:$0xff] }
 0x92c   : > { %v6315_v60 = vmax.f32 %v8203_v15, 0.0  ;;  %v6337_v15 = vld [vmem:[%s13082_s7 + $0x80] sm:$0xff] }
 0x92d   : > { %v6316_v47 = vmax.f32 %v8204_v52, 0.0  ;;  %v6339_v52 = vld [vmem:[%s13082_s7 + $0x90] sm:$0xff] }
 0x92e   : > { %v7781_v63 = vpack.c.bf16 %v6315_v60, %v6313_v23  ;;  %v6484_v23 = vld [vmem:[%s13083_s8 + $0x90] sm:$0xff]  ;;  %v6485_v60 = vld [vmem:[%s13083_s8 + $0x98] sm:$0xff] }
 0x92f   : > { %v7779_v44 = vpack.c.bf16 %v6316_v47, %v6314_v53  ;;  %v6248_v28 = vpop.f32.mrb[188].mxu1  ;;  %v7845_v53 = vpack.c.bf16 %v6485_v60, %v6484_v23  ;;  %v7551_v47 = vld [vmem:[%s13083_s8 + $0x120] sm:$0xff] }
 0x930   : > { %v8205_v36 = vadd.f32 %v6248_v28, %v12485_v32  ;;  %v6250_v49 = vpop.f32.mrb[189].mxu1  ;;  %v7553_v28 = vld [vmem:[%s13083_s8 + $0x130] sm:$0xff]  ;;  %v7571_v60 = vld [vmem:[%s13083_s8 + $0x1a0] sm:$0xff] }
 0x931   : > { %v8206_v25 = vadd.f32 %v6250_v49, %v12489_v29  ;;  %v6252_v16 = vpop.f32.mrb[190].mxu1  ;;  %7780 = vmatprep.subr.bf16.mxu1 %v7779_v44  ;;  %7846 = vmatpush1.bf16.msra.mxu0 %v7845_v53 }
 0x932   : > { %v8207_v37 = vadd.f32 %v6252_v16, %v12485_v32  ;;  %v6254_v20 = vpop.f32.mrb[191].mxu1  ;;  %7782 = vmatpush1.bf16.msra.mxu1 %v7781_v63  ;;  %v6317_v55 = vmax.f32 %v8205_v36, 0.0  ;;  %v6321_v32 = vld [vmem:[%s13082_s7] sm:$0xff]  ;;  %v7552_v63 = vld [vmem:[%s13083_s8 + $0x128] sm:$0xff]  ;;  %7877 = vmatprep.subr.bf16.mxu0 %v9250_v18  ;;  %v7554_v36 = vld [vmem:[%s13083_s8 + $0x138] sm:$0xff] }
 0x933   : > { %v8208_v10 = vadd.f32 %v6254_v20, %v12489_v29  ;;  %v6318_v14 = vmax.f32 %v8206_v25, 0.0  ;;  %v7788_v29 = vpack.c.bf16 %v7536_v57, %v7535_v51  ;;  %v7812_v44 = vpack.c.bf16 %v7552_v63, %v7551_v47  ;;  %v7581_v25 = vld [vmem:[%s13083_s8 + $0x1e0] sm:$0xff]  ;;  %v7582_v16 = vld [vmem:[%s13083_s8 + $0x1e8] sm:$0xff] }
 0x934   : > { %v6319_v24 = vmax.f32 %v8207_v37, 0.0  ;;  %v7815_v49 = vpack.c.bf16 %v7554_v36, %v7553_v28  ;;  %v7878_v20 = vpack.c.bf16 %v7582_v16, %v7581_v25  ;;  %v7560_v51 = vld [vmem:[%s13083_s8 + $0x148] sm:$0xff]  ;;  %v7585_v57 = vld [vmem:[%s13083_s8 + $0x200] sm:$0xff]  ;;  %v7573_v25 = vld [vmem:[%s13083_s8 + $0x1b0] sm:$0xff] }
 0x935   : > { %v6320_v50 = vmax.f32 %v8208_v10, 0.0  ;;  %v7572_v63 = vld [vmem:[%s13083_s8 + $0x1a8] sm:$0xff] }
 0x936   : > { %v7785_v39 = vpack.c.bf16 %v6319_v24, %v6317_v55  ;;  %v7583_v55 = vld [vmem:[%s13083_s8 + $0x1f0] sm:$0xff]  ;;  %v7584_v24 = vld [vmem:[%s13083_s8 + $0x1f8] sm:$0xff]  ;;  %v7598_v28 = vld [vmem:[%s13083_s8 + $0x268] sm:$0xff] }
 0x937   : > { %v7783_v19 = vpack.c.bf16 %v6320_v50, %v6318_v14  ;;  %v7559_v50 = vld [vmem:[%s13083_s8 + $0x140] sm:$0xff] }
 0x939   : > { %7784 = vmatprep.subr.bf16.mxu1 %v7783_v19 }
 0x93a   : > { %7786 = vmatpush1.bf16.msra.mxu1 %v7785_v39  ;;  %v7881_v39 = vpack.c.bf16 %v7584_v24, %v7583_v55  ;;  %v7600_v55 = vld [vmem:[%s13083_s8 + $0x278] sm:$0xff] }
 0x93b   : > { %7787 = vmatprep.subr.bf16.mxu1 %v9250_v18 }
 0x93d   : > { %6406 = vmatmul.mubr.f32.vlgmr.msra.gmra.mrb[192].mxu1 %v6321_v32  ;;  %v7586_v32 = vld [vmem:[%s13083_s8 + $0x208] sm:$0xff] }
 0x93e   : > { %6411 = vmatprep.mubr.f32.mxu1 %v6324_v31  ;;  %7789 = vmatpush1.bf16.msra.mxu1 %v7788_v29  ;;  %v7848_v31 = vpack.c.bf16 %v7560_v51, %v7559_v50  ;;  %v7884_v35 = vpack.c.bf16 %v7586_v32, %v7585_v57  ;;  %v7576_v51 = vld [vmem:[%s13083_s8 + $0x1c8] sm:$0xff] }
 0x93f   : > { %7790 = vmatprep.subr.bf16.mxu1 %v9250_v18 }
 0x941   : > { %6412 = vmatmul.mubr.f32.gmra.mrb[194].mxu1 %v6323_v26 }
 0x942   : > { %6417 = vmatprep.mubr.f32.mxu1 %v6326_v12  ;;  %7792 = vmatpush1.bf16.msra.mxu1 %v7791_v13  ;;  %v7562_v13 = vld [vmem:[%s13083_s8 + $0x158] sm:$0xff]  ;;  %v7587_v12 = vld [vmem:[%s13083_s8 + $0x210] sm:$0xff] }
 0x943   : > { %7793 = vmatprep.subr.bf16.mxu1 %v9250_v18 }
 0x945   : > { %6418 = vmatmul.mubr.f32.gmra.mrb[196].mxu1 %v6325_v0  ;;  %v7851_v0 = vpack.c.bf16 %v7562_v13, %v7561_v59 }
 0x946   : > { %6423 = vmatprep.mubr.f32.mxu1 %v6328_v58  ;;  %7795 = vmatpush1.bf16.msra.mxu1 %v7794_v30  ;;  %v7563_v30 = vld [vmem:[%s13083_s8 + $0x160] sm:$0xff]  ;;  %v7887_v58 = vpack.c.bf16 %v7588_v45, %v7587_v12  ;;  %v7605_v12 = vld [vmem:[%s13083_s8 + $0x290] sm:$0xff]  ;;  %v7606_v45 = vld [vmem:[%s13083_s8 + $0x298] sm:$0xff] }
 0x947   : > { %7796 = vmatprep.subr.bf16.mxu1 %v9250_v18 }
 0x949   : > { %6424 = vmatmul.mubr.f32.gmra.mrb[198].mxu1 %v6327_v40  ;;  %v7589_v40 = vld [vmem:[%s13083_s8 + $0x220] sm:$0xff] }
 0x94a   : > { %6429 = vmatprep.mubr.f32.mxu1 %v6330_v56  ;;  %7798 = vmatpush1.bf16.msra.mxu1 %v7797_v9  ;;  %v7590_v9 = vld [vmem:[%s13083_s8 + $0x228] sm:$0xff]  ;;  %v7854_v56 = vpack.c.bf16 %v7564_v5, %v7563_v30  ;;  %v7610_v5 = vld [vmem:[%s13083_s8 + $0x2b8] sm:$0xff] }
 0x94b   : > { %7799 = vmatprep.subr.bf16.mxu1 %v9250_v18  ;;  %v7890_v8 = vpack.c.bf16 %v7590_v9, %v7589_v40  ;;  %v7608_v30 = vld [vmem:[%s13083_s8 + $0x2a8] sm:$0xff]  ;;  %v7611_v9 = vld [vmem:[%s13083_s8 + $0x2c0] sm:$0xff] }
 0x94d   : > { %6430 = vmatmul.mubr.f32.gmra.mrb[200].mxu1 %v6329_v11 }
 0x94e   : > { %6435 = vmatprep.mubr.f32.mxu1 %v6332_v34  ;;  %7801 = vmatpush1.bf16.msra.mxu1 %v7800_v54  ;;  %v7566_v54 = vld [vmem:[%s13083_s8 + $0x178] sm:$0xff]  ;;  %v7591_v34 = vld [vmem:[%s13083_s8 + $0x230] sm:$0xff] }
 0x94f   : > { %7802 = vmatprep.subr.bf16.mxu1 %v9250_v18 }
 0x951   : > { %6436 = vmatmul.mubr.f32.gmra.mrb[202].mxu1 %v6331_v1  ;;  %v7857_v1 = vpack.c.bf16 %v7566_v54, %v7565_v33 }
 0x952   : > { %6441 = vmatprep.mubr.f32.mxu1 %v6334_v6  ;;  %7804 = vmatpush1.bf16.msra.mxu1 %v7803_v7  ;;  %v7567_v7 = vld [vmem:[%s13083_s8 + $0x180] sm:$0xff]  ;;  %v7893_v6 = vpack.c.bf16 %v7592_v61, %v7591_v34  ;;  %v7616_v61 = vld [vmem:[%s13083_s8 + $0x2e8] sm:$0xff] }
 0x953   : > { %7805 = vmatprep.subr.bf16.mxu1 %v9250_v18  ;;  %v7860_v41 = vpack.c.bf16 %v7568_v46, %v7567_v7  ;;  %v7615_v34 = vld [vmem:[%s13083_s8 + $0x2e0] sm:$0xff]  ;;  %v7618_v7 = vld [vmem:[%s13083_s8 + $0x2f8] sm:$0xff]  ;;  %v7620_v46 = vld [vmem:[%s13083_s8 + $0x308] sm:$0xff] }
 0x955   : > { %6442 = vmatmul.mubr.f32.gmra.mrb[204].mxu1 %v6333_v2  ;;  %v7593_v2 = vld [vmem:[%s13083_s8 + $0x240] sm:$0xff] }
 0x956   : > { %6447 = vmatprep.mubr.f32.mxu1 %v6336_v4  ;;  %7807 = vmatpush1.bf16.msra.mxu1 %v7806_v3  ;;  %v7594_v3 = vld [vmem:[%s13083_s8 + $0x248] sm:$0xff] }
 0x957   : > { %7808 = vmatprep.subr.bf16.mxu1 %v9250_v18 }
 0x959   : > { %6448 = vmatmul.mubr.f32.gmra.mrb[206].mxu1 %v6335_v21  ;;  %v7896_v21 = vpack.c.bf16 %v7594_v3, %v7593_v2  ;;  %v7621_v3 = vld [vmem:[%s13083_s8 + $0x310] sm:$0xff] }
 0x95a   : > { %6453 = vmatprep.mubr.f32.mxu1 %v6338_v43  ;;  %7810 = vmatpush1.bf16.msra.mxu1 %v7809_v22  ;;  %v7570_v43 = vld [vmem:[%s13083_s8 + $0x198] sm:$0xff] }
 0x95b   : > { %7811 = vmatprep.subr.bf16.mxu1 %v9250_v18  ;;  %v7863_v23 = vpack.c.bf16 %v7570_v43, %v7569_v17  ;;  %v6993_v17 = vld [vmem:[%s13085_s10] sm:$0xff]  ;;  %v6996_v43 = vld [vmem:[%s13085_s10 + $0x18] sm:$0xff] }
 0x95d   : > { %6454 = vmatmul.mubr.f32.gmra.mrb[208].mxu1 %v6337_v15  ;;  %v7595_v15 = vld [vmem:[%s13083_s8 + $0x250] sm:$0xff] }
 0x95e   : > { %6459 = vmatprep.mubr.f32.mxu1 %v6340_v27  ;;  %7813 = vmatpush1.bf16.msra.mxu1 %v7812_v44  ;;  %v7596_v27 = vld [vmem:[%s13083_s8 + $0x258] sm:$0xff]  ;;  %v7597_v44 = vld [vmem:[%s13083_s8 + $0x260] sm:$0xff] }
 0x95f   : > { %7814 = vmatprep.subr.bf16.mxu1 %v9250_v18  ;;  %v7899_v53 = vpack.c.bf16 %v7596_v27, %v7595_v15  ;;  %v7902_v16 = vpack.c.bf16 %v7598_v28, %v7597_v44  ;;  %v6997_v27 = vld [vmem:[%s13085_s10 + $0x20] sm:$0xff]  ;;  %v7002_v44 = vld [vmem:[%s13085_s10 + $0x48] sm:$0xff] }
 0x961   : > { %6460 = vmatmul.mubr.f32.gmra.mrb[210].mxu1 %v6339_v52 }
 0x962   : > { %7816 = vmatpush1.bf16.msra.mxu1 %v7815_v49  ;;  %v7866_v49 = vpack.c.bf16 %v7572_v63, %v7571_v60  ;;  %v6999_v60 = vld [vmem:[%s13085_s10 + $0x30] sm:$0xff]  ;;  %v7001_v63 = vld [vmem:[%s13085_s10 + $0x40] sm:$0xff] }
 0x963   : > { %7847 = vmatprep.subr.bf16.mxu1 %v9250_v18  ;;  %v7953_v28 = vpack.c.bf16 %v7002_v44, %v7001_v63 }
 0xa10   : > { %v6407_v37 = vpop.f32.mrb[192].mxu1 }
 0xa11   : > { %v6409_v10 = vpop.f32.mrb[193].mxu1 }
 0xa12   : > { %7557 = vmatprep.mubr.msk.f32.mxu0 %vm6507_vm6, %v6409_v10  ;;  %v7599_v10 = vld [vmem:[%s13083_s8 + $0x270] sm:$0xff] }
 0xa13   : > { %6660 = vmatmul.mubr.f32.vlgmr.msra.gmra.mrb[160].mxu0 %v6407_v37  ;;  %v7905_v50 = vpack.c.bf16 %v7600_v55, %v7599_v10  ;;  %v7007_v10 = vld [vmem:[%s13085_s10 + $0x70] sm:$0xff]  ;;  %v7099_v55 = vld [vmem:[%s13087_s12] sm:$0xff] }
 0xa14   : > { %v6413_v14 = vpop.f32.mrb[194].mxu1  ;;  %7879 = vmatpush1.bf16.msra.mxu0 %v7878_v20  ;;  %v7574_v20 = vld [vmem:[%s13083_s8 + $0x1b8] sm:$0xff] }
 0xa15   : > { %v6415_v19 = vpop.f32.mrb[195].mxu1  ;;  %7880 = vmatprep.subr.bf16.mxu0 %v9250_v18 }
 0xa16   : > { %7558 = vmatprep.mubr.msk.f32.mxu0 %vm6507_vm6, %v6415_v19  ;;  %v7575_v19 = vld [vmem:[%s13083_s8 + $0x1c0] sm:$0xff] }
 0xa17   : > { %6665 = vmatmul.mubr.f32.gmra.mrb[162].mxu0 %v6413_v14  ;;  %v7869_v14 = vpack.c.bf16 %v7574_v20, %v7573_v25  ;;  %v7872_v32 = vpack.c.bf16 %v7576_v51, %v7575_v19  ;;  %v7103_v51 = vld [vmem:[%s13087_s12 + $0x20] sm:$0xff] }
 0xa18   : > { %v6419_v29 = vpop.f32.mrb[196].mxu1  ;;  %7882 = vmatpush1.bf16.msra.mxu0 %v7881_v39 }
 0xa19   : > { %v6421_v26 = vpop.f32.mrb[197].mxu1  ;;  %7883 = vmatprep.subr.bf16.mxu0 %v9250_v18 }
 0xa1a   : > { %7555 = vmatprep.mubr.msk.f32.mxu1 %vm6507_vm6, %v6421_v26  ;;  %v7604_v26 = vld [vmem:[%s13083_s8 + $0x288] sm:$0xff] }
 0xa1b   : > { %6579 = vmatmul.mubr.f32.vlgmr.msra.gmra.mrb[212].mxu1 %v6419_v29  ;;  %v7577_v29 = vld [vmem:[%s13083_s8 + $0x1d0] sm:$0xff] }
 0xa1c   : > { %7849 = vmatpush1.bf16.msra.mxu1 %v7848_v31  ;;  %v6425_v62 = vpop.f32.mrb[198].mxu1  ;;  %7885 = vmatpush1.bf16.msra.mxu0 %v7884_v35  ;;  %v7578_v31 = vld [vmem:[%s13083_s8 + $0x1d8] sm:$0xff]  ;;  %v7603_v35 = vld [vmem:[%s13083_s8 + $0x280] sm:$0xff] }
 0xa1d   : > { %v6427_v42 = vpop.f32.mrb[199].mxu1  ;;  %7850 = vmatprep.subr.bf16.mxu1 %v9250_v18  ;;  %7886 = vmatprep.subr.bf16.mxu0 %v9250_v18  ;;  %v7875_v59 = vpack.c.bf16 %v7578_v31, %v7577_v29  ;;  %v7908_v13 = vpack.c.bf16 %v7604_v26, %v7603_v35  ;;  %v7105_v29 = vld [vmem:[%s13087_s12 + $0x30] sm:$0xff]  ;;  %v7106_v31 = vld [vmem:[%s13087_s12 + $0x38] sm:$0xff] }
 0xa1e   : > { %7556 = vmatprep.mubr.msk.f32.mxu1 %vm6507_vm6, %v6427_v42  ;;  %v7609_v42 = vld [vmem:[%s13083_s8 + $0x2b0] sm:$0xff] }
 0xa1f   : > { %6584 = vmatmul.mubr.f32.gmra.mrb[214].mxu1 %v6425_v62  ;;  %v7911_v62 = vpack.c.bf16 %v7606_v45, %v7605_v12  ;;  %v7917_v40 = vpack.c.bf16 %v7610_v5, %v7609_v42 }
 0xa20   : > { %7852 = vmatpush1.bf16.msra.mxu1 %v7851_v0  ;;  %7888 = vmatpush1.bf16.msra.mxu0 %v7887_v58  ;;  %v12801_v11 = vpop.f32.mrb[200].mxu1  ;;  %v7607_v0 = vld [vmem:[%s13083_s8 + $0x2a0] sm:$0xff] }
 0xa21   : > { %7853 = vmatprep.subr.bf16.mxu1 %v9250_v18  ;;  %7889 = vmatprep.subr.bf16.mxu0 %v9250_v18  ;;  %v6433_v38 = vpop.f32.mrb[201].mxu1  ;;  %v7914_v58 = vpack.c.bf16 %v7608_v30, %v7607_v0 }
 0xa22   : > { %7579 = vmatprep.mubr.msk.f32.mxu1 %vm6507_vm6, %v6433_v38  ;;  %v7926_v38 = vpack.c.bf16 %v7616_v61, %v7615_v34 }
 0xa24   : > { %7855 = vmatpush1.bf16.msra.mxu1 %v7854_v56  ;;  %7891 = vmatpush1.bf16.msra.mxu0 %v7890_v8  ;;  %v12818_v48 = vpop.f32.mrb[202].mxu1  ;;  %v7612_v56 = vld [vmem:[%s13083_s8 + $0x2c8] sm:$0xff]  ;;  %v7613_v8 = vld [vmem:[%s13083_s8 + $0x2d0] sm:$0xff] }
 0xa25   : > { %7856 = vmatprep.subr.bf16.mxu1 %v9250_v18  ;;  %7892 = vmatprep.subr.bf16.mxu0 %v9250_v18  ;;  %v12831_v4 = vpop.f32.mrb[203].mxu1  ;;  %v7920_v33 = vpack.c.bf16 %v7612_v56, %v7611_v9 }
 0xa28   : > { %7858 = vmatpush1.bf16.msra.mxu1 %v7857_v1  ;;  %7894 = vmatpush1.bf16.msra.mxu0 %v7893_v6  ;;  %v6443_v22 = vpop.f32.mrb[204].mxu1  ;;  %v7617_v1 = vld [vmem:[%s13083_s8 + $0x2f0] sm:$0xff] }
 0xa29   : > { %7859 = vmatprep.subr.bf16.mxu1 %v9250_v18  ;;  %7895 = vmatprep.subr.bf16.mxu0 %v9250_v18  ;;  %v6445_v52 = vpop.f32.mrb[205].mxu1  ;;  %v7929_v6 = vpack.c.bf16 %v7618_v7, %v7617_v1 }
 0xa2a   : > { %7601 = vmatprep.mubr.msk.f32.mxu0 %vm6507_vm6, %v6445_v52  ;;  %v6998_v52 = vld [vmem:[%s13085_s10 + $0x28] sm:$0xff] }
 0xa2c   : > { %7861 = vmatpush1.bf16.msra.mxu1 %v7860_v41  ;;  %7897 = vmatpush1.bf16.msra.mxu0 %v7896_v21  ;;  %v6449_v47 = vpop.f32.mrb[206].mxu1  ;;  %v6994_v21 = vld [vmem:[%s13085_s10 + $0x8] sm:$0xff] }
 0xa2d   : > { %7862 = vmatprep.subr.bf16.mxu1 %v9250_v18  ;;  %7898 = vmatprep.subr.bf16.mxu0 %v9250_v18  ;;  %v6451_v36 = vpop.f32.mrb[207].mxu1 }
 0xa30   : > { %7864 = vmatpush1.bf16.msra.mxu1 %v7863_v23  ;;  %7900 = vmatpush1.bf16.msra.mxu0 %v7899_v53  ;;  %v12865_v37 = vpop.f32.mrb[208].mxu1  ;;  %v7945_v23 = vpack.c.bf16 %v6998_v52, %v6997_v27  ;;  %v7000_v53 = vld [vmem:[%s13085_s10 + $0x38] sm:$0xff]  ;;  %v7109_v27 = vld [vmem:[%s13087_s12 + $0x50] sm:$0xf]  ;;  %v7626_v52 = vld [vmem:[%s13086_s11] ss:$0 sm:$0xff] }
 0xa31   : > { %7865 = vmatprep.subr.bf16.mxu1 %v9250_v18  ;;  %7901 = vmatprep.subr.bf16.mxu0 %v9250_v18  ;;  %v6457_v24 = vpop.f32.mrb[209].mxu1 }
 0xa34   : > { %7867 = vmatpush1.bf16.msra.mxu1 %v7866_v49  ;;  %7903 = vmatpush1.bf16.msra.mxu0 %v7902_v16  ;;  %v12878_v39 = vpop.f32.mrb[210].mxu1  ;;  %v7004_v49 = vld [vmem:[%s13085_s10 + $0x58] sm:$0xff]  ;;  %v7005_v16 = vld [vmem:[%s13085_s10 + $0x60] sm:$0xff] }
 0xa35   : > { %7868 = vmatprep.subr.bf16.mxu1 %v9250_v18  ;;  %7904 = vmatprep.subr.bf16.mxu0 %v9250_v18  ;;  %v12888_v57 = vpop.f32.mrb[211].mxu1 }
 0xa38   : > { %7870 = vmatpush1.bf16.msra.mxu1 %v7869_v14  ;;  %7906 = vmatpush1.bf16.msra.mxu0 %v7905_v50  ;;  %v7101_v14 = vld [vmem:[%s13087_s12 + $0x10] sm:$0xff] }
 0xa39   : > { %7871 = vmatprep.subr.bf16.mxu1 %v9250_v18 }
 0xa3b   : > { %6866 = vmatmul.mubr.f32.vlgmr.msra.gmra.mrb[164].mxu0 %v6443_v22  ;;  %v7937_v22 = vpack.c.bf16 %v6994_v21, %v6993_v17 }
 0xa3c   : > { %7873 = vmatpush1.bf16.msra.mxu1 %v7872_v32  ;;  %7602 = vmatprep.mubr.msk.f32.mxu0 %vm6507_vm6, %v6451_v36  ;;  %v7003_v36 = vld [vmem:[%s13085_s10 + $0x50] sm:$0xff] }
 0xa3d   : > { %7874 = vmatprep.subr.bf16.mxu1 %v9250_v18  ;;  %7938 = vmatprep.subr.bf16.mxu0 %v7937_v22  ;;  %v7957_v25 = vpack.c.bf16 %v7004_v49, %v7003_v36 }
 0xa3e   : > { %7940 = vmatpush3.bf16.msra.mxu0 %v7937_v22  ;;  %v7107_v22 = vld [vmem:[%s13087_s12 + $0x40] sm:$0xff] }
 0xa3f   : > { %6871 = vmatmul.mubr.f32.gmra.mrb[166].mxu0 %v6449_v47  ;;  %v7949_v47 = vpack.c.bf16 %v7000_v53, %v6999_v60 }
 0xa40   : > { %7876 = vmatpush1.bf16.msra.mxu1 %v7875_v59  ;;  %v7977_v59 = vpack.c.bf16 %v7106_v31, %v7105_v29 }
 0xa41   : > { %7907 = vmatprep.subr.bf16.mxu1 %v9250_v18 }
 0xa43   : > { %6762 = vmatmul.mubr.f32.vlgmr.msra.gmra.mrb[216].mxu1 %v12801_v11  ;;  %v7614_v11 = vld [vmem:[%s13083_s8 + $0x2d8] sm:$0xff] }
 0xa44   : > { %7909 = vmatpush1.bf16.msra.mxu1 %v7908_v13  ;;  %7580 = vmatprep.mubr.msk.f32.mxu1 %vm6507_vm6, %v12831_v4  ;;  %v7923_v54 = vpack.c.bf16 %v7614_v11, %v7613_v8  ;;  %v7622_v4 = vld [vmem:[%s13083_s8 + $0x318] sm:$0xff] }
 0xa45   : > { %7910 = vmatprep.subr.bf16.mxu1 %v9250_v18  ;;  %v7935_v41 = vpack.c.bf16 %v7622_v4, %v7621_v3 }
 0xa47   : > { %6767 = vmatmul.mubr.f32.gmra.mrb[218].mxu1 %v12818_v48  ;;  %v7619_v48 = vld [vmem:[%s13083_s8 + $0x300] sm:$0xff] }
 0xa48   : > { %7912 = vmatpush1.bf16.msra.mxu1 %v7911_v62  ;;  %7623 = vmatprep.mubr.msk.f32.mxu1 %vm6507_vm6, %v6457_v24  ;;  %v7932_v2 = vpack.c.bf16 %v7620_v46, %v7619_v48  ;;  %v7100_v24 = vld [vmem:[%s13087_s12 + $0x8] sm:$0xff] }
 0xa49   : > { %7913 = vmatprep.subr.bf16.mxu1 %v9250_v18  ;;  %v7965_v50 = vpack.c.bf16 %v7100_v24, %v7099_v55 }
 0xa4c   : > { %7915 = vmatpush1.bf16.msra.mxu1 %v7914_v58 }
 0xa4d   : > { %7916 = vmatprep.subr.bf16.mxu1 %v9250_v18 }
 0xa50   : > { %7918 = vmatpush1.bf16.msra.mxu1 %v7917_v40 }
 0xa51   : > { %7919 = vmatprep.subr.bf16.mxu1 %v9250_v18 }
 0xa54   : > { %7921 = vmatpush1.bf16.msra.mxu1 %v7920_v33 }
 0xa55   : > { %7922 = vmatprep.subr.bf16.mxu1 %v9250_v18 }
 0xa58   : > { %7924 = vmatpush1.bf16.msra.mxu1 %v7923_v54 }
 0xa59   : > { %7925 = vmatprep.subr.bf16.mxu1 %v9250_v18 }
 0xa5c   : > { %7927 = vmatpush1.bf16.msra.mxu1 %v7926_v38 }
 0xa5d   : > { %7928 = vmatprep.subr.bf16.mxu1 %v9250_v18 }
 0xa60   : > { %7930 = vmatpush1.bf16.msra.mxu1 %v7929_v6  ;;  %v7625_v6 = vld [vmem:[%s13084_s9] ss:$0 sm:$0xff] }
 0xa61   : > { %7931 = vmatprep.subr.bf16.mxu1 %v9250_v18 }
 0xa64   : > { %7933 = vmatpush1.bf16.msra.mxu1 %v7932_v2 }
 0xa65   : > { %7934 = vmatprep.subr.bf16.mxu1 %v9250_v18  ;;  %v6995_v18 = vld [vmem:[%s13085_s10 + $0x10] sm:$0xff] }
 0xa66   : > { %v7941_v15 = vpack.c.bf16 %v6996_v43, %v6995_v18  ;;  %v7108_v43 = vld [vmem:[%s13087_s12 + $0x48] sm:$0xff] }
 0xa68   : > { %7936 = vmatpush1.bf16.msra.mxu1 %v7935_v41  ;;  %7942 = vmatprep.subr.bf16.mxu0 %v7941_v15 }
 0xa69   : > { %7944 = vmatpush3.bf16.msra.mxu0 %v7941_v15  ;;  %7966 = vmatprep.subr.bf16.mxu1 %v7965_v50  ;;  %v7981_v15 = vpack.c.bf16 %v7108_v43, %v7107_v22 }
 0xa6a   : > { %7946 = vmatprep.subr.bf16.mxu0 %v7945_v23 }
 0xa6b   : > { %6970 = vmatmul.mubr.f32.vlgmr.msra.gmra.mrb[220].mxu1 %v12865_v37  ;;  %v7006_v37 = vld [vmem:[%s13085_s10 + $0x68] sm:$0xff] }
 0xa6c   : > { %7624 = vmatprep.mubr.msk.f32.mxu1 %vm6507_vm6, %v12888_v57  ;;  %v7961_v20 = vpack.c.bf16 %v7006_v37, %v7005_v16  ;;  %v7104_v57 = vld [vmem:[%s13087_s12 + $0x28] sm:$0xff]  ;;  %7968 = vmatpush3.bf16.msra.mxu1 %v7965_v50 }
 0xa6d   : > { %7948 = vmatpush3.bf16.msra.mxu0 %v7945_v23  ;;  %v7973_v32 = vpack.c.bf16 %v7104_v57, %v7103_v51 }
 0xa6e   : > { %7950 = vmatprep.subr.bf16.mxu0 %v7949_v47 }
 0xa6f   : > { %6975 = vmatmul.mubr.f32.gmra.mrb[222].mxu1 %v12878_v39  ;;  %v7102_v39 = vld [vmem:[%s13087_s12 + $0x18] sm:$0xff] }
 0xa70   : > { %v7969_v19 = vpack.c.bf16 %v7102_v39, %v7101_v14 }
 0xa71   : > { %7952 = vmatpush3.bf16.msra.mxu0 %v7949_v47 }
 0xa72   : > { %7954 = vmatprep.subr.bf16.mxu0 %v7953_v28  ;;  %7970 = vmatprep.subr.bf16.mxu1 %v7969_v19 }
 0xa73   : > { %7972 = vmatpush3.bf16.msra.mxu1 %v7969_v19 }
 0xa74   : > { %7974 = vmatprep.subr.bf16.mxu1 %v7973_v32 }
 0xa75   : > { %7956 = vmatpush3.bf16.msra.mxu0 %v7953_v28  ;;  %v7629_v28 = vld [vmem:[%s13088_s13] ss:$0 sm:$0xff] }
 0xa76   : > { %7958 = vmatprep.subr.bf16.mxu0 %v7957_v25 }
 0xa77   : > { %7976 = vmatpush3.bf16.msra.mxu1 %v7973_v32 }
 0xa78   : > { %7978 = vmatprep.subr.bf16.mxu1 %v7977_v59 }
 0xa79   : > { %7960 = vmatpush3.bf16.msra.mxu0 %v7957_v25 }
 0xa7a   : > { %7962 = vmatprep.subr.bf16.mxu0 %v7961_v20 }
 0xa7b   : > { %7980 = vmatpush3.bf16.msra.mxu1 %v7977_v59 }
 0xa7c   : > { %7982 = vmatprep.subr.bf16.mxu1 %v7981_v15 }
 0xa7d   : > { %7964 = vmatpush3.bf16.msra.mxu0 %v7961_v20 }
 0xa7e   : > { %7693 = vmatprep.subr.mxu0 %v7007_v10 }
 0xa7f   : > { %7984 = vmatpush3.bf16.msra.mxu1 %v7981_v15 }
 0xa80   : > { %7718 = vmatprep.subr.msk.mxu1 %vm4685_vm4, %v7109_v27 }
 0xa81   : > { %7694 = vmatpush3.msra.mxu0 %v7007_v10 }
 0xa83   : > { %7719 = vmatpush3.msk.msra.mxu1 %vm4685_vm4, %v7109_v27 }
 0xae6   : > { %v6661_v35 = vpop.f32.mrb[160].mxu0 }
 0xae7   : > { %v6663_v26 = vpop.f32.mrb[161].mxu0 }
 0xaea   : > { %v6666_v13 = vpop.f32.mrb[162].mxu0 }
 0xaeb   : > { %v6668_v12 = vpop.f32.mrb[163].mxu0 }
 0xaee   : > { %v6580_v45 = vpop.f32.mrb[212].mxu1 }
 0xaef   : > { %v6662_v62 = vadd.f32 %v6661_v35, %v6580_v45  ;;  %v6582_v0 = vpop.f32.mrb[213].mxu1 }
 0xaf2   : > { %v6585_v30 = vpop.f32.mrb[214].mxu1 }
 0xaf3   : > { %v6667_v58 = vadd.f32 %v6666_v13, %v6585_v30  ;;  %v6587_v42 = vpop.f32.mrb[215].mxu1 }
 0xb0e   : > { %v6867_v5 = vpop.f32.mrb[164].mxu0 }
 0xb0f   : > { %v6869_v40 = vpop.f32.mrb[165].mxu0 }
 0xb12   : > { %v6872_v9 = vpop.f32.mrb[166].mxu0 }
 0xb13   : > { %v6874_v56 = vpop.f32.mrb[167].mxu0 }
 0xb16   : > { %v6763_v33 = vpop.f32.mrb[216].mxu1 }
 0xb17   : > { %v6772_v8 = vadd.f32 %v6763_v33, %v6662_v62  ;;  %v6765_v11 = vpop.f32.mrb[217].mxu1 }
 0xb19   : > { %v6876_v54 = vadd.f32 %v6867_v5, %v6772_v8 }
 0xb1a   : > { %v6768_v34 = vpop.f32.mrb[218].mxu1 }
 0xb1b   : > { %v6773_v61 = vadd.f32 %v6768_v34, %v6667_v58  ;;  %v6770_v38 = vpop.f32.mrb[219].mxu1 }
 0xb1d   : > { %v6877_v1 = vadd.f32 %v6872_v9, %v6773_v61 }
 0xb3e   : > { %v6971_v7 = vpop.f32.mrb[220].mxu1 }
 0xb3f   : > { %v6980_v48 = vadd.f32 %v6971_v7, %v6876_v54  ;;  %v6973_v46 = vpop.f32.mrb[221].mxu1 }
 0xb41   : > { %v6989_v2 = vadd.f32 %v7625_v6, %v6980_v48 }
 0xb42   : > { %v6976_v3 = vpop.f32.mrb[222].mxu1 }
 0xb43   : > { %v6991_v4 = vmax.f32 %v6989_v2, 0.0  ;;  %v6981_v41 = vadd.f32 %v6976_v3, %v6877_v1  ;;  %v6978_v17 = vpop.f32.mrb[223].mxu1 }
 0xb45   : > { %v6990_v21 = vadd.f32 %v7625_v6, %v6981_v41  ;;  %7695 = vmatprep.mubr.msk.f32.mxu0 %vm7015_vm7, %v6991_v4 }
 0xb47   : > { %v6992_v18 = vmax.f32 %v6990_v21, 0.0 }
 0xb49   : > { %7696 = vmatmul.mubr.msk.f32.vlgmr.msra.gmra.mrb[168].mxu0 %vm7015_vm7, %v6992_v18 }
 0xc1c   : > { %v7697_v23 = vpop.f32.mrb[168].mxu0 }
 0xc1d   : > { %v7094_v60 = vadd.f32 %v7697_v23, %v7626_v52  ;;  %v7088_v53 = vpop.f32.mrb[169].mxu0 }
 0xc1e   : > { %v7089_v47 = vadd.f32 %v7626_v52, %v7088_v53 }
 0xc1f   : > { %v7098_v44 = vmax.f32 %v7094_v60, 0.0 }
 0xc20   : > { %v7097_v63 = vmax.f32 %v7089_v47, 0.0 }
 0xc22   : > { %7720 = vmatprep.mubr.msk.f32.mxu1 %vm7117_vm8, %v7097_v63 }
 0xc23   : > { %7721 = vmatmul.mubr.msk.f32.vlgmr.msra.gmra.mrb[224].mxu1 %vm7117_vm8, %v7098_v44 }
 0xcf6   : > { %v7722_v36 = vpop.f32.mrb[224].mxu1 }
 0xcf7   : > { %v7193_v49 = vpop.f32.mrb[225].mxu1  ;;  %v7199_v16 = vadd.f32 %v7722_v36, %v7629_v28 }
 0xcf8   : > { %v7194_v25 = vadd.f32 %v7629_v28, %v7193_v49 }
 0xcf9   : > { %7203 = vst [vmem:[%s469_s28 + $0x8] sm:$0xff] %v7199_v16 }
 0xcfa   : > { %7202 = vst [vmem:[%s469_s28] sm:$0xff] %v7194_v25 }
 0xcfb PF: > { %s24_s29 = sadd.s32 1, %s9247_s29  }
 0xcfc   : > { %p21_p5 = scmp.ge.s32.totalorder %s24_s29, 4  }
 0xcfe   :  { %23 = sbr.rel (!%p21_p5) target bundleno = 1 (0x1), region = 110 }

</bundles_post_ra>
